<compile_context>
chip_gen: v7x
topology: tpu7x:2x2x1
jax: 0.10.0
libtpu: 0.0.40
codegen_flags: <defaults>
</compile_context>

<pallas_src>
import numpy as np
import jax
import jax.numpy as jnp
from jax.experimental import pallas as pl
from jax.experimental.pallas import tpu as pltpu


STATE_SHAPE = (4, 42, 42)          # (C, H, W)
ACTION_DIM = 6
LSTM_HIDDEN = 256
CONV_CH = 32
KS = 3
HEAD_W = 128                       # lane-dense fused (policy | value) head width
N_INPUTS = 3 + 4 * 3 + 6           # x,h0,c0 + 4*(S,W,b) + lstm/head slabs


def _round_up(n, m):
    return ((n + m - 1) // m) * m


def _geometry(batch):
    """Per-layer conv geometry + padded slab shapes (all init-time Python ints)."""
    c, h, w = STATE_SHAPE
    in_rows = batch * h                                # rows of the x2d slab
    in_cols = _round_up(w * c, 128)                    # 168 -> 256
    geom = []
    for idx in range(4):
        pad = 0 if idx == 0 else 1
        ho = (h + 2 * pad - KS) // 2 + 1
        wo = (w + 2 * pad - KS) // 2 + 1
        geom.append(dict(hin=h, win=w, pad=pad, ho=ho, wo=wo,
                         in_rows=in_rows, inw=in_cols,
                         bhop=_round_up(batch * ho, 8),
                         outw=_round_up(wo * CONV_CH, 128)))
        h, w = ho, wo
        in_rows = geom[-1]['bhop']
        in_cols = geom[-1]['outw']
    assert geom[3]['ho'] == 3 and geom[3]['wo'] == 3          # 3*3*32 = 288
    return geom


# ---------------------------------------------------------------------------
# Init-time weight packing (all transposes / tap embedding / padding ONCE here)
# ---------------------------------------------------------------------------
def _pack_conv(w_oihw, bias, g, batch, spatial_major):
    """Build (S_stack, W_cat, bias_row) so a stride-2 conv is TWO matmuls.

    rows = S_stack @ src  selects, for every kh tap, the stride-2 input rows
    (zero row where H-padded); the three kh blocks are then placed at
    128-aligned column offsets and multiplied by W_cat, which embeds the kw
    taps / stride-2 column subsampling / zero W-padding / lane padding.
    """
    w = np.asarray(w_oihw, np.float32)
    cout, cin, ksh, ksw = w.shape
    hin, win, pad = g['hin'], g['win'], g['pad']
    ho, wo = g['ho'], g['wo']
    bhop, inw, outw, in_rows = g['bhop'], g['inw'], g['outw'], g['in_rows']

    s = np.zeros((ksh * bhop, in_rows), np.float32)
    for kh in range(ksh):
        for b in range(batch):
            for oh in range(ho):
                row = (oh * batch + b) if spatial_major else (b * ho + oh)
                h_in = 2 * oh + kh - pad
                if 0 <= h_in < hin:
                    s[kh * bhop + row, b * hin + h_in] = 1.0

    wcat = np.zeros((ksh * inw, outw), np.float32)
    for kh in range(ksh):
        for kw in range(ksw):
            for ow in range(wo):
                w_in = 2 * ow + kw - pad
                if 0 <= w_in < win:
                    wcat[kh * inw + w_in * cin: kh * inw + (w_in + 1) * cin,
                         ow * cout:(ow + 1) * cout] = w[:, :, kh, kw].T

    brow = np.zeros((1, outw), np.float32)
    brow[0, :wo * cout] = np.tile(np.asarray(bias, np.float32), wo)
    return s, wcat, brow


def pack_params(raw, batch):
    geom = _geometry(batch)
    packed = {}
    for idx, name in enumerate(('conv1', 'conv2', 'conv3', 'conv4')):
        s, wcat, brow = _pack_conv(raw[name + '_w'], raw[name + '_b'],
                                   geom[idx], batch, spatial_major=(idx == 3))
        packed[f's{idx + 1}'] = jnp.asarray(s, jnp.bfloat16)
        packed[f'w{idx + 1}'] = jnp.asarray(wcat, jnp.bfloat16)
        packed[f'b{idx + 1}'] = jnp.asarray(brow, jnp.float32)

    # LSTM: one matmul over [h0 | conv4-features]: vstack(whh^T, regrouped w_ih).
    g4 = geom[3]
    H = LSTM_HIDDEN
    w_ih = np.asarray(raw['w_ih'], np.float32)                 # (4H, 288)
    w_hh = np.asarray(raw['w_hh'], np.float32)                 # (4H, H)
    comb_k = H + g4['ho'] * g4['outw']                         # 256 + 3*128 = 640
    wl = np.zeros((comb_k, 4 * H), np.float32)
    wl[:H, :] = w_hh.T
    hw = g4['ho'] * g4['wo']
    for hh in range(g4['ho']):
        for ww in range(g4['wo']):
            for cc in range(CONV_CH):
                # conv4 feature column (oh block, ow*32+c) <- torch NCHW flatten
                wl[H + hh * g4['outw'] + ww * CONV_CH + cc, :] = \
                    w_ih[:, cc * hw + hh * g4['wo'] + ww]
    packed['w_lstm'] = jnp.asarray(wl, jnp.bfloat16)
    packed['b_gates'] = jnp.asarray(
        (np.asarray(raw['b_ih'], np.float32)
         + np.asarray(raw['b_hh'], np.float32)).reshape(1, -1), jnp.float32)

    # Fused, lane-dense policy|value head (+ softmax mask, value-column select).
    w_heads = np.zeros((H, HEAD_W), np.float32)
    w_heads[:, :ACTION_DIM] = np.asarray(raw['w_pol'], np.float32).T
    w_heads[:, ACTION_DIM] = np.asarray(raw['w_val'], np.float32)[0]
    b_heads = np.zeros((1, HEAD_W), np.float32)
    b_heads[0, :ACTION_DIM] = np.asarray(raw['b_pol'], np.float32)
    b_heads[0, ACTION_DIM] = np.asarray(raw['b_val'], np.float32)[0]
    head_mask = np.full((1, HEAD_W), -1e30, np.float32)
    head_mask[0, :ACTION_DIM] = 0.0
    val_sel = np.zeros((1, HEAD_W), np.float32)
    val_sel[0, ACTION_DIM] = 1.0
    packed['w_heads'] = jnp.asarray(w_heads, jnp.bfloat16)
    packed['b_heads'] = jnp.asarray(b_heads, jnp.float32)
    packed['head_mask'] = jnp.asarray(head_mask, jnp.float32)
    packed['val_sel'] = jnp.asarray(val_sel, jnp.float32)
    return packed


# ---------------------------------------------------------------------------
# Torch-layout parameter init (mirrors weights_init / __init__ semantics)
# ---------------------------------------------------------------------------
def init_raw_params(key):
    keys = jax.random.split(key, 8)
    C = STATE_SHAPE[0]

    def conv_init(k, cout, cin, ksz):
        fan_in = cin * ksz * ksz
        fan_out = ksz * ksz * cout
        bound = float(np.sqrt(6.0 / (fan_in + fan_out)))
        w = jax.random.uniform(k, (cout, cin, ksz, ksz), jnp.float32, -bound, bound)
        return w, jnp.zeros((cout,), jnp.float32)

    def norm_col(k, shape, std):
        out = jax.random.normal(k, shape, jnp.float32)
        return out * std / jnp.sqrt(jnp.sum(out ** 2, axis=1, keepdims=True))

    p = {}
    p['conv1_w'], p['conv1_b'] = conv_init(keys[0], CONV_CH, C, KS)
    p['conv2_w'], p['conv2_b'] = conv_init(keys[1], CONV_CH, CONV_CH, KS)
    p['conv3_w'], p['conv3_b'] = conv_init(keys[2], CONV_CH, CONV_CH, KS)
    p['conv4_w'], p['conv4_b'] = conv_init(keys[3], CONV_CH, CONV_CH, KS)

    H = LSTM_HIDDEN
    lim = 1.0 / float(np.sqrt(H))            # pytorch default LSTMCell init
    p['w_ih'] = jax.random.uniform(keys[4], (4 * H, 3 * 3 * CONV_CH), jnp.float32, -lim, lim)
    p['w_hh'] = jax.random.uniform(keys[5], (4 * H, H), jnp.float32, -lim, lim)
    p['b_ih'] = jnp.zeros((4 * H,), jnp.float32)   # bias_ih.data.fill_(0)
    p['b_hh'] = jnp.zeros((4 * H,), jnp.float32)   # bias_hh.data.fill_(0)

    p['w_pol'] = norm_col(keys[6], (ACTION_DIM, H), 0.01)
    p['b_pol'] = jnp.zeros((ACTION_DIM,), jnp.float32)
    p['w_val'] = norm_col(keys[7], (1, H), 1.0)
    p['b_val'] = jnp.zeros((1,), jnp.float32)
    return p


# ---------------------------------------------------------------------------
# Forward wrapper: ONE pallas_call; wrapper glue is one tiny transpose/pad.
# ---------------------------------------------------------------------------
def make_forward(batch):
    C, H, W = STATE_SHAPE
    geom = _geometry(batch)
    xcols = geom[0]['inw']
    g4 = geom[3]
    comb_w = LSTM_HIDDEN + g4['ho'] * g4['outw']
    vmem = pl.BlockSpec(memory_space=pltpu.MemorySpace.VMEM)

    def kernel(x_ref, h0_ref, c0_ref,
               s1_ref, w1_ref, b1_ref,
               s2_ref, w2_ref, b2_ref,
               s3_ref, w3_ref, b3_ref,
               s4_ref, w4_ref, b4_ref,
               wl_ref, bg_ref,
               wh_ref, bh_ref, mask_ref, vsel_ref,
               pv_ref, h_out_ref, c_out_ref,
               r1_ref, a1_ref, r2_ref, a2_ref,
               r3_ref, a3_ref, r4_ref, a4_ref, comb_ref):
        f32 = jnp.float32
        bf16 = jnp.bfloat16

        def conv_layer(src, s_ref, w_ref, b_ref, rows_ref, dst_ref, g):
            bhop, inw = g['bhop'], g['inw']
            # Push 1: stacked 0/1 row-selection (all 3 kh taps, zero-padded rows).
            big = jnp.dot(s_ref[...], src, preferred_element_type=f32)
            # Place the kh blocks at 128-aligned column offsets (full-width copies).
            for kh in range(KS):
                rows_ref[:, kh * inw:(kh + 1) * inw] = (
                    big[kh * bhop:(kh + 1) * bhop, :].astype(bf16))
            # Push 2: all 9 taps in one column-embedded weight matmul; f32 epilogue.
            acc = jnp.dot(rows_ref[...], w_ref[...], preferred_element_type=f32)
            dst_ref[...] = jnp.maximum(acc + b_ref[...], 0.0).astype(bf16)

        conv_layer(x_ref[...], s1_ref, w1_ref, b1_ref, r1_ref, a1_ref, geom[0])
        conv_layer(a1_ref[...], s2_ref, w2_ref, b2_ref, r2_ref, a2_ref, geom[1])
        conv_layer(a2_ref[...], s3_ref, w3_ref, b3_ref, r3_ref, a3_ref, geom[2])
        conv_layer(a3_ref[...], s4_ref, w4_ref, b4_ref, r4_ref, a4_ref, geom[3])

        Hn = LSTM_HIDDEN
        outw4, ho4 = geom[3]['outw'], geom[3]['ho']
        # Build [h0 | conv4-features] so ALL LSTM gates come from ONE matmul.
        comb_ref[:, 0:Hn] = h0_ref[...].astype(bf16)
        for oh in range(ho4):
            comb_ref[:, Hn + oh * outw4: Hn + (oh + 1) * outw4] = (
                a4_ref[oh * batch:(oh + 1) * batch, :])
        gates = jnp.dot(comb_ref[...], wl_ref[...],
                        preferred_element_type=f32) + bg_ref[...]
        i_g = jax.nn.sigmoid(gates[:, 0:Hn])
        f_g = jax.nn.sigmoid(gates[:, Hn:2 * Hn])
        g_g = jnp.tanh(gates[:, 2 * Hn:3 * Hn])
        o_g = jax.nn.sigmoid(gates[:, 3 * Hn:4 * Hn])
        c_new = f_g * c0_ref[...] + i_g * g_g
        h_new = o_g * jnp.tanh(c_new)
        h_out_ref[...] = h_new
        c_out_ref[...] = c_new

        # Fused lane-dense (policy | value) head: single (256, 128) matmul,
        # masked softmax over the 6 action columns, value re-injected at col 6.
        head = jnp.dot(h_new.astype(bf16), wh_ref[...],
                       preferred_element_type=f32) + bh_ref[...]
        masked = head + mask_ref[...]
        m = jnp.max(masked, axis=-1, keepdims=True)
        e = jnp.exp(masked - m)
        denom = jnp.sum(e, axis=-1, keepdims=True)
        probs = e * pl.reciprocal(denom, approx=True)
        pv_ref[...] = probs + head * vsel_ref[...]

    scratch = []
    for g in geom:
        scratch.append(pltpu.VMEM((g['bhop'], KS * g['inw']), jnp.bfloat16))  # rows
        scratch.append(pltpu.VMEM((g['bhop'], g['outw']), jnp.bfloat16))      # act
    scratch.append(pltpu.VMEM((batch, comb_w), jnp.bfloat16))                 # [h0|feat]

    out_shape = (
        jax.ShapeDtypeStruct((batch, HEAD_W), jnp.float32),        # [probs | value]
        jax.ShapeDtypeStruct((batch, LSTM_HIDDEN), jnp.float32),   # h
        jax.ShapeDtypeStruct((batch, LSTM_HIDDEN), jnp.float32),   # c
    )

    call = pl.pallas_call(
        kernel,
        out_shape=out_shape,
        in_specs=[vmem] * N_INPUTS,
        out_specs=(vmem, vmem, vmem),
        scratch_shapes=scratch,
        input_output_aliases={1: 1, 2: 2},   # h0 -> h_out, c0 -> c_out (in place)
        compiler_params=pltpu.CompilerParams(vmem_limit_bytes=32 * 1024 * 1024),
    )

    def forward(packed, x, hidden):
        h0, c0 = hidden
        x2d = jnp.transpose(x.reshape(-1, C, H, W), (0, 2, 3, 1)).reshape(batch * H, W * C)
        x2d = jnp.pad(x2d, ((0, 0), (0, xcols - W * C))).astype(jnp.bfloat16)
        ins = (x2d, h0, c0,
               packed['s1'], packed['w1'], packed['b1'],
               packed['s2'], packed['w2'], packed['b2'],
               packed['s3'], packed['w3'], packed['b3'],
               packed['s4'], packed['w4'], packed['b4'],
               packed['w_lstm'], packed['b_gates'],
               packed['w_heads'], packed['b_heads'],
               packed['head_mask'], packed['val_sel'])
        pv, h1, c1 = call(*ins)
        pol = pv[:, :ACTION_DIM]
        val = pv[:, ACTION_DIM:ACTION_DIM + 1]
        return pol, val, (h1, c1)

    # Donate hidden so the pallas input_output_aliases become real in-place updates.
    return jax.jit(forward, donate_argnums=(2,))


# ---------------------------------------------------------------------------
# Plain-JAX reference of the same PyTorch forward (numeric cross-check, f32)
# ---------------------------------------------------------------------------
def reference_forward(raw, x, h0, c0):
    def conv(z, w, b, pad):
        y = jax.lax.conv_general_dilated(
            z, w, window_strides=(2, 2), padding=[(pad, pad), (pad, pad)],
            dimension_numbers=('NCHW', 'OIHW', 'NCHW'))
        return jax.nn.relu(y + b.reshape(1, -1, 1, 1))

    z = x.reshape(-1, *STATE_SHAPE)
    z = conv(z, raw['conv1_w'], raw['conv1_b'], 0)
    z = conv(z, raw['conv2_w'], raw['conv2_b'], 1)
    z = conv(z, raw['conv3_w'], raw['conv3_b'], 1)
    z = conv(z, raw['conv4_w'], raw['conv4_b'], 1)
    feat = z.reshape(z.shape[0], -1)
    gates = feat @ raw['w_ih'].T + raw['b_ih'] + h0 @ raw['w_hh'].T + raw['b_hh']
    Hn = LSTM_HIDDEN
    i = jax.nn.sigmoid(gates[:, 0:Hn])
    f = jax.nn.sigmoid(gates[:, Hn:2 * Hn])
    g = jnp.tanh(gates[:, 2 * Hn:3 * Hn])
    o = jax.nn.sigmoid(gates[:, 3 * Hn:4 * Hn])
    c = f * c0 + i * g
    h = o * jnp.tanh(c)
    logits = h @ raw['w_pol'].T + raw['b_pol']
    pol = jax.nn.softmax(logits, axis=-1)
    v = h @ raw['w_val'].T + raw['b_val']
    return pol, v, h, c


if __name__ == "__main__":
    key = jax.random.PRNGKey(0)
    k_param, k_x, k_h, k_c = jax.random.split(key, 4)

    B = 2
    raw = init_raw_params(k_param)
    packed = pack_params(raw, B)

    x = jax.random.normal(k_x, (B,) + STATE_SHAPE, jnp.float32)
    h0 = jax.random.normal(k_h, (B, LSTM_HIDDEN), jnp.float32) * 0.1
    c0 = jax.random.normal(k_c, (B, LSTM_HIDDEN), jnp.float32) * 0.1

    # Compute the f32 reference FIRST: h0/c0 are donated to the kernel call below.
    rpol, rv, rh, rc = jax.block_until_ready(reference_forward(raw, x, h0, c0))

    forward = make_forward(B)
    pol, v, (h1, c1) = forward(packed, x, (h0, c0))
    jax.block_until_ready((pol, v, h1, c1))

    assert pol.shape == (B, ACTION_DIM) and v.shape == (B, 1)
    assert h1.shape == (B, LSTM_HIDDEN) and c1.shape == (B, LSTM_HIDDEN)
    assert bool(jnp.all(jnp.isfinite(pol))) and bool(jnp.all(jnp.isfinite(v)))
    # approx reciprocal in the softmax -> allow a small sum-to-one slack
    assert bool(jnp.allclose(jnp.sum(pol, axis=1), 1.0, atol=1e-2))

    # Cross-check against the plain-JAX f32 reference (bf16 MXU inputs -> loose tol).
    for got, want in ((pol, rpol), (v, rv), (h1, rh), (c1, rc)):
        assert bool(jnp.allclose(got, want, atol=5e-2, rtol=5e-2))

    print("KERNEL_OK")
</pallas_src>

<mosaic_0001>
module attributes {stable_mosaic.version = 11 : i64} {
  func.func @kernel(%arg0: memref<84x256xbf16, #tpu.memory_space<vmem>>, %arg1: memref<2x256xf32, #tpu.memory_space<vmem>>, %arg2: memref<2x256xf32, #tpu.memory_space<vmem>>, %arg3: memref<120x84xbf16, #tpu.memory_space<vmem>>, %arg4: memref<768x640xbf16, #tpu.memory_space<vmem>>, %arg5: memref<1x640xf32, #tpu.memory_space<vmem>>, %arg6: memref<72x40xbf16, #tpu.memory_space<vmem>>, %arg7: memref<1920x384xbf16, #tpu.memory_space<vmem>>, %arg8: memref<1x384xf32, #tpu.memory_space<vmem>>, %arg9: memref<48x24xbf16, #tpu.memory_space<vmem>>, %arg10: memref<1152x256xbf16, #tpu.memory_space<vmem>>, %arg11: memref<1x256xf32, #tpu.memory_space<vmem>>, %arg12: memref<24x16xbf16, #tpu.memory_space<vmem>>, %arg13: memref<768x128xbf16, #tpu.memory_space<vmem>>, %arg14: memref<1x128xf32, #tpu.memory_space<vmem>>, %arg15: memref<640x1024xbf16, #tpu.memory_space<vmem>>, %arg16: memref<1x1024xf32, #tpu.memory_space<vmem>>, %arg17: memref<256x128xbf16, #tpu.memory_space<vmem>>, %arg18: memref<1x128xf32, #tpu.memory_space<vmem>>, %arg19: memref<1x128xf32, #tpu.memory_space<vmem>>, %arg20: memref<1x128xf32, #tpu.memory_space<vmem>>, %arg21: memref<2x128xf32, #tpu.memory_space<vmem>>, %arg22: memref<2x256xf32, #tpu.memory_space<vmem>>, %arg23: memref<2x256xf32, #tpu.memory_space<vmem>>, %arg24: memref<40x768xbf16, #tpu.memory_space<vmem>>, %arg25: memref<40x640xbf16, #tpu.memory_space<vmem>>, %arg26: memref<24x1920xbf16, #tpu.memory_space<vmem>>, %arg27: memref<24x384xbf16, #tpu.memory_space<vmem>>, %arg28: memref<16x1152xbf16, #tpu.memory_space<vmem>>, %arg29: memref<16x256xbf16, #tpu.memory_space<vmem>>, %arg30: memref<8x768xbf16, #tpu.memory_space<vmem>>, %arg31: memref<8x128xbf16, #tpu.memory_space<vmem>>, %arg32: memref<2x640xbf16, #tpu.memory_space<vmem>>) attributes {dimension_semantics = [], scalar_prefetch = 0 : i64, scratch_operands = 9 : i64, tpu.core_type = #tpu.core_type<tc>} {
    %c0 = arith.constant 0 : index
    %c0_0 = arith.constant 0 : index
    %0 = vector.load %arg0[%c0, %c0_0] : memref<84x256xbf16, #tpu.memory_space<vmem>>, vector<84x256xbf16>
    %c0_1 = arith.constant 0 : index
    %c0_2 = arith.constant 0 : index
    %1 = vector.load %arg3[%c0_1, %c0_2] : memref<120x84xbf16, #tpu.memory_space<vmem>>, vector<120x84xbf16>
    %cst = arith.constant dense<0.000000e+00> : vector<120x256xf32>
    %2 = tpu.matmul %1, %0, %cst {dimension_numbers = #tpu.dot_dimension_numbers<[1], [0], [0], [1], [0, 0, 1, 1], [], []>} : vector<120x84xbf16>, vector<84x256xbf16>, vector<120x256xf32> -> vector<120x256xf32>
    %3 = vector.extract_strided_slice %2 {offsets = [0, 0], sizes = [40, 256], strides = [1, 1]} : vector<120x256xf32> to vector<40x256xf32>
    %4 = arith.truncf %3 : vector<40x256xf32> to vector<40x256xbf16>
    %c0_3 = arith.constant 0 : index
    %c0_4 = arith.constant 0 : index
    %5 = vector.load %arg24[%c0_3, %c0_4] : memref<40x768xbf16, #tpu.memory_space<vmem>>, vector<40x256xbf16>
    tpu.vector_store %arg24[%c0_3, %c0_4], %4 {strides = array<i32>} : memref<40x768xbf16, #tpu.memory_space<vmem>>, vector<40x256xbf16>,
    %6 = vector.extract_strided_slice %2 {offsets = [40, 0], sizes = [40, 256], strides = [1, 1]} : vector<120x256xf32> to vector<40x256xf32>
    %7 = arith.truncf %6 : vector<40x256xf32> to vector<40x256xbf16>
    %c0_5 = arith.constant 0 : index
    %c256 = arith.constant 256 : index
    %8 = vector.load %arg24[%c0_5, %c256] : memref<40x768xbf16, #tpu.memory_space<vmem>>, vector<40x256xbf16>
    tpu.vector_store %arg24[%c0_5, %c256], %7 {strides = array<i32>} : memref<40x768xbf16, #tpu.memory_space<vmem>>, vector<40x256xbf16>,
    %9 = vector.extract_strided_slice %2 {offsets = [80, 0], sizes = [40, 256], strides = [1, 1]} : vector<120x256xf32> to vector<40x256xf32>
    %10 = arith.truncf %9 : vector<40x256xf32> to vector<40x256xbf16>
    %c0_6 = arith.constant 0 : index
    %c512 = arith.constant 512 : index
    %11 = vector.load %arg24[%c0_6, %c512] : memref<40x768xbf16, #tpu.memory_space<vmem>>, vector<40x256xbf16>
    tpu.vector_store %arg24[%c0_6, %c512], %10 {strides = array<i32>} : memref<40x768xbf16, #tpu.memory_space<vmem>>, vector<40x256xbf16>,
    %c0_7 = arith.constant 0 : index
    %c0_8 = arith.constant 0 : index
    %12 = vector.load %arg24[%c0_7, %c0_8] : memref<40x768xbf16, #tpu.memory_space<vmem>>, vector<40x768xbf16>
    %c0_9 = arith.constant 0 : index
    %c0_10 = arith.constant 0 : index
    %13 = vector.load %arg4[%c0_9, %c0_10] : memref<768x640xbf16, #tpu.memory_space<vmem>>, vector<768x640xbf16>
    %cst_11 = arith.constant dense<0.000000e+00> : vector<40x640xf32>
    %14 = tpu.matmul %12, %13, %cst_11 {dimension_numbers = #tpu.dot_dimension_numbers<[1], [0], [0], [1], [0, 0, 1, 1], [], []>} : vector<40x768xbf16>, vector<768x640xbf16>, vector<40x640xf32> -> vector<40x640xf32>
    %c0_12 = arith.constant 0 : index
    %c0_13 = arith.constant 0 : index
    %15 = vector.load %arg5[%c0_12, %c0_13] : memref<1x640xf32, #tpu.memory_space<vmem>>, vector<1x640xf32>
    %16 = vector.broadcast %15 : vector<1x640xf32> to vector<40x640xf32>
    %17 = arith.addf %14, %16 : vector<40x640xf32>
    %cst_14 = arith.constant 0.000000e+00 : f32
    %18 = vector.broadcast %cst_14 : f32 to vector<40x640xf32>
    %19 = arith.maximumf %17, %18 : vector<40x640xf32>
    %20 = arith.truncf %19 : vector<40x640xf32> to vector<40x640xbf16>
    %c0_15 = arith.constant 0 : index
    %c0_16 = arith.constant 0 : index
    %21 = vector.load %arg25[%c0_15, %c0_16] : memref<40x640xbf16, #tpu.memory_space<vmem>>, vector<40x640xbf16>
    tpu.vector_store %arg25[%c0_15, %c0_16], %20 {strides = array<i32>} : memref<40x640xbf16, #tpu.memory_space<vmem>>, vector<40x640xbf16>,
    %c0_17 = arith.constant 0 : index
    %c0_18 = arith.constant 0 : index
    %22 = vector.load %arg25[%c0_17, %c0_18] : memref<40x640xbf16, #tpu.memory_space<vmem>>, vector<40x640xbf16>
    %c0_19 = arith.constant 0 : index
    %c0_20 = arith.constant 0 : index
    %23 = vector.load %arg6[%c0_19, %c0_20] : memref<72x40xbf16, #tpu.memory_space<vmem>>, vector<72x40xbf16>
    %cst_21 = arith.constant dense<0.000000e+00> : vector<72x640xf32>
    %24 = tpu.matmul %23, %22, %cst_21 {dimension_numbers = #tpu.dot_dimension_numbers<[1], [0], [0], [1], [0, 0, 1, 1], [], []>} : vector<72x40xbf16>, vector<40x640xbf16>, vector<72x640xf32> -> vector<72x640xf32>
    %25 = vector.extract_strided_slice %24 {offsets = [0, 0], sizes = [24, 640], strides = [1, 1]} : vector<72x640xf32> to vector<24x640xf32>
    %26 = arith.truncf %25 : vector<24x640xf32> to vector<24x640xbf16>
    %c0_22 = arith.constant 0 : index
    %c0_23 = arith.constant 0 : index
    %27 = vector.load %arg26[%c0_22, %c0_23] : memref<24x1920xbf16, #tpu.memory_space<vmem>>, vector<24x640xbf16>
    tpu.vector_store %arg26[%c0_22, %c0_23], %26 {strides = array<i32>} : memref<24x1920xbf16, #tpu.memory_space<vmem>>, vector<24x640xbf16>,
    %28 = vector.extract_strided_slice %24 {offsets = [24, 0], sizes = [24, 640], strides = [1, 1]} : vector<72x640xf32> to vector<24x640xf32>
    %29 = arith.truncf %28 : vector<24x640xf32> to vector<24x640xbf16>
    %c0_24 = arith.constant 0 : index
    %c640 = arith.constant 640 : index
    %30 = vector.load %arg26[%c0_24, %c640] : memref<24x1920xbf16, #tpu.memory_space<vmem>>, vector<24x640xbf16>
    tpu.vector_store %arg26[%c0_24, %c640], %29 {strides = array<i32>} : memref<24x1920xbf16, #tpu.memory_space<vmem>>, vector<24x640xbf16>,
    %31 = vector.extract_strided_slice %24 {offsets = [48, 0], sizes = [24, 640], strides = [1, 1]} : vector<72x640xf32> to vector<24x640xf32>
    %32 = arith.truncf %31 : vector<24x640xf32> to vector<24x640xbf16>
    %c0_25 = arith.constant 0 : index
    %c1280 = arith.constant 1280 : index
    %33 = vector.load %arg26[%c0_25, %c1280] : memref<24x1920xbf16, #tpu.memory_space<vmem>>, vector<24x640xbf16>
    tpu.vector_store %arg26[%c0_25, %c1280], %32 {strides = array<i32>} : memref<24x1920xbf16, #tpu.memory_space<vmem>>, vector<24x640xbf16>,
    %c0_26 = arith.constant 0 : index
    %c0_27 = arith.constant 0 : index
    %34 = vector.load %arg26[%c0_26, %c0_27] : memref<24x1920xbf16, #tpu.memory_space<vmem>>, vector<24x1920xbf16>
    %c0_28 = arith.constant 0 : index
    %c0_29 = arith.constant 0 : index
    %35 = vector.load %arg7[%c0_28, %c0_29] : memref<1920x384xbf16, #tpu.memory_space<vmem>>, vector<1920x384xbf16>
    %cst_30 = arith.constant dense<0.000000e+00> : vector<24x384xf32>
    %36 = tpu.matmul %34, %35, %cst_30 {dimension_numbers = #tpu.dot_dimension_numbers<[1], [0], [0], [1], [0, 0, 1, 1], [], []>} : vector<24x1920xbf16>, vector<1920x384xbf16>, vector<24x384xf32> -> vector<24x384xf32>
    %c0_31 = arith.constant 0 : index
    %c0_32 = arith.constant 0 : index
    %37 = vector.load %arg8[%c0_31, %c0_32] : memref<1x384xf32, #tpu.memory_space<vmem>>, vector<1x384xf32>
    %38 = vector.broadcast %37 : vector<1x384xf32> to vector<24x384xf32>
    %39 = arith.addf %36, %38 : vector<24x384xf32>
    %cst_33 = arith.constant 0.000000e+00 : f32
    %40 = vector.broadcast %cst_33 : f32 to vector<24x384xf32>
    %41 = arith.maximumf %39, %40 : vector<24x384xf32>
    %42 = arith.truncf %41 : vector<24x384xf32> to vector<24x384xbf16>
    %c0_34 = arith.constant 0 : index
    %c0_35 = arith.constant 0 : index
    %43 = vector.load %arg27[%c0_34, %c0_35] : memref<24x384xbf16, #tpu.memory_space<vmem>>, vector<24x384xbf16>
    tpu.vector_store %arg27[%c0_34, %c0_35], %42 {strides = array<i32>} : memref<24x384xbf16, #tpu.memory_space<vmem>>, vector<24x384xbf16>,
    %c0_36 = arith.constant 0 : index
    %c0_37 = arith.constant 0 : index
    %44 = vector.load %arg27[%c0_36, %c0_37] : memref<24x384xbf16, #tpu.memory_space<vmem>>, vector<24x384xbf16>
    %c0_38 = arith.constant 0 : index
    %c0_39 = arith.constant 0 : index
    %45 = vector.load %arg9[%c0_38, %c0_39] : memref<48x24xbf16, #tpu.memory_space<vmem>>, vector<48x24xbf16>
    %cst_40 = arith.constant dense<0.000000e+00> : vector<48x384xf32>
    %46 = tpu.matmul %45, %44, %cst_40 {dimension_numbers = #tpu.dot_dimension_numbers<[1], [0], [0], [1], [0, 0, 1, 1], [], []>} : vector<48x24xbf16>, vector<24x384xbf16>, vector<48x384xf32> -> vector<48x384xf32>
    %47 = vector.extract_strided_slice %46 {offsets = [0, 0], sizes = [16, 384], strides = [1, 1]} : vector<48x384xf32> to vector<16x384xf32>
    %48 = arith.truncf %47 : vector<16x384xf32> to vector<16x384xbf16>
    %c0_41 = arith.constant 0 : index
    %c0_42 = arith.constant 0 : index
    %49 = vector.load %arg28[%c0_41, %c0_42] : memref<16x1152xbf16, #tpu.memory_space<vmem>>, vector<16x384xbf16>
    tpu.vector_store %arg28[%c0_41, %c0_42], %48 {strides = array<i32>} : memref<16x1152xbf16, #tpu.memory_space<vmem>>, vector<16x384xbf16>,
    %50 = vector.extract_strided_slice %46 {offsets = [16, 0], sizes = [16, 384], strides = [1, 1]} : vector<48x384xf32> to vector<16x384xf32>
    %51 = arith.truncf %50 : vector<16x384xf32> to vector<16x384xbf16>
    %c0_43 = arith.constant 0 : index
    %c384 = arith.constant 384 : index
    %52 = vector.load %arg28[%c0_43, %c384] : memref<16x1152xbf16, #tpu.memory_space<vmem>>, vector<16x384xbf16>
    tpu.vector_store %arg28[%c0_43, %c384], %51 {strides = array<i32>} : memref<16x1152xbf16, #tpu.memory_space<vmem>>, vector<16x384xbf16>,
    %53 = vector.extract_strided_slice %46 {offsets = [32, 0], sizes = [16, 384], strides = [1, 1]} : vector<48x384xf32> to vector<16x384xf32>
    %54 = arith.truncf %53 : vector<16x384xf32> to vector<16x384xbf16>
    %c0_44 = arith.constant 0 : index
    %c768 = arith.constant 768 : index
    %55 = vector.load %arg28[%c0_44, %c768] : memref<16x1152xbf16, #tpu.memory_space<vmem>>, vector<16x384xbf16>
    tpu.vector_store %arg28[%c0_44, %c768], %54 {strides = array<i32>} : memref<16x1152xbf16, #tpu.memory_space<vmem>>, vector<16x384xbf16>,
    %c0_45 = arith.constant 0 : index
    %c0_46 = arith.constant 0 : index
    %56 = vector.load %arg28[%c0_45, %c0_46] : memref<16x1152xbf16, #tpu.memory_space<vmem>>, vector<16x1152xbf16>
    %c0_47 = arith.constant 0 : index
    %c0_48 = arith.constant 0 : index
    %57 = vector.load %arg10[%c0_47, %c0_48] : memref<1152x256xbf16, #tpu.memory_space<vmem>>, vector<1152x256xbf16>
    %cst_49 = arith.constant dense<0.000000e+00> : vector<16x256xf32>
    %58 = tpu.matmul %56, %57, %cst_49 {dimension_numbers = #tpu.dot_dimension_numbers<[1], [0], [0], [1], [0, 0, 1, 1], [], []>} : vector<16x1152xbf16>, vector<1152x256xbf16>, vector<16x256xf32> -> vector<16x256xf32>
    %c0_50 = arith.constant 0 : index
    %c0_51 = arith.constant 0 : index
    %59 = vector.load %arg11[%c0_50, %c0_51] : memref<1x256xf32, #tpu.memory_space<vmem>>, vector<1x256xf32>
    %60 = vector.broadcast %59 : vector<1x256xf32> to vector<16x256xf32>
    %61 = arith.addf %58, %60 : vector<16x256xf32>
    %cst_52 = arith.constant 0.000000e+00 : f32
    %62 = vector.broadcast %cst_52 : f32 to vector<16x256xf32>
    %63 = arith.maximumf %61, %62 : vector<16x256xf32>
    %64 = arith.truncf %63 : vector<16x256xf32> to vector<16x256xbf16>
    %c0_53 = arith.constant 0 : index
    %c0_54 = arith.constant 0 : index
    %65 = vector.load %arg29[%c0_53, %c0_54] : memref<16x256xbf16, #tpu.memory_space<vmem>>, vector<16x256xbf16>
    tpu.vector_store %arg29[%c0_53, %c0_54], %64 {strides = array<i32>} : memref<16x256xbf16, #tpu.memory_space<vmem>>, vector<16x256xbf16>,
    %c0_55 = arith.constant 0 : index
    %c0_56 = arith.constant 0 : index
    %66 = vector.load %arg29[%c0_55, %c0_56] : memref<16x256xbf16, #tpu.memory_space<vmem>>, vector<16x256xbf16>
    %c0_57 = arith.constant 0 : index
    %c0_58 = arith.constant 0 : index
    %67 = vector.load %arg12[%c0_57, %c0_58] : memref<24x16xbf16, #tpu.memory_space<vmem>>, vector<24x16xbf16>
    %cst_59 = arith.constant dense<0.000000e+00> : vector<24x256xf32>
    %68 = tpu.matmul %67, %66, %cst_59 {dimension_numbers = #tpu.dot_dimension_numbers<[1], [0], [0], [1], [0, 0, 1, 1], [], []>} : vector<24x16xbf16>, vector<16x256xbf16>, vector<24x256xf32> -> vector<24x256xf32>
    %69 = vector.extract_strided_slice %68 {offsets = [0, 0], sizes = [8, 256], strides = [1, 1]} : vector<24x256xf32> to vector<8x256xf32>
    %70 = arith.truncf %69 : vector<8x256xf32> to vector<8x256xbf16>
    %c0_60 = arith.constant 0 : index
    %c0_61 = arith.constant 0 : index
    %71 = vector.load %arg30[%c0_60, %c0_61] : memref<8x768xbf16, #tpu.memory_space<vmem>>, vector<8x256xbf16>
    tpu.vector_store %arg30[%c0_60, %c0_61], %70 {strides = array<i32>} : memref<8x768xbf16, #tpu.memory_space<vmem>>, vector<8x256xbf16>,
    %72 = vector.extract_strided_slice %68 {offsets = [8, 0], sizes = [8, 256], strides = [1, 1]} : vector<24x256xf32> to vector<8x256xf32>
    %73 = arith.truncf %72 : vector<8x256xf32> to vector<8x256xbf16>
    %c0_62 = arith.constant 0 : index
    %c256_63 = arith.constant 256 : index
    %74 = vector.load %arg30[%c0_62, %c256_63] : memref<8x768xbf16, #tpu.memory_space<vmem>>, vector<8x256xbf16>
    tpu.vector_store %arg30[%c0_62, %c256_63], %73 {strides = array<i32>} : memref<8x768xbf16, #tpu.memory_space<vmem>>, vector<8x256xbf16>,
    %75 = vector.extract_strided_slice %68 {offsets = [16, 0], sizes = [8, 256], strides = [1, 1]} : vector<24x256xf32> to vector<8x256xf32>
    %76 = arith.truncf %75 : vector<8x256xf32> to vector<8x256xbf16>
    %c0_64 = arith.constant 0 : index
    %c512_65 = arith.constant 512 : index
    %77 = vector.load %arg30[%c0_64, %c512_65] : memref<8x768xbf16, #tpu.memory_space<vmem>>, vector<8x256xbf16>
    tpu.vector_store %arg30[%c0_64, %c512_65], %76 {strides = array<i32>} : memref<8x768xbf16, #tpu.memory_space<vmem>>, vector<8x256xbf16>,
    %c0_66 = arith.constant 0 : index
    %c0_67 = arith.constant 0 : index
    %78 = vector.load %arg30[%c0_66, %c0_67] : memref<8x768xbf16, #tpu.memory_space<vmem>>, vector<8x768xbf16>
    %c0_68 = arith.constant 0 : index
    %c0_69 = arith.constant 0 : index
    %79 = vector.load %arg13[%c0_68, %c0_69] : memref<768x128xbf16, #tpu.memory_space<vmem>>, vector<768x128xbf16>
    %cst_70 = arith.constant dense<0.000000e+00> : vector<8x128xf32>
    %80 = tpu.matmul %78, %79, %cst_70 {dimension_numbers = #tpu.dot_dimension_numbers<[1], [0], [0], [1], [0, 0, 1, 1], [], []>} : vector<8x768xbf16>, vector<768x128xbf16>, vector<8x128xf32> -> vector<8x128xf32>
    %c0_71 = arith.constant 0 : index
    %c0_72 = arith.constant 0 : index
    %81 = vector.load %arg14[%c0_71, %c0_72] : memref<1x128xf32, #tpu.memory_space<vmem>>, vector<1x128xf32>
    %82 = vector.broadcast %81 : vector<1x128xf32> to vector<8x128xf32>
    %83 = arith.addf %80, %82 : vector<8x128xf32>
    %cst_73 = arith.constant 0.000000e+00 : f32
    %84 = vector.broadcast %cst_73 : f32 to vector<8x128xf32>
    %85 = arith.maximumf %83, %84 : vector<8x128xf32>
    %86 = arith.truncf %85 : vector<8x128xf32> to vector<8x128xbf16>
    %c0_74 = arith.constant 0 : index
    %c0_75 = arith.constant 0 : index
    %87 = vector.load %arg31[%c0_74, %c0_75] : memref<8x128xbf16, #tpu.memory_space<vmem>>, vector<8x128xbf16>
    tpu.vector_store %arg31[%c0_74, %c0_75], %86 {strides = array<i32>} : memref<8x128xbf16, #tpu.memory_space<vmem>>, vector<8x128xbf16>,
    %c0_76 = arith.constant 0 : index
    %c0_77 = arith.constant 0 : index
    %88 = vector.load %arg1[%c0_76, %c0_77] : memref<2x256xf32, #tpu.memory_space<vmem>>, vector<2x256xf32>
    %89 = arith.truncf %88 : vector<2x256xf32> to vector<2x256xbf16>
    %c0_78 = arith.constant 0 : index
    %c0_79 = arith.constant 0 : index
    %90 = vector.load %arg32[%c0_78, %c0_79] : memref<2x640xbf16, #tpu.memory_space<vmem>>, vector<2x256xbf16>
    tpu.vector_store %arg32[%c0_78, %c0_79], %89 {strides = array<i32>} : memref<2x640xbf16, #tpu.memory_space<vmem>>, vector<2x256xbf16>,
    %c0_80 = arith.constant 0 : index
    %c0_81 = arith.constant 0 : index
    %91 = vector.load %arg31[%c0_80, %c0_81] : memref<8x128xbf16, #tpu.memory_space<vmem>>, vector<2x128xbf16>
    %c0_82 = arith.constant 0 : index
    %c256_83 = arith.constant 256 : index
    %92 = vector.load %arg32[%c0_82, %c256_83] : memref<2x640xbf16, #tpu.memory_space<vmem>>, vector<2x128xbf16>
    tpu.vector_store %arg32[%c0_82, %c256_83], %91 {strides = array<i32>} : memref<2x640xbf16, #tpu.memory_space<vmem>>, vector<2x128xbf16>,
    %c2 = arith.constant 2 : index
    %c0_84 = arith.constant 0 : index
    %93 = vector.load %arg31[%c2, %c0_84] : memref<8x128xbf16, #tpu.memory_space<vmem>>, vector<2x128xbf16>
    %c0_85 = arith.constant 0 : index
    %c384_86 = arith.constant 384 : index
    %94 = vector.load %arg32[%c0_85, %c384_86] : memref<2x640xbf16, #tpu.memory_space<vmem>>, vector<2x128xbf16>
    tpu.vector_store %arg32[%c0_85, %c384_86], %93 {strides = array<i32>} : memref<2x640xbf16, #tpu.memory_space<vmem>>, vector<2x128xbf16>,
    %c4 = arith.constant 4 : index
    %c0_87 = arith.constant 0 : index
    %95 = vector.load %arg31[%c4, %c0_87] : memref<8x128xbf16, #tpu.memory_space<vmem>>, vector<2x128xbf16>
    %c0_88 = arith.constant 0 : index
    %c512_89 = arith.constant 512 : index
    %96 = vector.load %arg32[%c0_88, %c512_89] : memref<2x640xbf16, #tpu.memory_space<vmem>>, vector<2x128xbf16>
    tpu.vector_store %arg32[%c0_88, %c512_89], %95 {strides = array<i32>} : memref<2x640xbf16, #tpu.memory_space<vmem>>, vector<2x128xbf16>,
    %c0_90 = arith.constant 0 : index
    %c0_91 = arith.constant 0 : index
    %97 = vector.load %arg32[%c0_90, %c0_91] : memref<2x640xbf16, #tpu.memory_space<vmem>>, vector<2x640xbf16>
    %c0_92 = arith.constant 0 : index
    %c0_93 = arith.constant 0 : index
    %98 = vector.load %arg15[%c0_92, %c0_93] : memref<640x1024xbf16, #tpu.memory_space<vmem>>, vector<640x1024xbf16>
    %cst_94 = arith.constant dense<0.000000e+00> : vector<2x1024xf32>
    %99 = tpu.matmul %97, %98, %cst_94 {dimension_numbers = #tpu.dot_dimension_numbers<[1], [0], [0], [1], [0, 0, 1, 1], [], []>} : vector<2x640xbf16>, vector<640x1024xbf16>, vector<2x1024xf32> -> vector<2x1024xf32>
    %c0_95 = arith.constant 0 : index
    %c0_96 = arith.constant 0 : index
    %100 = vector.load %arg16[%c0_95, %c0_96] : memref<1x1024xf32, #tpu.memory_space<vmem>>, vector<1x1024xf32>
    %101 = vector.broadcast %100 : vector<1x1024xf32> to vector<2x1024xf32>
    %102 = arith.addf %99, %101 : vector<2x1024xf32>
    %103 = vector.extract_strided_slice %102 {offsets = [0, 0], sizes = [2, 256], strides = [1, 1]} : vector<2x1024xf32> to vector<2x256xf32>
    %104 = arith.negf %103 : vector<2x256xf32>
    %105 = math.exp %104 : vector<2x256xf32>
    %cst_97 = arith.constant 1.000000e+00 : f32
    %106 = vector.broadcast %cst_97 : f32 to vector<2x256xf32>
    %107 = arith.addf %106, %105 : vector<2x256xf32>
    %108 = arith.divf %106, %107 : vector<2x256xf32>
    %109 = vector.extract_strided_slice %102 {offsets = [0, 256], sizes = [2, 256], strides = [1, 1]} : vector<2x1024xf32> to vector<2x256xf32>
    %110 = arith.negf %109 : vector<2x256xf32>
    %111 = math.exp %110 : vector<2x256xf32>
    %cst_98 = arith.constant 1.000000e+00 : f32
    %112 = vector.broadcast %cst_98 : f32 to vector<2x256xf32>
    %113 = arith.addf %112, %111 : vector<2x256xf32>
    %114 = arith.divf %112, %113 : vector<2x256xf32>
    %115 = vector.extract_strided_slice %102 {offsets = [0, 512], sizes = [2, 256], strides = [1, 1]} : vector<2x1024xf32> to vector<2x256xf32>
    %116 = math.tanh %115 : vector<2x256xf32>
    %117 = vector.extract_strided_slice %102 {offsets = [0, 768], sizes = [2, 256], strides = [1, 1]} : vector<2x1024xf32> to vector<2x256xf32>
    %118 = arith.negf %117 : vector<2x256xf32>
    %119 = math.exp %118 : vector<2x256xf32>
    %cst_99 = arith.constant 1.000000e+00 : f32
    %120 = vector.broadcast %cst_99 : f32 to vector<2x256xf32>
    %121 = arith.addf %120, %119 : vector<2x256xf32>
    %122 = arith.divf %120, %121 : vector<2x256xf32>
    %c0_100 = arith.constant 0 : index
    %c0_101 = arith.constant 0 : index
    %123 = vector.load %arg2[%c0_100, %c0_101] : memref<2x256xf32, #tpu.memory_space<vmem>>, vector<2x256xf32>
    %124 = arith.mulf %114, %123 : vector<2x256xf32>
    %125 = arith.mulf %108, %116 : vector<2x256xf32>
    %126 = arith.addf %124, %125 : vector<2x256xf32>
    %127 = math.tanh %126 : vector<2x256xf32>
    %128 = arith.mulf %122, %127 : vector<2x256xf32>
    %c0_102 = arith.constant 0 : index
    %c0_103 = arith.constant 0 : index
    %129 = vector.load %arg22[%c0_102, %c0_103] : memref<2x256xf32, #tpu.memory_space<vmem>>, vector<2x256xf32>
    tpu.vector_store %arg22[%c0_102, %c0_103], %128 {strides = array<i32>} : memref<2x256xf32, #tpu.memory_space<vmem>>, vector<2x256xf32>,
    %c0_104 = arith.constant 0 : index
    %c0_105 = arith.constant 0 : index
    %130 = vector.load %arg23[%c0_104, %c0_105] : memref<2x256xf32, #tpu.memory_space<vmem>>, vector<2x256xf32>
    tpu.vector_store %arg23[%c0_104, %c0_105], %126 {strides = array<i32>} : memref<2x256xf32, #tpu.memory_space<vmem>>, vector<2x256xf32>,
    %131 = arith.truncf %128 : vector<2x256xf32> to vector<2x256xbf16>
    %c0_106 = arith.constant 0 : index
    %c0_107 = arith.constant 0 : index
    %132 = vector.load %arg17[%c0_106, %c0_107] : memref<256x128xbf16, #tpu.memory_space<vmem>>, vector<256x128xbf16>
    %cst_108 = arith.constant dense<0.000000e+00> : vector<2x128xf32>
    %133 = tpu.matmul %131, %132, %cst_108 {dimension_numbers = #tpu.dot_dimension_numbers<[1], [0], [0], [1], [0, 0, 1, 1], [], []>} : vector<2x256xbf16>, vector<256x128xbf16>, vector<2x128xf32> -> vector<2x128xf32>
    %c0_109 = arith.constant 0 : index
    %c0_110 = arith.constant 0 : index
    %134 = vector.load %arg18[%c0_109, %c0_110] : memref<1x128xf32, #tpu.memory_space<vmem>>, vector<1x128xf32>
    %135 = vector.broadcast %134 : vector<1x128xf32> to vector<2x128xf32>
    %136 = arith.addf %133, %135 : vector<2x128xf32>
    %c0_111 = arith.constant 0 : index
    %c0_112 = arith.constant 0 : index
    %137 = vector.load %arg19[%c0_111, %c0_112] : memref<1x128xf32, #tpu.memory_space<vmem>>, vector<1x128xf32>
    %138 = vector.broadcast %137 : vector<1x128xf32> to vector<2x128xf32>
    %139 = arith.addf %136, %138 : vector<2x128xf32>
    %cst_113 = arith.constant dense<0xFF800000> : vector<2xf32>
    %140 = vector.multi_reduction <maximumf>, %139, %cst_113 [1] : vector<2x128xf32> to vector<2xf32>
    %141 = vector.shape_cast %140 : vector<2xf32> to vector<2x1xf32>
    %142 = vector.broadcast %141 : vector<2x1xf32> to vector<2x128xf32>
    %143 = arith.subf %139, %142 : vector<2x128xf32>
    %144 = math.exp %143 : vector<2x128xf32>
    %cst_114 = arith.constant dense<0.000000e+00> : vector<2xf32>
    %145 = vector.multi_reduction <add>, %144, %cst_114 [1] : vector<2x128xf32> to vector<2xf32>
    %146 = vector.shape_cast %145 : vector<2xf32> to vector<2x1xf32>
    %147 = tpu.reciprocal %146 {approx = true} : vector<2x1xf32> -> vector<2x1xf32>
    %148 = vector.broadcast %147 : vector<2x1xf32> to vector<2x128xf32>
    %149 = arith.mulf %144, %148 : vector<2x128xf32>
    %c0_115 = arith.constant 0 : index
    %c0_116 = arith.constant 0 : index
    %150 = vector.load %arg20[%c0_115, %c0_116] : memref<1x128xf32, #tpu.memory_space<vmem>>, vector<1x128xf32>
    %151 = vector.broadcast %150 : vector<1x128xf32> to vector<2x128xf32>
    %152 = arith.mulf %136, %151 : vector<2x128xf32>
    %153 = arith.addf %149, %152 : vector<2x128xf32>
    %c0_117 = arith.constant 0 : index
    %c0_118 = arith.constant 0 : index
    %154 = vector.load %arg21[%c0_117, %c0_118] : memref<2x128xf32, #tpu.memory_space<vmem>>, vector<2x128xf32>
    tpu.vector_store %arg21[%c0_117, %c0_118], %153 {strides = array<i32>} : memref<2x128xf32, #tpu.memory_space<vmem>>, vector<2x128xf32>,
    return
  }
}

</mosaic_0001>

<bundles_post_ra>
// kernel: forward.1
= control target key start
LH: loop header
LB: loop body
LE: loop exit
PB: predicated region body
PF: predicated region fallthrough
CT: control target
= control target key end

     0   :  { %s16569_s0 = inlined_call_operand.vmem [shape: bf16[84,256], index: 0, kind: input, shape index: {}]   ;;  %s16570_s1 = inlined_call_operand.hbm [shape: f32[2,256], index: 1, kind: input, shape index: {}, may-alias: {1,22}]   ;;  %s16571_s2 = inlined_call_operand.hbm [shape: f32[2,256], index: 2, kind: input, shape index: {}, may-alias: {2,23}]   ;;  %s16572_s3 = inlined_call_operand.vmem [shape: bf16[120,84], index: 3, kind: input, shape index: {}]   ;;  %s16573_s4 = inlined_call_operand.hbm [shape: bf16[768,640], index: 4, kind: input, shape index: {}]   ;;  %s16574_s5 = inlined_call_operand.hbm [shape: f32[1,640], index: 5, kind: input, shape index: {}]   ;;  %s16575_s6 = inlined_call_operand.vmem [shape: bf16[72,40], index: 6, kind: input, shape index: {}]   ;;  %s16576_s7 = inlined_call_operand.hbm [shape: bf16[1920,384], index: 7, kind: input, shape index: {}]   ;;  %s16577_s8 = inlined_call_operand.hbm [shape: f32[1,384], index: 8, kind: input, shape index: {}]   ;;  %s16578_s9 = inlined_call_operand.vmem [shape: bf16[48,24], index: 9, kind: input, shape index: {}]   ;;  %s16579_s10 = inlined_call_operand.hbm [shape: bf16[1152,256], index: 10, kind: input, shape index: {}]   ;;  %s16580_s11 = inlined_call_operand.hbm [shape: f32[1,256], index: 11, kind: input, shape index: {}]   ;;  %s16581_s12 = inlined_call_operand.vmem [shape: bf16[24,16], index: 12, kind: input, shape index: {}]   ;;  %s16582_s13 = inlined_call_operand.hbm [shape: bf16[768,128], index: 13, kind: input, shape index: {}]   ;;  %s16583_s14 = inlined_call_operand.hbm [shape: f32[1,128], index: 14, kind: input, shape index: {}]   ;;  %s16584_s15 = inlined_call_operand.hbm [shape: bf16[640,1024], index: 15, kind: input, shape index: {}]   ;;  %s16585_s16 = inlined_call_operand.hbm [shape: f32[1,1024], index: 16, kind: input, shape index: {}]   ;;  %s16586_s17 = inlined_call_operand.hbm [shape: bf16[256,128], index: 17, kind: input, shape index: {}]   ;;  %s16587_s18 = inlined_call_operand.hbm [shape: f32[1,128], index: 18, kind: input, shape index: {}]   ;;  %s16588_s19 = inlined_call_operand.hbm [shape: f32[1,128], index: 19, kind: input, shape index: {}]   ;;  %s16589_s20 = inlined_call_operand.hbm [shape: f32[1,128], index: 20, kind: input, shape index: {}]   ;;  %s16590_s21 = inlined_call_operand.vmem [shape: f32[2,128], index: 21, kind: output, shape index: {0}]   ;;  %s16591_s22 = inlined_call_operand.hbm [shape: f32[2,256], index: 22, kind: output, shape index: {1}, may-alias: {1,22}]   ;;  %s16592_s23 = inlined_call_operand.hbm [shape: f32[2,256], index: 23, kind: output, shape index: {2}, may-alias: {2,23}]  }
   0x1   :  { %16601 = sst [smem:[#allocation51_spill]] %s16569_s0 }
   0x2   :  { %16602 = sst [smem:[#allocation52_spill]] %s16570_s1 }
   0x3   :  { %16603 = sst [smem:[#allocation53_spill]] %s16571_s2 }
   0x4   :  { %16604 = sst [smem:[#allocation54_spill]] %s16572_s3 }
   0x5   :  { %16605 = sst [smem:[#allocation55_spill]] %s16573_s4 }
   0x6   :  { %16606 = sst [smem:[#allocation56_spill]] %s16574_s5 }
   0x7   :  { %16607 = sst [smem:[#allocation57_spill]] %s16575_s6 }
   0x8   :  { %16608 = sst [smem:[#allocation58_spill]] %s16576_s7 }
   0x9   :  { %29 = vsyncpa [#allocation12], 0 }
   0xa   :  { %30 = vsyncpa [#allocation15], 0 }
   0xb   :  { %31 = vsyncpa [#allocation18], 0 }
   0xc   :  { %32 = vsyncpa [#allocation21], 0 }
   0xd   :  { %33 = vsyncpa [#allocation24], 0 }
   0xe   :  { %34 = vsyncpa [#allocation27], 0 }
   0xf   :  { %35 = vsyncpa [#allocation30], 0 }
  0x10   :  { %36 = vsyncpa [#allocation33], 0 }
  0x11   :  { %37 = vsyncpa [#allocation36], 0 }
  0x12   :  { %38 = vsyncpa [#allocation13], 0 }
  0x13   :  { %39 = vsyncpa [#allocation39], 0  ;;  %s15568_s4 = smov [#allocation14]   ;;  %s15569_s24 = smov [#allocation17]  }
  0x14   :  { %s58_s30 = sshll.u32 %s15568_s4, 4  ;;  %s82_s25 = sshll.u32 %s15569_s24, 4  ;;  %s59_s30 = int_to_ptr.vmem [resolvable:$true] %s58_s30  ;;  %s83_s25 = int_to_ptr.vmem [resolvable:$true] %s82_s25 }
  0x15   :  { %s16609_s26 = sld [smem:[#allocation53_spill]] }
  0x1b   :  { %s15150_s2 = scalar_lea.hbm %s16609_s26, 64 }
  0x1c   :  { %p15151_p0 = scmp.ne.s32.totalorder %s16609_s26, %s15150_s2  ;;  %p15154_p1 = scmp.lt.u32.totalorder %s15150_s2, %s16609_s26 }
  0x1e   :  { %p15156_p2 = pnand %p15154_p1, %p15151_p0 }
  0x20   :  { %15159 = shalt.err (!%p15156_p2)
}
  0x21   :  { %s15160_s29 = scalar_lea.vmem %s59_s30, 64  ;;  %p15165_p4 = scmp.lt.s32.totalorder %s59_s30, %s59_s30 }
  0x22   :  { %p15161_p3 = scmp.ne.s32.totalorder %s59_s30, %s15160_s29  ;;  %p15166_p5 = scmp.lt.s32.totalorder %s15160_s29, %s15160_s29 }
  0x24   :  { %p15167_p6 = por %p15166_p5, %p15165_p4 }
  0x26   :  { %p15168_p7 = pnand %p15167_p6, %p15161_p3 }
  0x28   :  { %15171 = shalt.err (!%p15168_p7)
}
  0x29   :  { %61 = dma.hbm_to_vmem [thread:$0]  %s16609_s26, 64, %s59_s30, [#allocation15]  }
  0x2a   :  { %s16610_s5 = sld [smem:[#allocation56_spill]] }
  0x30   :  { %s15172_s1 = scalar_lea.hbm %s16610_s5, 80 }
  0x31   :  { %p15173_p8 = scmp.ne.s32.totalorder %s16610_s5, %s15172_s1  ;;  %p15176_p9 = scmp.lt.u32.totalorder %s15172_s1, %s16610_s5 }
  0x33   :  { %p15178_p10 = pnand %p15176_p9, %p15173_p8 }
  0x35   :  { %15181 = shalt.err (!%p15178_p10)
}
  0x36   :  { %s15182_s28 = scalar_lea.vmem %s83_s25, 80  ;;  %s15186_s29 = scalar_lea.vmem %s83_s25, 96 }
  0x37   :  { %p15183_p11 = scmp.ne.s32.totalorder %s83_s25, %s15182_s28  ;;  %p15187_p12 = scmp.lt.s32.totalorder %s83_s25, %s83_s25 }
  0x38   :  { %p15188_p13 = scmp.lt.s32.totalorder %s15186_s29, %s15182_s28 }
  0x3a   :  { %p15189_p0 = por %p15188_p13, %p15187_p12 }
  0x3c   :  { %p15190_p1 = pnand %p15189_p0, %p15183_p11 }
  0x3e   :  { %15193 = shalt.err (!%p15190_p1)
}
  0x3f   :  { %85 = dma.hbm_to_vmem [thread:$0]  %s16610_s5, 80, %s83_s25, [#allocation18]  }
  0x40   :  { %s15570_s3 = smov [#allocation20]   ;;  %s15571_s4 = smov [#allocation23]  }
  0x41   :  { %s106_s0 = sshll.u32 %s15570_s3, 4  ;;  %s130_s24 = sshll.u32 %s15571_s4, 4  ;;  %s107_s0 = int_to_ptr.vmem [resolvable:$true] %s106_s0  ;;  %s131_s24 = int_to_ptr.vmem [resolvable:$true] %s130_s24 }
  0x42   :  { %s15194_s27 = scalar_lea.hbm %s16577_s8, 48 }
  0x43   :  { %p15195_p2 = scmp.ne.s32.totalorder %s16577_s8, %s15194_s27  ;;  %p15198_p3 = scmp.lt.u32.totalorder %s15194_s27, %s16577_s8 }
  0x45   :  { %p15200_p4 = pnand %p15198_p3, %p15195_p2 }
  0x47   :  { %15203 = shalt.err (!%p15200_p4)
}
  0x48   :  { %s15204_s25 = scalar_lea.vmem %s107_s0, 48  ;;  %s15208_s5 = scalar_lea.vmem %s107_s0, 64 }
  0x49   :  { %p15205_p5 = scmp.ne.s32.totalorder %s107_s0, %s15204_s25  ;;  %p15209_p6 = scmp.lt.s32.totalorder %s107_s0, %s107_s0 }
  0x4a   :  { %p15210_p7 = scmp.lt.s32.totalorder %s15208_s5, %s15204_s25 }
  0x4c   :  { %p15211_p8 = por %p15210_p7, %p15209_p6 }
  0x4e   :  { %p15212_p9 = pnand %p15211_p8, %p15205_p5 }
  0x50   :  { %15215 = shalt.err (!%p15212_p9)
}
  0x51   :  { %109 = dma.hbm_to_vmem [thread:$0]  %s16577_s8, 48, %s107_s0, [#allocation21]  }
  0x52   :  { %s15216_s1 = scalar_lea.hbm %s16580_s11, 32 }
  0x53   :  { %p15217_p10 = scmp.ne.s32.totalorder %s16580_s11, %s15216_s1  ;;  %p15220_p11 = scmp.lt.u32.totalorder %s15216_s1, %s16580_s11 }
  0x55   :  { %p15222_p12 = pnand %p15220_p11, %p15217_p10 }
  0x57   :  { %15225 = shalt.err (!%p15222_p12)
}
  0x58   :  { %s15226_s28 = scalar_lea.vmem %s131_s24, 32  ;;  %p15231_p0 = scmp.lt.s32.totalorder %s131_s24, %s131_s24 }
  0x59   :  { %p15227_p13 = scmp.ne.s32.totalorder %s131_s24, %s15226_s28  ;;  %p15232_p1 = scmp.lt.s32.totalorder %s15226_s28, %s15226_s28 }
  0x5b   :  { %p15233_p2 = por %p15232_p1, %p15231_p0 }
  0x5d   :  { %p15234_p3 = pnand %p15233_p2, %p15227_p13 }
  0x5f   :  { %15237 = shalt.err (!%p15234_p3)
}
  0x60   :  { %133 = dma.hbm_to_vmem [thread:$0]  %s16580_s11, 32, %s131_s24, [#allocation24]  }
  0x61   :  { %s15572_s29 = smov [#allocation26]   ;;  %s15573_s5 = smov [#allocation29]  }
  0x62   :  { %s154_s25 = sshll.u32 %s15572_s29, 4  ;;  %s176_s30 = sshll.u32 %s15573_s5, 4  ;;  %s155_s25 = int_to_ptr.vmem [resolvable:$true] %s154_s25  ;;  %s177_s30 = int_to_ptr.vmem [resolvable:$true] %s176_s30 }
  0x63   :  { %s15238_s4 = scalar_lea.hbm %s16583_s14, 16 }
  0x64   :  { %p15239_p4 = scmp.ne.s32.totalorder %s16583_s14, %s15238_s4  ;;  %p15242_p5 = scmp.lt.u32.totalorder %s15238_s4, %s16583_s14 }
  0x66   :  { %p15244_p6 = pnand %p15242_p5, %p15239_p4 }
  0x68   :  { %15247 = shalt.err (!%p15244_p6)
}
  0x69   :  { %s15248_s11 = scalar_lea.vmem %s155_s25, 16  ;;  %s15252_s24 = scalar_lea.vmem %s155_s25, 32 }
  0x6a   :  { %p15249_p7 = scmp.ne.s32.totalorder %s155_s25, %s15248_s11  ;;  %p15253_p8 = scmp.lt.s32.totalorder %s155_s25, %s155_s25 }
  0x6b   :  { %p15254_p9 = scmp.lt.s32.totalorder %s15252_s24, %s15248_s11 }
  0x6d   :  { %p15255_p10 = por %p15254_p9, %p15253_p8 }
  0x6f   :  { %p15256_p11 = pnand %p15255_p10, %p15249_p7 }
  0x71   :  { %15259 = shalt.err (!%p15256_p11)
}
  0x72   :  { %157 = dma.hbm_to_vmem [thread:$0]  %s16583_s14, 16, %s155_s25, [#allocation27]  }
  0x73   :  { %s15260_s29 = scalar_lea.hbm %s16585_s16, 128 }
  0x74   :  { %p15261_p12 = scmp.ne.s32.totalorder %s16585_s16, %s15260_s29  ;;  %p15264_p13 = scmp.lt.u32.totalorder %s15260_s29, %s16585_s16 }
  0x76   :  { %p15266_p0 = pnand %p15264_p13, %p15261_p12 }
  0x78   :  { %15269 = shalt.err (!%p15266_p0)
}
  0x79   :  { %s15270_s1 = scalar_lea.vmem %s177_s30, 128  ;;  %p15275_p2 = scmp.lt.s32.totalorder %s177_s30, %s177_s30 }
  0x7a   :  { %p15271_p1 = scmp.ne.s32.totalorder %s177_s30, %s15270_s1  ;;  %p15276_p3 = scmp.lt.s32.totalorder %s15270_s1, %s15270_s1 }
  0x7c   :  { %p15277_p4 = por %p15276_p3, %p15275_p2 }
  0x7e   :  { %p15278_p5 = pnand %p15277_p4, %p15271_p1 }
  0x80   :  { %15281 = shalt.err (!%p15278_p5)
}
  0x81   :  { %179 = dma.hbm_to_vmem [thread:$0]  %s16585_s16, 128, %s177_s30, [#allocation30]  }
  0x82   :  { %s15574_s6 = smov [#allocation32]   ;;  %s15575_s2 = smov [#allocation11]  }
  0x83   :  { %s198_s27 = sshll.u32 %s15574_s6, 4  ;;  %s48_s11 = sshll.u32 %s15575_s2, 4  ;;  %s199_s27 = int_to_ptr.vmem [resolvable:$true] %s198_s27  ;;  %s49_s11 = int_to_ptr.vmem [resolvable:$true] %s48_s11 }
  0x84   :  { %s15282_s28 = scalar_lea.hbm %s16587_s18, 16 }
  0x85   :  { %p15283_p6 = scmp.ne.s32.totalorder %s16587_s18, %s15282_s28  ;;  %p15286_p7 = scmp.lt.u32.totalorder %s15282_s28, %s16587_s18 }
  0x87   :  { %p15288_p8 = pnand %p15286_p7, %p15283_p6 }
  0x89   :  { %15291 = shalt.err (!%p15288_p8)
}
  0x8a   :  { %s15292_s16 = scalar_lea.vmem %s199_s27, 16  ;;  %s15296_s30 = scalar_lea.vmem %s199_s27, 32 }
  0x8b   :  { %p15293_p9 = scmp.ne.s32.totalorder %s199_s27, %s15292_s16  ;;  %p15297_p10 = scmp.lt.s32.totalorder %s199_s27, %s199_s27 }
  0x8c   :  { %p15298_p11 = scmp.lt.s32.totalorder %s15296_s30, %s15292_s16 }
  0x8e   :  { %p15299_p12 = por %p15298_p11, %p15297_p10 }
  0x90   :  { %p15300_p13 = pnand %p15299_p12, %p15293_p9 }
  0x92   :  { %15303 = shalt.err (!%p15300_p13)
}
  0x93   :  { %201 = dma.hbm_to_vmem [thread:$0]  %s16587_s18, 16, %s199_s27, [#allocation33]  }
  0x94   :  { %s16611_s14 = sld [smem:[#allocation52_spill]] }
  0x9a   :  { %s15304_s25 = scalar_lea.hbm %s16611_s14, 64 }
  0x9b   :  { %p15305_p0 = scmp.ne.s32.totalorder %s16611_s14, %s15304_s25  ;;  %p15308_p1 = scmp.lt.u32.totalorder %s15304_s25, %s16611_s14 }
  0x9d   :  { %p15310_p2 = pnand %p15308_p1, %p15305_p0 }
  0x9f   :  { %15313 = shalt.err (!%p15310_p2)
}
  0xa0   :  { %s15314_s28 = scalar_lea.vmem %s49_s11, 64  ;;  %p15319_p4 = scmp.lt.s32.totalorder %s49_s11, %s49_s11 }
  0xa1   :  { %p15315_p3 = scmp.ne.s32.totalorder %s49_s11, %s15314_s28  ;;  %p15320_p5 = scmp.lt.s32.totalorder %s15314_s28, %s15314_s28 }
  0xa3   :  { %p15321_p6 = por %p15320_p5, %p15319_p4 }
  0xa5   :  { %p15322_p7 = pnand %p15321_p6, %p15315_p3 }
  0xa7   :  { %15325 = shalt.err (!%p15322_p7)
}
  0xa8   :  { %51 = dma.hbm_to_vmem [thread:$0]  %s16611_s14, 64, %s49_s11, [#allocation12]  }
  0xa9   :  { %s15576_s8 = smov [#allocation16]   ;;  %s16612_s16 = sld [smem:[#allocation55_spill]] }
  0xaa   :  { %s69_s0 = sshll.u32 %s15576_s8, 4  ;;  %s70_s0 = int_to_ptr.vmem [resolvable:$true] %s69_s0 }
  0xaf   :  { %s15326_s30 = scalar_lea.hbm %s16612_s16, 30720 }
  0xb0   :  { %p15327_p8 = scmp.ne.s32.totalorder %s16612_s16, %s15326_s30  ;;  %p15330_p9 = scmp.lt.u32.totalorder %s15326_s30, %s16612_s16 }
  0xb2   :  { %p15332_p10 = pnand %p15330_p9, %p15327_p8 }
  0xb4   :  { %15335 = shalt.err (!%p15332_p10)
}
  0xb5   :  { %s15336_s25 = scalar_lea.vmem %s70_s0, 30720  ;;  %p15341_p12 = scmp.lt.s32.totalorder %s70_s0, %s70_s0 }
  0xb6   :  { %p15337_p11 = scmp.ne.s32.totalorder %s70_s0, %s15336_s25  ;;  %p15342_p13 = scmp.lt.s32.totalorder %s15336_s25, %s15336_s25 }
  0xb8   :  { %p15343_p0 = por %p15342_p13, %p15341_p12 }
  0xba   :  { %p15344_p1 = pnand %p15343_p0, %p15337_p11 }
  0xbc   :  { %15347 = shalt.err (!%p15344_p1)
}
  0xbd   :  { %s15577_s11 = smov 320   ;;  %s15578_s14 = smov 20  }
  0xbe   :  { %75 = dma.hbm_to_vmem [thread:$0]  %s16612_s16, 30720, %s70_s0, [#allocation15], %s15577_s11, %s15577_s11, %s15578_s14  }
  0xbf   :  { %s15579_s24 = smov [#allocation19]   ;;  %s16613_s27 = sld [smem:[#allocation58_spill]] }
  0xc0   :  { %s93_s7 = sshll.u32 %s15579_s24, 4  ;;  %s94_s7 = int_to_ptr.vmem [resolvable:$true] %s93_s7 }
  0xc5   :  { %s15348_s8 = scalar_lea.hbm %s16613_s27, 46080 }
  0xc6   :  { %p15349_p2 = scmp.ne.s32.totalorder %s16613_s27, %s15348_s8  ;;  %p15352_p3 = scmp.lt.u32.totalorder %s15348_s8, %s16613_s27 }
  0xc8   :  { %p15354_p4 = pnand %p15352_p3, %p15349_p2 }
  0xca   :  { %15357 = shalt.err (!%p15354_p4)
}
  0xcb   :  { %s15358_s3 = scalar_lea.vmem %s94_s7, 46080  ;;  %p15363_p6 = scmp.lt.s32.totalorder %s94_s7, %s94_s7 }
  0xcc   :  { %p15359_p5 = scmp.ne.s32.totalorder %s94_s7, %s15358_s3  ;;  %p15364_p7 = scmp.lt.s32.totalorder %s15358_s3, %s15358_s3 }
  0xce   :  { %p15365_p8 = por %p15364_p7, %p15363_p6 }
  0xd0   :  { %p15366_p9 = pnand %p15365_p8, %p15359_p5 }
  0xd2   :  { %15369 = shalt.err (!%p15366_p9)
}
  0xd3   :  { %s15580_s0 = smov 192   ;;  %s15581_s16 = smov 12  }
  0xd4   :  { %99 = dma.hbm_to_vmem [thread:$0]  %s16613_s27, 46080, %s94_s7, [#allocation18], %s15580_s0, %s15580_s0, %s15581_s16  }
  0xd5   :  { %s15582_s25 = smov [#allocation22]   ;;  %s15370_s2 = scalar_lea.hbm %s16579_s10, 18432 }
  0xd6   :  { %s117_s11 = sshll.u32 %s15582_s25, 4  ;;  %p15371_p10 = scmp.ne.s32.totalorder %s16579_s10, %s15370_s2  ;;  %s118_s11 = int_to_ptr.vmem [resolvable:$true] %s117_s11 }
  0xd7   :  { %p15374_p11 = scmp.lt.u32.totalorder %s15370_s2, %s16579_s10 }
  0xd9   :  { %p15376_p12 = pnand %p15374_p11, %p15371_p10 }
  0xdb   :  { %15379 = shalt.err (!%p15376_p12)
}
  0xdc   :  { %s15380_s29 = scalar_lea.vmem %s118_s11, 18432  ;;  %p15385_p0 = scmp.lt.s32.totalorder %s118_s11, %s118_s11 }
  0xdd   :  { %p15381_p13 = scmp.ne.s32.totalorder %s118_s11, %s15380_s29  ;;  %p15386_p1 = scmp.lt.s32.totalorder %s15380_s29, %s15380_s29 }
  0xdf   :  { %p15387_p2 = por %p15386_p1, %p15385_p0 }
  0xe1   :  { %p15388_p3 = pnand %p15387_p2, %p15381_p13 }
  0xe3   :  { %15391 = shalt.err (!%p15388_p3)
}
  0xe4   :  { %s15583_s7 = smov 128   ;;  %s15584_s27 = smov 8  }
  0xe5   :  { %123 = dma.hbm_to_vmem [thread:$0]  %s16579_s10, 18432, %s118_s11, [#allocation21], %s15583_s7, %s15583_s7, %s15584_s27  }
  0xe6   :  { %s15585_s26 = smov [#allocation25]   ;;  %s15392_s4 = scalar_lea.hbm %s16582_s13, 6144 }
  0xe7   :  { %s141_s3 = sshll.u32 %s15585_s26, 4  ;;  %p15393_p4 = scmp.ne.s32.totalorder %s16582_s13, %s15392_s4  ;;  %s142_s3 = int_to_ptr.vmem [resolvable:$true] %s141_s3 }
  0xe8   :  { %p15396_p5 = scmp.lt.u32.totalorder %s15392_s4, %s16582_s13 }
  0xea   :  { %p15398_p6 = pnand %p15396_p5, %p15393_p4 }
  0xec   :  { %15401 = shalt.err (!%p15398_p6)
}
  0xed   :  { %s15402_s2 = scalar_lea.vmem %s142_s3, 6144  ;;  %p15407_p8 = scmp.lt.s32.totalorder %s142_s3, %s142_s3 }
  0xee   :  { %p15403_p7 = scmp.ne.s32.totalorder %s142_s3, %s15402_s2  ;;  %p15408_p9 = scmp.lt.s32.totalorder %s15402_s2, %s15402_s2 }
  0xf0   :  { %p15409_p10 = por %p15408_p9, %p15407_p8 }
  0xf2   :  { %p15410_p11 = pnand %p15409_p10, %p15403_p7 }
  0xf4   :  { %15413 = shalt.err (!%p15410_p11)
}
  0xf5   :  { %s15586_s10 = smov 64   ;;  %s15587_s11 = smov 4  }
  0xf6   :  { %147 = dma.hbm_to_vmem [thread:$0]  %s16582_s13, 6144, %s142_s3, [#allocation24], %s15586_s10, %s15586_s10, %s15587_s11  }
  0xf7   :  { %s15588_s18 = smov [#allocation28]   ;;  %s15414_s27 = scalar_lea.hbm %s16584_s15, 40960 }
  0xf8   :  { %s163_s8 = sshll.u32 %s15588_s18, 4  ;;  %p15415_p12 = scmp.ne.s32.totalorder %s16584_s15, %s15414_s27  ;;  %s164_s8 = int_to_ptr.vmem [resolvable:$true] %s163_s8 }
  0xf9   :  { %p15418_p13 = scmp.lt.u32.totalorder %s15414_s27, %s16584_s15 }
  0xfb   :  { %p15420_p0 = pnand %p15418_p13, %p15415_p12 }
  0xfd   :  { %15423 = shalt.err (!%p15420_p0)
}
  0xfe   :  { %s15424_s16 = scalar_lea.vmem %s164_s8, 40960  ;;  %p15429_p2 = scmp.lt.s32.totalorder %s164_s8, %s164_s8 }
  0xff   :  { %p15425_p1 = scmp.ne.s32.totalorder %s164_s8, %s15424_s16  ;;  %p15430_p3 = scmp.lt.s32.totalorder %s15424_s16, %s15424_s16 }
 0x101   :  { %p15431_p4 = por %p15430_p3, %p15429_p2 }
 0x103   :  { %p15432_p5 = pnand %p15431_p4, %p15425_p1 }
 0x105   :  { %15435 = shalt.err (!%p15432_p5)
}
 0x106   :  { %s15589_s13 = smov 512   ;;  %s15590_s3 = smov 32  }
 0x107   :  { %169 = dma.hbm_to_vmem [thread:$0]  %s16584_s15, 40960, %s164_s8, [#allocation27], %s15589_s13, %s15589_s13, %s15590_s3  }
 0x108   :  { %s15591_s25 = smov [#allocation31]   ;;  %s15592_s6 = smov [#allocation34]  }
 0x109   :  { %s185_s14 = sshll.u32 %s15591_s25, 4  ;;  %s208_s2 = sshll.u32 %s15592_s6, 4  ;;  %s186_s14 = int_to_ptr.vmem [resolvable:$true] %s185_s14  ;;  %s209_s2 = int_to_ptr.vmem [resolvable:$true] %s208_s2 }
 0x10a   :  { %s15436_s18 = scalar_lea.hbm %s16586_s17, 2048 }
 0x10b   :  { %p15437_p6 = scmp.ne.s32.totalorder %s16586_s17, %s15436_s18  ;;  %p15440_p7 = scmp.lt.u32.totalorder %s15436_s18, %s16586_s17 }
 0x10d   :  { %p15442_p8 = pnand %p15440_p7, %p15437_p6 }
 0x10f   :  { %15445 = shalt.err (!%p15442_p8)
}
 0x110   :  { %s15446_s15 = scalar_lea.vmem %s186_s14, 2048  ;;  %p15451_p10 = scmp.lt.s32.totalorder %s186_s14, %s186_s14 }
 0x111   :  { %p15447_p9 = scmp.ne.s32.totalorder %s186_s14, %s15446_s15  ;;  %p15452_p11 = scmp.lt.s32.totalorder %s15446_s15, %s15446_s15 }
 0x113   :  { %p15453_p12 = por %p15452_p11, %p15451_p10 }
 0x115   :  { %p15454_p13 = pnand %p15453_p12, %p15447_p9 }
 0x117   :  { %15457 = shalt.err (!%p15454_p13)
}
 0x118   :  { %191 = dma.hbm_to_vmem [thread:$0]  %s16586_s17, 2048, %s186_s14, [#allocation30], %s15586_s10, %s15586_s10, %s15587_s11  }
 0x119   :  { %s15458_s16 = scalar_lea.hbm %s16588_s19, 16 }
 0x11a   :  { %p15459_p0 = scmp.ne.s32.totalorder %s16588_s19, %s15458_s16  ;;  %p15462_p1 = scmp.lt.u32.totalorder %s15458_s16, %s16588_s19 }
 0x11c   :  { %p15464_p2 = pnand %p15462_p1, %p15459_p0 }
 0x11e   :  { %15467 = shalt.err (!%p15464_p2)
}
 0x11f   :  { %s15468_s25 = scalar_lea.vmem %s209_s2, 16  ;;  %s15472_s6 = scalar_lea.vmem %s209_s2, 32 }
 0x120   :  { %p15469_p3 = scmp.ne.s32.totalorder %s209_s2, %s15468_s25  ;;  %p15473_p4 = scmp.lt.s32.totalorder %s209_s2, %s209_s2 }
 0x121   :  { %p15474_p5 = scmp.lt.s32.totalorder %s15472_s6, %s15468_s25 }
 0x123   :  { %p15475_p6 = por %p15474_p5, %p15473_p4 }
 0x125   :  { %p15476_p7 = pnand %p15475_p6, %p15469_p3 }
 0x127   :  { %15479 = shalt.err (!%p15476_p7)
}
 0x128   :  { %211 = dma.hbm_to_vmem [thread:$0]  %s16588_s19, 16, %s209_s2, [#allocation33]  }
 0x129   :  { %s15593_s11 = smov [#allocation35]   ;;  %s15480_s18 = scalar_lea.hbm %s16589_s20, 16 }
 0x12a   :  { %s218_s14 = sshll.u32 %s15593_s11, 4  ;;  %p15481_p8 = scmp.ne.s32.totalorder %s16589_s20, %s15480_s18  ;;  %s219_s14 = int_to_ptr.vmem [resolvable:$true] %s218_s14 }
 0x12b   :  { %p15484_p9 = scmp.lt.u32.totalorder %s15480_s18, %s16589_s20 }
 0x12d   :  { %p15486_p10 = pnand %p15484_p9, %p15481_p8 }
 0x12f   :  { %15489 = shalt.err (!%p15486_p10)
}
 0x130   :  { %s15490_s15 = scalar_lea.vmem %s219_s14, 16  ;;  %s15494_s19 = scalar_lea.vmem %s219_s14, 32 }
 0x131   :  { %p15491_p11 = scmp.ne.s32.totalorder %s219_s14, %s15490_s15  ;;  %p15495_p12 = scmp.lt.s32.totalorder %s219_s14, %s219_s14 }
 0x132   :  { %p15496_p13 = scmp.lt.s32.totalorder %s15494_s19, %s15490_s15 }
 0x134   :  { %p15497_p0 = por %p15496_p13, %p15495_p12 }
 0x136   :  { %p15498_p1 = pnand %p15497_p0, %p15491_p11 }
 0x138   :  { %15501 = shalt.err (!%p15498_p1)
}
 0x139   :  { %221 = dma.hbm_to_vmem [thread:$0]  %s16589_s20, 16, %s219_s14, [#allocation36]  }
 0x13a   :  { %15546 = dma.done.wait [#allocation12], 64  }
 0x13b   :  { %15547 = vsyncadd [#allocation12], 4294967232 }
 0x13c   :  { %15548 = dma.done.wait [#allocation15], 30784  }
 0x13d   :  { %15549 = vsyncadd [#allocation15], 4294936512 }
 0x13e   :  { %15550 = dma.done.wait [#allocation18], 46160  }
 0x13f   :  { %15551 = vsyncadd [#allocation18], 4294921136 }
 0x140   :  { %15552 = dma.done.wait [#allocation21], 18480  }
 0x141   :  { %15553 = vsyncadd [#allocation21], 4294948816 }
 0x142   :  { %15554 = dma.done.wait [#allocation24], 6176  }
 0x143   :  { %15555 = vsyncadd [#allocation24], 4294961120 }
 0x144   :  { %15556 = dma.done.wait [#allocation27], 40976  }
 0x145   :  { %15557 = vsyncadd [#allocation27], 4294926320 }
 0x146   :  { %15558 = dma.done.wait [#allocation30], 2176  }
 0x147   :  { %15559 = vsyncadd [#allocation30], 4294965120 }
 0x148   :  { %15560 = dma.done.wait [#allocation33], 32  }
 0x149   :  { %15561 = vsyncadd [#allocation33], 4294967264 }
 0x14a   :  { %15562 = dma.done.wait [#allocation36], 16  }
 0x14b   :  { %15563 = vsyncadd [#allocation36], 4294967280  ;;  %v15594_v0 = vmov 0   ;;  %s16614_s26 = sld [smem:[#allocation51_spill]]  ;;  %v13953_v12 = vld [vmem:[#allocation16 + $0x4] ss:$20 sps:$4 sm:$0xff]  }
 0x14c   :  { %454 = vmatprep.mubr.bf16.mxu0 %v15594_v0  ;;  %vm415_vm0 = vcmask 1041408   ;;  %2303 = vmatprep.subr.bf16.mxu1 %v13953_v12  ;;  %v13958_v15 = vld [vmem:[#allocation16] ss:$20 sps:$4 sm:$0xff]   ;;  %v13964_v18 = vld [vmem:[#allocation16 + $0x28] ss:$20 sps:$4 sm:$0xff]   ;;  %s16615_s8 = sld [smem:[#allocation54_spill]] }
 0x14d   :  { %v13959_v16 = vld [vmem:[#allocation16 + $0x2c] ss:$20 sps:$4 sm:$0xff]   ;;  %2304 = vmatpush1.bf16.msra.mxu1 %v13958_v15  ;;  %v13965_v20 = vld [vmem:[#allocation16 + $0x54] ss:$20 sps:$4 sm:$0xff]   ;;  %vm390_vm1 = vcmask 687104   ;;  %vm3090_vm2 = vcmask 1043456  }
 0x14e   :  { %v13957_v17 = vld [vmem:[#allocation16 + $0xc] ss:$20 sps:$4 sm:$0xff]   ;;  %2305 = vmatprep.subr.bf16.mxu1 %v13959_v16  ;;  %v13955_v22 = vld [vmem:[#allocation16 + $0x8] ss:$20 sps:$4 sm:$0xff]   ;;  %v13970_v24 = vld [vmem:[#allocation16 + $0x50] ss:$20 sps:$4 sm:$0xff]  }
 0x14f   :  { %v13963_v23 = vld [vmem:[#allocation16 + $0x34] ss:$20 sps:$4 sm:$0xff]   ;;  %v13971_v25 = vld [vmem:[#allocation16 + $0x7c] ss:$20 sps:$4 sm:$0xff]   ;;  %v13976_v28 = vld [vmem:[#allocation16 + $0x78] ss:$20 sps:$4 sm:$0xff]  }
 0x150   :  { %v13961_v26 = vld [vmem:[#allocation16 + $0x30] ss:$20 sps:$4 sm:$0xff]   ;;  %v13967_v31 = vld [vmem:[#allocation16 + $0x58] ss:$20 sps:$4 sm:$0xff]   ;;  %v13982_v33 = vld [vmem:[#allocation16 + $0xa0] ss:$20 sps:$4 sm:$0xff]  }
 0x151   :  { %v13928_v1 = vld [vmem:[%s16614_s26 + $0x4] ss:$8 sps:$4 sm:$0xff]   ;;  %v13930_v2 = vld [vmem:[%s16614_s26] ss:$8 sps:$4 sm:$0xff]   ;;  %v13931_v3 = vld [vmem:[%s16614_s26 + $0x14] ss:$8 sps:$4 sm:$0xff]   ;;  %2306 = vmatpush1.bf16.msra.mxu1 %v13964_v18 }
 0x152   :  { %422 = vmatprep.subr.bf16.mxu0 %v13928_v1  ;;  %v13933_v4 = vld [vmem:[%s16614_s26 + $0x10] ss:$8 sps:$4 sm:$0xff]   ;;  %v13934_v5 = vld [vmem:[%s16614_s26 + $0x24] ss:$8 sps:$4 sm:$0xff]   ;;  %v13936_v6 = vld [vmem:[%s16614_s26 + $0x20] ss:$8 sps:$4 sm:$0xff]   ;;  %2307 = vmatprep.subr.bf16.mxu1 %v13965_v20 }
 0x153   :  { %423 = vmatpush1.bf16.msra.mxu0 %v13930_v2  ;;  %v13937_v7 = vld [vmem:[%s16614_s26 + $0x34] ss:$8 sps:$4 sm:$0xff]   ;;  %v13939_v8 = vld [vmem:[%s16614_s26 + $0x30] ss:$8 sps:$4 sm:$0xff]   ;;  %v13940_v9 = vld [vmem:[%s16614_s26 + $0x44] ss:$8 sps:$4 sm:$0xff]  }
 0x154   :  { %424 = vmatprep.subr.bf16.mxu0 %v13931_v3  ;;  %v281_v10 = vld [vmem:[%s16614_s26 + $0x50] sm:$0x33]  ;;  %v13942_v11 = vld [vmem:[%s16614_s26 + $0x40] ss:$8 sps:$4 sm:$0xff]   ;;  %v13948_v48 = vld [vmem:[%s16615_s8 + $0x18] sm:$0xff]   ;;  %s16616_s28 = sld [smem:[#allocation57_spill]] }
 0x155   :  { %v11811_v13 = vcombine.high %v281_v10, %v281_v10  ;;  %v11810_v14 = vcombine.low %v281_v10, %v281_v10  ;;  %v13945_v21 = vld [vmem:[%s16615_s8] sm:$0xff]   ;;  %2308 = vmatpush1.bf16.msra.mxu1 %v13970_v24  ;;  %v13946_v30 = vld [vmem:[%s16615_s8 + $0x8] sm:$0xff]   ;;  %v13947_v39 = vld [vmem:[%s16615_s8 + $0x10] sm:$0xff]   ;;  %vm3074_vm3 = vcmask 326656   ;;  %vm15596_vm4 = vmmov 0   ;;  %s15599_s25 = smov [#allocation38]  }
 0x156   :  { %v13969_v27 = vld [vmem:[#allocation16 + $0x5c] ss:$20 sps:$4 sm:$0xff]   ;;  %2309 = vmatprep.subr.bf16.mxu1 %v13971_v25  ;;  %v13977_v29 = vld [vmem:[#allocation16 + $0xa4] ss:$20 sps:$4 sm:$0xff]   ;;  %v13983_v34 = vld [vmem:[#allocation16 + $0xcc] ss:$20 sps:$4 sm:$0xff]  }
 0x157   :  { %425 = vmatpush1.bf16.msra.mxu0 %v13933_v4  ;;  %v417_v19 = vsel %vm415_vm0, %v11810_v14, 0  ;;  %v13975_v32 = vld [vmem:[#allocation16 + $0x84] ss:$20 sps:$4 sm:$0xff]   ;;  %v13973_v35 = vld [vmem:[#allocation16 + $0x80] ss:$20 sps:$4 sm:$0xff]   ;;  %vm6987_vm5 = vcmask 195584  }
 0x158   :  { %426 = vmatprep.subr.bf16.mxu0 %v13934_v5  ;;  %v13981_v36 = vld [vmem:[#allocation16 + $0xac] ss:$20 sps:$4 sm:$0xff]   ;;  %v13988_v37 = vld [vmem:[#allocation16 + $0xc8] ss:$20 sps:$4 sm:$0xff]   ;;  %v13994_v42 = vld [vmem:[#allocation16 + $0xf0] ss:$20 sps:$4 sm:$0xff]  }
 0x159   :  { %2310 = vmatpush1.bf16.msra.mxu1 %v13976_v28  ;;  %v13989_v38 = vld [vmem:[#allocation16 + $0xf4] ss:$20 sps:$4 sm:$0xff]   ;;  %v13995_v43 = vld [vmem:[#allocation16 + $0x11c] ss:$20 sps:$4 sm:$0xff]   ;;  %v14000_v46 = vld [vmem:[#allocation16 + $0x118] ss:$20 sps:$4 sm:$0xff]  }
 0x15a   :  { %2311 = vmatprep.subr.bf16.mxu1 %v13977_v29  ;;  %v13979_v40 = vld [vmem:[#allocation16 + $0xa8] ss:$20 sps:$4 sm:$0xff]   ;;  %v13985_v44 = vld [vmem:[#allocation16 + $0xd0] ss:$20 sps:$4 sm:$0xff]   ;;  %v13991_v49 = vld [vmem:[#allocation16 + $0xf8] ss:$20 sps:$4 sm:$0xff]  }
 0x15b   :  { %427 = vmatpush1.bf16.msra.mxu0 %v13936_v6  ;;  %v13987_v41 = vld [vmem:[#allocation16 + $0xd4] ss:$20 sps:$4 sm:$0xff]   ;;  %v13993_v45 = vld [vmem:[#allocation16 + $0xfc] ss:$20 sps:$4 sm:$0xff]   ;;  %v14001_v47 = vld [vmem:[#allocation16 + $0x144] ss:$20 sps:$4 sm:$0xff]  }
 0x15c   :  { %428 = vmatprep.subr.bf16.mxu0 %v13937_v7  ;;  %v13999_v50 = vld [vmem:[#allocation16 + $0x124] ss:$20 sps:$4 sm:$0xff]   ;;  %v14006_v51 = vld [vmem:[#allocation16 + $0x140] ss:$20 sps:$4 sm:$0xff]   ;;  %v14012_v56 = vld [vmem:[#allocation16 + $0x168] ss:$20 sps:$4 sm:$0xff]  }
 0x15d   :  { %2312 = vmatpush1.bf16.msra.mxu1 %v13982_v33  ;;  %v14007_v52 = vld [vmem:[#allocation16 + $0x16c] ss:$20 sps:$4 sm:$0xff]   ;;  %v13949_v55 = vld [vmem:[%s16615_s8 + $0x20] sm:$0xff]   ;;  %v14003_v57 = vld [vmem:[#allocation16 + $0x148] ss:$20 sps:$4 sm:$0xff]   ;;  %vm8265_vm6 = vcmask 130048  }
 0x15e   :  { %2313 = vmatprep.subr.bf16.mxu1 %v13983_v34  ;;  %v13997_v53 = vld [vmem:[#allocation16 + $0x120] ss:$20 sps:$4 sm:$0xff]   ;;  %v14018_v60 = vld [vmem:[#allocation16 + $0x190] ss:$20 sps:$4 sm:$0xff]   ;;  %v14024_v1 = vld [vmem:[#allocation16 + $0x1b8] ss:$20 sps:$4 sm:$0xff]  }
 0x15f   :  { %429 = vmatpush1.bf16.msra.mxu0 %v13939_v8  ;;  %v14005_v54 = vld [vmem:[#allocation16 + $0x14c] ss:$20 sps:$4 sm:$0xff]   ;;  %v14013_v58 = vld [vmem:[#allocation16 + $0x194] ss:$20 sps:$4 sm:$0xff]   ;;  %v14019_v61 = vld [vmem:[#allocation16 + $0x1bc] ss:$20 sps:$4 sm:$0xff]  }
 0x160   :  { %430 = vmatprep.subr.bf16.mxu0 %v13940_v9  ;;  %v14011_v59 = vld [vmem:[#allocation16 + $0x174] ss:$20 sps:$4 sm:$0xff]   ;;  %v14009_v62 = vld [vmem:[#allocation16 + $0x170] ss:$20 sps:$4 sm:$0xff]   ;;  %v13950_v3 = vld [vmem:[%s16615_s8 + $0x28] sm:$0xff]   ;;  %s11769_s6 = sshll.u32 %s15599_s25, 4  ;;  %s11770_s6 = int_to_ptr.vmem [resolvable:$true] %s11769_s6 }
 0x161   :  { %2314 = vmatpush1.bf16.msra.mxu1 %v13988_v37  ;;  %v14017_v63 = vld [vmem:[#allocation16 + $0x19c] ss:$20 sps:$4 sm:$0xff]   ;;  %v14025_v2 = vld [vmem:[#allocation16 + $0x1e4] ss:$20 sps:$4 sm:$0xff]   ;;  %v14030_v6 = vld [vmem:[#allocation16 + $0x1e0] ss:$20 sps:$4 sm:$0xff]  }
 0x162   :  { %2315 = vmatprep.subr.bf16.mxu1 %v13989_v38  ;;  %v14015_v4 = vld [vmem:[#allocation16 + $0x198] ss:$20 sps:$4 sm:$0xff]   ;;  %v14021_v8 = vld [vmem:[#allocation16 + $0x1c0] ss:$20 sps:$4 sm:$0xff]   ;;  %v14036_v10 = vld [vmem:[#allocation16 + $0x208] ss:$20 sps:$4 sm:$0xff]  }
 0x163   :  { %431 = vmatpush1.bf16.msra.mxu0 %v13942_v11  ;;  %v14023_v5 = vld [vmem:[#allocation16 + $0x1c4] ss:$20 sps:$4 sm:$0xff]   ;;  %v14031_v7 = vld [vmem:[#allocation16 + $0x20c] ss:$20 sps:$4 sm:$0xff]   ;;  %v14037_v11 = vld [vmem:[#allocation16 + $0x234] ss:$20 sps:$4 sm:$0xff]  }
 0x164   :  { %11812 = vmatprep.subr.msk.bf16.mxu0 %vm415_vm0, %v11811_v13  ;;  %v14029_v9 = vld [vmem:[#allocation16 + $0x1ec] ss:$20 sps:$4 sm:$0xff]   ;;  %v14027_v13 = vld [vmem:[#allocation16 + $0x1e8] ss:$20 sps:$4 sm:$0xff]   ;;  %v14042_v15 = vld [vmem:[#allocation16 + $0x230] ss:$20 sps:$4 sm:$0xff]  }
 0x165   :  { %2316 = vmatpush1.bf16.msra.mxu1 %v13994_v42  ;;  %v13951_v12 = vld [vmem:[%s16615_s8 + $0x30] sm:$0xff]   ;;  %v13952_v18 = vld [vmem:[%s16615_s8 + $0x38] ss:$0 sps:$4 sm:$0xff]   ;;  %v14043_v20 = vld [vmem:[#allocation16 + $0x25c] ss:$20 sps:$4 sm:$0xff]  }
 0x166   :  { %2317 = vmatprep.subr.bf16.mxu1 %v13995_v43  ;;  %v14035_v14 = vld [vmem:[#allocation16 + $0x214] ss:$20 sps:$4 sm:$0xff]   ;;  %v14033_v16 = vld [vmem:[#allocation16 + $0x210] ss:$20 sps:$4 sm:$0xff]   ;;  %v14054_v25 = vld [vmem:[#allocation16 + $0x28c] ss:$20 sps:$4 sm:$0xff]  }
 0x167   :  { %433 = vmatpush1.bf16.msra.mxu0 %v417_v19  ;;  %v14039_v19 = vld [vmem:[#allocation16 + $0x238] ss:$20 sps:$4 sm:$0xff]   ;;  %v14049_v29 = vld [vmem:[#allocation16 + $0x280] ss:$20 sps:$4 sm:$0xff]   ;;  %v14058_v37 = vld [vmem:[#allocation16 + $0x2b0] ss:$20 sps:$4 sm:$0xff]  }
 0x168   :  { %2486 = vmatprep.subr.bf16.mxu0 %v13957_v17  ;;  %v14041_v17 = vld [vmem:[#allocation16 + $0x23c] ss:$20 sps:$4 sm:$0xff]   ;;  %v14051_v24 = vld [vmem:[#allocation16 + $0x284] ss:$20 sps:$4 sm:$0xff]   ;;  %v14057_v33 = vld [vmem:[#allocation16 + $0x2ac] ss:$20 sps:$4 sm:$0xff]  }
 0x169   :  { %2318 = vmatpush1.bf16.msra.mxu1 %v14000_v46  ;;  %v14060_v34 = vld [vmem:[#allocation16 + $0x2b4] ss:$20 sps:$4 sm:$0xff]   ;;  %v14061_v42 = vld [vmem:[#allocation16 + $0x2d0] ss:$20 sps:$4 sm:$0xff]   ;;  %v14064_v43 = vld [vmem:[#allocation16 + $0x2d8] ss:$20 sps:$4 sm:$0xff]  }
 0x16a   :  { %11813 = vmatmul.mubr.msk.bf16.vlgmr.msra.gmra.mrb[0].mxu0 %vm390_vm1, %v13945_v21  ;;  %2319 = vmatprep.subr.bf16.mxu1 %v14001_v47  ;;  %v14047_v21 = vld [vmem:[#allocation16 + $0x264] ss:$20 sps:$4 sm:$0xff]   ;;  %v14063_v38 = vld [vmem:[#allocation16 + $0x2d4] ss:$20 sps:$4 sm:$0xff]  }
 0x16b   :  { %464 = vmatprep.mubr.bf16.mxu0 %v15594_v0  ;;  %2487 = vmatpush1.bf16.msra.mxu0 %v13955_v22  ;;  %v14045_v22 = vld [vmem:[#allocation16 + $0x260] ss:$20 sps:$4 sm:$0xff]   ;;  %v14072_v46 = vld [vmem:[#allocation16 + $0x304] ss:$20 sps:$4 sm:$0xff]  }
 0x16c   :  { %2488 = vmatprep.subr.bf16.mxu0 %v13963_v23  ;;  %v14048_v23 = vld [vmem:[#allocation16 + $0x258] ss:$20 sps:$4 sm:$0xff]  }
 0x16d   :  { %2320 = vmatpush1.bf16.msra.mxu1 %v14006_v51  ;;  %v14070_v51 = vld [vmem:[#allocation16 + $0x300] ss:$20 sps:$4 sm:$0xff]  }
 0x16e   :  { %2321 = vmatprep.subr.bf16.mxu1 %v14007_v52 }
 0x16f   :  { %2489 = vmatpush1.bf16.msra.mxu0 %v13961_v26 }
 0x170   :  { %2490 = vmatprep.subr.bf16.mxu0 %v13969_v27 }
 0x171   :  { %2322 = vmatpush1.bf16.msra.mxu1 %v14012_v56  ;;  %v14073_v56 = vld [vmem:[#allocation16 + $0x320] ss:$20 sps:$4 sm:$0xff]  }
 0x172   :  { %11814 = vmatmul.mubr.msk.bf16.gmra.mrb[4].mxu0 %vm390_vm1, %v13946_v30  ;;  %2323 = vmatprep.subr.bf16.mxu1 %v14013_v58  ;;  %v14052_v30 = vld [vmem:[#allocation16 + $0x288] ss:$20 sps:$4 sm:$0xff]  }
 0x173   :  { %474 = vmatprep.mubr.bf16.mxu0 %v15594_v0  ;;  %2491 = vmatpush1.bf16.msra.mxu0 %v13967_v31 }
 0x174   :  { %2492 = vmatprep.subr.bf16.mxu0 %v13975_v32 }
 0x175   :  { %2324 = vmatpush1.bf16.msra.mxu1 %v14018_v60  ;;  %v14081_v60 = vld [vmem:[#allocation16 + $0x34c] ss:$20 sps:$4 sm:$0xff]  }
 0x176   :  { %2325 = vmatprep.subr.bf16.mxu1 %v14019_v61  ;;  %v14084_v61 = vld [vmem:[#allocation16 + $0x354] ss:$20 sps:$4 sm:$0xff]  }
 0x177   :  { %2493 = vmatpush1.bf16.msra.mxu0 %v13973_v35 }
 0x178   :  { %2494 = vmatprep.subr.bf16.mxu0 %v13981_v36  ;;  %v14055_v36 = vld [vmem:[#allocation16 + $0x2a8] ss:$20 sps:$4 sm:$0xff]  }
 0x179   :  { %2326 = vmatpush1.bf16.msra.mxu1 %v14024_v1  ;;  %v14079_v1 = vld [vmem:[#allocation16 + $0x348] ss:$20 sps:$4 sm:$0xff]  }
 0x17a   :  { %11815 = vmatmul.mubr.msk.bf16.gmra.mrb[8].mxu0 %vm390_vm1, %v13947_v39  ;;  %2327 = vmatprep.subr.bf16.mxu1 %v14025_v2  ;;  %v14066_v39 = vld [vmem:[#allocation16 + $0x2dc] ss:$20 sps:$4 sm:$0xff]  }
 0x17b   :  { %484 = vmatprep.mubr.bf16.mxu0 %v15594_v0  ;;  %2495 = vmatpush1.bf16.msra.mxu0 %v13979_v40  ;;  %v14082_v2 = vld [vmem:[#allocation16 + $0x350] ss:$20 sps:$4 sm:$0xff]  }
 0x17c   :  { %2496 = vmatprep.subr.bf16.mxu0 %v13987_v41 }
 0x17d   :  { %2328 = vmatpush1.bf16.msra.mxu1 %v14030_v6 }
 0x17e   :  { %2329 = vmatprep.subr.bf16.mxu1 %v14031_v7 }
 0x17f   :  { %2497 = vmatpush1.bf16.msra.mxu0 %v13985_v44 }
 0x180   :  { %2498 = vmatprep.subr.bf16.mxu0 %v13993_v45  ;;  %v14069_v45 = vld [vmem:[#allocation16 + $0x2fc] ss:$20 sps:$4 sm:$0xff]  }
 0x181   :  { %2330 = vmatpush1.bf16.msra.mxu1 %v14036_v10  ;;  %v14085_v10 = vld [vmem:[#allocation16 + $0x370] ss:$20 sps:$4 sm:$0xff]  }
 0x182   :  { %11816 = vmatmul.mubr.msk.bf16.gmra.mrb[12].mxu0 %vm390_vm1, %v13948_v48  ;;  %2331 = vmatprep.subr.bf16.mxu1 %v14037_v11 }
 0x183   :  { %494 = vmatprep.mubr.bf16.mxu0 %v15594_v0  ;;  %2499 = vmatpush1.bf16.msra.mxu0 %v13991_v49 }
 0x184   :  { %2500 = vmatprep.subr.bf16.mxu0 %v13999_v50  ;;  %v14067_v50 = vld [vmem:[#allocation16 + $0x2f8] ss:$20 sps:$4 sm:$0xff]  }
 0x185   :  { %2332 = vmatpush1.bf16.msra.mxu1 %v14042_v15  ;;  %v14091_v15 = vld [vmem:[#allocation16 + $0x398] ss:$20 sps:$4 sm:$0xff]  }
 0x186   :  { %2333 = vmatprep.subr.bf16.mxu1 %v14043_v20 }
 0x187   :  { %2501 = vmatpush1.bf16.msra.mxu0 %v13997_v53  ;;  %v14075_v53 = vld [vmem:[#allocation16 + $0x324] ss:$20 sps:$4 sm:$0xff]  }
 0x188   :  { %2502 = vmatprep.subr.bf16.mxu0 %v14005_v54  ;;  %v14078_v54 = vld [vmem:[#allocation16 + $0x32c] ss:$20 sps:$4 sm:$0xff]  }
 0x189   :  { %2334 = vmatpush1.bf16.msra.mxu1 %v14048_v23  ;;  %v14100_v23 = vld [vmem:[#allocation16 + $0x3c8] ss:$20 sps:$4 sm:$0xff]  }
 0x18a   :  { %11817 = vmatmul.mubr.msk.bf16.gmra.mrb[16].mxu0 %vm390_vm1, %v13949_v55  ;;  %2364 = vmatprep.subr.bf16.mxu1 %v14051_v24 }
 0x18b   :  { %504 = vmatprep.mubr.bf16.mxu0 %v15594_v0  ;;  %2503 = vmatpush1.bf16.msra.mxu0 %v14003_v57  ;;  %v14076_v57 = vld [vmem:[#allocation16 + $0x328] ss:$20 sps:$4 sm:$0xff]  }
 0x18c   :  { %2504 = vmatprep.subr.bf16.mxu0 %v14011_v59 }
 0x18f   :  { %2505 = vmatpush1.bf16.msra.mxu0 %v14009_v62 }
 0x190   :  { %2506 = vmatprep.subr.bf16.mxu0 %v14017_v63 }
 0x192   :  { %11818 = vmatmul.mubr.msk.bf16.gmra.mrb[20].mxu0 %vm390_vm1, %v13950_v3  ;;  %v14087_v3 = vld [vmem:[#allocation16 + $0x374] ss:$20 sps:$4 sm:$0xff]  }
 0x193   :  { %514 = vmatprep.mubr.bf16.mxu0 %v15594_v0  ;;  %2507 = vmatpush1.bf16.msra.mxu0 %v14015_v4  ;;  %v14090_v4 = vld [vmem:[#allocation16 + $0x37c] ss:$20 sps:$4 sm:$0xff]  }
 0x194   :  { %2508 = vmatprep.subr.bf16.mxu0 %v14023_v5 }
 0x197   :  { %2509 = vmatpush1.bf16.msra.mxu0 %v14021_v8 }
 0x198   :  { %2510 = vmatprep.subr.bf16.mxu0 %v14029_v9 }
 0x19a   :  { %11819 = vmatmul.mubr.msk.bf16.gmra.mrb[24].mxu0 %vm390_vm1, %v13951_v12  ;;  %v14088_v12 = vld [vmem:[#allocation16 + $0x378] ss:$20 sps:$4 sm:$0xff]  }
 0x19b   :  { %524 = vmatprep.mubr.bf16.mxu0 %v15594_v0  ;;  %2511 = vmatpush1.bf16.msra.mxu0 %v14027_v13  ;;  %v14093_v13 = vld [vmem:[#allocation16 + $0x39c] ss:$20 sps:$4 sm:$0xff]  }
 0x19c   :  { %2512 = vmatprep.subr.bf16.mxu0 %v14035_v14  ;;  %v14096_v14 = vld [vmem:[#allocation16 + $0x3a4] ss:$20 sps:$4 sm:$0xff]  }
 0x19f   :  { %2513 = vmatpush1.bf16.msra.mxu0 %v14033_v16  ;;  %v14094_v16 = vld [vmem:[#allocation16 + $0x3a0] ss:$20 sps:$4 sm:$0xff]  }
 0x1a0   :  { %2514 = vmatprep.subr.bf16.mxu0 %v14041_v17 }
 0x1a2   :  { %11820 = vmatmul.mubr.msk.bf16.gmra.mrb[28].mxu0 %vm390_vm1, %v13952_v18  ;;  %v14099_v18 = vld [vmem:[#allocation16 + $0x3c4] ss:$20 sps:$4 sm:$0xff]  }
 0x1a3   :  { %2515 = vmatpush1.bf16.msra.mxu0 %v14039_v19  ;;  %v14102_v19 = vld [vmem:[#allocation16 + $0x3cc] ss:$20 sps:$4 sm:$0xff]  }
 0x1a4   :  { %2516 = vmatprep.subr.bf16.mxu0 %v14047_v21 }
 0x1a7   :  { %2517 = vmatpush1.bf16.msra.mxu0 %v14045_v22  ;;  %v14097_v22 = vld [vmem:[#allocation16 + $0x3c0] ss:$20 sps:$4 sm:$0xff]  }
 0x1a8   :  { %2547 = vmatprep.subr.bf16.mxu0 %v14054_v25 }
 0x23d   :  { %v456_v26 = vpop.f32.mrb[0].mxu0 }
 0x23e   :  { %v458_v27 = vpop.f32.mrb[1].mxu0 }
 0x23f   :  { %v460_v28 = vpop.f32.mrb[2].mxu0 }
 0x240   :  { %v15993_v31 = vpack.c.bf16 %v460_v28, %v456_v26  ;;  %v462_v32 = vpop.f32.mrb[3].mxu0  ;;  %v14105_v26 = vld [vmem:[#allocation16 + $0x3ec] ss:$20 sps:$4 sm:$0xff]   ;;  %v14108_v28 = vld [vmem:[#allocation16 + $0x3f4] ss:$20 sps:$4 sm:$0xff]  }
 0x241   :  { %v15995_v35 = vpack.c.bf16 %v462_v32, %v458_v27  ;;  %v14111_v32 = vld [vmem:[#allocation16 + $0x414] ss:$20 sps:$4 sm:$0xff]  }
 0x243   :  { %2335 = vmatprep.mubr.bf16.mxu1 %v15995_v35  ;;  %2518 = vmatprep.mubr.bf16.mxu0 %v15995_v35 }
 0x244   :  { %2336 = vmatmul.mubr.bf16.vlgmr.msra.gmra.mrb[0].mxu1 %v15993_v31  ;;  %2519 = vmatmul.mubr.bf16.vlgmr.msra.gmra.mrb[32].mxu0 %v15993_v31 }
 0x245   :  { %2365 = vmatpush1.bf16.msra.mxu1 %v14049_v29  ;;  %2548 = vmatpush1.bf16.msra.mxu0 %v14052_v30  ;;  %v466_v40 = vpop.f32.mrb[4].mxu0  ;;  %v14103_v29 = vld [vmem:[#allocation16 + $0x3e8] ss:$20 sps:$4 sm:$0xff]   ;;  %v14106_v30 = vld [vmem:[#allocation16 + $0x3f0] ss:$20 sps:$4 sm:$0xff]  }
 0x246   :  { %2366 = vmatprep.subr.bf16.mxu1 %v14057_v33  ;;  %2549 = vmatprep.subr.bf16.mxu0 %v14060_v34  ;;  %v468_v41 = vpop.f32.mrb[5].mxu0  ;;  %v14114_v34 = vld [vmem:[#allocation16 + $0x41c] ss:$20 sps:$4 sm:$0xff]  }
 0x247   :  { %v470_v44 = vpop.f32.mrb[6].mxu0 }
 0x248   :  { %v16001_v47 = vpack.c.bf16 %v470_v44, %v466_v40  ;;  %v472_v48 = vpop.f32.mrb[7].mxu0  ;;  %v14117_v40 = vld [vmem:[#allocation16 + $0x43c] ss:$20 sps:$4 sm:$0xff]  }
 0x249   :  { %2367 = vmatpush1.bf16.msra.mxu1 %v14055_v36  ;;  %2550 = vmatpush1.bf16.msra.mxu0 %v14058_v37  ;;  %v16003_v49 = vpack.c.bf16 %v472_v48, %v468_v41  ;;  %v14109_v37 = vld [vmem:[#allocation16 + $0x410] ss:$20 sps:$4 sm:$0xff]  }
 0x24a   :  { %2368 = vmatprep.subr.bf16.mxu1 %v14063_v38  ;;  %2551 = vmatprep.subr.bf16.mxu0 %v14066_v39  ;;  %v14112_v38 = vld [vmem:[#allocation16 + $0x418] ss:$20 sps:$4 sm:$0xff]  }
 0x24b   :  { %2345 = vmatprep.mubr.bf16.mxu1 %v16003_v49  ;;  %2528 = vmatprep.mubr.bf16.mxu0 %v16003_v49  ;;  %v14120_v41 = vld [vmem:[#allocation16 + $0x444] ss:$20 sps:$4 sm:$0xff]  }
 0x24c   :  { %2346 = vmatmul.mubr.bf16.gmra.mrb[4].mxu1 %v16001_v47  ;;  %2529 = vmatmul.mubr.bf16.gmra.mrb[36].mxu0 %v16001_v47  ;;  %v14123_v48 = vld [vmem:[#allocation16 + $0x464] ss:$20 sps:$4 sm:$0xff]  }
 0x24d   :  { %2369 = vmatpush1.bf16.msra.mxu1 %v14061_v42  ;;  %2552 = vmatpush1.bf16.msra.mxu0 %v14064_v43  ;;  %v476_v52 = vpop.f32.mrb[8].mxu0 }
 0x24e   :  { %2370 = vmatprep.subr.bf16.mxu1 %v14069_v45  ;;  %2553 = vmatprep.subr.bf16.mxu0 %v14072_v46  ;;  %v478_v55 = vpop.f32.mrb[9].mxu0  ;;  %v16011_v62 = vpack.c.bf16 %v476_v52, %v476_v52  ;;  %v14115_v45 = vld [vmem:[#allocation16 + $0x438] ss:$20 sps:$4 sm:$0xff]   ;;  %v14118_v46 = vld [vmem:[#allocation16 + $0x440] ss:$20 sps:$4 sm:$0xff]  }
 0x24f   :  { %v16009_v58 = vpack.c.bf16 %v478_v55, %v478_v55  ;;  %v480_v59 = vpop.f32.mrb[10].mxu0 }
 0x250   :  { %v482_v63 = vpop.f32.mrb[11].mxu0 }
 0x251   :  { %2371 = vmatpush1.bf16.msra.mxu1 %v14067_v50  ;;  %2554 = vmatpush1.bf16.msra.mxu0 %v14070_v51  ;;  %v14126_v51 = vld [vmem:[#allocation16 + $0x46c] ss:$20 sps:$4 sm:$0xff]  }
 0x252   :  { %2372 = vmatprep.subr.bf16.mxu1 %v14075_v53  ;;  %2555 = vmatprep.subr.bf16.mxu0 %v14078_v54  ;;  %v14121_v53 = vld [vmem:[#allocation16 + $0x460] ss:$20 sps:$4 sm:$0xff]   ;;  %v14124_v54 = vld [vmem:[#allocation16 + $0x468] ss:$20 sps:$4 sm:$0xff]  }
 0x253   :  { %2355 = vmatprep.mubr.bf16.mxu1 %v16009_v58  ;;  %2538 = vmatprep.mubr.bf16.mxu0 %v16009_v58 }
 0x254   :  { %2356 = vmatmul.mubr.bf16.gmra.mrb[8].mxu1 %v16011_v62  ;;  %2539 = vmatmul.mubr.bf16.gmra.mrb[40].mxu0 %v16011_v62 }
 0x255   :  { %2373 = vmatpush1.bf16.msra.mxu1 %v14073_v56  ;;  %2556 = vmatpush1.bf16.msra.mxu0 %v14076_v57  ;;  %v486_v5 = vpop.f32.mrb[12].mxu0  ;;  %v14129_v56 = vld [vmem:[#allocation16 + $0x48c] ss:$20 sps:$4 sm:$0xff]   ;;  %v14132_v57 = vld [vmem:[#allocation16 + $0x494] ss:$20 sps:$4 sm:$0xff]  }
 0x256   :  { %2374 = vmatprep.subr.bf16.mxu1 %v14081_v60  ;;  %2557 = vmatprep.subr.bf16.mxu0 %v14084_v61  ;;  %v16017_v6 = vpack.c.bf16 %v486_v5, %v480_v59  ;;  %v488_v7 = vpop.f32.mrb[13].mxu0 }
 0x257   :  { %v16019_v8 = vpack.c.bf16 %v488_v7, %v482_v63  ;;  %v490_v9 = vpop.f32.mrb[14].mxu0  ;;  %v14127_v63 = vld [vmem:[#allocation16 + $0x488] ss:$20 sps:$4 sm:$0xff]   ;;  %v14133_v7 = vld [vmem:[#allocation16 + $0x4b0] ss:$20 sps:$4 sm:$0xff]  }
 0x258   :  { %v492_v11 = vpop.f32.mrb[15].mxu0 }
 0x259   :  { %2375 = vmatpush1.bf16.msra.mxu1 %v14079_v1  ;;  %2558 = vmatpush1.bf16.msra.mxu0 %v14082_v2  ;;  %v14130_v1 = vld [vmem:[#allocation16 + $0x490] ss:$20 sps:$4 sm:$0xff]   ;;  %v14135_v2 = vld [vmem:[#allocation16 + $0x4b4] ss:$20 sps:$4 sm:$0xff]  }
 0x25a   :  { %2376 = vmatprep.subr.bf16.mxu1 %v14087_v3  ;;  %2559 = vmatprep.subr.bf16.mxu0 %v14090_v4  ;;  %v14138_v4 = vld [vmem:[#allocation16 + $0x4bc] ss:$20 sps:$4 sm:$0xff]  }
 0x25b   :  { %2396 = vmatprep.mubr.bf16.mxu1 %v16019_v8  ;;  %2579 = vmatprep.mubr.bf16.mxu0 %v16019_v8 }
 0x25d   :  { %2377 = vmatpush1.bf16.msra.mxu1 %v14085_v10  ;;  %2560 = vmatpush1.bf16.msra.mxu0 %v14088_v12  ;;  %v496_v17 = vpop.f32.mrb[16].mxu0 }
 0x25e   :  { %2378 = vmatprep.subr.bf16.mxu1 %v14093_v13  ;;  %2561 = vmatprep.subr.bf16.mxu0 %v14096_v14  ;;  %v16023_v20 = vpack.c.bf16 %v496_v17, %v490_v9  ;;  %v498_v21 = vpop.f32.mrb[17].mxu0  ;;  %v14136_v9 = vld [vmem:[#allocation16 + $0x4b8] ss:$20 sps:$4 sm:$0xff]  }
 0x25f   :  { %v16025_v24 = vpack.c.bf16 %v498_v21, %v492_v11  ;;  %v16027_v25 = vpop.f32.mrb[18].mxu0  ;;  %v14141_v11 = vld [vmem:[#allocation16 + $0x4dc] ss:$20 sps:$4 sm:$0xff]   ;;  %v14144_v13 = vld [vmem:[#allocation16 + $0x4e4] ss:$20 sps:$4 sm:$0xff]  }
 0x260   :  { %v16029_v27 = vpop.f32.mrb[19].mxu0  ;;  %v14139_v14 = vld [vmem:[#allocation16 + $0x4d8] ss:$20 sps:$4 sm:$0xff]  }
 0x261   :  { %2379 = vmatpush1.bf16.msra.mxu1 %v14091_v15  ;;  %2562 = vmatpush1.bf16.msra.mxu0 %v14094_v16  ;;  %v14142_v15 = vld [vmem:[#allocation16 + $0x4e0] ss:$20 sps:$4 sm:$0xff]   ;;  %v14147_v16 = vld [vmem:[#allocation16 + $0x504] ss:$20 sps:$4 sm:$0xff]  }
 0x262   :  { %2380 = vmatprep.subr.bf16.mxu1 %v14099_v18  ;;  %2563 = vmatprep.subr.bf16.mxu0 %v14102_v19  ;;  %v14150_v17 = vld [vmem:[#allocation16 + $0x50c] ss:$20 sps:$4 sm:$0xff]   ;;  %v14148_v19 = vld [vmem:[#allocation16 + $0x508] ss:$20 sps:$4 sm:$0xff]  }
 0x263   :  { %v14145_v18 = vld [vmem:[#allocation16 + $0x500] ss:$20 sps:$4 sm:$0xff]  }
 0x264   :  { %v14153_v21 = vld [vmem:[#allocation16 + $0x52c] ss:$20 sps:$4 sm:$0xff]  }
 0x265   :  { %2381 = vmatpush1.bf16.msra.mxu1 %v14097_v22  ;;  %2564 = vmatpush1.bf16.msra.mxu0 %v14100_v23  ;;  %v506_v33 = vpop.f32.mrb[20].mxu0  ;;  %v14156_v22 = vld [vmem:[#allocation16 + $0x534] ss:$20 sps:$4 sm:$0xff]  }
 0x266   :  { %2382 = vmatprep.subr.bf16.mxu1 %v14105_v26  ;;  %2565 = vmatprep.subr.bf16.mxu0 %v14108_v28  ;;  %v508_v36 = vpop.f32.mrb[21].mxu0  ;;  %v14151_v23 = vld [vmem:[#allocation16 + $0x528] ss:$20 sps:$4 sm:$0xff]   ;;  %v14154_v26 = vld [vmem:[#allocation16 + $0x530] ss:$20 sps:$4 sm:$0xff]  }
 0x267   :  { %v510_v39 = vpop.f32.mrb[22].mxu0  ;;  %v14159_v28 = vld [vmem:[#allocation16 + $0x554] ss:$20 sps:$4 sm:$0xff]  }
 0x268   :  { %v16031_v42 = vpack.c.bf16 %v510_v39, %v506_v33  ;;  %v512_v43 = vpop.f32.mrb[23].mxu0  ;;  %v14165_v33 = vld [vmem:[#allocation16 + $0x57c] ss:$20 sps:$4 sm:$0xff]   ;;  %v14171_v39 = vld [vmem:[#allocation16 + $0x5a4] ss:$20 sps:$4 sm:$0xff]  }
 0x269   :  { %2383 = vmatpush1.bf16.msra.mxu1 %v14103_v29  ;;  %2566 = vmatpush1.bf16.msra.mxu0 %v14106_v30  ;;  %v16033_v44 = vpack.c.bf16 %v512_v43, %v508_v36  ;;  %v14162_v29 = vld [vmem:[#allocation16 + $0x55c] ss:$20 sps:$4 sm:$0xff]   ;;  %v16049_v36 = vpack.c.bf16 %v16029_v27, %v16029_v27  ;;  %v14177_v43 = vld [vmem:[#allocation16 + $0x5cc] ss:$20 sps:$4 sm:$0xff]  }
 0x26a   :  { %2384 = vmatprep.subr.bf16.mxu1 %v14111_v32  ;;  %2567 = vmatprep.subr.bf16.mxu0 %v14114_v34  ;;  %v14157_v30 = vld [vmem:[#allocation16 + $0x550] ss:$20 sps:$4 sm:$0xff]   ;;  %v14160_v32 = vld [vmem:[#allocation16 + $0x558] ss:$20 sps:$4 sm:$0xff]   ;;  %v14172_v27 = vld [vmem:[#allocation16 + $0x5a8] ss:$20 sps:$4 sm:$0xff]  }
 0x26b   :  { %v14168_v34 = vld [vmem:[#allocation16 + $0x584] ss:$20 sps:$4 sm:$0xff]  }
 0x26d   :  { %2385 = vmatpush1.bf16.msra.mxu1 %v14109_v37  ;;  %2568 = vmatpush1.bf16.msra.mxu0 %v14112_v38  ;;  %v516_v50 = vpop.f32.mrb[24].mxu0  ;;  %v14163_v37 = vld [vmem:[#allocation16 + $0x578] ss:$20 sps:$4 sm:$0xff]   ;;  %v14166_v38 = vld [vmem:[#allocation16 + $0x580] ss:$20 sps:$4 sm:$0xff]  }
 0x26e   :  { %2386 = vmatprep.subr.bf16.mxu1 %v14117_v40  ;;  %2569 = vmatprep.subr.bf16.mxu0 %v14120_v41  ;;  %v518_v52 = vpop.f32.mrb[25].mxu0  ;;  %v14174_v40 = vld [vmem:[#allocation16 + $0x5ac] ss:$20 sps:$4 sm:$0xff]  }
 0x26f   :  { %v520_v55 = vpop.f32.mrb[26].mxu0  ;;  %v14169_v41 = vld [vmem:[#allocation16 + $0x5a0] ss:$20 sps:$4 sm:$0xff]  }
 0x270   :  { %v16035_v59 = vpack.c.bf16 %v520_v55, %v516_v50  ;;  %v522_v60 = vpop.f32.mrb[27].mxu0  ;;  %v14178_v50 = vld [vmem:[#allocation16 + $0x5d0] ss:$20 sps:$4 sm:$0xff]  }
 0x271   :  { %2387 = vmatpush1.bf16.msra.mxu1 %v14115_v45  ;;  %2570 = vmatpush1.bf16.msra.mxu0 %v14118_v46  ;;  %v16037_v61 = vpack.c.bf16 %v522_v60, %v518_v52  ;;  %v16057_v45 = vpack.c.bf16 %v16027_v25, %v16027_v25  ;;  %v14180_v46 = vld [vmem:[#allocation16 + $0x5d4] ss:$20 sps:$4 sm:$0xff]   ;;  %v14186_v52 = vld [vmem:[#allocation16 + $0x5fc] ss:$20 sps:$4 sm:$0xff]   ;;  %v14192_v55 = vld [vmem:[#allocation16 + $0x624] ss:$20 sps:$4 sm:$0xff]  }
 0x272   :  { %2388 = vmatprep.subr.bf16.mxu1 %v14123_v48  ;;  %2571 = vmatprep.subr.bf16.mxu0 %v14126_v51  ;;  %v14175_v48 = vld [vmem:[#allocation16 + $0x5c8] ss:$20 sps:$4 sm:$0xff]   ;;  %v14181_v25 = vld [vmem:[#allocation16 + $0x5f0] ss:$20 sps:$4 sm:$0xff]  }
 0x273   :  { %v14183_v51 = vld [vmem:[#allocation16 + $0x5f4] ss:$20 sps:$4 sm:$0xff]   ;;  %v14195_v60 = vld [vmem:[#allocation16 + $0x644] ss:$20 sps:$4 sm:$0xff]  }
 0x275   :  { %2389 = vmatpush1.bf16.msra.mxu1 %v14121_v53  ;;  %2572 = vmatpush1.bf16.msra.mxu0 %v14124_v54  ;;  %v16039_v3 = vpop.f32.mrb[28].mxu0  ;;  %v14184_v53 = vld [vmem:[#allocation16 + $0x5f8] ss:$20 sps:$4 sm:$0xff]   ;;  %v14189_v54 = vld [vmem:[#allocation16 + $0x61c] ss:$20 sps:$4 sm:$0xff]  }
 0x276   :  { %2390 = vmatprep.subr.bf16.mxu1 %v14129_v56  ;;  %2573 = vmatprep.subr.bf16.mxu0 %v14132_v57  ;;  %v16041_v5 = vpop.f32.mrb[29].mxu0  ;;  %v14187_v56 = vld [vmem:[#allocation16 + $0x618] ss:$20 sps:$4 sm:$0xff]   ;;  %v14190_v57 = vld [vmem:[#allocation16 + $0x620] ss:$20 sps:$4 sm:$0xff]  }
 0x277   :  { %v530_v10 = vpop.f32.mrb[30].mxu0 }
 0x278   :  { %v531_v12 = vpop.f32.mrb[31].mxu0  ;;  %v14202_v10 = vld [vmem:[#allocation16 + $0x670] ss:$20 sps:$4 sm:$0xff]  }
 0x279   :  { %2391 = vmatpush1.bf16.msra.mxu1 %v14127_v63  ;;  %2574 = vmatpush1.bf16.msra.mxu0 %v14130_v1  ;;  %v14198_v63 = vld [vmem:[#allocation16 + $0x64c] ss:$20 sps:$4 sm:$0xff]   ;;  %v14210_v12 = vld [vmem:[#allocation16 + $0x69c] ss:$20 sps:$4 sm:$0xff]  }
 0x27a   :  { %2392 = vmatprep.subr.bf16.mxu1 %v14135_v2  ;;  %2575 = vmatprep.subr.bf16.mxu0 %v14138_v4  ;;  %v14193_v1 = vld [vmem:[#allocation16 + $0x640] ss:$20 sps:$4 sm:$0xff]   ;;  %v14196_v2 = vld [vmem:[#allocation16 + $0x648] ss:$20 sps:$4 sm:$0xff]  }
 0x27b   :  { %v14201_v4 = vld [vmem:[#allocation16 + $0x66c] ss:$20 sps:$4 sm:$0xff]  }
 0x27d   :  { %2393 = vmatpush1.bf16.msra.mxu1 %v14133_v7  ;;  %2576 = vmatpush1.bf16.msra.mxu0 %v14136_v9  ;;  %v14204_v7 = vld [vmem:[#allocation16 + $0x674] ss:$20 sps:$4 sm:$0xff]  }
 0x27e   :  { %2394 = vmatprep.subr.bf16.mxu1 %v14141_v11  ;;  %2577 = vmatprep.subr.bf16.mxu0 %v14144_v13  ;;  %v14199_v9 = vld [vmem:[#allocation16 + $0x668] ss:$20 sps:$4 sm:$0xff]   ;;  %v14205_v13 = vld [vmem:[#allocation16 + $0x690] ss:$20 sps:$4 sm:$0xff]  }
 0x27f   :  { %v14207_v11 = vld [vmem:[#allocation16 + $0x694] ss:$20 sps:$4 sm:$0xff]  }
 0x281   :  { %2395 = vmatpush1.bf16.msra.mxu1 %v14139_v14  ;;  %2578 = vmatpush1.bf16.msra.mxu0 %v14142_v15  ;;  %v14208_v14 = vld [vmem:[#allocation16 + $0x698] ss:$20 sps:$4 sm:$0xff]   ;;  %v14213_v15 = vld [vmem:[#allocation16 + $0x6bc] ss:$20 sps:$4 sm:$0xff]  }
 0x282   :  { %2425 = vmatprep.subr.bf16.mxu1 %v14147_v16  ;;  %2608 = vmatprep.subr.bf16.mxu0 %v14150_v17  ;;  %v14216_v16 = vld [vmem:[#allocation16 + $0x6c4] ss:$20 sps:$4 sm:$0xff]  }
 0x283   :  { %v14211_v17 = vld [vmem:[#allocation16 + $0x6b8] ss:$20 sps:$4 sm:$0xff]  }
 0x284   :  { %2397 = vmatmul.mubr.bf16.vlgmr.msra.gmra.mrb[0].mxu1 %v16017_v6  ;;  %2580 = vmatmul.mubr.bf16.vlgmr.msra.gmra.mrb[32].mxu0 %v16017_v6 }
 0x285   :  { %2406 = vmatprep.mubr.bf16.mxu1 %v16025_v24  ;;  %2426 = vmatpush1.bf16.msra.mxu1 %v14145_v18  ;;  %v14214_v18 = vld [vmem:[#allocation16 + $0x6c0] ss:$20 sps:$4 sm:$0xff]  }
 0x286   :  { %2589 = vmatprep.mubr.bf16.mxu0 %v16025_v24  ;;  %2609 = vmatpush1.bf16.msra.mxu0 %v14148_v19  ;;  %v14219_v19 = vld [vmem:[#allocation16 + $0x6e4] ss:$20 sps:$4 sm:$0xff]  }
 0x287   :  { %2427 = vmatprep.subr.bf16.mxu1 %v14153_v21  ;;  %2610 = vmatprep.subr.bf16.mxu0 %v14156_v22  ;;  %v14222_v21 = vld [vmem:[#allocation16 + $0x6ec] ss:$20 sps:$4 sm:$0xff]  }
 0x288   :  { %v14217_v22 = vld [vmem:[#allocation16 + $0x6e0] ss:$20 sps:$4 sm:$0xff]  }
 0x289   :  { %2428 = vmatpush1.bf16.msra.mxu1 %v14151_v23  ;;  %v14220_v23 = vld [vmem:[#allocation16 + $0x6e8] ss:$20 sps:$4 sm:$0xff]  }
 0x28a   :  { %2611 = vmatpush1.bf16.msra.mxu0 %v14154_v26  ;;  %2429 = vmatprep.subr.bf16.mxu1 %v14159_v28  ;;  %v14225_v26 = vld [vmem:[#allocation16 + $0x70c] ss:$20 sps:$4 sm:$0xff]   ;;  %v14228_v28 = vld [vmem:[#allocation16 + $0x714] ss:$20 sps:$4 sm:$0xff]  }
 0x28b   :  { %2612 = vmatprep.subr.bf16.mxu0 %v14162_v29  ;;  %v14223_v29 = vld [vmem:[#allocation16 + $0x708] ss:$20 sps:$4 sm:$0xff]  }
 0x28c   :  { %2407 = vmatmul.mubr.bf16.gmra.mrb[4].mxu1 %v16023_v20  ;;  %2590 = vmatmul.mubr.bf16.gmra.mrb[36].mxu0 %v16023_v20 }
 0x28d   :  { %2430 = vmatpush1.bf16.msra.mxu1 %v14157_v30  ;;  %2416 = vmatprep.mubr.bf16.mxu1 %v16049_v36  ;;  %v14226_v30 = vld [vmem:[#allocation16 + $0x710] ss:$20 sps:$4 sm:$0xff]  }
 0x28e   :  { %2613 = vmatpush1.bf16.msra.mxu0 %v14160_v32  ;;  %2431 = vmatprep.subr.bf16.mxu1 %v14165_v33  ;;  %v14231_v32 = vld [vmem:[#allocation16 + $0x734] ss:$20 sps:$4 sm:$0xff]   ;;  %v14234_v33 = vld [vmem:[#allocation16 + $0x73c] ss:$20 sps:$4 sm:$0xff]  }
 0x28f   :  { %2614 = vmatprep.subr.bf16.mxu0 %v14168_v34  ;;  %2599 = vmatprep.mubr.bf16.mxu0 %v16049_v36  ;;  %v14229_v34 = vld [vmem:[#allocation16 + $0x730] ss:$20 sps:$4 sm:$0xff]  }
 0x291   :  { %2432 = vmatpush1.bf16.msra.mxu1 %v14163_v37  ;;  %v14232_v37 = vld [vmem:[#allocation16 + $0x738] ss:$20 sps:$4 sm:$0xff]  }
 0x292   :  { %2615 = vmatpush1.bf16.msra.mxu0 %v14166_v38  ;;  %2433 = vmatprep.subr.bf16.mxu1 %v14171_v39  ;;  %v14237_v38 = vld [vmem:[#allocation16 + $0x75c] ss:$20 sps:$4 sm:$0xff]   ;;  %v14240_v39 = vld [vmem:[#allocation16 + $0x764] ss:$20 sps:$4 sm:$0xff]  }
 0x293   :  { %2616 = vmatprep.subr.bf16.mxu0 %v14174_v40  ;;  %v14235_v40 = vld [vmem:[#allocation16 + $0x758] ss:$20 sps:$4 sm:$0xff]  }
 0x294   :  { %2417 = vmatmul.mubr.bf16.gmra.mrb[8].mxu1 %v16057_v45  ;;  %2600 = vmatmul.mubr.bf16.gmra.mrb[40].mxu0 %v16057_v45 }
 0x295   :  { %2434 = vmatpush1.bf16.msra.mxu1 %v14169_v41  ;;  %2457 = vmatprep.mubr.bf16.mxu1 %v16033_v44  ;;  %v14238_v41 = vld [vmem:[#allocation16 + $0x760] ss:$20 sps:$4 sm:$0xff]  }
 0x296   :  { %2617 = vmatpush1.bf16.msra.mxu0 %v14172_v27  ;;  %2435 = vmatprep.subr.bf16.mxu1 %v14177_v43  ;;  %v14241_v27 = vld [vmem:[#allocation16 + $0x150] ss:$20 sps:$4 sm:$0xff]  }
 0x297   :  { %2618 = vmatprep.subr.bf16.mxu0 %v14180_v46  ;;  %2640 = vmatprep.mubr.bf16.mxu0 %v16033_v44  ;;  %v14242_v43 = vld [vmem:[#allocation16 + $0x3d0] ss:$20 sps:$4 sm:$0xff]  }
 0x298   :  { %v14243_v46 = vld [vmem:[#allocation16 + $0x10] ss:$20 sps:$4 sm:$0xff]  }
 0x299   :  { %2436 = vmatpush1.bf16.msra.mxu1 %v14175_v48  ;;  %v14244_v48 = vld [vmem:[#allocation16 + $0x290] ss:$20 sps:$4 sm:$0xff]  }
 0x29a   :  { %2619 = vmatpush1.bf16.msra.mxu0 %v14178_v50  ;;  %2437 = vmatprep.subr.bf16.mxu1 %v14183_v51  ;;  %v14245_v50 = vld [vmem:[#allocation16 + $0x178] ss:$20 sps:$4 sm:$0xff]  }
 0x29b   :  { %2620 = vmatprep.subr.bf16.mxu0 %v14186_v52  ;;  %v14246_v51 = vld [vmem:[#allocation16 + $0x3f8] ss:$20 sps:$4 sm:$0xff]  }
 0x29c   :  { %v14247_v52 = vld [vmem:[#allocation16 + $0x38] ss:$20 sps:$4 sm:$0xff]  }
 0x29d   :  { %2438 = vmatpush1.bf16.msra.mxu1 %v14181_v25  ;;  %v14248_v25 = vld [vmem:[#allocation16 + $0x2b8] ss:$20 sps:$4 sm:$0xff]  }
 0x29e   :  { %2621 = vmatpush1.bf16.msra.mxu0 %v14184_v53  ;;  %2439 = vmatprep.subr.bf16.mxu1 %v14189_v54  ;;  %v14249_v53 = vld [vmem:[#allocation16 + $0x1a0] ss:$20 sps:$4 sm:$0xff]  }
 0x29f   :  { %2622 = vmatprep.subr.bf16.mxu0 %v14192_v55  ;;  %v14250_v54 = vld [vmem:[#allocation16 + $0x420] ss:$20 sps:$4 sm:$0xff]  }
 0x2a0   :  { %v14251_v55 = vld [vmem:[#allocation16 + $0x60] ss:$20 sps:$4 sm:$0xff]  }
 0x2a1   :  { %2440 = vmatpush1.bf16.msra.mxu1 %v14187_v56  ;;  %v14252_v56 = vld [vmem:[#allocation16 + $0x2e0] ss:$20 sps:$4 sm:$0xff]  }
 0x2a2   :  { %2623 = vmatpush1.bf16.msra.mxu0 %v14190_v57  ;;  %2441 = vmatprep.subr.bf16.mxu1 %v14195_v60  ;;  %v14253_v57 = vld [vmem:[#allocation16 + $0x1c8] ss:$20 sps:$4 sm:$0xff]  }
 0x2a3   :  { %2624 = vmatprep.subr.bf16.mxu0 %v14198_v63  ;;  %v14254_v60 = vld [vmem:[#allocation16 + $0x448] ss:$20 sps:$4 sm:$0xff]   ;;  %v16069_v63 = vpack.c.bf16 %v16041_v5, %v16041_v5  ;;  %v14261_v5 = vld [vmem:[#allocation16 + $0x218] ss:$20 sps:$4 sm:$0xff]  }
 0x2a5   :  { %2442 = vmatpush1.bf16.msra.mxu1 %v14193_v1  ;;  %v14255_v1 = vld [vmem:[#allocation16 + $0x88] ss:$20 sps:$4 sm:$0xff]  }
 0x2a6   :  { %2625 = vmatpush1.bf16.msra.mxu0 %v14196_v2  ;;  %2443 = vmatprep.subr.bf16.mxu1 %v14201_v4  ;;  %v14256_v2 = vld [vmem:[#allocation16 + $0x308] ss:$20 sps:$4 sm:$0xff]   ;;  %v14257_v4 = vld [vmem:[#allocation16 + $0x1f0] ss:$20 sps:$4 sm:$0xff]  }
 0x2a7   :  { %2626 = vmatprep.subr.bf16.mxu0 %v14204_v7  ;;  %v14258_v7 = vld [vmem:[#allocation16 + $0x470] ss:$20 sps:$4 sm:$0xff]  }
 0x2a9   :  { %2444 = vmatpush1.bf16.msra.mxu1 %v14199_v9  ;;  %v14259_v9 = vld [vmem:[#allocation16 + $0xb0] ss:$20 sps:$4 sm:$0xff]  }
 0x2aa   :  { %2627 = vmatpush1.bf16.msra.mxu0 %v14202_v10  ;;  %2445 = vmatprep.subr.bf16.mxu1 %v14207_v11  ;;  %v14260_v10 = vld [vmem:[#allocation16 + $0x330] ss:$20 sps:$4 sm:$0xff]   ;;  %v16077_v11 = vpack.c.bf16 %v16039_v3, %v16039_v3  ;;  %v14267_v3 = vld [vmem:[#allocation16 + $0x100] ss:$20 sps:$4 sm:$0xff]  }
 0x2ab   :  { %2628 = vmatprep.subr.bf16.mxu0 %v14210_v12  ;;  %v14262_v12 = vld [vmem:[#allocation16 + $0x498] ss:$20 sps:$4 sm:$0xff]  }
 0x2ad   :  { %2446 = vmatpush1.bf16.msra.mxu1 %v14205_v13  ;;  %v14263_v13 = vld [vmem:[#allocation16 + $0xd8] ss:$20 sps:$4 sm:$0xff]  }
 0x2ae   :  { %2629 = vmatpush1.bf16.msra.mxu0 %v14208_v14  ;;  %2447 = vmatprep.subr.bf16.mxu1 %v14213_v15  ;;  %v14264_v14 = vld [vmem:[#allocation16 + $0x358] ss:$20 sps:$4 sm:$0xff]   ;;  %v14265_v15 = vld [vmem:[#allocation16 + $0x240] ss:$20 sps:$4 sm:$0xff]  }
 0x2af   :  { %2630 = vmatprep.subr.bf16.mxu0 %v14216_v16  ;;  %v14266_v16 = vld [vmem:[#allocation16 + $0x4c0] ss:$20 sps:$4 sm:$0xff]  }
 0x2b1   :  { %2448 = vmatpush1.bf16.msra.mxu1 %v14211_v17  ;;  %v14268_v17 = vld [vmem:[#allocation16 + $0x380] ss:$20 sps:$4 sm:$0xff]  }
 0x2b2   :  { %2631 = vmatpush1.bf16.msra.mxu0 %v14214_v18  ;;  %2449 = vmatprep.subr.bf16.mxu1 %v14219_v19  ;;  %v14269_v18 = vld [vmem:[#allocation16 + $0x268] ss:$20 sps:$4 sm:$0xff]  }
 0x2b3   :  { %2632 = vmatprep.subr.bf16.mxu0 %v14222_v21  ;;  %v14270_v19 = vld [vmem:[#allocation16 + $0x4e8] ss:$20 sps:$4 sm:$0xff]  }
 0x2b4   :  { %v14271_v21 = vld [vmem:[#allocation16 + $0x128] ss:$20 sps:$4 sm:$0xff]  }
 0x2b5   :  { %2450 = vmatpush1.bf16.msra.mxu1 %v14217_v22  ;;  %v14272_v22 = vld [vmem:[#allocation16 + $0x3a8] ss:$20 sps:$4 sm:$0xff]  }
 0x2b6   :  { %2633 = vmatpush1.bf16.msra.mxu0 %v14220_v23  ;;  %2451 = vmatprep.subr.bf16.mxu1 %v14225_v26  ;;  %v14273_v23 = vld [vmem:[#allocation16 + $0x650] ss:$20 sps:$4 sm:$0xff]   ;;  %v14276_v26 = vld [vmem:[#allocation16 + $0x538] ss:$20 sps:$4 sm:$0xff]  }
 0x2b7   :  { %2634 = vmatprep.subr.bf16.mxu0 %v14228_v28  ;;  %v14277_v28 = vld [vmem:[#allocation16 + $0x6a0] ss:$20 sps:$4 sm:$0xff]  }
 0x2b9   :  { %2452 = vmatpush1.bf16.msra.mxu1 %v14223_v29  ;;  %v14278_v29 = vld [vmem:[#allocation16 + $0x560] ss:$20 sps:$4 sm:$0xff]  }
 0x2ba   :  { %2635 = vmatpush1.bf16.msra.mxu0 %v14226_v30  ;;  %2453 = vmatprep.subr.bf16.mxu1 %v14231_v32  ;;  %v14279_v30 = vld [vmem:[#allocation16 + $0x6c8] ss:$20 sps:$4 sm:$0xff]  }
 0x2bb   :  { %2636 = vmatprep.subr.bf16.mxu0 %v14234_v33  ;;  %v14280_v32 = vld [vmem:[#allocation16 + $0x588] ss:$20 sps:$4 sm:$0xff]   ;;  %v16106_v33 = vld [vmem:[#allocation17] sm:$0x1f] }
 0x2bd   :  { %2454 = vmatpush1.bf16.msra.mxu1 %v14229_v34 }
 0x2be   :  { %2637 = vmatpush1.bf16.msra.mxu0 %v14232_v37  ;;  %2455 = vmatprep.subr.bf16.mxu1 %v14237_v38 }
 0x2bf   :  { %2638 = vmatprep.subr.bf16.mxu0 %v14240_v39 }
 0x2c1   :  { %2456 = vmatpush1.bf16.msra.mxu1 %v14235_v40 }
 0x2c2   :  { %2639 = vmatpush1.bf16.msra.mxu0 %v14238_v41  ;;  %13235 = vmatprep.subr.bf16.mxu1 %v14241_v27 }
 0x2c3   :  { %13269 = vmatprep.subr.bf16.mxu0 %v14242_v43 }
 0x2c4   :  { %2458 = vmatmul.mubr.bf16.vlgmr.msra.gmra.mrb[0].mxu1 %v16031_v42 }
 0x2c5   :  { %2641 = vmatmul.mubr.bf16.vlgmr.msra.gmra.mrb[32].mxu0 %v16031_v42  ;;  %13236 = vmatpush3.bf16.msra.mxu1 %v14243_v46 }
 0x2c6   :  { %13270 = vmatpush3.bf16.msra.mxu0 %v14244_v48  ;;  %2467 = vmatprep.mubr.bf16.mxu1 %v16037_v61 }
 0x2c7   :  { %2650 = vmatprep.mubr.bf16.mxu0 %v16037_v61  ;;  %13237 = vmatprep.subr.bf16.mxu1 %v14245_v50 }
 0x2c8   :  { %13271 = vmatprep.subr.bf16.mxu0 %v14246_v51 }
 0x2c9   :  { %13238 = vmatpush3.bf16.msra.mxu1 %v14247_v52 }
 0x2ca   :  { %13272 = vmatpush3.bf16.msra.mxu0 %v14248_v25  ;;  %13239 = vmatprep.subr.bf16.mxu1 %v14249_v53 }
 0x2cb   :  { %13273 = vmatprep.subr.bf16.mxu0 %v14250_v54 }
 0x2cc   :  { %2468 = vmatmul.mubr.bf16.gmra.mrb[4].mxu1 %v16035_v59 }
 0x2cd   :  { %2651 = vmatmul.mubr.bf16.gmra.mrb[36].mxu0 %v16035_v59  ;;  %13240 = vmatpush3.bf16.msra.mxu1 %v14251_v55 }
 0x2ce   :  { %13274 = vmatpush3.bf16.msra.mxu0 %v14252_v56  ;;  %13241 = vmatprep.subr.bf16.mxu1 %v14253_v57 }
 0x2cf   :  { %13275 = vmatprep.subr.bf16.mxu0 %v14254_v60  ;;  %2477 = vmatprep.mubr.bf16.mxu1 %v16069_v63 }
 0x2d0   :  { %2660 = vmatprep.mubr.bf16.mxu0 %v16069_v63 }
 0x2d1   :  { %13242 = vmatpush3.bf16.msra.mxu1 %v14255_v1 }
 0x2d2   :  { %13276 = vmatpush3.bf16.msra.mxu0 %v14256_v2  ;;  %13243 = vmatprep.subr.bf16.mxu1 %v14257_v4 }
 0x2d3   :  { %13277 = vmatprep.subr.bf16.mxu0 %v14258_v7 }
 0x2d4   :  { %2478 = vmatmul.mubr.bf16.gmra.mrb[8].mxu1 %v16077_v11 }
 0x2d5   :  { %2661 = vmatmul.mubr.bf16.gmra.mrb[40].mxu0 %v16077_v11  ;;  %13244 = vmatpush3.bf16.msra.mxu1 %v14259_v9 }
 0x2d6   :  { %2701 = vmatprep.mubr.bf16.mxu1 %v15995_v35  ;;  %13278 = vmatpush3.bf16.msra.mxu0 %v14260_v10  ;;  %v14274_v35 = vld [vmem:[#allocation16 + $0x510] ss:$20 sps:$4 sm:$0xff]  }
 0x2d7   :  { %2757 = vmatprep.mubr.bf16.mxu0 %v16019_v8  ;;  %13245 = vmatprep.subr.bf16.mxu1 %v14261_v5  ;;  %v14275_v8 = vld [vmem:[#allocation16 + $0x678] ss:$20 sps:$4 sm:$0xff]  }
 0x2d8   :  { %13279 = vmatprep.subr.bf16.mxu0 %v14262_v12 }
 0x2d9   :  { %13246 = vmatpush3.bf16.msra.mxu1 %v14263_v13 }
 0x2da   :  { %13280 = vmatpush3.bf16.msra.mxu0 %v14264_v14  ;;  %13247 = vmatprep.subr.bf16.mxu1 %v14265_v15 }
 0x2db   :  { %13281 = vmatprep.subr.bf16.mxu0 %v14266_v16 }
 0x2dd   :  { %13248 = vmatpush3.bf16.msra.mxu1 %v14267_v3 }
 0x2de   :  { %13282 = vmatpush3.bf16.msra.mxu0 %v14268_v17  ;;  %13249 = vmatprep.subr.bf16.mxu1 %v14269_v18 }
 0x2df   :  { %13283 = vmatprep.subr.bf16.mxu0 %v14270_v19 }
 0x2e1   :  { %13250 = vmatpush3.bf16.msra.mxu1 %v14271_v21 }
 0x2e2   :  { %13284 = vmatpush3.bf16.msra.mxu0 %v14272_v22  ;;  %13303 = vmatprep.subr.bf16.mxu1 %v14273_v23 }
 0x2e4   :  { %2702 = vmatmul.mubr.bf16.vlgmr.msra.gmra.mrb[12].mxu1 %v15993_v31  ;;  %v14281_v31 = vld [vmem:[#allocation16 + $0x6f0] ss:$20 sps:$4 sm:$0xff]  }
 0x2e5   :  { %2758 = vmatmul.mubr.bf16.vlgmr.msra.gmra.mrb[44].mxu0 %v16017_v6  ;;  %2709 = vmatprep.mubr.bf16.mxu1 %v16003_v49  ;;  %v14282_v49 = vld [vmem:[#allocation16 + $0x5b0] ss:$20 sps:$4 sm:$0xff]   ;;  %v14283_v6 = vld [vmem:[#allocation16 + $0x718] ss:$20 sps:$4 sm:$0xff]  }
 0x2e6   :  { %2765 = vmatprep.mubr.bf16.mxu0 %v16025_v24  ;;  %13304 = vmatpush3.bf16.msra.mxu1 %v14274_v35  ;;  %v14284_v24 = vld [vmem:[#allocation16 + $0x5d8] ss:$20 sps:$4 sm:$0xff]  }
 0x2e7   :  { %13305 = vmatprep.subr.bf16.mxu1 %v14275_v8 }
 0x2ea   :  { %13306 = vmatpush3.bf16.msra.mxu1 %v14276_v26 }
 0x2eb   :  { %13307 = vmatprep.subr.bf16.mxu1 %v14277_v28 }
 0x2ec   :  { %2710 = vmatmul.mubr.bf16.gmra.mrb[16].mxu1 %v16001_v47  ;;  %v14285_v47 = vld [vmem:[#allocation16 + $0x740] ss:$20 sps:$4 sm:$0xff]  }
 0x2ed   :  { %2766 = vmatmul.mubr.bf16.gmra.mrb[48].mxu0 %v16023_v20  ;;  %2717 = vmatprep.mubr.bf16.mxu1 %v16009_v58  ;;  %v14286_v58 = vld [vmem:[#allocation16 + $0x600] ss:$20 sps:$4 sm:$0xff]   ;;  %v14287_v20 = vld [vmem:[#allocation16 + $0x768] ss:$20 sps:$4 sm:$0xff]  }
 0x2ee   :  { %2773 = vmatprep.mubr.bf16.mxu0 %v16049_v36  ;;  %13308 = vmatpush3.bf16.msra.mxu1 %v14278_v29  ;;  %v14288_v36 = vld [vmem:[#allocation16 + $0x628] ss:$20 sps:$4 sm:$0xff]  }
 0x2ef   :  { %13309 = vmatprep.subr.bf16.mxu1 %v14279_v30 }
 0x2f2   :  { %13310 = vmatpush3.bf16.msra.mxu1 %v14280_v32 }
 0x2f3   :  { %13311 = vmatprep.subr.bf16.mxu1 %v14281_v31 }
 0x2f4   :  { %2718 = vmatmul.mubr.bf16.gmra.mrb[20].mxu1 %v16011_v62  ;;  %v949_v62 = vlaneseq }
 0x2f5   :  { %2774 = vmatmul.mubr.bf16.gmra.mrb[52].mxu0 %v16057_v45  ;;  %2813 = vmatprep.mubr.bf16.mxu1 %v16033_v44 }
 0x2f6   :  { %13312 = vmatpush3.bf16.msra.mxu1 %v14282_v49  ;;  %3138 = vmatprep.mubr.bf16.mxu0 %v15594_v0  ;;  %v16101_v44 = vshrl.u32 %v949_v62, 7 }
 0x2f7   :  { %13313 = vmatprep.subr.bf16.mxu1 %v14283_v6 }
 0x2f8   :  { %v16104_v45 = vsub.s32 0, %v16101_v44 }
 0x2fa   :  { %13314 = vmatpush3.bf16.msra.mxu1 %v14284_v24  ;;  %v952_v34 = vrot.slane %v16106_v33, %v16104_v45 }
 0x2fb   :  { %13315 = vmatprep.subr.bf16.mxu1 %v14285_v47 }
 0x2fe   :  { %13316 = vmatpush3.bf16.msra.mxu1 %v14286_v58 }
 0x2ff   :  { %13317 = vmatprep.subr.bf16.mxu1 %v14287_v20 }
 0x302   :  { %13318 = vmatpush3.bf16.msra.mxu1 %v14288_v36 }
 0x305   :  { %2814 = vmatmul.mubr.bf16.vlgmr.msra.gmra.mrb[24].mxu1 %v16031_v42  ;;  %v16109_v42 = vsub.s32 2, %v16101_v44 }
 0x306   :  { %2821 = vmatprep.mubr.bf16.mxu1 %v16037_v61  ;;  %v16112_v61 = vsub.s32 1, %v16101_v44 }
 0x307   :  { %v16119_v37 = vrot.slane %v16106_v33, %v16109_v42 }
 0x308   :  { %v16123_v38 = vrot.slane %v16106_v33, %v16112_v61 }
 0x30d   :  { %2822 = vmatmul.mubr.bf16.gmra.mrb[28].mxu1 %v16035_v59  ;;  %v963_v59 = vsub.s32 3, %v16101_v44 }
 0x30e   :  { %2829 = vmatprep.mubr.bf16.mxu1 %v16069_v63 }
 0x30f   :  { %v16128_v39 = vrot.slane %v16106_v33, %v963_v59 }
 0x315   :  { %2830 = vmatmul.mubr.bf16.gmra.mrb[32].mxu1 %v16077_v11 }
 0x316   :  { %3219 = vmatprep.mubr.bf16.mxu1 %v15594_v0 }
 0x397   :  { %v2459_v40 = vpop.f32.mrb[0].mxu1 }
 0x398   :  { %v13706_v41 = vadd.f32 %v2459_v40, %v952_v34  ;;  %v2642_v27 = vpop.f32.mrb[32].mxu0  ;;  %v2461_v43 = vpop.f32.mrb[1].mxu1 }
 0x399   :  { %v13716_v46 = vadd.f32 %v2642_v27, %v16119_v37  ;;  %v13707_v48 = vadd.f32 %v2461_v43, %v16123_v38  ;;  %v2644_v50 = vpop.f32.mrb[33].mxu0  ;;  %v2463_v51 = vpop.f32.mrb[2].mxu1 }
 0x39a   :  { %v2837_v52 = vmax.f32 %v13706_v41, 0.0  ;;  %v13717_v25 = vadd.f32 %v2644_v50, %v16128_v39  ;;  %v13708_v53 = vadd.f32 %v2463_v51, %v952_v34  ;;  %v2646_v54 = vpop.f32.mrb[34].mxu0  ;;  %v2465_v55 = vpop.f32.mrb[3].mxu1 }
 0x39b   :  { %v2839_v56 = vmax.f32 %v13716_v46, 0.0  ;;  %v2838_v57 = vmax.f32 %v13707_v48, 0.0  ;;  %v13718_v60 = vadd.f32 %v2646_v54, %v16119_v37  ;;  %v13709_v63 = vadd.f32 %v2465_v55, %v16123_v38  ;;  %v2648_v1 = vpop.f32.mrb[35].mxu0 }
 0x39c   :  { %v2840_v2 = vmax.f32 %v13717_v25, 0.0  ;;  %v2842_v4 = vmax.f32 %v13708_v53, 0.0  ;;  %v13719_v7 = vadd.f32 %v2648_v1, %v16128_v39 }
 0x39d   :  { %v2844_v9 = vmax.f32 %v13718_v60, 0.0  ;;  %v2843_v10 = vmax.f32 %v13709_v63, 0.0 }
 0x39e   :  { %v2845_v5 = vmax.f32 %v13719_v7, 0.0  ;;  %v15118_v18 = vpack.c.bf16 %v2842_v4, %v2837_v52  ;;  %v14299_v7 = vld [vmem:[#allocation19 + $0x4] ss:$12 sps:$4 sm:$0xff]  }
 0x39f   :  { %v2469_v11 = vpop.f32.mrb[4].mxu1  ;;  %v15119_v19 = vpack.c.bf16 %v2843_v10, %v2838_v57  ;;  %v15120_v26 = vpack.c.bf16 %v2844_v9, %v2839_v56  ;;  %v16150_v9 = vld [vmem:[%s16616_s28] sm:$0xff]  }
 0x3a0   :  { %v13710_v12 = vadd.f32 %v2469_v11, %v952_v34  ;;  %v2652_v13 = vpop.f32.mrb[36].mxu0  ;;  %v2471_v14 = vpop.f32.mrb[5].mxu1  ;;  %v15121_v47 = vpack.c.bf16 %v2845_v5, %v2840_v2  ;;  %v967_v5 = vsub.s32 4, %v16101_v44  ;;  %v15595_v11 = vmov 0.0  }
 0x3a1   :  { %v13720_v15 = vadd.f32 %v2652_v13, %v16119_v37  ;;  %v13711_v16 = vadd.f32 %v2471_v14, %v16123_v38  ;;  %v2654_v3 = vpop.f32.mrb[37].mxu0  ;;  %v2473_v17 = vpop.f32.mrb[6].mxu1  ;;  %3106 = vmatprep.subr.bf16.mxu0 %v15119_v19  ;;  %v14302_v13 = vld [vmem:[#allocation19 + $0x1c] ss:$12 sps:$4 sm:$0xff]  }
 0x3a2   :  { %v2847_v21 = vmax.f32 %v13710_v12, 0.0  ;;  %v13721_v22 = vadd.f32 %v2654_v3, %v16128_v39  ;;  %v13712_v23 = vadd.f32 %v2473_v17, %v952_v34  ;;  %v2656_v35 = vpop.f32.mrb[38].mxu0  ;;  %v2475_v8 = vpop.f32.mrb[7].mxu1  ;;  %3107 = vmatpush1.bf16.msra.mxu0 %v15118_v18  ;;  %3187 = vmatprep.subr.bf16.mxu1 %v15121_v47  ;;  %v14297_v12 = vld [vmem:[#allocation19] ss:$12 sps:$4 sm:$0xff]  }
 0x3a3   :  { %v2849_v28 = vmax.f32 %v13720_v15, 0.0  ;;  %v2848_v29 = vmax.f32 %v13711_v16, 0.0  ;;  %v13722_v30 = vadd.f32 %v2656_v35, %v16119_v37  ;;  %v13713_v32 = vadd.f32 %v2475_v8, %v16123_v38  ;;  %v2658_v31 = vpop.f32.mrb[39].mxu0  ;;  %3188 = vmatpush1.bf16.msra.mxu1 %v15120_v26  ;;  %v14300_v16 = vld [vmem:[#allocation19 + $0x18] ss:$12 sps:$4 sm:$0xff]  }
 0x3a4   :  { %v2850_v49 = vmax.f32 %v13721_v22, 0.0  ;;  %v2852_v6 = vmax.f32 %v13712_v23, 0.0  ;;  %v13723_v24 = vadd.f32 %v2658_v31, %v16128_v39  ;;  %v16164_v15 = vrot.slane %v16106_v33, %v967_v5  ;;  %v14305_v18 = vld [vmem:[#allocation19 + $0x34] ss:$12 sps:$4 sm:$0xff]   ;;  %v14308_v31 = vld [vmem:[#allocation19 + $0x4c] ss:$12 sps:$4 sm:$0xff]  }
 0x3a5   :  { %v2854_v58 = vmax.f32 %v13722_v30, 0.0  ;;  %v2853_v20 = vmax.f32 %v13713_v32, 0.0  ;;  %v16170_v23 = vld [vmem:[%s16616_s28 + $0x8] sm:$0xff]  }
 0x3a6   :  { %v2855_v36 = vmax.f32 %v13723_v24, 0.0  ;;  %v15122_v51 = vpack.c.bf16 %v2852_v6, %v2847_v21  ;;  %v14303_v30 = vld [vmem:[#allocation19 + $0x30] ss:$12 sps:$4 sm:$0xff]  }
 0x3a7   :  { %v2479_v62 = vpop.f32.mrb[8].mxu1  ;;  %v15123_v52 = vpack.c.bf16 %v2853_v20, %v2848_v29  ;;  %v15124_v56 = vpack.c.bf16 %v2854_v58, %v2849_v28  ;;  %v14306_v58 = vld [vmem:[#allocation19 + $0x48] ss:$12 sps:$4 sm:$0xff]  }
 0x3a8   :  { %v13714_v40 = vadd.f32 %v2479_v62, %v952_v34  ;;  %v2662_v41 = vpop.f32.mrb[40].mxu0  ;;  %v2481_v27 = vpop.f32.mrb[9].mxu1  ;;  %v15125_v57 = vpack.c.bf16 %v2855_v36, %v2850_v49  ;;  %v14311_v62 = vld [vmem:[#allocation19 + $0x64] ss:$12 sps:$4 sm:$0xff]  }
 0x3a9   :  { %v13724_v43 = vadd.f32 %v2662_v41, %v16119_v37  ;;  %v13715_v46 = vadd.f32 %v2481_v27, %v16123_v38  ;;  %v2664_v48 = vpop.f32.mrb[41].mxu0  ;;  %v2483_v50 = vpop.f32.mrb[10].mxu1  ;;  %3108 = vmatprep.subr.bf16.mxu0 %v15123_v52 }
 0x3aa   :  { %v2857_v25 = vmax.f32 %v13714_v40, 0.0  ;;  %v13725_v53 = vadd.f32 %v2664_v48, %v16128_v39  ;;  %v2666_v54 = vpop.f32.mrb[42].mxu0  ;;  %v2484_v55 = vpop.f32.mrb[11].mxu1  ;;  %3189 = vmatprep.subr.bf16.mxu1 %v15125_v57  ;;  %3109 = vmatpush1.bf16.msra.mxu0 %v15122_v51 }
 0x3ab   :  { %v2859_v60 = vmax.f32 %v13724_v43, 0.0  ;;  %v2858_v63 = vmax.f32 %v13715_v46, 0.0  ;;  %v2667_v34 = vpop.f32.mrb[43].mxu0  ;;  %3190 = vmatpush1.bf16.msra.mxu1 %v15124_v56  ;;  %v16187_v43 = vld [vmem:[%s16616_s28 + $0x10] sm:$0xff]  }
 0x3ac   :  { %v2860_v1 = vmax.f32 %v13725_v53, 0.0  ;;  %v15127_v38 = vpack.c.bf16 %v2857_v25, %v2857_v25  ;;  %v14309_v53 = vld [vmem:[#allocation19 + $0x60] ss:$12 sps:$4 sm:$0xff]   ;;  %v14314_v55 = vld [vmem:[#allocation19 + $0x7c] ss:$12 sps:$4 sm:$0xff]  }
 0x3ad   :  { %v15126_v37 = vpack.c.bf16 %v2858_v63, %v2858_v63  ;;  %v15129_v4 = vpack.c.bf16 %v2859_v60, %v2859_v60  ;;  %v14312_v34 = vld [vmem:[#allocation19 + $0x78] ss:$12 sps:$4 sm:$0xff]  }
 0x3ae   :  { %v15128_v2 = vpack.c.bf16 %v2860_v1, %v2860_v1  ;;  %v3092_v39 = vsel %vm3090_vm2, %v15127_v38, 0  ;;  %v14317_v38 = vld [vmem:[#allocation19 + $0x94] ss:$12 sps:$4 sm:$0xff]  }
 0x3af   :  { %12129 = vmatprep.subr.msk.bf16.mxu0 %vm3090_vm2, %v15126_v37  ;;  %v3098_v10 = vsel %vm3090_vm2, %v15129_v4, 0 }
 0x3b0   :  { %12135 = vmatprep.subr.msk.bf16.mxu1 %vm3090_vm2, %v15128_v2  ;;  %3111 = vmatpush1.bf16.msra.mxu0 %v3092_v39  ;;  %v16204_v39 = vld [vmem:[%s16616_s28 + $0x18] sm:$0xff]  }
 0x3b1   :  { %3192 = vmatpush1.bf16.msra.mxu1 %v3098_v10  ;;  %13644 = vmatprep.subr.bf16.mxu0 %v15595_v11 }
 0x3b2   :  { %6096 = vmatprep.subr.bf16.mxu1 %v14299_v7 }
 0x3b3   :  { %12130 = vmatmul.mubr.msk.bf16.vlgmr.msra.gmra.mrb[56].mxu0 %vm3074_vm3, %v16150_v9 }
 0x3b4   :  { %3148 = vmatprep.mubr.bf16.mxu0 %v15594_v0  ;;  %12136 = vmatmul.mubr.msk.bf16.vlgmr.msra.gmra.mrb[36].mxu1 %vm3074_vm3, %v16150_v9 }
 0x3b5   :  { %3229 = vmatprep.mubr.bf16.mxu1 %v15594_v0  ;;  %6097 = vmatpush1.bf16.msra.mxu1 %v14297_v12 }
 0x3b6   :  { %6098 = vmatprep.subr.bf16.mxu1 %v14302_v13 }
 0x3b7   :  { %v13251_v14 = vpop.f32.mrb[12].mxu1 }
 0x3b8   :  { %v13285_v3 = vpop.f32.mrb[44].mxu0  ;;  %v13252_v17 = vpop.f32.mrb[13].mxu1 }
 0x3b9   :  { %v13253_v19 = vadd.f32 %v13252_v17, %v13251_v14  ;;  %v13286_v21 = vpop.f32.mrb[45].mxu0  ;;  %v13254_v22 = vpop.f32.mrb[14].mxu1  ;;  %6099 = vmatpush1.bf16.msra.mxu1 %v14300_v16  ;;  %v14320_v17 = vld [vmem:[#allocation19 + $0xac] ss:$12 sps:$4 sm:$0xff]  }
 0x3ba   :  { %v13287_v35 = vadd.f32 %v13286_v21, %v13285_v3  ;;  %v13288_v8 = vpop.f32.mrb[46].mxu0  ;;  %v13255_v33 = vpop.f32.mrb[15].mxu1  ;;  %6100 = vmatprep.subr.bf16.mxu1 %v14305_v18  ;;  %v14315_v3 = vld [vmem:[#allocation19 + $0x90] ss:$12 sps:$4 sm:$0xff]   ;;  %v16218_v21 = vld [vmem:[%s16616_s28 + $0x20] ss:$0 sps:$4 sm:$0xff]  }
 0x3bb   :  { %v2704_v26 = vadd.f32 %v13253_v19, %v16164_v15  ;;  %v13256_v28 = vadd.f32 %v13255_v33, %v13254_v22  ;;  %v13289_v29 = vpop.f32.mrb[47].mxu0  ;;  %12131 = vmatmul.mubr.msk.bf16.gmra.mrb[60].mxu0 %vm3074_vm3, %v16170_v23  ;;  %v14318_v19 = vld [vmem:[#allocation19 + $0xa8] ss:$12 sps:$4 sm:$0xff]   ;;  %v14321_v22 = vld [vmem:[#allocation19 + $0xc0] ss:$12 sps:$4 sm:$0xff]  }
 0x3bc   :  { %v13290_v32 = vadd.f32 %v13289_v29, %v13288_v8  ;;  %3158 = vmatprep.mubr.bf16.mxu0 %v15594_v0  ;;  %12137 = vmatmul.mubr.msk.bf16.gmra.mrb[40].mxu1 %vm3074_vm3, %v16170_v23  ;;  %v14326_v8 = vld [vmem:[#allocation19 + $0xd8] ss:$12 sps:$4 sm:$0xff]  }
 0x3bd   :  { %v16173_v49 = vadd.f32 %v13287_v35, %v2704_v26  ;;  %v2707_v6 = vadd.f32 %v13256_v28, %v16164_v15  ;;  %3239 = vmatprep.mubr.bf16.mxu1 %v15594_v0  ;;  %6101 = vmatpush1.bf16.msra.mxu1 %v14303_v30  ;;  %v14328_v35 = vld [vmem:[#allocation19 + $0xdc] ss:$12 sps:$4 sm:$0xff]   ;;  %v14333_v26 = vld [vmem:[#allocation19 + $0xf4] ss:$12 sps:$4 sm:$0xff]  }
 0x3be   :  { %6102 = vmatprep.subr.bf16.mxu1 %v14308_v31  ;;  %v14331_v31 = vld [vmem:[#allocation19 + $0xf0] ss:$12 sps:$4 sm:$0xff]  }
 0x3bf   :  { %v16181_v24 = vadd.f32 %v13290_v32, %v2707_v6  ;;  %v13257_v47 = vpop.f32.mrb[16].mxu1 }
 0x3c0   :  { %v13291_v20 = vpop.f32.mrb[48].mxu0  ;;  %v13258_v36 = vpop.f32.mrb[17].mxu1 }
 0x3c1   :  { %v13259_v40 = vadd.f32 %v13258_v36, %v13257_v47  ;;  %v13292_v41 = vpop.f32.mrb[49].mxu0  ;;  %v13260_v27 = vpop.f32.mrb[18].mxu1  ;;  %6103 = vmatpush1.bf16.msra.mxu1 %v14306_v58  ;;  %v14338_v58 = vld [vmem:[#allocation19 + $0x10c] ss:$12 sps:$4 sm:$0xff]  }
 0x3c2   :  { %v13293_v46 = vadd.f32 %v13292_v41, %v13291_v20  ;;  %v13294_v48 = vpop.f32.mrb[50].mxu0  ;;  %v13261_v50 = vpop.f32.mrb[19].mxu1  ;;  %6104 = vmatprep.subr.bf16.mxu1 %v14311_v62  ;;  %v14336_v62 = vld [vmem:[#allocation19 + $0x108] ss:$12 sps:$4 sm:$0xff]  }
 0x3c3   :  { %v2712_v51 = vadd.f32 %v13259_v40, %v16164_v15  ;;  %v13262_v52 = vadd.f32 %v13261_v50, %v13260_v27  ;;  %v13295_v25 = vpop.f32.mrb[51].mxu0  ;;  %12132 = vmatmul.mubr.msk.bf16.gmra.mrb[64].mxu0 %vm3074_vm3, %v16187_v43 }
 0x3c4   :  { %v13296_v54 = vadd.f32 %v13295_v25, %v13294_v48  ;;  %3168 = vmatprep.mubr.bf16.mxu0 %v15594_v0  ;;  %12138 = vmatmul.mubr.msk.bf16.gmra.mrb[44].mxu1 %vm3074_vm3, %v16187_v43 }
 0x3c5   :  { %v16190_v56 = vadd.f32 %v13293_v46, %v2712_v51  ;;  %v2715_v57 = vadd.f32 %v13262_v52, %v16164_v15  ;;  %6105 = vmatpush1.bf16.msra.mxu1 %v14309_v53  ;;  %3249 = vmatprep.mubr.bf16.mxu1 %v15594_v0 }
 0x3c6   :  { %6106 = vmatprep.subr.bf16.mxu1 %v14314_v55 }
 0x3c7   :  { %v16198_v60 = vadd.f32 %v13296_v54, %v2715_v57  ;;  %v13263_v63 = vpop.f32.mrb[20].mxu1 }
 0x3c8   :  { %v13297_v1 = vpop.f32.mrb[52].mxu0  ;;  %v13264_v37 = vpop.f32.mrb[21].mxu1 }
 0x3c9   :  { %v13265_v2 = vadd.f32 %v13264_v37, %v13263_v63  ;;  %v13298_v4 = vpop.f32.mrb[53].mxu0  ;;  %v13266_v7 = vpop.f32.mrb[22].mxu1  ;;  %6107 = vmatpush1.bf16.msra.mxu1 %v14312_v34 }
 0x3ca   :  { %v13299_v10 = vadd.f32 %v13298_v4, %v13297_v1  ;;  %v13300_v12 = vpop.f32.mrb[54].mxu0  ;;  %v13267_v13 = vpop.f32.mrb[23].mxu1  ;;  %6108 = vmatprep.subr.bf16.mxu1 %v14317_v38 }
 0x3cb   :  { %v2720_v14 = vadd.f32 %v13265_v2, %v16164_v15  ;;  %v13301_v16 = vpop.f32.mrb[55].mxu0  ;;  %12133 = vmatmul.mubr.msk.bf16.gmra.mrb[68].mxu0 %vm3074_vm3, %v16204_v39  ;;  %v14323_v15 = vld [vmem:[#allocation19 + $0xc4] ss:$12 sps:$4 sm:$0xff]   ;;  %v14324_v12 = vld [vmem:[#allocation19 + $0xc8] ss:$12 sps:$4 sm:$0xff]  }
 0x3cc   :  { %3178 = vmatprep.mubr.bf16.mxu0 %v15594_v0  ;;  %12139 = vmatmul.mubr.msk.bf16.gmra.mrb[48].mxu1 %vm3074_vm3, %v16204_v39  ;;  %v14329_v16 = vld [vmem:[#allocation19 + $0xe0] ss:$12 sps:$4 sm:$0xff]  }
 0x3cd   :  { %v16207_v18 = vadd.f32 %v13299_v10, %v2720_v14  ;;  %6109 = vmatpush1.bf16.msra.mxu1 %v14315_v3  ;;  %3259 = vmatprep.mubr.bf16.mxu1 %v15594_v0  ;;  %v14325_v14 = vld [vmem:[#allocation19 + $0x8] ss:$12 sps:$4 sm:$0xff]   ;;  %v14330_v3 = vld [vmem:[#allocation19 + $0x20] ss:$12 sps:$4 sm:$0xff]  }
 0x3ce   :  { %6110 = vmatprep.subr.bf16.mxu1 %v14320_v17  ;;  %v14334_v17 = vld [vmem:[#allocation19 + $0xf8] ss:$12 sps:$4 sm:$0xff]  }
 0x3d1   :  { %6111 = vmatpush1.bf16.msra.mxu1 %v14318_v19  ;;  %v14341_v19 = vld [vmem:[#allocation19 + $0x120] ss:$12 sps:$4 sm:$0xff]  }
 0x3d2   :  { %6112 = vmatprep.subr.bf16.mxu1 %v14323_v15  ;;  %v14335_v15 = vld [vmem:[#allocation19 + $0x38] ss:$12 sps:$4 sm:$0xff]  }
 0x3d3   :  { %12134 = vmatmul.mubr.msk.bf16.gmra.mrb[72].mxu0 %vm3074_vm3, %v16218_v21 }
 0x3d4   :  { %13650 = vmatprep.mubr.msk.bf16.mxu0 %vm15596_vm4, %v15595_v11  ;;  %12140 = vmatmul.mubr.msk.bf16.gmra.mrb[52].mxu1 %vm3074_vm3, %v16218_v21 }
 0x3d5   :  { %6113 = vmatpush1.bf16.msra.mxu1 %v14321_v22  ;;  %v14339_v22 = vld [vmem:[#allocation19 + $0x110] ss:$12 sps:$4 sm:$0xff]  }
 0x3d6   :  { %6114 = vmatprep.subr.bf16.mxu1 %v14328_v35  ;;  %v14348_v35 = vld [vmem:[#allocation19 + $0x13c] ss:$12 sps:$4 sm:$0xff]  }
 0x3d8   :  { %v13319_v33 = vpop.f32.mrb[24].mxu1 }
 0x3d9   :  { %v13320_v28 = vpop.f32.mrb[25].mxu1  ;;  %6115 = vmatpush1.bf16.msra.mxu1 %v14326_v8  ;;  %v14346_v8 = vld [vmem:[#allocation19 + $0x138] ss:$12 sps:$4 sm:$0xff]  }
 0x3da   :  { %v13321_v29 = vadd.f32 %v13320_v28, %v13319_v33  ;;  %v13322_v30 = vpop.f32.mrb[26].mxu1  ;;  %6116 = vmatprep.subr.bf16.mxu1 %v14333_v26  ;;  %v14344_v33 = vld [vmem:[#allocation19 + $0x128] ss:$12 sps:$4 sm:$0xff]   ;;  %v14351_v28 = vld [vmem:[#allocation19 + $0x150] ss:$12 sps:$4 sm:$0xff]  }
 0x3db   :  { %v13323_v32 = vpop.f32.mrb[27].mxu1  ;;  %v14353_v26 = vld [vmem:[#allocation19 + $0x154] ss:$12 sps:$4 sm:$0xff]  }
 0x3dc   :  { %v2816_v6 = vadd.f32 %v13321_v29, %v16173_v49  ;;  %v13324_v47 = vadd.f32 %v13323_v32, %v13322_v30  ;;  %v14345_v29 = vld [vmem:[#allocation19 + $0x68] ss:$12 sps:$4 sm:$0xff]   ;;  %v14349_v30 = vld [vmem:[#allocation19 + $0x140] ss:$12 sps:$4 sm:$0xff]  }
 0x3dd   :  { %6117 = vmatpush1.bf16.msra.mxu1 %v14331_v31  ;;  %v14358_v32 = vld [vmem:[#allocation19 + $0x16c] ss:$12 sps:$4 sm:$0xff]   ;;  %v14356_v31 = vld [vmem:[#allocation19 + $0x168] ss:$12 sps:$4 sm:$0xff]  }
 0x3de   :  { %v2841_v20 = vmax.f32 %v2816_v6, 0.0  ;;  %v2819_v36 = vadd.f32 %v13324_v47, %v16181_v24  ;;  %6118 = vmatprep.subr.bf16.mxu1 %v14338_v58  ;;  %v14363_v6 = vld [vmem:[#allocation19 + $0x184] ss:$12 sps:$4 sm:$0xff]  }
 0x3df   :  { %v14354_v47 = vld [vmem:[#allocation19 + $0x158] ss:$12 sps:$4 sm:$0xff]  }
 0x3e0   :  { %v13162_v40 = vpack.c.bf16 %v2841_v20, %v2841_v20  ;;  %v2846_v41 = vmax.f32 %v2819_v36, 0.0  ;;  %v13325_v27 = vpop.f32.mrb[28].mxu1  ;;  %v14355_v58 = vld [vmem:[#allocation19 + $0x98] ss:$12 sps:$4 sm:$0xff]   ;;  %v14359_v20 = vld [vmem:[#allocation19 + $0x170] ss:$12 sps:$4 sm:$0xff]  }
 0x3e1   :  { %v13326_v46 = vpop.f32.mrb[29].mxu1  ;;  %6119 = vmatpush1.bf16.msra.mxu1 %v14336_v62  ;;  %v14364_v36 = vld [vmem:[#allocation19 + $0x248] ss:$12 sps:$4 sm:$0xff]  }
 0x3e2   :  { %2949 = vst [vmem:[#allocation3 + $0x10] sm:$0xf] %v13162_v40  ;;  %v13165_v48 = vpack.c.bf16 %v2846_v41, %v2846_v41  ;;  %v13327_v50 = vadd.f32 %v13326_v46, %v13325_v27  ;;  %v13328_v51 = vpop.f32.mrb[30].mxu1 }
 0x3e3   :  { %v13329_v52 = vpop.f32.mrb[31].mxu1 }
 0x3e4   :  { %2952 = vst [vmem:[#allocation3 + $0x24] sm:$0xf] %v13165_v48  ;;  %v2824_v49 = vadd.f32 %v13327_v50, %v16190_v56  ;;  %v13330_v25 = vadd.f32 %v13329_v52, %v13328_v51 }
 0x3e6   :  { %v2851_v53 = vmax.f32 %v2824_v49, 0.0  ;;  %v2827_v24 = vadd.f32 %v13330_v25, %v16198_v60  ;;  %v14361_v49 = vld [vmem:[#allocation19 + $0x180] ss:$12 sps:$4 sm:$0xff]   ;;  %v14365_v25 = vld [vmem:[#allocation19 + $0x188] ss:$12 sps:$4 sm:$0xff]  }
 0x3e8   :  { %v13168_v54 = vpack.c.bf16 %v2851_v53, %v2851_v53  ;;  %v2856_v55 = vmax.f32 %v2827_v24, 0.0  ;;  %v13331_v57 = vpop.f32.mrb[32].mxu1  ;;  %v14368_v53 = vld [vmem:[#allocation19 + $0x19c] ss:$12 sps:$4 sm:$0xff]   ;;  %v14369_v24 = vld [vmem:[#allocation19 + $0x260] ss:$12 sps:$4 sm:$0xff]  }
 0x3e9   :  { %v13332_v63 = vpop.f32.mrb[33].mxu1 }
 0x3ea   :  { %2955 = vst [vmem:[#allocation3 + $0x38] sm:$0xf] %v13168_v54  ;;  %v13171_v34 = vpack.c.bf16 %v2856_v55, %v2856_v55  ;;  %v13333_v1 = vadd.f32 %v13332_v63, %v13331_v57  ;;  %v13334_v37 = vpop.f32.mrb[34].mxu1 }
 0x3eb   :  { %v13335_v38 = vpop.f32.mrb[35].mxu1  ;;  %v14292_v2 = vld [vmem:[#allocation3 + $0x10] ss:$20 sps:$4 sm:$0xff]  }
 0x3ec   :  { %2958 = vst [vmem:[#allocation3 + $0x4c] sm:$0xf] %v13171_v34  ;;  %v2832_v4 = vadd.f32 %v13333_v1, %v16207_v18  ;;  %13645 = vmatpush3.bf16.msra.mxu0 %v14292_v2  ;;  %v14343_v18 = vld [vmem:[#allocation19 + $0x124] ss:$12 sps:$4 sm:$0xff]   ;;  %v14370_v1 = vld [vmem:[#allocation19 + $0x1a0] ss:$12 sps:$4 sm:$0xff]  }
 0x3ed   :  { %13646 = vmatprep.subr.bf16.mxu0 %v15595_v11  ;;  %6120 = vmatprep.subr.bf16.mxu1 %v14343_v18  ;;  %v14366_v34 = vld [vmem:[#allocation19 + $0x198] ss:$12 sps:$4 sm:$0xff]   ;;  %v14373_v2 = vld [vmem:[#allocation19 + $0x1b4] ss:$12 sps:$4 sm:$0xff]   ;;  %v14379_v18 = vld [vmem:[#allocation19 + $0x290] ss:$12 sps:$4 sm:$0xff]  }
 0x3ee   :  { %v2861_v7 = vmax.f32 %v2832_v4, 0.0  ;;  %6121 = vmatpush1.bf16.msra.mxu1 %v14341_v19  ;;  %v14374_v4 = vld [vmem:[#allocation19 + $0x278] ss:$12 sps:$4 sm:$0xff]  }
 0x3ef   :  { %6122 = vmatprep.subr.bf16.mxu1 %v14348_v35  ;;  %v14376_v35 = vld [vmem:[#allocation19 + $0x1c8] ss:$12 sps:$4 sm:$0xff]  }
 0x3f0   :  { %v13174_v56 = vpack.c.bf16 %v2861_v7, %v2861_v7 }
 0x3f2   :  { %2961 = vst [vmem:[#allocation3 + $0x60] sm:$0xf] %v13174_v56  ;;  %6123 = vmatpush1.bf16.msra.mxu1 %v14346_v8  ;;  %v14380_v8 = vld [vmem:[#allocation19 + $0x1d0] ss:$12 sps:$4 sm:$0xff]  }
 0x3f3   :  { %v14294_v60 = vld [vmem:[#allocation3 + $0x38] ss:$20 sps:$4 sm:$0xff]   ;;  %6124 = vmatprep.subr.bf16.mxu1 %v14353_v26 }
 0x3f4   :  { %13647 = vmatpush3.bf16.msra.mxu0 %v14294_v60 }
 0x3f5   :  { %13648 = vmatprep.subr.bf16.mxu0 %v15595_v11 }
 0x3f6   :  { %6125 = vmatpush1.bf16.msra.mxu1 %v14351_v28  ;;  %v14383_v28 = vld [vmem:[#allocation19 + $0x1e4] ss:$12 sps:$4 sm:$0xff]  }
 0x3f7   :  { %6126 = vmatprep.subr.bf16.mxu1 %v14358_v32 }
 0x3f9   :  { %v14296_v10 = vld [vmem:[#allocation3 + $0x60] ss:$0 sps:$4 sm:$0xff]  }
 0x3fa   :  { %v3104_v13 = vsel %vm3090_vm2, %v14296_v10, 0  ;;  %6127 = vmatpush1.bf16.msra.mxu1 %v14356_v31 }
 0x3fb   :  { %13649 = vmatpush3.bf16.msra.mxu0 %v3104_v13  ;;  %6147 = vmatprep.subr.bf16.mxu1 %v14363_v6 }
 0x3fc   :  { %13345 = vmatprep.subr.bf16.mxu0 %v14324_v12 }
 0x3fe   :  { %13651 = vmatmul.mubr.msk.bf16.vlgmr.msra.gmra.mrb[76].mxu0 %vm3074_vm3, %v16150_v9  ;;  %v14340_v9 = vld [vmem:[#allocation19 + $0x50] ss:$12 sps:$4 sm:$0xff]  }
 0x3ff   :  { %13654 = vmatprep.mubr.msk.bf16.mxu0 %vm15596_vm4, %v15595_v11  ;;  %13346 = vmatpush3.bf16.msra.mxu0 %v14325_v14 }
 0x400   :  { %13347 = vmatprep.subr.bf16.mxu0 %v14329_v16  ;;  %v14371_v16 = vld [vmem:[#allocation19 + $0x1b0] ss:$12 sps:$4 sm:$0xff]  }
 0x403   :  { %13348 = vmatpush3.bf16.msra.mxu0 %v14330_v3  ;;  %v14375_v3 = vld [vmem:[#allocation19 + $0x1b8] ss:$12 sps:$4 sm:$0xff]  }
 0x404   :  { %13349 = vmatprep.subr.bf16.mxu0 %v14334_v17  ;;  %v14378_v17 = vld [vmem:[#allocation19 + $0x1cc] ss:$12 sps:$4 sm:$0xff]  }
 0x406   :  { %13655 = vmatmul.mubr.msk.bf16.gmra.mrb[80].mxu0 %vm3074_vm3, %v16170_v23  ;;  %v14350_v23 = vld [vmem:[#allocation19 + $0x80] ss:$12 sps:$4 sm:$0xff]  }
 0x407   :  { %13658 = vmatprep.mubr.msk.bf16.mxu0 %vm15596_vm4, %v15595_v11  ;;  %13350 = vmatpush3.bf16.msra.mxu0 %v14335_v15 }
 0x408   :  { %13351 = vmatprep.subr.bf16.mxu0 %v14339_v22 }
 0x40b   :  { %13352 = vmatpush3.bf16.msra.mxu0 %v14340_v9 }
 0x40c   :  { %13353 = vmatprep.subr.bf16.mxu0 %v14344_v33 }
 0x40e   :  { %13659 = vmatmul.mubr.msk.bf16.gmra.mrb[84].mxu0 %vm3074_vm3, %v16187_v43  ;;  %v14360_v43 = vld [vmem:[#allocation19 + $0xb0] ss:$12 sps:$4 sm:$0xff]  }
 0x40f   :  { %13662 = vmatprep.mubr.msk.bf16.mxu0 %vm15596_vm4, %v15595_v11  ;;  %13354 = vmatpush3.bf16.msra.mxu0 %v14345_v29  ;;  %v14384_v29 = vld [vmem:[#allocation19 + $0x2a8] ss:$12 sps:$4 sm:$0xff]  }
 0x410   :  { %13355 = vmatprep.subr.bf16.mxu0 %v14349_v30 }
 0x413   :  { %13356 = vmatpush3.bf16.msra.mxu0 %v14350_v23 }
 0x414   :  { %13357 = vmatprep.subr.bf16.mxu0 %v14354_v47 }
 0x416   :  { %13663 = vmatmul.mubr.msk.bf16.gmra.mrb[88].mxu0 %vm3074_vm3, %v16204_v39 }
 0x417   :  { %13666 = vmatprep.mubr.msk.bf16.mxu0 %vm15596_vm4, %v15595_v11  ;;  %13358 = vmatpush3.bf16.msra.mxu0 %v14355_v58  ;;  %v14381_v58 = vld [vmem:[#allocation19 + $0x1e0] ss:$12 sps:$4 sm:$0xff]  }
 0x418   :  { %13359 = vmatprep.subr.bf16.mxu0 %v14359_v20  ;;  %v14385_v20 = vld [vmem:[#allocation19 + $0x1e8] ss:$12 sps:$4 sm:$0xff]  }
 0x41b   :  { %13360 = vmatpush3.bf16.msra.mxu0 %v14360_v43  ;;  %v14388_v43 = vld [vmem:[#allocation19 + $0x1fc] ss:$12 sps:$4 sm:$0xff]  }
 0x41c   :  { %13373 = vmatprep.subr.bf16.mxu0 %v14364_v36  ;;  %v14389_v36 = vld [vmem:[#allocation19 + $0x2c0] ss:$12 sps:$4 sm:$0xff]  }
 0x41e   :  { %13667 = vmatmul.mubr.msk.bf16.gmra.mrb[92].mxu0 %vm3074_vm3, %v16218_v21 }
 0x486   :  { %v3140_v62 = vpop.f32.mrb[56].mxu0 }
 0x487   :  { %v3142_v40 = vpop.f32.mrb[57].mxu0  ;;  %v3221_v41 = vpop.f32.mrb[36].mxu1 }
 0x488   :  { %v3144_v27 = vpop.f32.mrb[58].mxu0  ;;  %v3223_v46 = vpop.f32.mrb[37].mxu1 }
 0x489   :  { %v3146_v48 = vpop.f32.mrb[59].mxu0  ;;  %v3225_v50 = vpop.f32.mrb[38].mxu1  ;;  %v15130_v51 = vpack.c.bf16 %v3144_v27, %v3140_v62  ;;  %v14390_v27 = vld [vmem:[#allocation19 + $0x200] ss:$12 sps:$4 sm:$0xff]  }
 0x48a   :  { %v3227_v39 = vpop.f32.mrb[39].mxu1  ;;  %v15131_v52 = vpack.c.bf16 %v3146_v48, %v3142_v40  ;;  %v16252_v54 = vpack.c.bf16 %v3225_v50, %v3221_v41  ;;  %v14386_v41 = vld [vmem:[#allocation19 + $0x1f8] ss:$12 sps:$4 sm:$0xff]   ;;  %v14393_v48 = vld [vmem:[#allocation19 + $0x214] ss:$12 sps:$4 sm:$0xff]  }
 0x48b   :  { %v15133_v55 = vpack.c.bf16 %v3227_v39, %v3223_v46  ;;  %v14394_v50 = vld [vmem:[#allocation19 + $0x2d8] ss:$12 sps:$4 sm:$0xff]  }
 0x48c   :  { %6128 = vmatprep.mubr.bf16.mxu1 %v15131_v52  ;;  %6536 = vmatprep.mubr.bf16.mxu0 %v15131_v52  ;;  %v14395_v52 = vld [vmem:[#allocation19 + $0x218] ss:$12 sps:$4 sm:$0xff]  }
 0x48d   :  { %6129 = vmatmul.mubr.bf16.vlgmr.msra.gmra.mrb[56].mxu1 %v15130_v51  ;;  %6537 = vmatmul.mubr.bf16.vlgmr.msra.gmra.mrb[96].mxu0 %v15130_v51  ;;  %v14391_v51 = vld [vmem:[#allocation19 + $0x210] ss:$12 sps:$4 sm:$0xff]  }
 0x48e   :  { %v3150_v21 = vpop.f32.mrb[60].mxu0  ;;  %6148 = vmatpush1.bf16.msra.mxu1 %v14361_v49  ;;  %13374 = vmatpush3.bf16.msra.mxu0 %v14365_v25 }
 0x48f   :  { %v3152_v57 = vpop.f32.mrb[61].mxu0  ;;  %v16254_v63 = vpop.f32.mrb[40].mxu1  ;;  %6149 = vmatprep.subr.bf16.mxu1 %v14368_v53  ;;  %13375 = vmatprep.subr.bf16.mxu0 %v14369_v24  ;;  %v15135_v13 = vpack.c.bf16 %v3150_v21, %v3150_v21  ;;  %v14398_v53 = vld [vmem:[#allocation19 + $0x22c] ss:$12 sps:$4 sm:$0xff]   ;;  %v14399_v24 = vld [vmem:[#allocation19 + $0x2f0] ss:$12 sps:$4 sm:$0xff]  }
 0x490   :  { %v3154_v37 = vpop.f32.mrb[62].mxu0  ;;  %v16256_v38 = vpop.f32.mrb[41].mxu1  ;;  %v15134_v60 = vpack.c.bf16 %v3152_v57, %v3152_v57  ;;  %v14396_v57 = vld [vmem:[#allocation19 + $0x228] ss:$12 sps:$4 sm:$0xff]  }
 0x491   :  { %v3156_v7 = vpop.f32.mrb[63].mxu0  ;;  %v3235_v56 = vpop.f32.mrb[42].mxu1 }
 0x492   :  { %v13184_v10 = vpack.c.bf16 %v3156_v7, %v3154_v37  ;;  %v3237_v12 = vpop.f32.mrb[43].mxu1  ;;  %6150 = vmatpush1.bf16.msra.mxu1 %v14366_v34  ;;  %13376 = vmatpush3.bf16.msra.mxu0 %v14370_v1  ;;  %v14400_v34 = vld [vmem:[#allocation19 + $0x230] ss:$12 sps:$4 sm:$0xff]   ;;  %v14401_v7 = vld [vmem:[#allocation19 + $0x240] ss:$12 sps:$4 sm:$0xff]  }
 0x493   :  { %v13185_v14 = vpack.c.bf16 %v3237_v12, %v3235_v56  ;;  %6151 = vmatprep.subr.bf16.mxu1 %v14373_v2  ;;  %13377 = vmatprep.subr.bf16.mxu0 %v14374_v4  ;;  %v14403_v37 = vld [vmem:[#allocation19 + $0x244] ss:$12 sps:$4 sm:$0xff]   ;;  %v14404_v2 = vld [vmem:[#allocation19 + $0x3c8] ss:$12 sps:$4 sm:$0xff]   ;;  %v16268_v12 = vpack.c.bf16 %v16256_v38, %v16256_v38 }
 0x494   :  { %3455 = vst [vmem:[#allocation4 + $0x14] sm:$0xff] %v13184_v10  ;;  %6544 = vmatprep.mubr.bf16.mxu0 %v15134_v60  ;;  %6138 = vmatprep.mubr.bf16.mxu1 %v15134_v60  ;;  %v14405_v56 = vld [vmem:[#allocation19 + $0x308] ss:$12 sps:$4 sm:$0xff]   ;;  %v14409_v10 = vld [vmem:[#allocation19 + $0x3e0] ss:$12 sps:$4 sm:$0xff]  }
 0x495   :  { %3456 = vst [vmem:[#allocation4 + $0x1c] sm:$0xff] %v13185_v14  ;;  %6545 = vmatmul.mubr.bf16.gmra.mrb[100].mxu0 %v15135_v13  ;;  %6139 = vmatmul.mubr.bf16.gmra.mrb[60].mxu1 %v15135_v13  ;;  %v14408_v60 = vld [vmem:[#allocation19 + $0x25c] ss:$12 sps:$4 sm:$0xff]   ;;  %v14406_v13 = vld [vmem:[#allocation19 + $0x258] ss:$12 sps:$4 sm:$0xff]  }
 0x496   :  { %v3160_v19 = vpop.f32.mrb[64].mxu0  ;;  %6152 = vmatpush1.bf16.msra.mxu1 %v14371_v16  ;;  %13378 = vmatpush3.bf16.msra.mxu0 %v14375_v3  ;;  %v14410_v14 = vld [vmem:[#allocation19 + $0x320] ss:$12 sps:$4 sm:$0xff]   ;;  %v14414_v3 = vld [vmem:[#allocation19 + $0x3f8] ss:$12 sps:$4 sm:$0xff]  }
 0x497   :  { %v3162_v15 = vpop.f32.mrb[65].mxu0  ;;  %v3241_v22 = vpop.f32.mrb[44].mxu1  ;;  %6153 = vmatprep.subr.bf16.mxu1 %v14378_v17  ;;  %13379 = vmatprep.subr.bf16.mxu0 %v14379_v18  ;;  %v14413_v16 = vld [vmem:[#allocation19 + $0x274] ss:$12 sps:$4 sm:$0xff]   ;;  %v16274_v17 = vpack.c.bf16 %v16254_v63, %v16254_v63  ;;  %v14411_v38 = vld [vmem:[#allocation19 + $0x270] ss:$12 sps:$4 sm:$0xff]  }
 0x498   :  { %v13187_v9 = vpack.c.bf16 %v3162_v15, %v3160_v19  ;;  %v3164_v33 = vpop.f32.mrb[66].mxu0  ;;  %v3243_v26 = vpop.f32.mrb[45].mxu1  ;;  %6584 = vmatprep.mubr.bf16.mxu0 %v15133_v55  ;;  %6179 = vmatprep.mubr.bf16.mxu1 %v15133_v55  ;;  %v14415_v18 = vld [vmem:[#allocation19 + $0x338] ss:$12 sps:$4 sm:$0xff]   ;;  %v14419_v15 = vld [vmem:[#allocation19 + $0x410] ss:$12 sps:$4 sm:$0xff]  }
 0x499   :  { %v3166_v30 = vpop.f32.mrb[67].mxu0  ;;  %v13188_v32 = vpack.c.bf16 %v3243_v26, %v3241_v22  ;;  %v3245_v31 = vpop.f32.mrb[46].mxu1  ;;  %v14418_v19 = vld [vmem:[#allocation19 + $0x28c] ss:$12 sps:$4 sm:$0xff]   ;;  %v14416_v22 = vld [vmem:[#allocation19 + $0x288] ss:$12 sps:$4 sm:$0xff]  }
 0x49a   :  { %3458 = vst [vmem:[#allocation4 + $0x50] sm:$0xff] %v13187_v9  ;;  %v13190_v23 = vpack.c.bf16 %v3166_v30, %v3164_v33  ;;  %v3247_v6 = vpop.f32.mrb[47].mxu1  ;;  %6154 = vmatpush1.bf16.msra.mxu1 %v14376_v35  ;;  %13380 = vmatpush3.bf16.msra.mxu0 %v14380_v8  ;;  %v14420_v35 = vld [vmem:[#allocation19 + $0x350] ss:$12 sps:$4 sm:$0xff]   ;;  %v14424_v9 = vld [vmem:[#allocation19 + $0x428] ss:$12 sps:$4 sm:$0xff]  }
 0x49b   :  { %3459 = vst [vmem:[#allocation4 + $0x58] sm:$0xff] %v13188_v32  ;;  %v13191_v47 = vpack.c.bf16 %v3247_v6, %v3245_v31  ;;  %6155 = vmatprep.subr.bf16.mxu1 %v14383_v28  ;;  %13381 = vmatprep.subr.bf16.mxu0 %v14384_v29  ;;  %v14423_v8 = vld [vmem:[#allocation19 + $0x2a4] ss:$12 sps:$4 sm:$0xff]   ;;  %v14421_v63 = vld [vmem:[#allocation19 + $0x2a0] ss:$12 sps:$4 sm:$0xff]  }
 0x49c   :  { %3461 = vst [vmem:[#allocation4 + $0x8c] sm:$0xff] %v13190_v23  ;;  %v14425_v33 = vld [vmem:[#allocation19 + $0x368] ss:$12 sps:$4 sm:$0xff]   ;;  %v14429_v28 = vld [vmem:[#allocation19 + $0x440] ss:$12 sps:$4 sm:$0xff]  }
 0x49d   :  { %3462 = vst [vmem:[#allocation4 + $0x94] sm:$0xff] %v13191_v47  ;;  %v14428_v26 = vld [vmem:[#allocation19 + $0x2bc] ss:$12 sps:$4 sm:$0xff]   ;;  %v14426_v29 = vld [vmem:[#allocation19 + $0x2b8] ss:$12 sps:$4 sm:$0xff]  }
 0x49e   :  { %v3170_v62 = vpop.f32.mrb[68].mxu0  ;;  %6156 = vmatpush1.bf16.msra.mxu1 %v14381_v58  ;;  %13382 = vmatpush3.bf16.msra.mxu0 %v14385_v20  ;;  %v14430_v30 = vld [vmem:[#allocation19 + $0x380] ss:$12 sps:$4 sm:$0xff]   ;;  %v14434_v31 = vld [vmem:[#allocation19 + $0x458] ss:$12 sps:$4 sm:$0xff]  }
 0x49f   :  { %v3172_v40 = vpop.f32.mrb[69].mxu0  ;;  %6157 = vmatprep.subr.bf16.mxu1 %v14388_v43  ;;  %13383 = vmatprep.subr.bf16.mxu0 %v14389_v36  ;;  %v14433_v32 = vld [vmem:[#allocation19 + $0x2d4] ss:$12 sps:$4 sm:$0xff]   ;;  %v14431_v23 = vld [vmem:[#allocation19 + $0x2d0] ss:$12 sps:$4 sm:$0xff]  }
 0x4a0   :  { %v3174_v46 = vpop.f32.mrb[70].mxu0  ;;  %v14435_v6 = vld [vmem:[#allocation19 + $0x398] ss:$12 sps:$4 sm:$0xff]   ;;  %v14439_v58 = vld [vmem:[#allocation19 + $0x470] ss:$12 sps:$4 sm:$0xff]  }
 0x4a1   :  { %v3176_v39 = vpop.f32.mrb[71].mxu0  ;;  %v16258_v49 = vpack.c.bf16 %v3174_v46, %v3170_v62  ;;  %v14438_v47 = vld [vmem:[#allocation19 + $0x2ec] ss:$12 sps:$4 sm:$0xff]   ;;  %v14436_v20 = vld [vmem:[#allocation19 + $0x2e8] ss:$12 sps:$4 sm:$0xff]  }
 0x4a2   :  { %6158 = vmatpush1.bf16.msra.mxu1 %v14386_v41  ;;  %13384 = vmatpush3.bf16.msra.mxu0 %v14390_v27  ;;  %v16260_v25 = vpack.c.bf16 %v3176_v39, %v3172_v40  ;;  %v14440_v43 = vld [vmem:[#allocation19 + $0x3b0] ss:$12 sps:$4 sm:$0xff]   ;;  %v14447_v62 = vld [vmem:[#allocation19 + $0x548] ss:$12 sps:$4 sm:$0xff]   ;;  %v14441_v40 = vld [vmem:[#allocation19 + $0x300] ss:$12 sps:$4 sm:$0xff]  }
 0x4a3   :  { %6159 = vmatprep.subr.bf16.mxu1 %v14393_v48  ;;  %13385 = vmatprep.subr.bf16.mxu0 %v14394_v50  ;;  %v14443_v36 = vld [vmem:[#allocation19 + $0x304] ss:$12 sps:$4 sm:$0xff]   ;;  %v3251_v41 = vpop.f32.mrb[48].mxu1  ;;  %v14451_v27 = vld [vmem:[#allocation19 + $0x31c] ss:$12 sps:$4 sm:$0xff]  }
 0x4a4   :  { %v3253_v46 = vpop.f32.mrb[49].mxu1  ;;  %v14449_v39 = vld [vmem:[#allocation19 + $0x318] ss:$12 sps:$4 sm:$0xff]  }
 0x4a5   :  { %v3255_v48 = vpop.f32.mrb[50].mxu1 }
 0x4a6   :  { %v16262_v55 = vpop.f32.mrb[72].mxu0  ;;  %6160 = vmatpush1.bf16.msra.mxu1 %v14391_v51  ;;  %13386 = vmatpush3.bf16.msra.mxu0 %v14395_v52  ;;  %v3257_v51 = vpop.f32.mrb[51].mxu1 }
 0x4a7   :  { %v16264_v21 = vpop.f32.mrb[73].mxu0  ;;  %6161 = vmatprep.subr.bf16.mxu1 %v14398_v53  ;;  %13387 = vmatprep.subr.bf16.mxu0 %v14399_v24  ;;  %v14456_v24 = vld [vmem:[#allocation19 + $0x334] ss:$12 sps:$4 sm:$0xff]  }
 0x4a8   :  { %v3184_v1 = vpop.f32.mrb[74].mxu0 }
 0x4a9   :  { %v3185_v4 = vpop.f32.mrb[75].mxu0 }
 0x4aa   :  { %6162 = vmatpush1.bf16.msra.mxu1 %v14396_v57  ;;  %13388 = vmatpush3.bf16.msra.mxu0 %v14400_v34 }
 0x4ab   :  { %6163 = vmatprep.subr.bf16.mxu1 %v14403_v37  ;;  %13401 = vmatprep.subr.bf16.mxu0 %v14404_v2  ;;  %v14454_v37 = vld [vmem:[#allocation19 + $0x330] ss:$12 sps:$4 sm:$0xff]   ;;  %v14466_v2 = vld [vmem:[#allocation19 + $0x34c] ss:$12 sps:$4 sm:$0xff]  }
 0x4ad   :  { %6585 = vmatmul.mubr.bf16.vlgmr.msra.gmra.mrb[104].mxu0 %v16252_v54 }
 0x4ae   :  { %6164 = vmatpush1.bf16.msra.mxu1 %v14401_v7  ;;  %13402 = vmatpush3.bf16.msra.mxu0 %v14405_v56  ;;  %v14464_v7 = vld [vmem:[#allocation19 + $0x348] ss:$12 sps:$4 sm:$0xff]  }
 0x4af   :  { %6165 = vmatprep.subr.bf16.mxu1 %v14408_v60  ;;  %13403 = vmatprep.subr.bf16.mxu0 %v14409_v10  ;;  %v16284_v60 = vpack.c.bf16 %v3255_v48, %v3251_v41  ;;  %v16286_v10 = vpack.c.bf16 %v3257_v51, %v3253_v46  ;;  %v14486_v41 = vld [vmem:[#allocation19 + $0x3ac] ss:$12 sps:$4 sm:$0xff]   ;;  %v14472_v48 = vld [vmem:[#allocation19 + $0x5a8] ss:$12 sps:$4 sm:$0xff]  }
 0x4b0   :  { %6592 = vmatprep.mubr.bf16.mxu0 %v16268_v12 }
 0x4b2   :  { %6166 = vmatpush1.bf16.msra.mxu1 %v14406_v13  ;;  %13404 = vmatpush3.bf16.msra.mxu0 %v14410_v14  ;;  %v14471_v13 = vld [vmem:[#allocation19 + $0x364] ss:$12 sps:$4 sm:$0xff]  }
 0x4b3   :  { %6167 = vmatprep.subr.bf16.mxu1 %v14413_v16  ;;  %13405 = vmatprep.subr.bf16.mxu0 %v14414_v3 }
 0x4b5   :  { %6593 = vmatmul.mubr.bf16.gmra.mrb[108].mxu0 %v16274_v17 }
 0x4b6   :  { %6168 = vmatpush1.bf16.msra.mxu1 %v14411_v38  ;;  %13406 = vmatpush3.bf16.msra.mxu0 %v14415_v18  ;;  %v14448_v18 = vld [vmem:[#allocation19 + $0x488] ss:$12 sps:$4 sm:$0xff]  }
 0x4b7   :  { %6169 = vmatprep.subr.bf16.mxu1 %v14418_v19  ;;  %13407 = vmatprep.subr.bf16.mxu0 %v14419_v15  ;;  %v14469_v19 = vld [vmem:[#allocation19 + $0x360] ss:$12 sps:$4 sm:$0xff]  }
 0x4ba   :  { %6170 = vmatpush1.bf16.msra.mxu1 %v14416_v22  ;;  %13408 = vmatpush3.bf16.msra.mxu0 %v14420_v35  ;;  %v14446_v35 = vld [vmem:[#allocation4 + $0x14] ss:$60 sps:$4 sm:$0xff]  }
 0x4bb   :  { %6171 = vmatprep.subr.bf16.mxu1 %v14423_v8  ;;  %13409 = vmatprep.subr.bf16.mxu0 %v14424_v9  ;;  %v14452_v8 = vld [vmem:[#allocation19 + $0x560] ss:$12 sps:$4 sm:$0xff]   ;;  %v14476_v9 = vld [vmem:[#allocation19 + $0x37c] ss:$12 sps:$4 sm:$0xff]  }
 0x4bc   :  { %6632 = vmatprep.mubr.bf16.mxu0 %v14446_v35 }
 0x4be   :  { %6172 = vmatpush1.bf16.msra.mxu1 %v14421_v63  ;;  %13410 = vmatpush3.bf16.msra.mxu0 %v14425_v33  ;;  %v14453_v63 = vld [vmem:[#allocation19 + $0x4a0] ss:$12 sps:$4 sm:$0xff]   ;;  %v14474_v33 = vld [vmem:[#allocation19 + $0x378] ss:$12 sps:$4 sm:$0xff]  }
 0x4bf   :  { %6173 = vmatprep.subr.bf16.mxu1 %v14428_v26  ;;  %13411 = vmatprep.subr.bf16.mxu0 %v14429_v28  ;;  %v14458_v28 = vld [vmem:[#allocation19 + $0x578] ss:$12 sps:$4 sm:$0xff]  }
 0x4c2   :  { %6174 = vmatpush1.bf16.msra.mxu1 %v14426_v29  ;;  %13412 = vmatpush3.bf16.msra.mxu0 %v14430_v30 }
 0x4c3   :  { %6175 = vmatprep.subr.bf16.mxu1 %v14433_v32  ;;  %13413 = vmatprep.subr.bf16.mxu0 %v14434_v31  ;;  %v14481_v31 = vld [vmem:[#allocation19 + $0x394] ss:$12 sps:$4 sm:$0xff]  }
 0x4c6   :  { %6176 = vmatpush1.bf16.msra.mxu1 %v14431_v23  ;;  %13414 = vmatpush3.bf16.msra.mxu0 %v14435_v6 }
 0x4c7   :  { %6177 = vmatprep.subr.bf16.mxu1 %v14438_v47  ;;  %13415 = vmatprep.subr.bf16.mxu0 %v14439_v58 }
 0x4ca   :  { %6178 = vmatpush1.bf16.msra.mxu1 %v14436_v20  ;;  %13416 = vmatpush3.bf16.msra.mxu0 %v14440_v43  ;;  %v14460_v43 = vld [vmem:[#allocation19 + $0x4b8] ss:$12 sps:$4 sm:$0xff]  }
 0x4cb   :  { %6198 = vmatprep.subr.bf16.mxu1 %v14443_v36  ;;  %13429 = vmatprep.subr.bf16.mxu0 %v14447_v62  ;;  %v14467_v36 = vld [vmem:[#allocation19 + $0x590] ss:$12 sps:$4 sm:$0xff]  }
 0x4cc   :  { %v14479_v62 = vld [vmem:[#allocation19 + $0x390] ss:$12 sps:$4 sm:$0xff]  }
 0x4cd   :  { %6180 = vmatmul.mubr.bf16.vlgmr.msra.gmra.mrb[56].mxu1 %v16252_v54  ;;  %v16279_v54 = vpop.f32.mrb[52].mxu1 }
 0x4ce   :  { %6199 = vmatpush1.bf16.msra.mxu1 %v14441_v40  ;;  %6189 = vmatprep.mubr.bf16.mxu1 %v16268_v12  ;;  %v16282_v56 = vpop.f32.mrb[53].mxu1  ;;  %v16296_v40 = vld [vmem:[#allocation4 + $0x1c] ss:$60 sps:$4 sm:$0xff]  }
 0x4cf   :  { %6200 = vmatprep.subr.bf16.mxu1 %v14451_v27  ;;  %v3265_v16 = vpop.f32.mrb[54].mxu1  ;;  %v14468_v27 = vld [vmem:[#allocation19 + $0x4d0] ss:$12 sps:$4 sm:$0xff]  }
 0x4d0   :  { %v3266_v38 = vpop.f32.mrb[55].mxu1 }
 0x4d1   :  { %v3302_v50 = vpop.f32.mrb[76].mxu0 }
 0x4d2   :  { %v13177_v52 = vpack.c.bf16 %v3302_v50, %v3302_v50  ;;  %v13652_v53 = vpop.f32.mrb[77].mxu0  ;;  %6201 = vmatpush1.bf16.msra.mxu1 %v14449_v39  ;;  %v14484_v50 = vld [vmem:[#allocation19 + $0x3a8] ss:$12 sps:$4 sm:$0xff]  }
 0x4d3   :  { %v3305_v57 = vpop.f32.mrb[78].mxu0  ;;  %6202 = vmatprep.subr.bf16.mxu1 %v14456_v24 }
 0x4d4   :  { %3395 = vst [vmem:[#allocation4 + $0x10] sm:$0xf] %v13177_v52  ;;  %v13180_v34 = vpack.c.bf16 %v3305_v57, %v3305_v57  ;;  %v13653_v1 = vpop.f32.mrb[79].mxu0  ;;  %v14491_v52 = vld [vmem:[#allocation19 + $0x3c4] ss:$12 sps:$4 sm:$0xff]  }
 0x4d5   :  { %6190 = vmatmul.mubr.bf16.gmra.mrb[60].mxu1 %v16274_v17  ;;  %v14477_v1 = vld [vmem:[#allocation19 + $0x5c0] ss:$12 sps:$4 sm:$0xff]  }
 0x4d6   :  { %3398 = vst [vmem:[#allocation4 + $0x4c] sm:$0xf] %v13180_v34  ;;  %6203 = vmatpush1.bf16.msra.mxu1 %v14454_v37  ;;  %6230 = vmatprep.mubr.bf16.mxu1 %v14446_v35  ;;  %v14473_v34 = vld [vmem:[#allocation19 + $0x4e8] ss:$12 sps:$4 sm:$0xff]   ;;  %v14489_v37 = vld [vmem:[#allocation19 + $0x3c0] ss:$12 sps:$4 sm:$0xff]  }
 0x4d7   :  { %6204 = vmatprep.subr.bf16.mxu1 %v14466_v2  ;;  %v14496_v2 = vld [vmem:[#allocation19 + $0x3dc] ss:$12 sps:$4 sm:$0xff]   ;;  %v14508_v35 = vld [vmem:[#allocation19 + $0x40c] ss:$12 sps:$4 sm:$0xff]  }
 0x4d9   :  { %v3310_v4 = vpop.f32.mrb[80].mxu0 }
 0x4da   :  { %v13183_v12 = vpack.c.bf16 %v3310_v4, %v3310_v4  ;;  %v13656_v14 = vpop.f32.mrb[81].mxu0  ;;  %6205 = vmatpush1.bf16.msra.mxu1 %v14464_v7  ;;  %v14478_v4 = vld [vmem:[#allocation19 + $0x500] ss:$12 sps:$4 sm:$0xff]  }
 0x4db   :  { %v3313_v3 = vpop.f32.mrb[82].mxu0  ;;  %6206 = vmatprep.subr.bf16.mxu1 %v14471_v13  ;;  %v14494_v13 = vld [vmem:[#allocation19 + $0x3d8] ss:$12 sps:$4 sm:$0xff]  }
 0x4dc   :  { %3401 = vst [vmem:[#allocation4 + $0x88] sm:$0xf] %v13183_v12  ;;  %v13186_v17 = vpack.c.bf16 %v3313_v3, %v3313_v3  ;;  %v13657_v15 = vpop.f32.mrb[83].mxu0  ;;  %v14482_v12 = vld [vmem:[#allocation19 + $0x5d8] ss:$12 sps:$4 sm:$0xff]  }
 0x4dd   :  { %v16288_v22 = vld [vmem:[#allocation4 + $0x10] ss:$60 sps:$4 sm:$0xff]  }
 0x4de   :  { %3457 = vst [vmem:[#allocation4 + $0x24] sm:$0xf] %v13186_v17  ;;  %6633 = vmatmul.mubr.bf16.vlgmr.msra.gmra.mrb[112].mxu0 %v16288_v22  ;;  %6207 = vmatpush1.bf16.msra.mxu1 %v14469_v19  ;;  %v14502_v3 = vld [vmem:[#allocation19 + $0x3f4] ss:$12 sps:$4 sm:$0xff]   ;;  %v14483_v19 = vld [vmem:[#allocation19 + $0x518] ss:$12 sps:$4 sm:$0xff]  }
 0x4df   :  { %13430 = vmatpush3.bf16.msra.mxu0 %v14448_v18  ;;  %6208 = vmatprep.subr.bf16.mxu1 %v14476_v9  ;;  %v14487_v17 = vld [vmem:[#allocation19 + $0x5f0] ss:$12 sps:$4 sm:$0xff]   ;;  %v14492_v9 = vld [vmem:[#allocation19 + $0x6c8] ss:$12 sps:$4 sm:$0xff]  }
 0x4e0   :  { %13431 = vmatprep.subr.bf16.mxu0 %v14452_v8  ;;  %v14500_v15 = vld [vmem:[#allocation19 + $0x3f0] ss:$12 sps:$4 sm:$0xff]  }
 0x4e1   :  { %v3318_v26 = vpop.f32.mrb[84].mxu0  ;;  %v14488_v8 = vld [vmem:[#allocation19 + $0x530] ss:$12 sps:$4 sm:$0xff]  }
 0x4e2   :  { %v13189_v29 = vpack.c.bf16 %v3318_v26, %v3318_v26  ;;  %v13660_v30 = vpop.f32.mrb[85].mxu0  ;;  %6209 = vmatpush1.bf16.msra.mxu1 %v14474_v33  ;;  %v14513_v33 = vld [vmem:[#allocation19 + $0x424] ss:$12 sps:$4 sm:$0xff]  }
 0x4e3   :  { %v3544_v32 = vld [vmem:[#allocation4 + $0x88] sm:$0xff]  ;;  %v3321_v23 = vpop.f32.mrb[86].mxu0  ;;  %13432 = vmatpush3.bf16.msra.mxu0 %v14453_v63  ;;  %6210 = vmatprep.subr.bf16.mxu1 %v14481_v31  ;;  %v14506_v63 = vld [vmem:[#allocation19 + $0x408] ss:$12 sps:$4 sm:$0xff]  }
 0x4e4   :  { %v16291_v6 = vcombine.high %v3544_v32, %v3544_v32  ;;  %v16293_v47 = vcombine.low %v3544_v32, %v3544_v32  ;;  %3460 = vst [vmem:[#allocation4 + $0x60] sm:$0xf] %v13189_v29  ;;  %v13192_v58 = vpack.c.bf16 %v3321_v23, %v3321_v23  ;;  %v13661_v20 = vpop.f32.mrb[87].mxu0  ;;  %13433 = vmatprep.subr.bf16.mxu0 %v14458_v28  ;;  %v3545_v26 = vld [vmem:[#allocation4 + $0x90] sm:$0xff] }
 0x4e5   :  { %v14493_v28 = vld [vmem:[#allocation19 + $0x608] ss:$12 sps:$4 sm:$0xff]   ;;  %v14497_v30 = vld [vmem:[#allocation19 + $0x6e0] ss:$12 sps:$4 sm:$0xff]   ;;  %v16302_v31 = vcombine.high %v3545_v26, %v3545_v26  ;;  %v14504_v20 = vld [vmem:[#allocation19 + $0x6f8] ss:$12 sps:$4 sm:$0xff]  }
 0x4e6   :  { %6640 = vmatprep.mubr.bf16.mxu0 %v16291_v6  ;;  %3463 = vst [vmem:[#allocation4 + $0x9c] sm:$0xf] %v13192_v58  ;;  %6211 = vmatpush1.bf16.msra.mxu1 %v14479_v62  ;;  %v16300_v29 = vld [vmem:[#allocation4 + $0x18] ss:$60 sps:$4 sm:$0xff]  }
 0x4e7   :  { %6641 = vmatmul.mubr.bf16.gmra.mrb[116].mxu0 %v16293_v47  ;;  %6212 = vmatprep.subr.bf16.mxu1 %v14486_v41  ;;  %v14511_v32 = vld [vmem:[#allocation19 + $0x420] ss:$12 sps:$4 sm:$0xff]   ;;  %v14518_v23 = vld [vmem:[#allocation19 + $0x43c] ss:$12 sps:$4 sm:$0xff]   ;;  %v14505_v62 = vld [vmem:[#allocation19 + $0x638] ss:$12 sps:$4 sm:$0xff]  }
 0x4e8   :  { %13434 = vmatpush3.bf16.msra.mxu0 %v14460_v43  ;;  %6680 = vmatprep.mubr.bf16.mxu0 %v16296_v40  ;;  %v14499_v58 = vld [vmem:[#allocation19 + $0x620] ss:$12 sps:$4 sm:$0xff]   ;;  %v14516_v43 = vld [vmem:[#allocation19 + $0x438] ss:$12 sps:$4 sm:$0xff]  }
 0x4e9   :  { %v3326_v46 = vpop.f32.mrb[88].mxu0  ;;  %13435 = vmatprep.subr.bf16.mxu0 %v14467_v36  ;;  %v14526_v36 = vld [vmem:[#allocation19 + $0x454] ss:$12 sps:$4 sm:$0xff]  }
 0x4ea   :  { %v13195_v39 = vpack.c.bf16 %v3326_v46, %v3326_v46  ;;  %v13664_v51 = vpop.f32.mrb[89].mxu0  ;;  %6213 = vmatpush1.bf16.msra.mxu1 %v14484_v50  ;;  %v14509_v46 = vld [vmem:[#allocation19 + $0x710] ss:$12 sps:$4 sm:$0xff]   ;;  %v14531_v50 = vld [vmem:[#allocation19 + $0x46c] ss:$12 sps:$4 sm:$0xff]  }
 0x4eb   :  { %v3329_v53 = vpop.f32.mrb[90].mxu0  ;;  %6214 = vmatprep.subr.bf16.mxu1 %v14491_v52  ;;  %v16306_v41 = vld [vmem:[#allocation4 + $0x24] ss:$60 sps:$4 sm:$0xff]  }
 0x4ec   :  { %3519 = vst [vmem:[#allocation4 + $0x38] sm:$0xf] %v13195_v39  ;;  %v13198_v24 = vpack.c.bf16 %v3329_v53, %v3329_v53  ;;  %v13665_v57 = vpop.f32.mrb[91].mxu0  ;;  %13436 = vmatpush3.bf16.msra.mxu0 %v14468_v27  ;;  %v16308_v27 = vcombine.low %v3545_v26, %v3545_v26  ;;  %v14510_v39 = vld [vmem:[#allocation19 + $0x650] ss:$12 sps:$4 sm:$0xff]  }
 0x4ed   :  { %13437 = vmatprep.subr.bf16.mxu0 %v14472_v48  ;;  %v14524_v48 = vld [vmem:[#allocation19 + $0x450] ss:$12 sps:$4 sm:$0xff]   ;;  %v14514_v51 = vld [vmem:[#allocation19 + $0x728] ss:$12 sps:$4 sm:$0xff]   ;;  %v14519_v57 = vld [vmem:[#allocation19 + $0x740] ss:$12 sps:$4 sm:$0xff]  }
 0x4ee   :  { %3522 = vst [vmem:[#allocation4 + $0x74] sm:$0xf] %v13198_v24  ;;  %6215 = vmatpush1.bf16.msra.mxu1 %v14489_v37  ;;  %v14529_v52 = vld [vmem:[#allocation19 + $0x468] ss:$12 sps:$4 sm:$0xff]   ;;  %v14536_v53 = vld [vmem:[#allocation19 + $0x484] ss:$12 sps:$4 sm:$0xff]  }
 0x4ef   :  { %6216 = vmatprep.subr.bf16.mxu1 %v14496_v2  ;;  %v14515_v24 = vld [vmem:[#allocation19 + $0x668] ss:$12 sps:$4 sm:$0xff]   ;;  %v14520_v37 = vld [vmem:[#allocation19 + $0x680] ss:$12 sps:$4 sm:$0xff]   ;;  %v14527_v2 = vld [vmem:[#allocation19 + $0x758] ss:$12 sps:$4 sm:$0xff]  }
 0x4f0   :  { %13438 = vmatpush3.bf16.msra.mxu0 %v14473_v34  ;;  %v14534_v34 = vld [vmem:[#allocation19 + $0x480] ss:$12 sps:$4 sm:$0xff]  }
 0x4f1   :  { %v3334_v7 = vpop.f32.mrb[92].mxu0  ;;  %13439 = vmatprep.subr.bf16.mxu0 %v14477_v1  ;;  %v14541_v1 = vld [vmem:[#allocation19 + $0x49c] ss:$12 sps:$4 sm:$0xff]   ;;  %v14568_v26 = vld [vmem:[#allocation19 + $0x514] ss:$12 sps:$4 sm:$0xff]  }
 0x4f2   :  { %v13201_v14 = vpack.c.bf16 %v3334_v7, %v3334_v7  ;;  %v13668_v16 = vpop.f32.mrb[93].mxu0  ;;  %6217 = vmatpush1.bf16.msra.mxu1 %v14494_v13  ;;  %v14546_v7 = vld [vmem:[#allocation19 + $0x4b4] ss:$12 sps:$4 sm:$0xff]   ;;  %v14532_v13 = vld [vmem:[#allocation19 + $0x770] ss:$12 sps:$4 sm:$0xff]  }
 0x4f3   :  { %v3337_v38 = vpop.f32.mrb[94].mxu0  ;;  %6218 = vmatprep.subr.bf16.mxu1 %v14502_v3  ;;  %v14553_v16 = vld [vmem:[#allocation19 + $0x4cc] ss:$12 sps:$4 sm:$0xff]   ;;  %v14533_v3 = vld [vmem:[#allocation19 + $0x6b0] ss:$12 sps:$4 sm:$0xff]  }
 0x4f4   :  { %3525 = vst [vmem:[#allocation4 + $0xb0] sm:$0xf] %v13201_v14  ;;  %v13669_v18 = vpop.f32.mrb[95].mxu0  ;;  %13440 = vmatpush3.bf16.msra.mxu0 %v14478_v4  ;;  %v14539_v4 = vld [vmem:[#allocation19 + $0x498] ss:$12 sps:$4 sm:$0xff]   ;;  %v3546_v38 = vld [vmem:[#allocation4 + $0x98] sm:$0xff] }
 0x4f5   :  { %13441 = vmatprep.subr.bf16.mxu0 %v14482_v12  ;;  %v14528_v12 = vld [vmem:[#allocation19 + $0x698] ss:$12 sps:$4 sm:$0xff]   ;;  %v14544_v14 = vld [vmem:[#allocation19 + $0x4b0] ss:$12 sps:$4 sm:$0xff]  }
 0x4f6   :  { %6219 = vmatpush1.bf16.msra.mxu1 %v14500_v15  ;;  %v14558_v18 = vld [vmem:[#allocation19 + $0x4e4] ss:$12 sps:$4 sm:$0xff]  }
 0x4f7   :  { %6220 = vmatprep.subr.bf16.mxu1 %v14508_v35  ;;  %v16318_v15 = vld [vmem:[#allocation4 + $0x20] ss:$60 sps:$4 sm:$0xff]  }
 0x4f8   :  { %13442 = vmatpush3.bf16.msra.mxu0 %v14483_v19  ;;  %v14538_v19 = vld [vmem:[#allocation19 + $0x788] ss:$12 sps:$4 sm:$0xff]   ;;  %v14542_v35 = vld [vmem:[#allocation19 + $0x860] ss:$12 sps:$4 sm:$0xff]  }
 0x4f9   :  { %13443 = vmatprep.subr.bf16.mxu0 %v14487_v17  ;;  %v16316_v17 = vcombine.high %v3546_v38, %v3546_v38 }
 0x4fa   :  { %6221 = vmatpush1.bf16.msra.mxu1 %v14506_v63  ;;  %v14561_v63 = vld [vmem:[#allocation19 + $0x4f8] ss:$12 sps:$4 sm:$0xff]  }
 0x4fb   :  { %6222 = vmatprep.subr.bf16.mxu1 %v14513_v33  ;;  %v16322_v33 = vcombine.low %v3546_v38, %v3546_v38  ;;  %v14589_v38 = vld [vmem:[#allocation19 + $0x9f8] ss:$12 sps:$4 sm:$0xff]  }
 0x4fc   :  { %13444 = vmatpush3.bf16.msra.mxu0 %v14488_v8  ;;  %v14556_v8 = vld [vmem:[#allocation19 + $0x4e0] ss:$12 sps:$4 sm:$0xff]  }
 0x4fd   :  { %13457 = vmatprep.subr.bf16.mxu0 %v14492_v9  ;;  %v14549_v9 = vld [vmem:[#allocation19 + $0x878] ss:$12 sps:$4 sm:$0xff]  }
 0x4fe   :  { %6223 = vmatpush1.bf16.msra.mxu1 %v14511_v32  ;;  %v14566_v32 = vld [vmem:[#allocation19 + $0x510] ss:$12 sps:$4 sm:$0xff]  }
 0x4ff   :  { %6681 = vmatmul.mubr.bf16.vlgmr.msra.gmra.mrb[120].mxu0 %v16300_v29  ;;  %6224 = vmatprep.subr.bf16.mxu1 %v14518_v23  ;;  %v14573_v23 = vld [vmem:[#allocation19 + $0x52c] ss:$12 sps:$4 sm:$0xff]  }
 0x500   :  { %13458 = vmatpush3.bf16.msra.mxu0 %v14493_v28  ;;  %6688 = vmatprep.mubr.bf16.mxu0 %v16302_v31  ;;  %v14550_v28 = vld [vmem:[#allocation19 + $0x7b8] ss:$12 sps:$4 sm:$0xff]  }
 0x501   :  { %13459 = vmatprep.subr.bf16.mxu0 %v14497_v30  ;;  %v14554_v30 = vld [vmem:[#allocation19 + $0x890] ss:$12 sps:$4 sm:$0xff]  }
 0x502   :  { %6225 = vmatpush1.bf16.msra.mxu1 %v14516_v43  ;;  %v14571_v43 = vld [vmem:[#allocation19 + $0x528] ss:$12 sps:$4 sm:$0xff]  }
 0x503   :  { %6226 = vmatprep.subr.bf16.mxu1 %v14526_v36  ;;  %v14578_v36 = vld [vmem:[#allocation19 + $0x544] ss:$12 sps:$4 sm:$0xff]  }
 0x504   :  { %13460 = vmatpush3.bf16.msra.mxu0 %v14499_v58  ;;  %v14555_v58 = vld [vmem:[#allocation19 + $0x7d0] ss:$12 sps:$4 sm:$0xff]  }
 0x505   :  { %13461 = vmatprep.subr.bf16.mxu0 %v14504_v20  ;;  %v14559_v20 = vld [vmem:[#allocation19 + $0x8a8] ss:$12 sps:$4 sm:$0xff]  }
 0x506   :  { %6227 = vmatpush1.bf16.msra.mxu1 %v14524_v48  ;;  %v14576_v48 = vld [vmem:[#allocation19 + $0x540] ss:$12 sps:$4 sm:$0xff]  }
 0x507   :  { %6689 = vmatmul.mubr.bf16.gmra.mrb[124].mxu0 %v16308_v27  ;;  %6228 = vmatprep.subr.bf16.mxu1 %v14531_v50  ;;  %v14583_v50 = vld [vmem:[#allocation19 + $0x55c] ss:$12 sps:$4 sm:$0xff]  }
 0x508   :  { %13462 = vmatpush3.bf16.msra.mxu0 %v14505_v62  ;;  %6728 = vmatprep.mubr.bf16.mxu0 %v16306_v41  ;;  %v14560_v62 = vld [vmem:[#allocation19 + $0x7e8] ss:$12 sps:$4 sm:$0xff]  }
 0x509   :  { %13463 = vmatprep.subr.bf16.mxu0 %v14509_v46  ;;  %v14564_v46 = vld [vmem:[#allocation19 + $0x8c0] ss:$12 sps:$4 sm:$0xff]  }
 0x50a   :  { %6229 = vmatpush1.bf16.msra.mxu1 %v14529_v52  ;;  %v14581_v52 = vld [vmem:[#allocation19 + $0x558] ss:$12 sps:$4 sm:$0xff]  }
 0x50b   :  { %6249 = vmatprep.subr.bf16.mxu1 %v14536_v53  ;;  %v14588_v53 = vld [vmem:[#allocation19 + $0x574] ss:$12 sps:$4 sm:$0xff]  }
 0x50c   :  { %13464 = vmatpush3.bf16.msra.mxu0 %v14510_v39  ;;  %v14565_v39 = vld [vmem:[#allocation19 + $0x800] ss:$12 sps:$4 sm:$0xff]  }
 0x50d   :  { %13465 = vmatprep.subr.bf16.mxu0 %v14514_v51  ;;  %6231 = vmatmul.mubr.bf16.vlgmr.msra.gmra.mrb[56].mxu1 %v16288_v22  ;;  %v14537_v22 = vld [vmem:[#allocation19 + $0x848] ss:$12 sps:$4 sm:$0xff]   ;;  %v14569_v51 = vld [vmem:[#allocation19 + $0x8d8] ss:$12 sps:$4 sm:$0xff]  }
 0x50e   :  { %6240 = vmatprep.mubr.bf16.mxu1 %v16291_v6  ;;  %6250 = vmatpush1.bf16.msra.mxu1 %v14534_v34  ;;  %v14551_v6 = vld [vmem:[#allocation19 + $0x4c8] ss:$12 sps:$4 sm:$0xff]   ;;  %v14586_v34 = vld [vmem:[#allocation19 + $0x570] ss:$12 sps:$4 sm:$0xff]  }
 0x50f   :  { %6251 = vmatprep.subr.bf16.mxu1 %v14541_v1  ;;  %v14593_v1 = vld [vmem:[#allocation19 + $0x58c] ss:$12 sps:$4 sm:$0xff]  }
 0x510   :  { %13466 = vmatpush3.bf16.msra.mxu0 %v14515_v24  ;;  %v14570_v24 = vld [vmem:[#allocation19 + $0x818] ss:$12 sps:$4 sm:$0xff]  }
 0x511   :  { %13467 = vmatprep.subr.bf16.mxu0 %v14519_v57  ;;  %v14574_v57 = vld [vmem:[#allocation19 + $0x8f0] ss:$12 sps:$4 sm:$0xff]  }
 0x512   :  { %6252 = vmatpush1.bf16.msra.mxu1 %v14539_v4  ;;  %v14591_v4 = vld [vmem:[#allocation19 + $0x588] ss:$12 sps:$4 sm:$0xff]  }
 0x513   :  { %6253 = vmatprep.subr.bf16.mxu1 %v14546_v7  ;;  %v14598_v7 = vld [vmem:[#allocation19 + $0x5a4] ss:$12 sps:$4 sm:$0xff]  }
 0x514   :  { %13468 = vmatpush3.bf16.msra.mxu0 %v14520_v37  ;;  %v14575_v37 = vld [vmem:[#allocation19 + $0x830] ss:$12 sps:$4 sm:$0xff]  }
 0x515   :  { %13469 = vmatprep.subr.bf16.mxu0 %v14527_v2  ;;  %6241 = vmatmul.mubr.bf16.gmra.mrb[60].mxu1 %v16293_v47  ;;  %v14563_v47 = vld [vmem:[#allocation19 + $0x4fc] ss:$12 sps:$4 sm:$0xff]  }
 0x516   :  { %6281 = vmatprep.mubr.bf16.mxu1 %v16296_v40  ;;  %6254 = vmatpush1.bf16.msra.mxu1 %v14544_v14  ;;  %v14543_v40 = vld [vmem:[#allocation19 + $0x7a0] ss:$12 sps:$4 sm:$0xff]   ;;  %v14579_v2 = vld [vmem:[#allocation19 + $0x9c8] ss:$12 sps:$4 sm:$0xff]   ;;  %v16328_v14 = vpack.c.bf16 %v16264_v21, %v16264_v21  ;;  %v16334_v21 = vpack.c.bf16 %v16262_v55, %v16262_v55 }
 0x517   :  { %6255 = vmatprep.subr.bf16.mxu1 %v14553_v16  ;;  %v14596_v16 = vld [vmem:[#allocation19 + $0x5a0] ss:$12 sps:$4 sm:$0xff]   ;;  %v14600_v55 = vld [vmem:[#allocation19 + $0x968] ss:$12 sps:$4 sm:$0xff]  }
 0x518   :  { %13470 = vmatpush3.bf16.msra.mxu0 %v14528_v12  ;;  %v14580_v12 = vld [vmem:[#allocation19 + $0x908] ss:$12 sps:$4 sm:$0xff]  }
 0x519   :  { %13471 = vmatprep.subr.bf16.mxu0 %v14532_v13  ;;  %v14584_v13 = vld [vmem:[#allocation19 + $0x9e0] ss:$12 sps:$4 sm:$0xff]  }
 0x51a   :  { %6256 = vmatpush1.bf16.msra.mxu1 %v14551_v6  ;;  %v14601_v6 = vld [vmem:[#allocation19 + $0x5b8] ss:$12 sps:$4 sm:$0xff]  }
 0x51b   :  { %6257 = vmatprep.subr.bf16.mxu1 %v14558_v18  ;;  %v14608_v18 = vld [vmem:[#allocation19 + $0x5d4] ss:$12 sps:$4 sm:$0xff]  }
 0x51c   :  { %13472 = vmatpush3.bf16.msra.mxu0 %v14533_v3  ;;  %v14603_v3 = vld [vmem:[#allocation19 + $0x5bc] ss:$12 sps:$4 sm:$0xff]  }
 0x51d   :  { %13485 = vmatprep.subr.bf16.mxu0 %v14537_v22  ;;  %v14585_v22 = vld [vmem:[#allocation19 + $0x920] ss:$12 sps:$4 sm:$0xff]  }
 0x51e   :  { %6258 = vmatpush1.bf16.msra.mxu1 %v14556_v8  ;;  %v14606_v8 = vld [vmem:[#allocation19 + $0x5d0] ss:$12 sps:$4 sm:$0xff]  }
 0x51f   :  { %6729 = vmatmul.mubr.bf16.vlgmr.msra.gmra.mrb[128].mxu0 %v16318_v15  ;;  %6259 = vmatprep.subr.bf16.mxu1 %v14563_v47  ;;  %v14613_v47 = vld [vmem:[#allocation19 + $0x5ec] ss:$12 sps:$4 sm:$0xff]  }
 0x520   :  { %13486 = vmatpush3.bf16.msra.mxu0 %v14538_v19  ;;  %6736 = vmatprep.mubr.bf16.mxu0 %v16316_v17  ;;  %v14590_v19 = vld [vmem:[#allocation19 + $0x938] ss:$12 sps:$4 sm:$0xff]  }
 0x521   :  { %13487 = vmatprep.subr.bf16.mxu0 %v14542_v35  ;;  %v14594_v35 = vld [vmem:[#allocation19 + $0xa10] ss:$12 sps:$4 sm:$0xff]  }
 0x522   :  { %6260 = vmatpush1.bf16.msra.mxu1 %v14561_v63  ;;  %v14611_v63 = vld [vmem:[#allocation19 + $0x5e8] ss:$12 sps:$4 sm:$0xff]  }
 0x523   :  { %6261 = vmatprep.subr.bf16.mxu1 %v14568_v26  ;;  %v14618_v26 = vld [vmem:[#allocation19 + $0x604] ss:$12 sps:$4 sm:$0xff]  }
 0x524   :  { %13488 = vmatpush3.bf16.msra.mxu0 %v14543_v40  ;;  %v14595_v40 = vld [vmem:[#allocation19 + $0x950] ss:$12 sps:$4 sm:$0xff]  }
 0x525   :  { %13489 = vmatprep.subr.bf16.mxu0 %v14549_v9  ;;  %v14599_v9 = vld [vmem:[#allocation19 + $0xa28] ss:$12 sps:$4 sm:$0xff]  }
 0x526   :  { %6262 = vmatpush1.bf16.msra.mxu1 %v14566_v32  ;;  %v14622_v32 = vld [vmem:[#allocation19 + $0x61c] ss:$12 sps:$4 sm:$0xff]  }
 0x527   :  { %6737 = vmatmul.mubr.bf16.gmra.mrb[132].mxu0 %v16322_v33  ;;  %6263 = vmatprep.subr.bf16.mxu1 %v14573_v23  ;;  %v14605_v23 = vld [vmem:[#allocation19 + $0x980] ss:$12 sps:$4 sm:$0xff]  }
 0x528   :  { %13490 = vmatpush3.bf16.msra.mxu0 %v14550_v28  ;;  %6776 = vmatprep.mubr.bf16.mxu0 %v16260_v25  ;;  %v14604_v28 = vld [vmem:[#allocation19 + $0xa40] ss:$12 sps:$4 sm:$0xff]  }
 0x529   :  { %13491 = vmatprep.subr.bf16.mxu0 %v14554_v30  ;;  %v14616_v30 = vld [vmem:[#allocation19 + $0x600] ss:$12 sps:$4 sm:$0xff]  }
 0x52a   :  { %6264 = vmatpush1.bf16.msra.mxu1 %v14571_v43  ;;  %v14626_v43 = vld [vmem:[#allocation19 + $0x634] ss:$12 sps:$4 sm:$0xff]  }
 0x52b   :  { %6265 = vmatprep.subr.bf16.mxu1 %v14578_v36  ;;  %v14610_v36 = vld [vmem:[#allocation19 + $0x998] ss:$12 sps:$4 sm:$0xff]  }
 0x52c   :  { %13492 = vmatpush3.bf16.msra.mxu0 %v14555_v58  ;;  %v14609_v58 = vld [vmem:[#allocation19 + $0xa58] ss:$12 sps:$4 sm:$0xff]  }
 0x52d   :  { %13493 = vmatprep.subr.bf16.mxu0 %v14559_v20  ;;  %v14620_v20 = vld [vmem:[#allocation19 + $0x618] ss:$12 sps:$4 sm:$0xff]  }
 0x52e   :  { %6266 = vmatpush1.bf16.msra.mxu1 %v14576_v48  ;;  %v14630_v48 = vld [vmem:[#allocation19 + $0x64c] ss:$12 sps:$4 sm:$0xff]  }
 0x52f   :  { %6267 = vmatprep.subr.bf16.mxu1 %v14583_v50  ;;  %v14615_v50 = vld [vmem:[#allocation19 + $0x9b0] ss:$12 sps:$4 sm:$0xff]  }
 0x530   :  { %13494 = vmatpush3.bf16.msra.mxu0 %v14560_v62  ;;  %v14614_v62 = vld [vmem:[#allocation19 + $0xa70] ss:$12 sps:$4 sm:$0xff]  }
 0x531   :  { %13495 = vmatprep.subr.bf16.mxu0 %v14564_v46  ;;  %v14624_v46 = vld [vmem:[#allocation19 + $0x630] ss:$12 sps:$4 sm:$0xff]  }
 0x532   :  { %6268 = vmatpush1.bf16.msra.mxu1 %v14581_v52  ;;  %v14623_v52 = vld [vmem:[#allocation19 + $0xaa0] ss:$12 sps:$4 sm:$0xff]  }
 0x533   :  { %6269 = vmatprep.subr.bf16.mxu1 %v14588_v53  ;;  %v14632_v53 = vld [vmem:[#allocation19 + $0x660] ss:$12 sps:$4 sm:$0xff]  }
 0x534   :  { %13496 = vmatpush3.bf16.msra.mxu0 %v14565_v39  ;;  %v14619_v39 = vld [vmem:[#allocation19 + $0xa88] ss:$12 sps:$4 sm:$0xff]  }
 0x535   :  { %13497 = vmatprep.subr.bf16.mxu0 %v14569_v51  ;;  %v16344_v51 = vpack.c.bf16 %v16282_v56, %v16282_v56  ;;  %v14642_v56 = vld [vmem:[#allocation19 + $0x694] ss:$12 sps:$4 sm:$0xff]  }
 0x536   :  { %6270 = vmatpush1.bf16.msra.mxu1 %v14586_v34 }
 0x537   :  { %6271 = vmatprep.subr.bf16.mxu1 %v14593_v1 }
 0x538   :  { %13498 = vmatpush3.bf16.msra.mxu0 %v14570_v24  ;;  %v14638_v24 = vld [vmem:[#allocation19 + $0x67c] ss:$12 sps:$4 sm:$0xff]  }
 0x539   :  { %13499 = vmatprep.subr.bf16.mxu0 %v14574_v57 }
 0x53a   :  { %6272 = vmatpush1.bf16.msra.mxu1 %v14591_v4  ;;  %v16354_v4 = vpack.c.bf16 %v16279_v54, %v16279_v54 }
 0x53b   :  { %6273 = vmatprep.subr.bf16.mxu1 %v14598_v7  ;;  %v14631_v7 = vld [vmem:[#allocation19 + $0xad0] ss:$12 sps:$4 sm:$0xff]  }
 0x53c   :  { %13500 = vmatpush3.bf16.msra.mxu0 %v14575_v37 }
 0x53d   :  { %13513 = vmatprep.subr.bf16.mxu0 %v14579_v2  ;;  %v16350_v2 = vld [vmem:[#allocation4 + $0x38] ss:$60 sps:$4 sm:$0xff]  }
 0x53e   :  { %6274 = vmatpush1.bf16.msra.mxu1 %v14596_v16  ;;  %v14640_v16 = vld [vmem:[#allocation19 + $0x690] ss:$12 sps:$4 sm:$0xff]  }
 0x53f   :  { %6777 = vmatmul.mubr.bf16.vlgmr.msra.gmra.mrb[136].mxu0 %v16258_v49  ;;  %6275 = vmatprep.subr.bf16.mxu1 %v14603_v3  ;;  %v14646_v3 = vld [vmem:[#allocation19 + $0x6ac] ss:$12 sps:$4 sm:$0xff]  }
 0x540   :  { %6784 = vmatprep.mubr.bf16.mxu0 %v16328_v14  ;;  %13514 = vmatpush3.bf16.msra.mxu0 %v14580_v12 }
 0x541   :  { %13515 = vmatprep.subr.bf16.mxu0 %v14584_v13 }
 0x542   :  { %6276 = vmatpush1.bf16.msra.mxu1 %v14601_v6  ;;  %v14650_v6 = vld [vmem:[#allocation19 + $0x6c4] ss:$12 sps:$4 sm:$0xff]  }
 0x543   :  { %6277 = vmatprep.subr.bf16.mxu1 %v14608_v18 }
 0x544   :  { %13516 = vmatpush3.bf16.msra.mxu0 %v14585_v22  ;;  %v14635_v22 = vld [vmem:[#allocation19 + $0xae8] ss:$12 sps:$4 sm:$0xff]  }
 0x545   :  { %13517 = vmatprep.subr.bf16.mxu0 %v14589_v38  ;;  %v14644_v38 = vld [vmem:[#allocation19 + $0x6a8] ss:$12 sps:$4 sm:$0xff]  }
 0x546   :  { %6278 = vmatpush1.bf16.msra.mxu1 %v14606_v8  ;;  %v14639_v8 = vld [vmem:[#allocation19 + $0xb00] ss:$12 sps:$4 sm:$0xff]  }
 0x547   :  { %6785 = vmatmul.mubr.bf16.gmra.mrb[140].mxu0 %v16334_v21  ;;  %6279 = vmatprep.subr.bf16.mxu1 %v14613_v47 }
 0x548   :  { %13518 = vmatpush3.bf16.msra.mxu0 %v14590_v19  ;;  %6824 = vmatprep.mubr.bf16.mxu0 %v16286_v10 }
 0x549   :  { %13519 = vmatprep.subr.bf16.mxu0 %v14594_v35 }
 0x54a   :  { %6280 = vmatpush1.bf16.msra.mxu1 %v14611_v63  ;;  %v14643_v63 = vld [vmem:[#allocation19 + $0xb18] ss:$12 sps:$4 sm:$0xff]  }
 0x54b   :  { %6300 = vmatprep.subr.bf16.mxu1 %v14618_v26  ;;  %v14653_v26 = vld [vmem:[#allocation19 + $0x6d8] ss:$12 sps:$4 sm:$0xff]  }
 0x54c   :  { %13520 = vmatpush3.bf16.msra.mxu0 %v14595_v40  ;;  %v14648_v40 = vld [vmem:[#allocation19 + $0x6c0] ss:$12 sps:$4 sm:$0xff]  }
 0x54d   :  { %13521 = vmatprep.subr.bf16.mxu0 %v14599_v9  ;;  %6282 = vmatmul.mubr.bf16.vlgmr.msra.gmra.mrb[56].mxu1 %v16300_v29  ;;  %v14628_v29 = vld [vmem:[#allocation19 + $0x648] ss:$12 sps:$4 sm:$0xff]  }
 0x54e   :  { %6291 = vmatprep.mubr.bf16.mxu1 %v16302_v31  ;;  %6301 = vmatpush1.bf16.msra.mxu1 %v14616_v30  ;;  %v14634_v31 = vld [vmem:[#allocation19 + $0x664] ss:$12 sps:$4 sm:$0xff]   ;;  %v14655_v9 = vld [vmem:[#allocation19 + $0x6dc] ss:$12 sps:$4 sm:$0xff]  }
 0x54f   :  { %6302 = vmatprep.subr.bf16.mxu1 %v14622_v32  ;;  %v14656_v30 = vld [vmem:[#allocation19 + $0x6f0] ss:$12 sps:$4 sm:$0xff]   ;;  %v14661_v32 = vld [vmem:[#allocation19 + $0x70c] ss:$12 sps:$4 sm:$0xff]  }
 0x550   :  { %13522 = vmatpush3.bf16.msra.mxu0 %v14600_v55  ;;  %v14658_v55 = vld [vmem:[#allocation19 + $0x6f4] ss:$12 sps:$4 sm:$0xff]  }
 0x551   :  { %13523 = vmatprep.subr.bf16.mxu0 %v14604_v28  ;;  %v14647_v28 = vld [vmem:[#allocation19 + $0xb30] ss:$12 sps:$4 sm:$0xff]  }
 0x552   :  { %6303 = vmatpush1.bf16.msra.mxu1 %v14620_v20  ;;  %v14664_v20 = vld [vmem:[#allocation19 + $0x724] ss:$12 sps:$4 sm:$0xff]  }
 0x553   :  { %6304 = vmatprep.subr.bf16.mxu1 %v14626_v43  ;;  %v16362_v43 = vld [vmem:[#allocation20] sm:$0x7] }
 0x554   :  { %13524 = vmatpush3.bf16.msra.mxu0 %v14605_v23  ;;  %v14659_v23 = vld [vmem:[#allocation19 + $0x708] ss:$12 sps:$4 sm:$0xff]  }
 0x555   :  { %13525 = vmatprep.subr.bf16.mxu0 %v14609_v58  ;;  %6292 = vmatmul.mubr.bf16.gmra.mrb[60].mxu1 %v16308_v27  ;;  %v14636_v27 = vld [vmem:[#allocation19 + $0x678] ss:$12 sps:$4 sm:$0xff]   ;;  %v16360_v58 = vld [vmem:[#allocation4 + $0xb0] ss:$0 sps:$4 sm:$0xff]  }
 0x556   :  { %6305 = vmatpush1.bf16.msra.mxu1 %v14624_v46  ;;  %6332 = vmatprep.mubr.bf16.mxu1 %v16306_v41  ;;  %v14627_v41 = vld [vmem:[#allocation19 + $0xab8] ss:$12 sps:$4 sm:$0xff]   ;;  %v4043_v46 = vrot.slane %v16362_v43, %v16109_v42 }
 0x557   :  { %6306 = vmatprep.subr.bf16.mxu1 %v14630_v48 }
 0x558   :  { %13526 = vmatpush3.bf16.msra.mxu0 %v14610_v36  ;;  %v14662_v36 = vld [vmem:[#allocation19 + $0x720] ss:$12 sps:$4 sm:$0xff]  }
 0x559   :  { %13527 = vmatprep.subr.bf16.mxu0 %v14614_v62  ;;  %v14667_v62 = vld [vmem:[#allocation19 + $0x73c] ss:$12 sps:$4 sm:$0xff]  }
 0x55a   :  { %6307 = vmatpush1.bf16.msra.mxu1 %v14628_v29  ;;  %v14670_v29 = vld [vmem:[#allocation19 + $0x754] ss:$12 sps:$4 sm:$0xff]  }
 0x55b   :  { %6308 = vmatprep.subr.bf16.mxu1 %v14634_v31 }
 0x55c   :  { %13528 = vmatpush3.bf16.msra.mxu0 %v14615_v50  ;;  %v14665_v50 = vld [vmem:[#allocation19 + $0x738] ss:$12 sps:$4 sm:$0xff]  }
 0x55d   :  { %13670 = vmatprep.subr.bf16.mxu0 %v14619_v39 }
 0x55e   :  { %6309 = vmatpush1.bf16.msra.mxu1 %v14632_v53 }
 0x55f   :  { %6825 = vmatmul.mubr.bf16.vlgmr.msra.gmra.mrb[144].mxu0 %v16284_v60  ;;  %6310 = vmatprep.subr.bf16.mxu1 %v14638_v24 }
 0x560   :  { %13671 = vmatpush3.bf16.msra.mxu0 %v14619_v39  ;;  %6832 = vmatprep.mubr.bf16.mxu0 %v16344_v51  ;;  %v13361_v57 = vpop.f32.mrb[96].mxu0 }
 0x561   :  { %13672 = vmatprep.subr.bf16.mxu0 %v14623_v52  ;;  %v13362_v34 = vpop.f32.mrb[97].mxu0 }
 0x562   :  { %v16348_v1 = vadd.f32 %v13362_v34, %v13361_v57  ;;  %v13364_v37 = vpop.f32.mrb[98].mxu0  ;;  %6311 = vmatpush1.bf16.msra.mxu1 %v14636_v27  ;;  %v14668_v34 = vld [vmem:[#allocation19 + $0x750] ss:$12 sps:$4 sm:$0xff]  }
 0x563   :  { %v13365_v12 = vpop.f32.mrb[99].mxu0  ;;  %6312 = vmatprep.subr.bf16.mxu1 %v14642_v56  ;;  %v14673_v56 = vld [vmem:[#allocation19 + $0x76c] ss:$12 sps:$4 sm:$0xff]  }
 0x564   :  { %13673 = vmatpush3.bf16.msra.mxu0 %v14623_v52  ;;  %v16356_v13 = vadd.f32 %v13365_v12, %v13364_v37  ;;  %v6539_v31 = vadd.f32 %v16348_v1, %v4043_v46  ;;  %v14671_v12 = vld [vmem:[#allocation19 + $0x768] ss:$12 sps:$4 sm:$0xff]   ;;  %v14676_v1 = vld [vmem:[#allocation19 + $0x784] ss:$12 sps:$4 sm:$0xff]  }
 0x565   :  { %13674 = vmatprep.subr.bf16.mxu0 %v14627_v41 }
 0x566   :  { %6313 = vmatpush1.bf16.msra.mxu1 %v14640_v16 }
 0x567   :  { %6833 = vmatmul.mubr.bf16.gmra.mrb[148].mxu0 %v16354_v4  ;;  %6314 = vmatprep.subr.bf16.mxu1 %v14646_v3 }
 0x568   :  { %13675 = vmatpush3.bf16.msra.mxu0 %v14627_v41  ;;  %13686 = vmatprep.mubr.bf16.mxu0 %v16350_v2  ;;  %v13367_v54 = vpop.f32.mrb[100].mxu0  ;;  %v6542_v41 = vadd.f32 %v16356_v13, %v4043_v46  ;;  %v14674_v13 = vld [vmem:[#allocation19 + $0x780] ss:$12 sps:$4 sm:$0xff]  }
 0x569   :  { %13676 = vmatprep.subr.bf16.mxu0 %v14631_v7  ;;  %v13368_v18 = vpop.f32.mrb[101].mxu0 }
 0x56a   :  { %v13369_v19 = vadd.f32 %v13368_v18, %v13367_v54  ;;  %v13370_v35 = vpop.f32.mrb[102].mxu0  ;;  %6315 = vmatpush1.bf16.msra.mxu1 %v14644_v38  ;;  %v14679_v18 = vld [vmem:[#allocation19 + $0x79c] ss:$12 sps:$4 sm:$0xff]  }
 0x56b   :  { %v13371_v47 = vpop.f32.mrb[103].mxu0  ;;  %6316 = vmatprep.subr.bf16.mxu1 %v14650_v6  ;;  %v14682_v35 = vld [vmem:[#allocation19 + $0x7b4] ss:$12 sps:$4 sm:$0xff]  }
 0x56c   :  { %13677 = vmatpush3.bf16.msra.mxu0 %v14631_v7  ;;  %v6547_v7 = vadd.f32 %v13369_v19, %v4043_v46  ;;  %v14677_v19 = vld [vmem:[#allocation19 + $0x798] ss:$12 sps:$4 sm:$0xff]  }
 0x56d   :  { %13678 = vmatprep.subr.bf16.mxu0 %v14635_v22  ;;  %v14685_v47 = vld [vmem:[#allocation19 + $0x7cc] ss:$12 sps:$4 sm:$0xff]  }
 0x56e   :  { %6317 = vmatpush1.bf16.msra.mxu1 %v14648_v40  ;;  %v14683_v40 = vld [vmem:[#allocation19 + $0x7c8] ss:$12 sps:$4 sm:$0xff]  }
 0x56f   :  { %6318 = vmatprep.subr.bf16.mxu1 %v14655_v9  ;;  %v14688_v9 = vld [vmem:[#allocation19 + $0x7e4] ss:$12 sps:$4 sm:$0xff]  }
 0x570   :  { %13679 = vmatpush3.bf16.msra.mxu0 %v14635_v22 }
 0x571   :  { %13680 = vmatprep.subr.bf16.mxu0 %v14639_v8 }
 0x572   :  { %6319 = vmatpush1.bf16.msra.mxu1 %v14653_v26  ;;  %v14694_v26 = vld [vmem:[#allocation19 + $0x814] ss:$12 sps:$4 sm:$0xff]  }
 0x573   :  { %6320 = vmatprep.subr.bf16.mxu1 %v14658_v55  ;;  %v14692_v55 = vld [vmem:[#allocation19 + $0x810] ss:$12 sps:$4 sm:$0xff]  }
 0x574   :  { %13681 = vmatpush3.bf16.msra.mxu0 %v14639_v8  ;;  %v14680_v8 = vld [vmem:[#allocation19 + $0x7b0] ss:$12 sps:$4 sm:$0xff]  }
 0x575   :  { %13682 = vmatprep.subr.bf16.mxu0 %v14643_v63 }
 0x576   :  { %6321 = vmatpush1.bf16.msra.mxu1 %v14656_v30  ;;  %v14700_v30 = vld [vmem:[#allocation19 + $0x844] ss:$12 sps:$4 sm:$0xff]  }
 0x577   :  { %6322 = vmatprep.subr.bf16.mxu1 %v14661_v32  ;;  %v14703_v32 = vld [vmem:[#allocation19 + $0x85c] ss:$12 sps:$4 sm:$0xff]  }
 0x578   :  { %13683 = vmatpush3.bf16.msra.mxu0 %v14643_v63  ;;  %v14689_v63 = vld [vmem:[#allocation19 + $0x7f8] ss:$12 sps:$4 sm:$0xff]  }
 0x579   :  { %13684 = vmatprep.subr.bf16.mxu0 %v14647_v28 }
 0x57a   :  { %6323 = vmatpush1.bf16.msra.mxu1 %v14659_v23 }
 0x57b   :  { %6324 = vmatprep.subr.bf16.mxu1 %v14664_v20  ;;  %v14701_v20 = vld [vmem:[#allocation19 + $0x858] ss:$12 sps:$4 sm:$0xff]  }
 0x57c   :  { %13685 = vmatpush3.bf16.msra.mxu0 %v14647_v28  ;;  %v14697_v28 = vld [vmem:[#allocation19 + $0x82c] ss:$12 sps:$4 sm:$0xff]  }
 0x57e   :  { %6325 = vmatpush1.bf16.msra.mxu1 %v14662_v36 }
 0x57f   :  { %13687 = vmatmul.mubr.bf16.vlgmr.msra.gmra.mrb[152].mxu0 %v16360_v58  ;;  %6326 = vmatprep.subr.bf16.mxu1 %v14667_v62  ;;  %v14706_v62 = vld [vmem:[#allocation19 + $0x874] ss:$12 sps:$4 sm:$0xff]  }
 0x580   :  { %7038 = vmatprep.mubr.bf16.mxu0 %v15594_v0  ;;  %v13389_v48 = vpop.f32.mrb[104].mxu0 }
 0x581   :  { %v13390_v39 = vpop.f32.mrb[105].mxu0 }
 0x582   :  { %v13391_v52 = vadd.f32 %v13390_v39, %v13389_v48  ;;  %v13392_v53 = vpop.f32.mrb[106].mxu0  ;;  %6327 = vmatpush1.bf16.msra.mxu1 %v14665_v50 }
 0x583   :  { %v13393_v24 = vpop.f32.mrb[107].mxu0  ;;  %6328 = vmatprep.subr.bf16.mxu1 %v14670_v29 }
 0x584   :  { %v16370_v27 = vadd.f32 %v13391_v52, %v6539_v31  ;;  %v13394_v57 = vadd.f32 %v13393_v24, %v13392_v53  ;;  %v14704_v31 = vld [vmem:[#allocation19 + $0x870] ss:$12 sps:$4 sm:$0xff]   ;;  %v14709_v52 = vld [vmem:[#allocation19 + $0x88c] ss:$12 sps:$4 sm:$0xff]  }
 0x586   :  { %v16372_v37 = vadd.f32 %v13394_v57, %v6542_v41  ;;  %6329 = vmatpush1.bf16.msra.mxu1 %v14668_v34  ;;  %v14707_v41 = vld [vmem:[#allocation19 + $0x888] ss:$12 sps:$4 sm:$0xff]   ;;  %v14712_v34 = vld [vmem:[#allocation19 + $0x8a4] ss:$12 sps:$4 sm:$0xff]  }
 0x587   :  { %6330 = vmatprep.subr.bf16.mxu1 %v14673_v56 }
 0x588   :  { %v13395_v16 = vpop.f32.mrb[108].mxu0 }
 0x589   :  { %v13396_v3 = vpop.f32.mrb[109].mxu0 }
 0x58a   :  { %v13397_v22 = vadd.f32 %v13396_v3, %v13395_v16  ;;  %v13398_v38 = vpop.f32.mrb[110].mxu0  ;;  %6331 = vmatpush1.bf16.msra.mxu1 %v14671_v12  ;;  %v14713_v3 = vld [vmem:[#allocation19 + $0x8b8] ss:$12 sps:$4 sm:$0xff]  }
 0x58b   :  { %v13399_v54 = vpop.f32.mrb[111].mxu0  ;;  %6351 = vmatprep.subr.bf16.mxu1 %v14676_v1  ;;  %v14715_v1 = vld [vmem:[#allocation19 + $0x8bc] ss:$12 sps:$4 sm:$0xff]   ;;  %v14721_v38 = vld [vmem:[#allocation19 + $0x8ec] ss:$12 sps:$4 sm:$0xff]  }
 0x58c   :  { %v16374_v6 = vadd.f32 %v13397_v22, %v6547_v7  ;;  %v14718_v22 = vld [vmem:[#allocation19 + $0x8d4] ss:$12 sps:$4 sm:$0xff]  }
 0x58d   :  { %6333 = vmatmul.mubr.bf16.vlgmr.msra.gmra.mrb[56].mxu1 %v16318_v15  ;;  %v14686_v15 = vld [vmem:[#allocation19 + $0x7e0] ss:$12 sps:$4 sm:$0xff]   ;;  %v14719_v54 = vld [vmem:[#allocation19 + $0x8e8] ss:$12 sps:$4 sm:$0xff]  }
 0x58e   :  { %6342 = vmatprep.mubr.bf16.mxu1 %v16316_v17  ;;  %6352 = vmatpush1.bf16.msra.mxu1 %v14674_v13  ;;  %v14691_v17 = vld [vmem:[#allocation19 + $0x7fc] ss:$12 sps:$4 sm:$0xff]   ;;  %v14724_v13 = vld [vmem:[#allocation19 + $0x904] ss:$12 sps:$4 sm:$0xff]  }
 0x58f   :  { %6353 = vmatprep.subr.bf16.mxu1 %v14679_v18  ;;  %v14722_v18 = vld [vmem:[#allocation19 + $0x900] ss:$12 sps:$4 sm:$0xff]  }
 0x592   :  { %6354 = vmatpush1.bf16.msra.mxu1 %v14677_v19 }
 0x593   :  { %6355 = vmatprep.subr.bf16.mxu1 %v14682_v35  ;;  %v14725_v35 = vld [vmem:[#allocation19 + $0x918] ss:$12 sps:$4 sm:$0xff]  }
 0x595   :  { %6343 = vmatmul.mubr.bf16.gmra.mrb[60].mxu1 %v16322_v33  ;;  %v14695_v33 = vld [vmem:[#allocation19 + $0x828] ss:$12 sps:$4 sm:$0xff]  }
 0x596   :  { %6356 = vmatpush1.bf16.msra.mxu1 %v14680_v8  ;;  %6383 = vmatprep.mubr.bf16.mxu1 %v16260_v25  ;;  %v14698_v25 = vld [vmem:[#allocation19 + $0x840] ss:$12 sps:$4 sm:$0xff]  }
 0x597   :  { %6357 = vmatprep.subr.bf16.mxu1 %v14685_v47  ;;  %v14730_v47 = vld [vmem:[#allocation19 + $0x934] ss:$12 sps:$4 sm:$0xff]  }
 0x59a   :  { %6358 = vmatpush1.bf16.msra.mxu1 %v14683_v40 }
 0x59b   :  { %6359 = vmatprep.subr.bf16.mxu1 %v14688_v9 }
 0x59e   :  { %6360 = vmatpush1.bf16.msra.mxu1 %v14686_v15 }
 0x59f   :  { %6361 = vmatprep.subr.bf16.mxu1 %v14691_v17 }
 0x5a2   :  { %6362 = vmatpush1.bf16.msra.mxu1 %v14689_v63 }
 0x5a3   :  { %6363 = vmatprep.subr.bf16.mxu1 %v14694_v26  ;;  %v14728_v26 = vld [vmem:[#allocation19 + $0x930] ss:$12 sps:$4 sm:$0xff]  }
 0x5a6   :  { %6364 = vmatpush1.bf16.msra.mxu1 %v14692_v55  ;;  %v14733_v55 = vld [vmem:[#allocation19 + $0x94c] ss:$12 sps:$4 sm:$0xff]  }
 0x5a7   :  { %6365 = vmatprep.subr.bf16.mxu1 %v14697_v28 }
 0x5aa   :  { %6366 = vmatpush1.bf16.msra.mxu1 %v14695_v33 }
 0x5ab   :  { %6367 = vmatprep.subr.bf16.mxu1 %v14700_v30  ;;  %v14736_v30 = vld [vmem:[#allocation19 + $0x964] ss:$12 sps:$4 sm:$0xff]  }
 0x5ae   :  { %6368 = vmatpush1.bf16.msra.mxu1 %v14698_v25 }
 0x5af   :  { %6369 = vmatprep.subr.bf16.mxu1 %v14703_v32 }
 0x5b1   :  { %v13417_v23 = vpop.f32.mrb[112].mxu0 }
 0x5b2   :  { %v13418_v36 = vpop.f32.mrb[113].mxu0  ;;  %6370 = vmatpush1.bf16.msra.mxu1 %v14701_v20 }
 0x5b3   :  { %v13419_v46 = vadd.f32 %v13418_v36, %v13417_v23  ;;  %v13420_v48 = vpop.f32.mrb[114].mxu0  ;;  %6371 = vmatprep.subr.bf16.mxu1 %v14706_v62  ;;  %v14734_v36 = vld [vmem:[#allocation19 + $0x960] ss:$12 sps:$4 sm:$0xff]   ;;  %v14739_v62 = vld [vmem:[#allocation19 + $0x97c] ss:$12 sps:$4 sm:$0xff]  }
 0x5b4   :  { %v13421_v50 = vpop.f32.mrb[115].mxu0 }
 0x5b5   :  { %v6635_v39 = vadd.f32 %v13419_v46, %v16370_v27  ;;  %v13422_v29 = vadd.f32 %v13421_v50, %v13420_v48  ;;  %v14710_v27 = vld [vmem:[#allocation19 + $0x8a0] ss:$12 sps:$4 sm:$0xff]   ;;  %v14737_v46 = vld [vmem:[#allocation19 + $0x978] ss:$12 sps:$4 sm:$0xff]   ;;  %v14740_v48 = vld [vmem:[#allocation19 + $0x990] ss:$12 sps:$4 sm:$0xff]  }
 0x5b6   :  { %6372 = vmatpush1.bf16.msra.mxu1 %v14704_v31  ;;  %v14743_v50 = vld [vmem:[#allocation19 + $0x9a8] ss:$12 sps:$4 sm:$0xff]  }
 0x5b7   :  { %v6638_v53 = vadd.f32 %v13422_v29, %v16372_v37  ;;  %6373 = vmatprep.subr.bf16.mxu1 %v14709_v52  ;;  %v14716_v37 = vld [vmem:[#allocation19 + $0x8d0] ss:$12 sps:$4 sm:$0xff]   ;;  %v14746_v29 = vld [vmem:[#allocation19 + $0x9c0] ss:$12 sps:$4 sm:$0xff]  }
 0x5b8   :  { %v14751_v31 = vld [vmem:[#allocation19 + $0x9dc] ss:$12 sps:$4 sm:$0xff]  }
 0x5ba   :  { %v13423_v24 = vpop.f32.mrb[116].mxu0  ;;  %6374 = vmatpush1.bf16.msra.mxu1 %v14707_v41  ;;  %v14754_v41 = vld [vmem:[#allocation19 + $0x9f4] ss:$12 sps:$4 sm:$0xff]  }
 0x5bb   :  { %v13424_v57 = vpop.f32.mrb[117].mxu0  ;;  %6375 = vmatprep.subr.bf16.mxu1 %v14712_v34 }
 0x5bc   :  { %v13425_v56 = vadd.f32 %v13424_v57, %v13423_v24  ;;  %v13426_v7 = vpop.f32.mrb[118].mxu0 }
 0x5bd   :  { %v13427_v12 = vpop.f32.mrb[119].mxu0 }
 0x5be   :  { %v6643_v16 = vadd.f32 %v13425_v56, %v16374_v6  ;;  %6376 = vmatpush1.bf16.msra.mxu1 %v14710_v27  ;;  %v14727_v6 = vld [vmem:[#allocation19 + $0x91c] ss:$12 sps:$4 sm:$0xff]   ;;  %v14757_v27 = vld [vmem:[#allocation19 + $0xa0c] ss:$12 sps:$4 sm:$0xff]  }
 0x5bf   :  { %6377 = vmatprep.subr.bf16.mxu1 %v14715_v1 }
 0x5c2   :  { %6378 = vmatpush1.bf16.msra.mxu1 %v14713_v3 }
 0x5c3   :  { %6379 = vmatprep.subr.bf16.mxu1 %v14718_v22  ;;  %v14755_v22 = vld [vmem:[#allocation19 + $0xa08] ss:$12 sps:$4 sm:$0xff]  }
 0x5c6   :  { %6380 = vmatpush1.bf16.msra.mxu1 %v14716_v37 }
 0x5c7   :  { %6381 = vmatprep.subr.bf16.mxu1 %v14721_v38  ;;  %v14760_v38 = vld [vmem:[#allocation19 + $0xa24] ss:$12 sps:$4 sm:$0xff]  }
 0x5ca   :  { %6382 = vmatpush1.bf16.msra.mxu1 %v14719_v54 }
 0x5cb   :  { %6402 = vmatprep.subr.bf16.mxu1 %v14724_v13 }
 0x5cd   :  { %6384 = vmatmul.mubr.bf16.vlgmr.msra.gmra.mrb[56].mxu1 %v16258_v49 }
 0x5ce   :  { %6393 = vmatprep.mubr.bf16.mxu1 %v16328_v14  ;;  %6403 = vmatpush1.bf16.msra.mxu1 %v14722_v18  ;;  %v14731_v14 = vld [vmem:[#allocation19 + $0x948] ss:$12 sps:$4 sm:$0xff]  }
 0x5cf   :  { %6404 = vmatprep.subr.bf16.mxu1 %v14727_v6 }
 0x5d2   :  { %v13445_v19 = vpop.f32.mrb[120].mxu0  ;;  %6405 = vmatpush1.bf16.msra.mxu1 %v14725_v35  ;;  %v14763_v35 = vld [vmem:[#allocation19 + $0xa3c] ss:$12 sps:$4 sm:$0xff]  }
 0x5d3   :  { %v13446_v8 = vpop.f32.mrb[121].mxu0  ;;  %6406 = vmatprep.subr.bf16.mxu1 %v14730_v47  ;;  %v14766_v47 = vld [vmem:[#allocation19 + $0xa54] ss:$12 sps:$4 sm:$0xff]  }
 0x5d4   :  { %v13447_v40 = vadd.f32 %v13446_v8, %v13445_v19  ;;  %v13448_v9 = vpop.f32.mrb[122].mxu0  ;;  %v14758_v19 = vld [vmem:[#allocation19 + $0xa20] ss:$12 sps:$4 sm:$0xff]   ;;  %v14761_v8 = vld [vmem:[#allocation19 + $0xa38] ss:$12 sps:$4 sm:$0xff]  }
 0x5d5   :  { %v13449_v15 = vpop.f32.mrb[123].mxu0  ;;  %6394 = vmatmul.mubr.bf16.gmra.mrb[60].mxu1 %v16334_v21  ;;  %v14742_v21 = vld [vmem:[#allocation19 + $0x994] ss:$12 sps:$4 sm:$0xff]  }
 0x5d6   :  { %v6683_v17 = vadd.f32 %v13447_v40, %v6635_v39  ;;  %v13450_v63 = vadd.f32 %v13449_v15, %v13448_v9  ;;  %6407 = vmatpush1.bf16.msra.mxu1 %v14728_v26  ;;  %6434 = vmatprep.mubr.bf16.mxu1 %v16286_v10  ;;  %v14745_v10 = vld [vmem:[#allocation19 + $0x9ac] ss:$12 sps:$4 sm:$0xff]   ;;  %v14748_v39 = vld [vmem:[#allocation19 + $0x9c4] ss:$12 sps:$4 sm:$0xff]   ;;  %v14767_v15 = vld [vmem:[#allocation19 + $0xa68] ss:$12 sps:$4 sm:$0xff]  }
 0x5d7   :  { %6408 = vmatprep.subr.bf16.mxu1 %v14733_v55  ;;  %v14764_v40 = vld [vmem:[#allocation19 + $0xa50] ss:$12 sps:$4 sm:$0xff]   ;;  %v14769_v9 = vld [vmem:[#allocation19 + $0xa6c] ss:$12 sps:$4 sm:$0xff]  }
 0x5d8   :  { %v6686_v28 = vadd.f32 %v13450_v63, %v6638_v53  ;;  %v14749_v53 = vld [vmem:[#allocation19 + $0x9d8] ss:$12 sps:$4 sm:$0xff]   ;;  %v14770_v63 = vld [vmem:[#allocation19 + $0xa80] ss:$12 sps:$4 sm:$0xff]   ;;  %v14775_v26 = vld [vmem:[#allocation19 + $0xa9c] ss:$12 sps:$4 sm:$0xff]  }
 0x5da   :  { %v13451_v49 = vpop.f32.mrb[124].mxu0  ;;  %6409 = vmatpush1.bf16.msra.mxu1 %v14731_v14  ;;  %v14778_v14 = vld [vmem:[#allocation19 + $0xab4] ss:$12 sps:$4 sm:$0xff]  }
 0x5db   :  { %v13452_v33 = vpop.f32.mrb[125].mxu0  ;;  %6410 = vmatprep.subr.bf16.mxu1 %v14736_v30 }
 0x5dc   :  { %v13453_v25 = vadd.f32 %v13452_v33, %v13451_v49  ;;  %v13454_v32 = vpop.f32.mrb[126].mxu0 }
 0x5dd   :  { %v13455_v23 = vpop.f32.mrb[127].mxu0 }
 0x5de   :  { %v6691_v20 = vadd.f32 %v13453_v25, %v6643_v16  ;;  %6411 = vmatpush1.bf16.msra.mxu1 %v14734_v36  ;;  %v14752_v16 = vld [vmem:[#allocation19 + $0x9f0] ss:$12 sps:$4 sm:$0xff]   ;;  %v14781_v36 = vld [vmem:[#allocation19 + $0xacc] ss:$12 sps:$4 sm:$0xff]  }
 0x5df   :  { %6412 = vmatprep.subr.bf16.mxu1 %v14739_v62 }
 0x5e2   :  { %6413 = vmatpush1.bf16.msra.mxu1 %v14737_v46 }
 0x5e3   :  { %6414 = vmatprep.subr.bf16.mxu1 %v14742_v21  ;;  %v14784_v21 = vld [vmem:[#allocation19 + $0xae4] ss:$12 sps:$4 sm:$0xff]  }
 0x5e6   :  { %6415 = vmatpush1.bf16.msra.mxu1 %v14740_v48 }
 0x5e7   :  { %6416 = vmatprep.subr.bf16.mxu1 %v14745_v10 }
 0x5ea   :  { %6417 = vmatpush1.bf16.msra.mxu1 %v14743_v50 }
 0x5eb   :  { %6418 = vmatprep.subr.bf16.mxu1 %v14748_v39 }
 0x5ee   :  { %6419 = vmatpush1.bf16.msra.mxu1 %v14746_v29  ;;  %v14782_v29 = vld [vmem:[#allocation19 + $0xae0] ss:$12 sps:$4 sm:$0xff]  }
 0x5ef   :  { %6420 = vmatprep.subr.bf16.mxu1 %v14751_v31  ;;  %v14787_v31 = vld [vmem:[#allocation19 + $0xafc] ss:$12 sps:$4 sm:$0xff]  }
 0x5f2   :  { %v13473_v52 = vpop.f32.mrb[128].mxu0  ;;  %6421 = vmatpush1.bf16.msra.mxu1 %v14749_v53  ;;  %v14788_v53 = vld [vmem:[#allocation19 + $0xb10] ss:$12 sps:$4 sm:$0xff]  }
 0x5f3   :  { %v13474_v24 = vpop.f32.mrb[129].mxu0  ;;  %6422 = vmatprep.subr.bf16.mxu1 %v14754_v41  ;;  %v14791_v41 = vld [vmem:[#allocation19 + $0xb28] ss:$12 sps:$4 sm:$0xff]  }
 0x5f4   :  { %v13475_v57 = vadd.f32 %v13474_v24, %v13473_v52  ;;  %v13476_v34 = vpop.f32.mrb[130].mxu0  ;;  %v14785_v52 = vld [vmem:[#allocation19 + $0xaf8] ss:$12 sps:$4 sm:$0xff]  }
 0x5f5   :  { %v13477_v56 = vpop.f32.mrb[131].mxu0  ;;  %v14793_v24 = vld [vmem:[#allocation19 + $0xb2c] ss:$12 sps:$4 sm:$0xff]  }
 0x5f6   :  { %v6731_v7 = vadd.f32 %v13475_v57, %v6683_v17  ;;  %v13478_v12 = vadd.f32 %v13477_v56, %v13476_v34  ;;  %6423 = vmatpush1.bf16.msra.mxu1 %v14752_v16  ;;  %v14772_v17 = vld [vmem:[#allocation19 + $0xa84] ss:$12 sps:$4 sm:$0xff]  }
 0x5f7   :  { %6424 = vmatprep.subr.bf16.mxu1 %v14757_v27 }
 0x5f8   :  { %v6734_v1 = vadd.f32 %v13478_v12, %v6686_v28  ;;  %v14773_v28 = vld [vmem:[#allocation19 + $0xa98] ss:$12 sps:$4 sm:$0xff]  }
 0x5fa   :  { %v13479_v3 = vpop.f32.mrb[132].mxu0  ;;  %6425 = vmatpush1.bf16.msra.mxu1 %v14755_v22 }
 0x5fb   :  { %v13480_v37 = vpop.f32.mrb[133].mxu0  ;;  %6426 = vmatprep.subr.bf16.mxu1 %v14760_v38 }
 0x5fc   :  { %v13481_v54 = vadd.f32 %v13480_v37, %v13479_v3  ;;  %v13482_v13 = vpop.f32.mrb[134].mxu0 }
 0x5fd   :  { %v13483_v18 = vpop.f32.mrb[135].mxu0 }
 0x5fe   :  { %v6739_v6 = vadd.f32 %v13481_v54, %v6691_v20  ;;  %6427 = vmatpush1.bf16.msra.mxu1 %v14758_v19  ;;  %v14776_v20 = vld [vmem:[#allocation19 + $0xab0] ss:$12 sps:$4 sm:$0xff]  }
 0x5ff   :  { %6428 = vmatprep.subr.bf16.mxu1 %v14763_v35 }
 0x602   :  { %6429 = vmatpush1.bf16.msra.mxu1 %v14761_v8 }
 0x603   :  { %6430 = vmatprep.subr.bf16.mxu1 %v14766_v47 }
 0x606   :  { %6431 = vmatpush1.bf16.msra.mxu1 %v14764_v40 }
 0x607   :  { %6432 = vmatprep.subr.bf16.mxu1 %v14769_v9 }
 0x60a   :  { %6433 = vmatpush1.bf16.msra.mxu1 %v14767_v15 }
 0x60b   :  { %6453 = vmatprep.subr.bf16.mxu1 %v14772_v17 }
 0x60d   :  { %6435 = vmatmul.mubr.bf16.vlgmr.msra.gmra.mrb[56].mxu1 %v16284_v60 }
 0x60e   :  { %6444 = vmatprep.mubr.bf16.mxu1 %v16344_v51  ;;  %6454 = vmatpush1.bf16.msra.mxu1 %v14770_v63  ;;  %v14779_v51 = vld [vmem:[#allocation19 + $0xac8] ss:$12 sps:$4 sm:$0xff]  }
 0x60f   :  { %6455 = vmatprep.subr.bf16.mxu1 %v14775_v26  ;;  %v4035_v26 = vrot.slane %v16362_v43, %v16104_v45 }
 0x612   :  { %v13501_v55 = vpop.f32.mrb[136].mxu0  ;;  %6456 = vmatpush1.bf16.msra.mxu1 %v14773_v28 }
 0x613   :  { %v13502_v49 = vpop.f32.mrb[137].mxu0  ;;  %6457 = vmatprep.subr.bf16.mxu1 %v14778_v14 }
 0x614   :  { %v13503_v33 = vadd.f32 %v13502_v49, %v13501_v55  ;;  %v13504_v30 = vpop.f32.mrb[138].mxu0  ;;  %v4039_v55 = vrot.slane %v16362_v43, %v16112_v61 }
 0x615   :  { %v13505_v25 = vpop.f32.mrb[139].mxu0  ;;  %6445 = vmatmul.mubr.bf16.gmra.mrb[60].mxu1 %v16354_v4  ;;  %v14790_v4 = vld [vmem:[#allocation19 + $0xb14] ss:$12 sps:$4 sm:$0xff]  }
 0x616   :  { %v6779_v32 = vadd.f32 %v13503_v33, %v6731_v7  ;;  %v13506_v23 = vadd.f32 %v13505_v25, %v13504_v30  ;;  %6458 = vmatpush1.bf16.msra.mxu1 %v14776_v20  ;;  %6485 = vmatprep.mubr.bf16.mxu1 %v15594_v0 }
 0x617   :  { %6459 = vmatprep.subr.bf16.mxu1 %v14781_v36 }
 0x618   :  { %v6782_v62 = vadd.f32 %v13506_v23, %v6734_v1 }
 0x61a   :  { %v13507_v60 = vpop.f32.mrb[140].mxu0  ;;  %6460 = vmatpush1.bf16.msra.mxu1 %v14779_v51 }
 0x61b   :  { %v13508_v46 = vpop.f32.mrb[141].mxu0  ;;  %6461 = vmatprep.subr.bf16.mxu1 %v14784_v21 }
 0x61c   :  { %v13509_v48 = vadd.f32 %v13508_v46, %v13507_v60  ;;  %v13510_v10 = vpop.f32.mrb[142].mxu0 }
 0x61d   :  { %v13511_v50 = vpop.f32.mrb[143].mxu0 }
 0x61e   :  { %v6787_v39 = vadd.f32 %v13509_v48, %v6739_v6  ;;  %6462 = vmatpush1.bf16.msra.mxu1 %v14782_v29 }
 0x61f   :  { %6463 = vmatprep.subr.bf16.mxu1 %v14787_v31 }
 0x622   :  { %6464 = vmatpush1.bf16.msra.mxu1 %v14785_v52 }
 0x623   :  { %6465 = vmatprep.subr.bf16.mxu1 %v14790_v4 }
 0x626   :  { %6466 = vmatpush1.bf16.msra.mxu1 %v14788_v53 }
 0x627   :  { %6467 = vmatprep.subr.bf16.mxu1 %v14793_v24  ;;  %v14794_v24 = vld [vmem:[%s16578_s9] sm:$0xff]  }
 0x62a   :  { %6468 = vmatpush1.bf16.msra.mxu1 %v14791_v41 }
 0x62d   :  { %6486 = vmatmul.mubr.bf16.vlgmr.msra.gmra.mrb[56].mxu1 %v16350_v2 }
 0x62e   :  { %6495 = vmatprep.mubr.bf16.mxu1 %v15594_v0 }
 0x632   :  { %v13529_v57 = vpop.f32.mrb[144].mxu0 }
 0x633   :  { %v13530_v34 = vpop.f32.mrb[145].mxu0 }
 0x634   :  { %v13531_v56 = vadd.f32 %v13530_v34, %v13529_v57  ;;  %v13532_v7 = vpop.f32.mrb[146].mxu0  ;;  %v14801_v34 = vld [vmem:[#allocation22 + $0x4] ss:$8 sps:$4 sm:$0xff]  }
 0x635   :  { %v13533_v12 = vpop.f32.mrb[147].mxu0  ;;  %6496 = vmatmul.mubr.bf16.gmra.mrb[60].mxu1 %v16360_v58 }
 0x636   :  { %v13534_v16 = vadd.f32 %v13533_v12, %v13532_v7  ;;  %v6827_v27 = vadd.f32 %v13531_v56, %v6779_v32  ;;  %8304 = vmatprep.mubr.bf16.mxu1 %v15594_v0  ;;  %v14797_v7 = vld [vmem:[%s16578_s9 + $0x8] sm:$0xff]   ;;  %v14798_v12 = vld [vmem:[%s16578_s9 + $0x10] sm:$0xff]  }
 0x638   :  { %v6830_v1 = vadd.f32 %v13534_v16, %v6782_v62  ;;  %v14799_v16 = vld [vmem:[#allocation22] ss:$8 sps:$4 sm:$0xff]  }
 0x63a   :  { %v13535_v3 = vpop.f32.mrb[148].mxu0 }
 0x63b   :  { %v13536_v22 = vpop.f32.mrb[149].mxu0 }
 0x63c   :  { %v13537_v37 = vadd.f32 %v13536_v22, %v13535_v3  ;;  %v13538_v38 = vpop.f32.mrb[150].mxu0  ;;  %v14807_v3 = vld [vmem:[#allocation22 + $0x24] ss:$8 sps:$4 sm:$0xff]   ;;  %v14805_v22 = vld [vmem:[#allocation22 + $0x20] ss:$8 sps:$4 sm:$0xff]  }
 0x63d   :  { %v13539_v54 = vpop.f32.mrb[151].mxu0  ;;  %v14808_v38 = vld [vmem:[#allocation22 + $0x30] ss:$8 sps:$4 sm:$0xff]  }
 0x63e   :  { %v6835_v2 = vadd.f32 %v13537_v37, %v6787_v39  ;;  %v14810_v37 = vld [vmem:[#allocation22 + $0x34] ss:$8 sps:$4 sm:$0xff]   ;;  %v14813_v54 = vld [vmem:[#allocation22 + $0x44] ss:$8 sps:$4 sm:$0xff]  }
 0x652   :  { %v13688_v13 = vpop.f32.mrb[152].mxu0 }
 0x653   :  { %v6883_v18 = vadd.f32 %v13688_v13, %v6835_v2  ;;  %v6874_v6 = vpop.f32.mrb[153].mxu0  ;;  %v14811_v2 = vld [vmem:[#allocation22 + $0x40] ss:$8 sps:$4 sm:$0xff]   ;;  %v14816_v13 = vld [vmem:[#allocation22 + $0x54] ss:$8 sps:$4 sm:$0xff]  }
 0x654   :  { %v6875_v19 = vadd.f32 %v6874_v6, %v6827_v27  ;;  %v13689_v35 = vpop.f32.mrb[154].mxu0  ;;  %v14804_v27 = vld [vmem:[#allocation22 + $0x14] ss:$8 sps:$4 sm:$0xff]   ;;  %v14819_v6 = vld [vmem:[#allocation22 + $0x64] ss:$8 sps:$4 sm:$0xff]  }
 0x655   :  { %v6896_v8 = vmax.f32 %v6883_v18, 0.0  ;;  %v6877_v47 = vpop.f32.mrb[155].mxu0  ;;  %v14814_v18 = vld [vmem:[#allocation22 + $0x50] ss:$8 sps:$4 sm:$0xff]   ;;  %v14822_v35 = vld [vmem:[#allocation22 + $0x74] ss:$8 sps:$4 sm:$0xff]  }
 0x656   :  { %v6890_v40 = vmax.f32 %v6875_v19, 0.0  ;;  %v6878_v9 = vadd.f32 %v6877_v47, %v6830_v1  ;;  %v14802_v1 = vld [vmem:[#allocation22 + $0x10] ss:$8 sps:$4 sm:$0xff]   ;;  %v14817_v19 = vld [vmem:[#allocation22 + $0x60] ss:$8 sps:$4 sm:$0xff]  }
 0x657   :  { %v13207_v15 = vpack.c.bf16 %v6896_v8, %v6896_v8  ;;  %v14820_v8 = vld [vmem:[#allocation22 + $0x70] ss:$8 sps:$4 sm:$0xff]   ;;  %v14823_v47 = vld [vmem:[#allocation22 + $0x80] ss:$8 sps:$4 sm:$0xff]  }
 0x658   :  { %v13203_v17 = vpack.c.bf16 %v6890_v40, %v6890_v40  ;;  %v6893_v58 = vmax.f32 %v6878_v9, 0.0  ;;  %v14828_v40 = vld [vmem:[#allocation22 + $0x94] ss:$8 sps:$4 sm:$0xff]   ;;  %v14826_v9 = vld [vmem:[#allocation22 + $0x90] ss:$8 sps:$4 sm:$0xff]  }
 0x659   :  { %6935 = vst [vmem:[#allocation5 + $0x20] sm:$0xf] %v13207_v15  ;;  %v14831_v15 = vld [vmem:[#allocation22 + $0xa4] ss:$8 sps:$4 sm:$0xff]  }
 0x65a   :  { %6931 = vst [vmem:[#allocation5 + $0x8] sm:$0xf] %v13203_v17  ;;  %v13205_v63 = vpack.c.bf16 %v6893_v58, %v6893_v58  ;;  %v14829_v17 = vld [vmem:[#allocation22 + $0xa0] ss:$8 sps:$4 sm:$0xff]   ;;  %v14834_v58 = vld [vmem:[#allocation22 + $0xb4] ss:$8 sps:$4 sm:$0xff]  }
 0x65c   :  { %6933 = vst [vmem:[#allocation5 + $0x14] sm:$0xf] %v13205_v63  ;;  %v14832_v63 = vld [vmem:[#allocation22 + $0xb0] ss:$8 sps:$4 sm:$0xff]  }
 0x660   :  { %v14796_v57 = vld [vmem:[#allocation5 + $0x20] ss:$0 sps:$4 sm:$0xff]  }
 0x661   :  { %v7004_v56 = vsel %vm3090_vm2, %v14796_v57, 0  ;;  %v14861_v57 = vld [vmem:[#allocation22 + $0x144] ss:$8 sps:$4 sm:$0xff]  }
 0x663   :  { %v14795_v41 = vld [vmem:[#allocation5 + $0x8] ss:$12 sps:$4 sm:$0xff]  }
 0x700   :  { %v6487_v28 = vpop.f32.mrb[56].mxu1 }
 0x701   :  { %v13726_v49 = vadd.f32 %v6487_v28, %v4035_v26  ;;  %v6489_v14 = vpop.f32.mrb[57].mxu1  ;;  %v14840_v28 = vld [vmem:[#allocation22 + $0xd4] ss:$8 sps:$4 sm:$0xff]  }
 0x702   :  { %v13727_v33 = vadd.f32 %v6489_v14, %v4039_v55  ;;  %v6491_v30 = vpop.f32.mrb[58].mxu1  ;;  %v14843_v14 = vld [vmem:[#allocation22 + $0xe4] ss:$8 sps:$4 sm:$0xff]  }
 0x703   :  { %v6888_v25 = vmax.f32 %v13726_v49, 0.0  ;;  %v13728_v32 = vadd.f32 %v6491_v30, %v4035_v26  ;;  %v6493_v23 = vpop.f32.mrb[59].mxu1  ;;  %v14838_v49 = vld [vmem:[#allocation22 + $0xd0] ss:$8 sps:$4 sm:$0xff]   ;;  %v14846_v30 = vld [vmem:[#allocation22 + $0xf4] ss:$8 sps:$4 sm:$0xff]  }
 0x704   :  { %v6889_v20 = vmax.f32 %v13727_v33, 0.0  ;;  %v13729_v36 = vadd.f32 %v6493_v23, %v4039_v55  ;;  %v14841_v33 = vld [vmem:[#allocation22 + $0xe0] ss:$8 sps:$4 sm:$0xff]  }
 0x705   :  { %v6891_v62 = vmax.f32 %v13728_v32, 0.0  ;;  %v14849_v32 = vld [vmem:[#allocation22 + $0x104] ss:$8 sps:$4 sm:$0xff]  }
 0x706   :  { %v6892_v60 = vmax.f32 %v13729_v36, 0.0 }
 0x707   :  { %v15146_v50 = vpack.c.bf16 %v6891_v62, %v6888_v25  ;;  %v14844_v25 = vld [vmem:[#allocation22 + $0xf0] ss:$8 sps:$4 sm:$0xff]  }
 0x708   :  { %v6497_v51 = vpop.f32.mrb[60].mxu1  ;;  %v15147_v39 = vpack.c.bf16 %v6892_v60, %v6889_v20 }
 0x709   :  { %v13730_v46 = vadd.f32 %v6497_v51, %v4035_v26  ;;  %v6499_v21 = vpop.f32.mrb[61].mxu1  ;;  %v14837_v26 = vld [vmem:[#allocation22 + $0xc4] ss:$8 sps:$4 sm:$0xff]  }
 0x70a   :  { %v13731_v48 = vadd.f32 %v6499_v21, %v4039_v55  ;;  %v6501_v10 = vpop.f32.mrb[62].mxu1  ;;  %7006 = vmatprep.subr.bf16.mxu0 %v15147_v39  ;;  %v14835_v55 = vld [vmem:[#allocation22 + $0xc0] ss:$8 sps:$4 sm:$0xff]   ;;  %v14852_v21 = vld [vmem:[#allocation22 + $0x114] ss:$8 sps:$4 sm:$0xff]  }
 0x70b   :  { %v6894_v43 = vmax.f32 %v13730_v46, 0.0  ;;  %v6502_v29 = vpop.f32.mrb[63].mxu1  ;;  %7007 = vmatpush1.bf16.msra.mxu0 %v15146_v50  ;;  %v14847_v46 = vld [vmem:[#allocation22 + $0x100] ss:$8 sps:$4 sm:$0xff]   ;;  %v14855_v50 = vld [vmem:[#allocation22 + $0x124] ss:$8 sps:$4 sm:$0xff]  }
 0x70c   :  { %v6895_v31 = vmax.f32 %v13731_v48, 0.0  ;;  %v14850_v48 = vld [vmem:[#allocation22 + $0x110] ss:$8 sps:$4 sm:$0xff]  }
 0x70d   :  { %v15149_v4 = vpack.c.bf16 %v6894_v43, %v6894_v43 }
 0x70e   :  { %v15148_v52 = vpack.c.bf16 %v6895_v31, %v6895_v31 }
 0x70f   :  { %v6998_v53 = vsel %vm3090_vm2, %v15149_v4, 0 }
 0x710   :  { %12578 = vmatprep.subr.msk.bf16.mxu0 %vm3090_vm2, %v15148_v52  ;;  %v14853_v52 = vld [vmem:[#allocation22 + $0x120] ss:$8 sps:$4 sm:$0xff]  }
 0x711   :  { %7009 = vmatpush1.bf16.msra.mxu0 %v6998_v53  ;;  %v14858_v53 = vld [vmem:[#allocation22 + $0x134] ss:$8 sps:$4 sm:$0xff]  }
 0x712   :  { %13690 = vmatprep.subr.bf16.mxu0 %v15595_v11 }
 0x714   :  { %12579 = vmatmul.mubr.msk.bf16.vlgmr.msra.gmra.mrb[156].mxu0 %vm6987_vm5, %v14794_v24 }
 0x715   :  { %13691 = vmatpush3.bf16.msra.mxu0 %v14795_v41  ;;  %7048 = vmatprep.mubr.bf16.mxu0 %v15594_v0 }
 0x716   :  { %13692 = vmatprep.subr.bf16.mxu0 %v15595_v11 }
 0x719   :  { %13693 = vmatpush3.bf16.msra.mxu0 %v7004_v56 }
 0x71a   :  { %8029 = vmatprep.subr.bf16.mxu0 %v14801_v34 }
 0x71c   :  { %12580 = vmatmul.mubr.msk.bf16.gmra.mrb[160].mxu0 %vm6987_vm5, %v14797_v7 }
 0x71d   :  { %7058 = vmatprep.mubr.bf16.mxu0 %v15594_v0 }
 0x724   :  { %12581 = vmatmul.mubr.msk.bf16.gmra.mrb[164].mxu0 %vm6987_vm5, %v14798_v12 }
 0x725   :  { %13694 = vmatprep.mubr.msk.bf16.mxu0 %vm15596_vm4, %v15595_v11 }
 0x72c   :  { %13695 = vmatmul.mubr.msk.bf16.vlgmr.msra.gmra.mrb[168].mxu0 %vm6987_vm5, %v14794_v24  ;;  %v14856_v24 = vld [vmem:[#allocation22 + $0x130] ss:$8 sps:$4 sm:$0xff]  }
 0x72d   :  { %13698 = vmatprep.mubr.msk.bf16.mxu0 %vm15596_vm4, %v15595_v11  ;;  %8030 = vmatpush1.bf16.msra.mxu0 %v14799_v16  ;;  %v14859_v16 = vld [vmem:[#allocation22 + $0x140] ss:$8 sps:$4 sm:$0xff]  }
 0x72e   :  { %8031 = vmatprep.subr.bf16.mxu0 %v14804_v27 }
 0x731   :  { %8032 = vmatpush1.bf16.msra.mxu0 %v14802_v1  ;;  %v14864_v1 = vld [vmem:[#allocation22 + $0x154] ss:$8 sps:$4 sm:$0xff]  }
 0x732   :  { %8033 = vmatprep.subr.bf16.mxu0 %v14807_v3  ;;  %v14862_v3 = vld [vmem:[#allocation22 + $0x150] ss:$8 sps:$4 sm:$0xff]  }
 0x734   :  { %13699 = vmatmul.mubr.msk.bf16.gmra.mrb[172].mxu0 %vm6987_vm5, %v14797_v7 }
 0x735   :  { %8034 = vmatpush1.bf16.msra.mxu0 %v14805_v22  ;;  %13702 = vmatprep.mubr.msk.bf16.mxu0 %vm15596_vm4, %v15595_v11  ;;  %v14825_v11 = vld [vmem:[#allocation22 + $0x84] ss:$8 sps:$4 sm:$0xff]  }
 0x736   :  { %8035 = vmatprep.subr.bf16.mxu0 %v14810_v37  ;;  %v14867_v37 = vld [vmem:[#allocation22 + $0x164] ss:$8 sps:$4 sm:$0xff]  }
 0x739   :  { %8036 = vmatpush1.bf16.msra.mxu0 %v14808_v38 }
 0x73a   :  { %8037 = vmatprep.subr.bf16.mxu0 %v14813_v54 }
 0x73c   :  { %13703 = vmatmul.mubr.msk.bf16.gmra.mrb[176].mxu0 %vm6987_vm5, %v14798_v12 }
 0x73d   :  { %8038 = vmatpush1.bf16.msra.mxu0 %v14811_v2 }
 0x73e   :  { %8039 = vmatprep.subr.bf16.mxu0 %v14816_v13 }
 0x741   :  { %8040 = vmatpush1.bf16.msra.mxu0 %v14814_v18  ;;  %v14865_v18 = vld [vmem:[#allocation22 + $0x160] ss:$8 sps:$4 sm:$0xff]  }
 0x742   :  { %8041 = vmatprep.subr.bf16.mxu0 %v14819_v6  ;;  %v14870_v6 = vld [vmem:[#allocation22 + $0x174] ss:$8 sps:$4 sm:$0xff]  }
 0x745   :  { %8042 = vmatpush1.bf16.msra.mxu0 %v14817_v19  ;;  %v14868_v19 = vld [vmem:[#allocation22 + $0x170] ss:$8 sps:$4 sm:$0xff]  }
 0x746   :  { %8043 = vmatprep.subr.bf16.mxu0 %v14822_v35 }
 0x749   :  { %8044 = vmatpush1.bf16.msra.mxu0 %v14820_v8  ;;  %v14873_v8 = vld [vmem:[#allocation22 + $0x184] ss:$8 sps:$4 sm:$0xff]  }
 0x74a   :  { %8045 = vmatprep.subr.bf16.mxu0 %v14825_v11 }
 0x74d   :  { %8046 = vmatpush1.bf16.msra.mxu0 %v14823_v47 }
 0x74e   :  { %8047 = vmatprep.subr.bf16.mxu0 %v14828_v40 }
 0x751   :  { %8048 = vmatpush1.bf16.msra.mxu0 %v14826_v9 }
 0x752   :  { %8049 = vmatprep.subr.bf16.mxu0 %v14831_v15  ;;  %v14871_v15 = vld [vmem:[#allocation22 + $0x180] ss:$8 sps:$4 sm:$0xff]  }
 0x755   :  { %8050 = vmatpush1.bf16.msra.mxu0 %v14829_v17  ;;  %v14876_v17 = vld [vmem:[#allocation22 + $0x194] ss:$8 sps:$4 sm:$0xff]  }
 0x756   :  { %8051 = vmatprep.subr.bf16.mxu0 %v14834_v58  ;;  %v14874_v58 = vld [vmem:[#allocation22 + $0x190] ss:$8 sps:$4 sm:$0xff]  }
 0x759   :  { %8052 = vmatpush1.bf16.msra.mxu0 %v14832_v63  ;;  %v14879_v63 = vld [vmem:[#allocation22 + $0x1a4] ss:$8 sps:$4 sm:$0xff]  }
 0x75a   :  { %8053 = vmatprep.subr.bf16.mxu0 %v14837_v26  ;;  %v14877_v26 = vld [vmem:[#allocation22 + $0x1a0] ss:$8 sps:$4 sm:$0xff]  }
 0x75d   :  { %8054 = vmatpush1.bf16.msra.mxu0 %v14835_v55  ;;  %v14882_v55 = vld [vmem:[#allocation22 + $0x1b4] ss:$8 sps:$4 sm:$0xff]  }
 0x75e   :  { %8055 = vmatprep.subr.bf16.mxu0 %v14840_v28  ;;  %v14880_v28 = vld [vmem:[#allocation22 + $0x1b0] ss:$8 sps:$4 sm:$0xff]  }
 0x761   :  { %8056 = vmatpush1.bf16.msra.mxu0 %v14838_v49  ;;  %v14885_v49 = vld [vmem:[#allocation22 + $0x1c4] ss:$8 sps:$4 sm:$0xff]  }
 0x762   :  { %8057 = vmatprep.subr.bf16.mxu0 %v14843_v14  ;;  %v14883_v14 = vld [vmem:[#allocation22 + $0x1c0] ss:$8 sps:$4 sm:$0xff]  }
 0x765   :  { %8058 = vmatpush1.bf16.msra.mxu0 %v14841_v33  ;;  %v14888_v33 = vld [vmem:[#allocation22 + $0x1d4] ss:$8 sps:$4 sm:$0xff]  }
 0x766   :  { %8059 = vmatprep.subr.bf16.mxu0 %v14846_v30  ;;  %v14886_v30 = vld [vmem:[#allocation22 + $0x1d0] ss:$8 sps:$4 sm:$0xff]  }
 0x769   :  { %8060 = vmatpush1.bf16.msra.mxu0 %v14844_v25  ;;  %v14891_v25 = vld [vmem:[#allocation22 + $0x1e4] ss:$8 sps:$4 sm:$0xff]  }
 0x76a   :  { %8072 = vmatprep.subr.bf16.mxu0 %v14849_v32  ;;  %v14889_v32 = vld [vmem:[#allocation22 + $0x1e0] ss:$8 sps:$4 sm:$0xff]  }
 0x7e7   :  { %v7040_v23 = vpop.f32.mrb[156].mxu0 }
 0x7e8   :  { %v7042_v20 = vpop.f32.mrb[157].mxu0 }
 0x7e9   :  { %v7044_v36 = vpop.f32.mrb[158].mxu0 }
 0x7ea   :  { %v7126_v62 = vpack.c.bf16 %v7044_v36, %v7040_v23  ;;  %v7046_v60 = vpop.f32.mrb[159].mxu0  ;;  %v14894_v23 = vld [vmem:[#allocation22 + $0x1f4] ss:$8 sps:$4 sm:$0xff]   ;;  %v14897_v36 = vld [vmem:[#allocation22 + $0x204] ss:$8 sps:$4 sm:$0xff]  }
 0x7eb   :  { %v7127_v51 = vpack.c.bf16 %v7046_v60, %v7042_v20  ;;  %v14892_v20 = vld [vmem:[#allocation22 + $0x1f0] ss:$8 sps:$4 sm:$0xff]   ;;  %v14900_v60 = vld [vmem:[#allocation22 + $0x214] ss:$8 sps:$4 sm:$0xff]  }
 0x7ed   :  { %8061 = vmatprep.mubr.bf16.mxu0 %v7127_v51  ;;  %v14898_v51 = vld [vmem:[#allocation22 + $0x210] ss:$8 sps:$4 sm:$0xff]  }
 0x7ee   :  { %8062 = vmatmul.mubr.bf16.vlgmr.msra.gmra.mrb[180].mxu0 %v7126_v62  ;;  %v14895_v62 = vld [vmem:[#allocation22 + $0x200] ss:$8 sps:$4 sm:$0xff]  }
 0x7ef   :  { %8073 = vmatpush1.bf16.msra.mxu0 %v14847_v46  ;;  %v7050_v10 = vpop.f32.mrb[160].mxu0  ;;  %v14903_v46 = vld [vmem:[#allocation22 + $0x224] ss:$8 sps:$4 sm:$0xff]  }
 0x7f0   :  { %8074 = vmatprep.subr.bf16.mxu0 %v14852_v21  ;;  %v16427_v39 = vpop.f32.mrb[161].mxu0  ;;  %v14901_v21 = vld [vmem:[#allocation22 + $0x220] ss:$8 sps:$4 sm:$0xff]  }
 0x7f1   :  { %v7054_v43 = vpop.f32.mrb[162].mxu0 }
 0x7f2   :  { %v7132_v29 = vpack.c.bf16 %v7054_v43, %v7050_v10  ;;  %v16429_v31 = vpop.f32.mrb[163].mxu0  ;;  %v14904_v43 = vld [vmem:[#allocation22 + $0x230] ss:$8 sps:$4 sm:$0xff]  }
 0x7f3   :  { %8075 = vmatpush1.bf16.msra.mxu0 %v14850_v48  ;;  %v7133_v4 = vpack.c.bf16 %v16429_v31, %v16427_v39  ;;  %v14906_v48 = vld [vmem:[#allocation22 + $0x234] ss:$8 sps:$4 sm:$0xff]   ;;  %v14958_v31 = vld [vmem:[#allocation22 + $0x350] ss:$8 sps:$4 sm:$0xff]  }
 0x7f4   :  { %8076 = vmatprep.subr.bf16.mxu0 %v14855_v50  ;;  %8104 = vmatprep.mubr.bf16.mxu0 %v7132_v29  ;;  %v14960_v39 = vld [vmem:[#allocation22 + $0x354] ss:$8 sps:$4 sm:$0xff]  }
 0x7f7   :  { %8077 = vmatpush1.bf16.msra.mxu0 %v14853_v52  ;;  %v16433_v41 = vpop.f32.mrb[164].mxu0  ;;  %v14909_v52 = vld [vmem:[#allocation22 + $0x244] ss:$8 sps:$4 sm:$0xff]  }
 0x7f8   :  { %8078 = vmatprep.subr.bf16.mxu0 %v14858_v53  ;;  %v16435_v34 = vpop.f32.mrb[165].mxu0 }
 0x7f9   :  { %v16437_v56 = vpop.f32.mrb[166].mxu0 }
 0x7fa   :  { %v7138_v7 = vpack.c.bf16 %v16437_v56, %v16433_v41  ;;  %v16441_v12 = vpop.f32.mrb[167].mxu0  ;;  %v15006_v41 = vld [vmem:[#allocation22 + $0x450] ss:$8 sps:$4 sm:$0xff]   ;;  %v15011_v56 = vld [vmem:[#allocation22 + $0x464] ss:$8 sps:$4 sm:$0xff]  }
 0x7fb   :  { %8079 = vmatpush1.bf16.msra.mxu0 %v14856_v24  ;;  %v7139_v27 = vpack.c.bf16 %v16441_v12, %v16435_v34  ;;  %v14961_v34 = vld [vmem:[#allocation22 + $0x360] ss:$8 sps:$4 sm:$0xff]   ;;  %v14966_v12 = vld [vmem:[#allocation22 + $0x374] ss:$8 sps:$4 sm:$0xff]  }
 0x7fc   :  { %8080 = vmatprep.subr.bf16.mxu0 %v14861_v57  ;;  %v14907_v57 = vld [vmem:[#allocation22 + $0x240] ss:$8 sps:$4 sm:$0xff]  }
 0x7ff   :  { %8081 = vmatpush1.bf16.msra.mxu0 %v14859_v16  ;;  %v7103_v22 = vpop.f32.mrb[168].mxu0  ;;  %v14912_v16 = vld [vmem:[#allocation22 + $0x254] ss:$8 sps:$4 sm:$0xff]  }
 0x800   :  { %8082 = vmatprep.subr.bf16.mxu0 %v14864_v1  ;;  %v13696_v38 = vpop.f32.mrb[169].mxu0  ;;  %v14910_v1 = vld [vmem:[#allocation22 + $0x250] ss:$8 sps:$4 sm:$0xff]  }
 0x801   :  { %v7106_v54 = vpop.f32.mrb[170].mxu0  ;;  %v14916_v38 = vld [vmem:[#allocation22 + $0x270] ss:$8 sps:$4 sm:$0xff]  }
 0x802   :  { %v7128_v2 = vpack.c.bf16 %v7106_v54, %v7103_v22  ;;  %v13697_v13 = vpop.f32.mrb[171].mxu0  ;;  %v14913_v22 = vld [vmem:[#allocation22 + $0x260] ss:$8 sps:$4 sm:$0xff]   ;;  %v14921_v54 = vld [vmem:[#allocation22 + $0x284] ss:$8 sps:$4 sm:$0xff]  }
 0x803   :  { %8083 = vmatpush1.bf16.msra.mxu0 %v14862_v3  ;;  %v14915_v3 = vld [vmem:[#allocation22 + $0x264] ss:$8 sps:$4 sm:$0xff]   ;;  %v14924_v13 = vld [vmem:[#allocation22 + $0x294] ss:$8 sps:$4 sm:$0xff]  }
 0x804   :  { %8084 = vmatprep.subr.bf16.mxu0 %v14867_v37  ;;  %v14918_v37 = vld [vmem:[#allocation22 + $0x274] ss:$8 sps:$4 sm:$0xff]  }
 0x807   :  { %8085 = vmatpush1.bf16.msra.mxu0 %v14865_v18  ;;  %v7111_v35 = vpop.f32.mrb[172].mxu0  ;;  %v14922_v18 = vld [vmem:[#allocation22 + $0x290] ss:$8 sps:$4 sm:$0xff]  }
 0x808   :  { %8086 = vmatprep.subr.bf16.mxu0 %v14870_v6  ;;  %v13700_v11 = vpop.f32.mrb[173].mxu0  ;;  %v14927_v6 = vld [vmem:[#allocation22 + $0x2a4] ss:$8 sps:$4 sm:$0xff]  }
 0x809   :  { %v7114_v47 = vpop.f32.mrb[174].mxu0  ;;  %v14933_v11 = vld [vmem:[#allocation22 + $0x2c4] ss:$8 sps:$4 sm:$0xff]  }
 0x80a   :  { %v7134_v40 = vpack.c.bf16 %v7114_v47, %v7111_v35  ;;  %v13701_v9 = vpop.f32.mrb[175].mxu0  ;;  %v14930_v35 = vld [vmem:[#allocation22 + $0x2b4] ss:$8 sps:$4 sm:$0xff]   ;;  %v14931_v47 = vld [vmem:[#allocation22 + $0x2c0] ss:$8 sps:$4 sm:$0xff]  }
 0x80b   :  { %8087 = vmatpush1.bf16.msra.mxu0 %v14868_v19  ;;  %v14925_v19 = vld [vmem:[#allocation22 + $0x2a0] ss:$8 sps:$4 sm:$0xff]   ;;  %v14934_v9 = vld [vmem:[#allocation22 + $0x2d0] ss:$8 sps:$4 sm:$0xff]  }
 0x80c   :  { %8088 = vmatprep.subr.bf16.mxu0 %v14873_v8  ;;  %v14928_v8 = vld [vmem:[#allocation22 + $0x2b0] ss:$8 sps:$4 sm:$0xff]  }
 0x80f   :  { %8089 = vmatpush1.bf16.msra.mxu0 %v14871_v15  ;;  %v16445_v10 = vpop.f32.mrb[176].mxu0  ;;  %v14939_v15 = vld [vmem:[#allocation22 + $0x2e4] ss:$8 sps:$4 sm:$0xff]  }
 0x810   :  { %8090 = vmatprep.subr.bf16.mxu0 %v14876_v17  ;;  %v13704_v50 = vpop.f32.mrb[177].mxu0  ;;  %v14937_v17 = vld [vmem:[#allocation22 + $0x2e0] ss:$8 sps:$4 sm:$0xff]  }
 0x811   :  { %v16447_v29 = vpop.f32.mrb[178].mxu0  ;;  %v14981_v50 = vld [vmem:[#allocation22 + $0x3c4] ss:$8 sps:$4 sm:$0xff]  }
 0x812   :  { %v7140_v53 = vpack.c.bf16 %v16447_v29, %v16445_v10  ;;  %v13705_v24 = vpop.f32.mrb[179].mxu0  ;;  %v15017_v29 = vld [vmem:[#allocation25 + $0x40] sm:$0xff]  }
 0x813   :  { %8091 = vmatpush1.bf16.msra.mxu0 %v14874_v58  ;;  %v14942_v58 = vld [vmem:[#allocation22 + $0x2f4] ss:$8 sps:$4 sm:$0xff]   ;;  %v14982_v24 = vld [vmem:[#allocation22 + $0x3d0] ss:$8 sps:$4 sm:$0xff]  }
 0x814   :  { %8092 = vmatprep.subr.bf16.mxu0 %v14879_v63  ;;  %v14940_v63 = vld [vmem:[#allocation22 + $0x2f0] ss:$8 sps:$4 sm:$0xff]  }
 0x817   :  { %8093 = vmatpush1.bf16.msra.mxu0 %v14877_v26  ;;  %v14945_v26 = vld [vmem:[#allocation22 + $0x304] ss:$8 sps:$4 sm:$0xff]  }
 0x818   :  { %8094 = vmatprep.subr.bf16.mxu0 %v14882_v55  ;;  %v14943_v55 = vld [vmem:[#allocation22 + $0x300] ss:$8 sps:$4 sm:$0xff]  }
 0x81b   :  { %8095 = vmatpush1.bf16.msra.mxu0 %v14880_v28  ;;  %v14948_v28 = vld [vmem:[#allocation22 + $0x314] ss:$8 sps:$4 sm:$0xff]  }
 0x81c   :  { %8096 = vmatprep.subr.bf16.mxu0 %v14885_v49  ;;  %v14946_v49 = vld [vmem:[#allocation22 + $0x310] ss:$8 sps:$4 sm:$0xff]  }
 0x81f   :  { %8097 = vmatpush1.bf16.msra.mxu0 %v14883_v14  ;;  %v14951_v14 = vld [vmem:[#allocation22 + $0x324] ss:$8 sps:$4 sm:$0xff]  }
 0x820   :  { %8098 = vmatprep.subr.bf16.mxu0 %v14888_v33  ;;  %v14949_v33 = vld [vmem:[#allocation22 + $0x320] ss:$8 sps:$4 sm:$0xff]  }
 0x823   :  { %8099 = vmatpush1.bf16.msra.mxu0 %v14886_v30  ;;  %v14954_v30 = vld [vmem:[#allocation22 + $0x334] ss:$8 sps:$4 sm:$0xff]  }
 0x824   :  { %8100 = vmatprep.subr.bf16.mxu0 %v14891_v25  ;;  %v14952_v25 = vld [vmem:[#allocation22 + $0x330] ss:$8 sps:$4 sm:$0xff]  }
 0x827   :  { %8101 = vmatpush1.bf16.msra.mxu0 %v14889_v32  ;;  %v14957_v32 = vld [vmem:[#allocation22 + $0x344] ss:$8 sps:$4 sm:$0xff]  }
 0x828   :  { %8102 = vmatprep.subr.bf16.mxu0 %v14894_v23  ;;  %v14955_v23 = vld [vmem:[#allocation22 + $0x340] ss:$8 sps:$4 sm:$0xff]  }
 0x82b   :  { %8103 = vmatpush1.bf16.msra.mxu0 %v14892_v20  ;;  %v14969_v20 = vld [vmem:[#allocation22 + $0x384] ss:$8 sps:$4 sm:$0xff]  }
 0x82c   :  { %8115 = vmatprep.subr.bf16.mxu0 %v14897_v36  ;;  %v14967_v36 = vld [vmem:[#allocation22 + $0x380] ss:$8 sps:$4 sm:$0xff]  }
 0x82e   :  { %8105 = vmatmul.mubr.bf16.vlgmr.msra.gmra.mrb[180].mxu0 %v7128_v2  ;;  %v14919_v2 = vld [vmem:[#allocation22 + $0x280] ss:$8 sps:$4 sm:$0xff]  }
 0x82f   :  { %8116 = vmatpush1.bf16.msra.mxu0 %v14895_v62  ;;  %8147 = vmatprep.mubr.bf16.mxu0 %v7134_v40  ;;  %v14936_v40 = vld [vmem:[#allocation22 + $0x2d4] ss:$8 sps:$4 sm:$0xff]  }
 0x830   :  { %8117 = vmatprep.subr.bf16.mxu0 %v14900_v60  ;;  %v14972_v62 = vld [vmem:[#allocation22 + $0x394] ss:$8 sps:$4 sm:$0xff]   ;;  %v14970_v60 = vld [vmem:[#allocation22 + $0x390] ss:$8 sps:$4 sm:$0xff]  }
 0x833   :  { %8118 = vmatpush1.bf16.msra.mxu0 %v14898_v51  ;;  %v14975_v51 = vld [vmem:[#allocation22 + $0x3a4] ss:$8 sps:$4 sm:$0xff]  }
 0x834   :  { %8119 = vmatprep.subr.bf16.mxu0 %v14903_v46  ;;  %v14973_v46 = vld [vmem:[#allocation22 + $0x3a0] ss:$8 sps:$4 sm:$0xff]  }
 0x837   :  { %8120 = vmatpush1.bf16.msra.mxu0 %v14901_v21  ;;  %v14978_v21 = vld [vmem:[#allocation22 + $0x3b4] ss:$8 sps:$4 sm:$0xff]  }
 0x838   :  { %8121 = vmatprep.subr.bf16.mxu0 %v14906_v48  ;;  %v14976_v48 = vld [vmem:[#allocation22 + $0x3b0] ss:$8 sps:$4 sm:$0xff]  }
 0x83b   :  { %8122 = vmatpush1.bf16.msra.mxu0 %v14904_v43  ;;  %v14979_v43 = vld [vmem:[#allocation22 + $0x3c0] ss:$8 sps:$4 sm:$0xff]  }
 0x83c   :  { %8123 = vmatprep.subr.bf16.mxu0 %v14909_v52  ;;  %v14984_v52 = vld [vmem:[#allocation22 + $0x3d4] ss:$8 sps:$4 sm:$0xff]  }
 0x83f   :  { %8124 = vmatpush1.bf16.msra.mxu0 %v14907_v57  ;;  %v14987_v57 = vld [vmem:[#allocation22 + $0x3e4] ss:$8 sps:$4 sm:$0xff]  }
 0x840   :  { %8125 = vmatprep.subr.bf16.mxu0 %v14912_v16  ;;  %v14985_v16 = vld [vmem:[#allocation22 + $0x3e0] ss:$8 sps:$4 sm:$0xff]  }
 0x843   :  { %8126 = vmatpush1.bf16.msra.mxu0 %v14910_v1  ;;  %v14990_v1 = vld [vmem:[#allocation22 + $0x3f4] ss:$8 sps:$4 sm:$0xff]  }
 0x844   :  { %8127 = vmatprep.subr.bf16.mxu0 %v14915_v3  ;;  %v14988_v3 = vld [vmem:[#allocation22 + $0x3f0] ss:$8 sps:$4 sm:$0xff]  }
 0x847   :  { %8128 = vmatpush1.bf16.msra.mxu0 %v14913_v22  ;;  %v14993_v22 = vld [vmem:[#allocation22 + $0x404] ss:$8 sps:$4 sm:$0xff]  }
 0x848   :  { %8129 = vmatprep.subr.bf16.mxu0 %v14918_v37  ;;  %v14991_v37 = vld [vmem:[#allocation22 + $0x400] ss:$8 sps:$4 sm:$0xff]  }
 0x84b   :  { %8130 = vmatpush1.bf16.msra.mxu0 %v14916_v38  ;;  %v14996_v38 = vld [vmem:[#allocation22 + $0x414] ss:$8 sps:$4 sm:$0xff]  }
 0x84c   :  { %8131 = vmatprep.subr.bf16.mxu0 %v14921_v54  ;;  %v14994_v54 = vld [vmem:[#allocation22 + $0x410] ss:$8 sps:$4 sm:$0xff]  }
 0x84f   :  { %8132 = vmatpush1.bf16.msra.mxu0 %v14919_v2  ;;  %v14999_v2 = vld [vmem:[#allocation22 + $0x424] ss:$8 sps:$4 sm:$0xff]  }
 0x850   :  { %8133 = vmatprep.subr.bf16.mxu0 %v14924_v13  ;;  %v14997_v13 = vld [vmem:[#allocation22 + $0x420] ss:$8 sps:$4 sm:$0xff]  }
 0x853   :  { %8134 = vmatpush1.bf16.msra.mxu0 %v14922_v18  ;;  %v15002_v18 = vld [vmem:[#allocation22 + $0x434] ss:$8 sps:$4 sm:$0xff]  }
 0x854   :  { %8135 = vmatprep.subr.bf16.mxu0 %v14927_v6  ;;  %v15000_v6 = vld [vmem:[#allocation22 + $0x430] ss:$8 sps:$4 sm:$0xff]  }
 0x857   :  { %8136 = vmatpush1.bf16.msra.mxu0 %v14925_v19  ;;  %v15005_v19 = vld [vmem:[#allocation22 + $0x444] ss:$8 sps:$4 sm:$0xff]  }
 0x858   :  { %8137 = vmatprep.subr.bf16.mxu0 %v14930_v35  ;;  %v15003_v35 = vld [vmem:[#allocation22 + $0x440] ss:$8 sps:$4 sm:$0xff]  }
 0x85b   :  { %8138 = vmatpush1.bf16.msra.mxu0 %v14928_v8  ;;  %v15008_v8 = vld [vmem:[#allocation22 + $0x454] ss:$8 sps:$4 sm:$0xff]  }
 0x85c   :  { %8139 = vmatprep.subr.bf16.mxu0 %v14933_v11  ;;  %v15014_v11 = vld [vmem:[#allocation22 + $0x474] ss:$8 sps:$4 sm:$0xff]  }
 0x85f   :  { %8140 = vmatpush1.bf16.msra.mxu0 %v14931_v47  ;;  %v15012_v47 = vld [vmem:[#allocation22 + $0x470] ss:$8 sps:$4 sm:$0xff]  }
 0x860   :  { %8141 = vmatprep.subr.bf16.mxu0 %v14936_v40  ;;  %v7297_v40 = vld [vmem:[#allocation23] sm:$0x3] }
 0x863   :  { %8142 = vmatpush1.bf16.msra.mxu0 %v14934_v9  ;;  %v7302_v9 = vrot.slane %v7297_v40, %v16104_v45 }
 0x864   :  { %8143 = vmatprep.subr.bf16.mxu0 %v14939_v15  ;;  %v7306_v15 = vrot.slane %v7297_v40, %v16112_v61  ;;  %v15044_v40 = vld [vmem:[#allocation25 + $0xa8] sm:$0xff]  }
 0x867   :  { %8144 = vmatpush1.bf16.msra.mxu0 %v14937_v17 }
 0x868   :  { %8145 = vmatprep.subr.bf16.mxu0 %v14942_v58 }
 0x86b   :  { %8146 = vmatpush1.bf16.msra.mxu0 %v14940_v63 }
 0x86c   :  { %8158 = vmatprep.subr.bf16.mxu0 %v14945_v26 }
 0x86e   :  { %8148 = vmatmul.mubr.bf16.vlgmr.msra.gmra.mrb[180].mxu0 %v7133_v4  ;;  %v14963_v4 = vld [vmem:[#allocation22 + $0x364] ss:$8 sps:$4 sm:$0xff]  }
 0x86f   :  { %8159 = vmatpush1.bf16.msra.mxu0 %v14943_v55  ;;  %8190 = vmatprep.mubr.bf16.mxu0 %v7139_v27  ;;  %v14964_v27 = vld [vmem:[#allocation22 + $0x370] ss:$8 sps:$4 sm:$0xff]  }
 0x870   :  { %8160 = vmatprep.subr.bf16.mxu0 %v14948_v28 }
 0x873   :  { %8161 = vmatpush1.bf16.msra.mxu0 %v14946_v49 }
 0x874   :  { %8162 = vmatprep.subr.bf16.mxu0 %v14951_v14 }
 0x877   :  { %8163 = vmatpush1.bf16.msra.mxu0 %v14949_v33 }
 0x878   :  { %8164 = vmatprep.subr.bf16.mxu0 %v14954_v30 }
 0x87b   :  { %8165 = vmatpush1.bf16.msra.mxu0 %v14952_v25 }
 0x87c   :  { %8166 = vmatprep.subr.bf16.mxu0 %v14957_v32 }
 0x87f   :  { %8167 = vmatpush1.bf16.msra.mxu0 %v14955_v23 }
 0x880   :  { %8168 = vmatprep.subr.bf16.mxu0 %v14960_v39  ;;  %v15018_v39 = vld [vmem:[#allocation25] sm:$0xff]  }
 0x883   :  { %8169 = vmatpush1.bf16.msra.mxu0 %v14958_v31  ;;  %v15019_v31 = vld [vmem:[#allocation25 + $0x48] sm:$0xff]  }
 0x884   :  { %8170 = vmatprep.subr.bf16.mxu0 %v14963_v4  ;;  %v15020_v4 = vld [vmem:[#allocation25 + $0x8] sm:$0xff]  }
 0x887   :  { %8171 = vmatpush1.bf16.msra.mxu0 %v14961_v34  ;;  %v15021_v34 = vld [vmem:[#allocation25 + $0x50] sm:$0xff]  }
 0x888   :  { %8172 = vmatprep.subr.bf16.mxu0 %v14966_v12  ;;  %v15016_v12 = vld [vmem:[%s16581_s12 + $0x8] ss:$0 sps:$4 sm:$0xff]  }
 0x88b   :  { %8173 = vmatpush1.bf16.msra.mxu0 %v14964_v27  ;;  %v15022_v27 = vld [vmem:[#allocation25 + $0x10] sm:$0xff]  }
 0x88c   :  { %8174 = vmatprep.subr.bf16.mxu0 %v14969_v20  ;;  %v15023_v20 = vld [vmem:[#allocation25 + $0x58] sm:$0xff]  }
 0x88f   :  { %8175 = vmatpush1.bf16.msra.mxu0 %v14967_v36  ;;  %v15024_v36 = vld [vmem:[#allocation25 + $0x18] sm:$0xff]  }
 0x890   :  { %8176 = vmatprep.subr.bf16.mxu0 %v14972_v62  ;;  %v15025_v62 = vld [vmem:[#allocation25 + $0x60] sm:$0xff]  }
 0x893   :  { %8177 = vmatpush1.bf16.msra.mxu0 %v14970_v60  ;;  %v15026_v60 = vld [vmem:[#allocation25 + $0x20] sm:$0xff]  }
 0x894   :  { %8178 = vmatprep.subr.bf16.mxu0 %v14975_v51  ;;  %v15027_v51 = vld [vmem:[#allocation25 + $0x68] sm:$0xff]  }
 0x897   :  { %8179 = vmatpush1.bf16.msra.mxu0 %v14973_v46  ;;  %v15028_v46 = vld [vmem:[#allocation25 + $0x28] sm:$0xff]  }
 0x898   :  { %8180 = vmatprep.subr.bf16.mxu0 %v14978_v21  ;;  %v15029_v21 = vld [vmem:[#allocation25 + $0x70] sm:$0xff]  }
 0x89b   :  { %8181 = vmatpush1.bf16.msra.mxu0 %v14976_v48  ;;  %v15030_v48 = vld [vmem:[#allocation25 + $0x30] sm:$0xff]  }
 0x89c   :  { %8182 = vmatprep.subr.bf16.mxu0 %v14981_v50  ;;  %v15031_v50 = vld [vmem:[#allocation25 + $0x78] sm:$0xff]  }
 0x89f   :  { %8183 = vmatpush1.bf16.msra.mxu0 %v14979_v43  ;;  %v15032_v43 = vld [vmem:[#allocation25 + $0x38] sm:$0xff]  }
 0x8a0   :  { %8184 = vmatprep.subr.bf16.mxu0 %v14984_v52  ;;  %v15033_v52 = vld [vmem:[#allocation25 + $0xc0] sm:$0xff]  }
 0x8a3   :  { %8185 = vmatpush1.bf16.msra.mxu0 %v14982_v24 }
 0x8a4   :  { %8186 = vmatprep.subr.bf16.mxu0 %v14987_v57 }
 0x8a7   :  { %8187 = vmatpush1.bf16.msra.mxu0 %v14985_v16 }
 0x8a8   :  { %8188 = vmatprep.subr.bf16.mxu0 %v14990_v1  ;;  %v15034_v1 = vld [vmem:[#allocation25 + $0x80] sm:$0xff]  }
 0x8ab   :  { %8189 = vmatpush1.bf16.msra.mxu0 %v14988_v3 }
 0x8ac   :  { %8201 = vmatprep.subr.bf16.mxu0 %v14993_v22 }
 0x8ae   :  { %8191 = vmatmul.mubr.bf16.vlgmr.msra.gmra.mrb[180].mxu0 %v7138_v7  ;;  %v15009_v7 = vld [vmem:[#allocation22 + $0x460] ss:$8 sps:$4 sm:$0xff]  }
 0x8af   :  { %8202 = vmatpush1.bf16.msra.mxu0 %v14991_v37  ;;  %8233 = vmatprep.mubr.bf16.mxu0 %v15594_v0  ;;  %v15035_v37 = vld [vmem:[#allocation25 + $0xc8] sm:$0xff]  }
 0x8b0   :  { %8203 = vmatprep.subr.bf16.mxu0 %v14996_v38 }
 0x8b3   :  { %8204 = vmatpush1.bf16.msra.mxu0 %v14994_v54 }
 0x8b4   :  { %8205 = vmatprep.subr.bf16.mxu0 %v14999_v2  ;;  %v15036_v2 = vld [vmem:[#allocation25 + $0x88] sm:$0xff]  }
 0x8b7   :  { %8206 = vmatpush1.bf16.msra.mxu0 %v14997_v13  ;;  %v15037_v13 = vld [vmem:[#allocation25 + $0xd0] sm:$0xff]  }
 0x8b8   :  { %8207 = vmatprep.subr.bf16.mxu0 %v15002_v18 }
 0x8bb   :  { %8208 = vmatpush1.bf16.msra.mxu0 %v15000_v6 }
 0x8bc   :  { %8209 = vmatprep.subr.bf16.mxu0 %v15005_v19  ;;  %v15038_v19 = vld [vmem:[#allocation25 + $0x90] sm:$0xff]  }
 0x8bf   :  { %8210 = vmatpush1.bf16.msra.mxu0 %v15003_v35 }
 0x8c0   :  { %8211 = vmatprep.subr.bf16.mxu0 %v15008_v8  ;;  %v15039_v8 = vld [vmem:[#allocation25 + $0xd8] sm:$0xff]  }
 0x8c3   :  { %8212 = vmatpush1.bf16.msra.mxu0 %v15006_v41 }
 0x8c4   :  { %8213 = vmatprep.subr.bf16.mxu0 %v15011_v56  ;;  %v15040_v56 = vld [vmem:[#allocation25 + $0x98] sm:$0xff]  }
 0x8c7   :  { %8214 = vmatpush1.bf16.msra.mxu0 %v15009_v7  ;;  %v15041_v7 = vld [vmem:[#allocation25 + $0xe0] sm:$0xff]  }
 0x8c8   :  { %8215 = vmatprep.subr.bf16.mxu0 %v15014_v11  ;;  %v15042_v11 = vld [vmem:[#allocation25 + $0xa0] sm:$0xff]  }
 0x8cb   :  { %8216 = vmatpush1.bf16.msra.mxu0 %v15012_v47  ;;  %v15043_v47 = vld [vmem:[#allocation25 + $0xe8] sm:$0xff]  }
 0x8ce   :  { %8234 = vmatmul.mubr.bf16.vlgmr.msra.gmra.mrb[180].mxu0 %v7140_v53  ;;  %v15015_v53 = vld [vmem:[%s16581_s12] sm:$0xff]   ;;  %s15598_s12 = smov [#allocation37]  }
 0x8cf   :  { %s11759_s1 = sshll.u32 %s15598_s12, 4  ;;  %s11760_s1 = int_to_ptr.vmem [resolvable:$true] %s11759_s1 }
 0x8d0   :  { %s15502_s17 = scalar_lea.vmem %s11760_s1, 64  ;;  %p15507_p3 = scmp.lt.s32.totalorder %s11760_s1, %s11760_s1 }
 0x8d1   :  { %p15503_p2 = scmp.ne.s32.totalorder %s11760_s1, %s15502_s17  ;;  %p15508_p4 = scmp.lt.s32.totalorder %s15502_s17, %s15502_s17 }
 0x8d3   :  { %p15509_p5 = por %p15508_p4, %p15507_p3 }
 0x8d5   :  { %p15510_p6 = pnand %p15509_p5, %p15503_p2 }
 0x9a1   :  { %v8235_v17 = vpop.f32.mrb[180].mxu0 }
 0x9a2   :  { %v13732_v58 = vadd.f32 %v8235_v17, %v7302_v9  ;;  %v8237_v63 = vpop.f32.mrb[181].mxu0  ;;  %v15047_v17 = vld [vmem:[#allocation25 + $0xf8] sm:$0xff]  }
 0x9a3   :  { %v13733_v26 = vadd.f32 %v8237_v63, %v7306_v15  ;;  %v8239_v55 = vpop.f32.mrb[182].mxu0  ;;  %v15049_v63 = vld [vmem:[#allocation25 + $0x140] sm:$0xff]  }
 0x9a4   :  { %v13734_v28 = vadd.f32 %v8239_v55, %v7302_v9  ;;  %v8241_v49 = vpop.f32.mrb[183].mxu0  ;;  %v8244_v33 = vmax.f32 %v13732_v58, 0.0  ;;  %v15045_v9 = vld [vmem:[#allocation25 + $0xf0] sm:$0xff]   ;;  %v15048_v58 = vld [vmem:[#allocation25 + $0xb8] sm:$0xff]  }
 0x9a5   :  { %v13735_v14 = vadd.f32 %v8241_v49, %v7306_v15  ;;  %v8245_v25 = vmax.f32 %v13733_v26, 0.0  ;;  %v15046_v15 = vld [vmem:[#allocation25 + $0xb0] sm:$0xff]   ;;  %v15050_v26 = vld [vmem:[#allocation25 + $0x100] sm:$0xff]   ;;  %v15051_v49 = vld [vmem:[#allocation25 + $0x148] sm:$0xff]  }
 0x9a6   :  { %v8246_v30 = vmax.f32 %v13734_v28, 0.0 }
 0x9a7   :  { %v8247_v32 = vmax.f32 %v13735_v14, 0.0  ;;  %v15052_v14 = vld [vmem:[#allocation25 + $0x108] sm:$0xff]  }
 0x9a8   :  { %v8248_v23 = vpack.c.bf16 %v8246_v30, %v8244_v33  ;;  %v15053_v33 = vld [vmem:[#allocation25 + $0x150] sm:$0xff]  }
 0x9a9   :  { %v8249_v10 = vpack.c.bf16 %v8247_v32, %v8245_v25  ;;  %v15054_v30 = vld [vmem:[#allocation25 + $0x110] sm:$0xff]   ;;  %v15055_v25 = vld [vmem:[#allocation25 + $0x158] sm:$0xff]  }
 0x9aa   :  { %v15056_v32 = vld [vmem:[#allocation25 + $0x118] sm:$0xff]  }
 0x9ab   :  { %8272 = vmatprep.subr.bf16.mxu1 %v8249_v10  ;;  %v15058_v10 = vld [vmem:[#allocation25 + $0x120] sm:$0xff]  }
 0x9ac   :  { %8273 = vmatpush1.bf16.msra.mxu1 %v8248_v23  ;;  %v15057_v23 = vld [vmem:[#allocation25 + $0x160] sm:$0xff]  }
 0x9ad   :  { %13556 = vmatprep.subr.bf16.mxu1 %v15017_v29  ;;  %v15059_v29 = vld [vmem:[#allocation25 + $0x168] sm:$0xff]  }
 0x9af   :  { %12731 = vmatmul.mubr.msk.bf16.vlgmr.msra.gmra.mrb[64].mxu1 %vm8265_vm6, %v15015_v53  ;;  %v15060_v53 = vld [vmem:[#allocation25 + $0x128] sm:$0xff]  }
 0x9b0   :  { %8314 = vmatprep.mubr.bf16.mxu1 %v15594_v0  ;;  %13557 = vmatpush3.bf16.msra.mxu1 %v15018_v39  ;;  %v15061_v39 = vld [vmem:[#allocation25 + $0x170] sm:$0xff]  }
 0x9b1   :  { %13558 = vmatprep.subr.bf16.mxu1 %v15019_v31  ;;  %v15062_v31 = vld [vmem:[#allocation25 + $0x130] sm:$0xff]  }
 0x9b4   :  { %13559 = vmatpush3.bf16.msra.mxu1 %v15020_v4  ;;  %v15063_v4 = vld [vmem:[#allocation25 + $0x178] sm:$0xff]  }
 0x9b5   :  { %13560 = vmatprep.subr.bf16.mxu1 %v15021_v34  ;;  %v15064_v34 = vld [vmem:[#allocation25 + $0x138] sm:$0xff]  }
 0x9b7   :  { %12732 = vmatmul.mubr.msk.bf16.gmra.mrb[68].mxu1 %vm8265_vm6, %v15016_v12 }
 0x9b8   :  { %13561 = vmatpush3.bf16.msra.mxu1 %v15022_v27  ;;  %v8962_v27 = vld [vmem:[#allocation28] sm:$0xff] }
 0x9b9   :  { %13562 = vmatprep.subr.bf16.mxu1 %v15023_v20  ;;  %v8966_v20 = vld [vmem:[#allocation28 + $0x20] sm:$0xff] }
 0x9bc   :  { %13563 = vmatpush3.bf16.msra.mxu1 %v15024_v36  ;;  %v8963_v36 = vld [vmem:[#allocation28 + $0x8] sm:$0xff] }
 0x9bd   :  { %13564 = vmatprep.subr.bf16.mxu1 %v15025_v62  ;;  %v12798_v62 = vcombine.high %v8962_v27, %v8966_v20 }
 0x9c0   :  { %13565 = vmatpush3.bf16.msra.mxu1 %v15026_v60  ;;  %v8967_v60 = vld [vmem:[#allocation28 + $0x28] sm:$0xff] }
 0x9c1   :  { %13566 = vmatprep.subr.bf16.mxu1 %v15027_v51  ;;  %v12797_v51 = vcombine.low %v8962_v27, %v8966_v20  ;;  %v9022_v27 = vld [vmem:[#allocation28 + $0x1e0] sm:$0xff]  ;;  %v9019_v20 = vld [vmem:[#allocation28 + $0x1c8] sm:$0xff] }
 0x9c4   :  { %13567 = vmatpush3.bf16.msra.mxu1 %v15028_v46  ;;  %v12799_v46 = vcombine.low %v8963_v36, %v8967_v60 }
 0x9c5   :  { %13568 = vmatprep.subr.bf16.mxu1 %v15029_v21  ;;  %v12800_v21 = vcombine.high %v8963_v36, %v8967_v60 }
 0x9c7   :  { %11092 = vmatprep.subr.bf16.mxu0 %v12800_v21  ;;  %v9026_v21 = vld [vmem:[#allocation28 + $0x200] sm:$0xff] }
 0x9c8   :  { %13569 = vmatpush3.bf16.msra.mxu1 %v15030_v48  ;;  %v8970_v48 = vld [vmem:[#allocation28 + $0x40] sm:$0xff]  ;;  %11093 = vmatpush1.bf16.msra.mxu0 %v12799_v46 }
 0x9c9   :  { %13570 = vmatprep.subr.bf16.mxu1 %v15031_v50  ;;  %v8974_v50 = vld [vmem:[#allocation28 + $0x60] sm:$0xff] }
 0x9cc   :  { %13571 = vmatpush3.bf16.msra.mxu1 %v15032_v43  ;;  %v8971_v43 = vld [vmem:[#allocation28 + $0x48] sm:$0xff] }
 0x9cd   :  { %13578 = vmatprep.subr.bf16.mxu1 %v15033_v52  ;;  %v12805_v52 = vcombine.low %v8970_v48, %v8974_v50 }
 0xa82   :  { %v8306_v24 = vpop.f32.mrb[64].mxu1 }
 0xa83   :  { %v8308_v57 = vpop.f32.mrb[65].mxu1  ;;  %v13229_v22 = vpack.c.bf16 %v8306_v24, %v8306_v24  ;;  %v12806_v24 = vcombine.high %v8970_v48, %v8974_v50  ;;  %v9030_v48 = vld [vmem:[#allocation28 + $0x220] sm:$0xff]  ;;  %v9027_v50 = vld [vmem:[#allocation28 + $0x208] sm:$0xff] }
 0xa84   :  { %v13230_v16 = vpack.c.bf16 %v8308_v57, %v8308_v57  ;;  %v8310_v3 = vpop.f32.mrb[66].mxu1  ;;  %v8975_v57 = vld [vmem:[#allocation28 + $0x68] sm:$0xff] }
 0xa85   :  { %v8312_v38 = vpop.f32.mrb[67].mxu1  ;;  %v13231_v28 = vpack.c.bf16 %v8310_v3, %v8310_v3  ;;  %v12807_v3 = vcombine.low %v8971_v43, %v8975_v57 }
 0xa86   :  { %8797 = vmatprep.mubr.bf16.mxu1 %v13230_v16  ;;  %v13232_v54 = vpack.c.bf16 %v8312_v38, %v8312_v38  ;;  %v8978_v16 = vld [vmem:[#allocation28 + $0x80] sm:$0xff]  ;;  %v8979_v38 = vld [vmem:[#allocation28 + $0x88] sm:$0xff] }
 0xa87   :  { %8798 = vmatmul.mubr.bf16.vlgmr.msra.gmra.mrb[72].mxu1 %v13229_v22  ;;  %v12808_v22 = vcombine.high %v8971_v43, %v8975_v57  ;;  %v12862_v43 = vcombine.high %v9026_v21, %v9030_v48 }
 0xa88   :  { %13579 = vmatpush3.bf16.msra.mxu1 %v15034_v1  ;;  %8837 = vmatprep.mubr.bf16.mxu1 %v13232_v54  ;;  %v8982_v1 = vld [vmem:[#allocation28 + $0xa0] sm:$0xff]  ;;  %v8983_v54 = vld [vmem:[#allocation28 + $0xa8] sm:$0xff] }
 0xa89   :  { %13580 = vmatprep.subr.bf16.mxu1 %v15035_v37  ;;  %v12814_v37 = vcombine.high %v8978_v16, %v8982_v1  ;;  %11094 = vmatprep.subr.bf16.mxu0 %v12808_v22  ;;  %v9035_v22 = vld [vmem:[#allocation28 + $0x248] sm:$0xff] }
 0xa8a   :  { %v16473_v18 = vpop.f32.mrb[68].mxu1  ;;  %11095 = vmatpush1.bf16.msra.mxu0 %v12807_v3  ;;  %v9038_v3 = vld [vmem:[#allocation28 + $0x260] sm:$0xff] }
 0xa8b   :  { %v8318_v6 = vpop.f32.mrb[69].mxu1  ;;  %v13233_v12 = vpack.c.bf16 %v16473_v18, %v16473_v18  ;;  %v8990_v18 = vld [vmem:[#allocation28 + $0xe0] sm:$0xff] }
 0xa8c   :  { %13581 = vmatpush3.bf16.msra.mxu1 %v15036_v2  ;;  %v8320_v35 = vpop.f32.mrb[70].mxu1  ;;  %v13234_v55 = vpack.c.bf16 %v8318_v6, %v8318_v6  ;;  %v12816_v2 = vcombine.high %v8979_v38, %v8983_v54  ;;  %v8987_v6 = vld [vmem:[#allocation28 + $0xc8] sm:$0xff] }
 0xa8d   :  { %13582 = vmatprep.subr.bf16.mxu1 %v15037_v13  ;;  %v8321_v41 = vpop.f32.mrb[71].mxu1  ;;  %v8986_v13 = vld [vmem:[#allocation28 + $0xc0] sm:$0xff]  ;;  %v12813_v35 = vcombine.low %v8978_v16, %v8982_v1 }
 0xa8e   :  { %v12822_v41 = vcombine.high %v8986_v13, %v8990_v18  ;;  %11096 = vmatprep.subr.bf16.mxu0 %v12816_v2  ;;  %v9034_v1 = vld [vmem:[#allocation28 + $0x240] sm:$0xff] }
 0xa90   :  { %13583 = vmatpush3.bf16.msra.mxu1 %v15038_v19  ;;  %v8991_v19 = vld [vmem:[#allocation28 + $0xe8] sm:$0xff] }
 0xa91   :  { %13584 = vmatprep.subr.bf16.mxu1 %v15039_v8  ;;  %v12815_v8 = vcombine.low %v8979_v38, %v8983_v54  ;;  %v9039_v38 = vld [vmem:[#allocation28 + $0x268] sm:$0xff]  ;;  %v12869_v54 = vcombine.low %v9034_v1, %v9038_v3 }
 0xa92   :  { %v12871_v2 = vcombine.low %v9035_v22, %v9039_v38 }
 0xa93   :  { %11097 = vmatpush1.bf16.msra.mxu0 %v12815_v8  ;;  %v9047_v8 = vld [vmem:[#allocation28 + $0x2a8] sm:$0xff] }
 0xa94   :  { %13585 = vmatpush3.bf16.msra.mxu1 %v15040_v56  ;;  %v12824_v56 = vcombine.high %v8987_v6, %v8991_v19 }
 0xa95   :  { %13586 = vmatprep.subr.bf16.mxu1 %v15041_v7  ;;  %v8994_v7 = vld [vmem:[#allocation28 + $0x100] sm:$0xff] }
 0xa96   :  { %11098 = vmatprep.subr.bf16.mxu0 %v12824_v56 }
 0xa98   :  { %13587 = vmatpush3.bf16.msra.mxu1 %v15042_v11  ;;  %v8998_v11 = vld [vmem:[#allocation28 + $0x120] sm:$0xff] }
 0xa99   :  { %13588 = vmatprep.subr.bf16.mxu1 %v15043_v47  ;;  %v8995_v47 = vld [vmem:[#allocation28 + $0x108] sm:$0xff] }
 0xa9c   :  { %13589 = vmatpush3.bf16.msra.mxu1 %v15044_v40  ;;  %v8999_v40 = vld [vmem:[#allocation28 + $0x128] sm:$0xff] }
 0xa9d   :  { %13590 = vmatprep.subr.bf16.mxu1 %v15045_v9  ;;  %v12821_v9 = vcombine.low %v8986_v13, %v8990_v18  ;;  %v12872_v13 = vcombine.high %v9035_v22, %v9039_v38  ;;  %v9042_v18 = vld [vmem:[#allocation28 + $0x280] sm:$0xff] }
 0xaa0   :  { %13591 = vmatpush3.bf16.msra.mxu1 %v15046_v15  ;;  %v12823_v15 = vcombine.low %v8987_v6, %v8991_v19  ;;  %v9046_v6 = vld [vmem:[#allocation28 + $0x2a0] sm:$0xff]  ;;  %v9043_v19 = vld [vmem:[#allocation28 + $0x288] sm:$0xff] }
 0xaa1   :  { %13592 = vmatprep.subr.bf16.mxu1 %v15047_v17  ;;  %v12830_v17 = vcombine.high %v8994_v7, %v8998_v11  ;;  %v12879_v56 = vcombine.low %v9043_v19, %v9047_v8 }
 0xaa2   :  { %11099 = vmatpush1.bf16.msra.mxu0 %v12823_v15  ;;  %v9051_v15 = vld [vmem:[#allocation28 + $0x2c8] sm:$0xff] }
 0xaa4   :  { %13593 = vmatpush3.bf16.msra.mxu1 %v15048_v58  ;;  %v12832_v58 = vcombine.high %v8995_v47, %v8999_v40 }
 0xaa5   :  { %13600 = vmatprep.subr.bf16.mxu1 %v15049_v63  ;;  %v9002_v63 = vld [vmem:[#allocation28 + $0x140] sm:$0xff] }
 0xaa6   :  { %11100 = vmatprep.subr.bf16.mxu0 %v12832_v58  ;;  %v9055_v58 = vld [vmem:[#allocation28 + $0x2e8] sm:$0xff] }
 0xaa7   :  { %8838 = vmatmul.mubr.bf16.vlgmr.msra.gmra.mrb[76].mxu1 %v13231_v28  ;;  %v9007_v28 = vld [vmem:[#allocation28 + $0x168] sm:$0xff] }
 0xaa8   :  { %13601 = vmatpush3.bf16.msra.mxu1 %v15050_v26  ;;  %8877 = vmatprep.mubr.bf16.mxu1 %v13234_v55  ;;  %v9006_v26 = vld [vmem:[#allocation28 + $0x160] sm:$0xff]  ;;  %v9003_v55 = vld [vmem:[#allocation28 + $0x148] sm:$0xff] }
 0xaa9   :  { %13602 = vmatprep.subr.bf16.mxu1 %v15051_v49  ;;  %v12829_v49 = vcombine.low %v8994_v7, %v8998_v11  ;;  %v12880_v7 = vcombine.high %v9043_v19, %v9047_v8  ;;  %v15597_v11 = vmov 1966171168  }
 0xaac   :  { %13603 = vmatpush3.bf16.msra.mxu1 %v15052_v14  ;;  %v12831_v14 = vcombine.low %v8995_v47, %v8999_v40  ;;  %v8906_v47 = vunpack.c.l.s4 %v15597_v11  ;;  %v9050_v40 = vld [vmem:[#allocation28 + $0x2c0] sm:$0xff] }
 0xaad   :  { %13604 = vmatprep.subr.bf16.mxu1 %v15053_v33  ;;  %v12838_v33 = vcombine.high %v9002_v63, %v9006_v26 }
 0xaae   :  { %11101 = vmatpush1.bf16.msra.mxu0 %v12831_v14 }
 0xab0   :  { %13605 = vmatpush3.bf16.msra.mxu1 %v15054_v30  ;;  %v12840_v30 = vcombine.high %v9003_v55, %v9007_v28 }
 0xab1   :  { %13606 = vmatprep.subr.bf16.mxu1 %v15055_v25  ;;  %v9010_v25 = vld [vmem:[#allocation28 + $0x180] sm:$0xff] }
 0xab2   :  { %11102 = vmatprep.subr.bf16.mxu0 %v12840_v30  ;;  %v9062_v30 = vld [vmem:[#allocation28 + $0x320] sm:$0xff] }
 0xab4   :  { %13607 = vmatpush3.bf16.msra.mxu1 %v15056_v32  ;;  %v9014_v32 = vld [vmem:[#allocation28 + $0x1a0] sm:$0xff] }
 0xab5   :  { %13608 = vmatprep.subr.bf16.mxu1 %v15057_v23  ;;  %v9011_v23 = vld [vmem:[#allocation28 + $0x188] sm:$0xff] }
 0xab8   :  { %13609 = vmatpush3.bf16.msra.mxu1 %v15058_v10  ;;  %v9015_v10 = vld [vmem:[#allocation28 + $0x1a8] sm:$0xff] }
 0xab9   :  { %13610 = vmatprep.subr.bf16.mxu1 %v15059_v29  ;;  %v12837_v29 = vcombine.low %v9002_v63, %v9006_v26  ;;  %v8907_v63 = vunpack.c.0.s8 %v8906_v47 }
 0xabc   :  { %13611 = vmatpush3.bf16.msra.mxu1 %v15060_v53  ;;  %v12839_v53 = vcombine.low %v9003_v55, %v9007_v28  ;;  %v12887_v55 = vcombine.low %v9051_v15, %v9055_v58  ;;  %v12888_v28 = vcombine.high %v9051_v15, %v9055_v58  ;;  %v12736_v15 = vld [vmem:[#allocation26] ss:$0 sm:$0xff] }
 0xabd   :  { %13612 = vmatprep.subr.bf16.mxu1 %v15061_v39  ;;  %v12846_v39 = vcombine.high %v9010_v25, %v9014_v32 }
 0xabe   :  { %11103 = vmatpush1.bf16.msra.mxu0 %v12839_v53 }
 0xac0   :  { %13613 = vmatpush3.bf16.msra.mxu1 %v15062_v31  ;;  %v12848_v31 = vcombine.high %v9011_v23, %v9015_v10 }
 0xac1   :  { %13614 = vmatprep.subr.bf16.mxu1 %v15063_v4  ;;  %v12845_v4 = vcombine.low %v9010_v25, %v9014_v32  ;;  %v9059_v25 = vld [vmem:[#allocation28 + $0x308] sm:$0xff] }
 0xac2   :  { %11104 = vmatprep.subr.bf16.mxu0 %v12848_v31 }
 0xac4   :  { %13615 = vmatpush3.bf16.msra.mxu1 %v15064_v34  ;;  %v12847_v34 = vcombine.low %v9011_v23, %v9015_v10  ;;  %v9063_v23 = vld [vmem:[#allocation28 + $0x328] sm:$0xff] }
 0xac5   :  { %10969 = vmatprep.subr.bf16.mxu1 %v12798_v62  ;;  %v9023_v62 = vld [vmem:[#allocation28 + $0x1e8] sm:$0xff]  ;;  %v12896_v31 = vcombine.high %v9059_v25, %v9063_v23 }
 0xac6   :  { %11105 = vmatpush1.bf16.msra.mxu0 %v12847_v34  ;;  %v12856_v46 = vcombine.high %v9019_v20, %v9023_v62  ;;  %v9070_v34 = vld [vmem:[#allocation28 + $0x360] sm:$0xff] }
 0xac7   :  { %8878 = vmatmul.mubr.bf16.vlgmr.msra.gmra.mrb[80].mxu1 %v13233_v12  ;;  %v9018_v12 = vld [vmem:[#allocation28 + $0x1c0] sm:$0xff] }
 0xac8   :  { %10970 = vmatpush1.bf16.msra.mxu1 %v12797_v51  ;;  %v12854_v36 = vcombine.high %v9018_v12, %v9022_v27  ;;  %v12853_v60 = vcombine.low %v9018_v12, %v9022_v27  ;;  %v12855_v51 = vcombine.low %v9019_v20, %v9023_v62  ;;  %11106 = vmatprep.subr.bf16.mxu0 %v12856_v46  ;;  %v9067_v12 = vld [vmem:[#allocation28 + $0x348] sm:$0xff]  ;;  %v9078_v62 = vld [vmem:[#allocation28 + $0x3a0] sm:$0xff] }
 0xac9   :  { %10971 = vmatprep.subr.bf16.mxu1 %v12806_v24  ;;  %v12861_v24 = vcombine.low %v9026_v21, %v9030_v48  ;;  %v9071_v20 = vld [vmem:[#allocation28 + $0x368] sm:$0xff] }
 0xaca   :  { %11107 = vmatpush1.bf16.msra.mxu0 %v12855_v51  ;;  %v12904_v46 = vcombine.high %v9067_v12, %v9071_v20  ;;  %v9075_v21 = vld [vmem:[#allocation28 + $0x388] sm:$0xff] }
 0xacb   :  { %v9079_v48 = vld [vmem:[#allocation28 + $0x3a8] sm:$0xff] }
 0xacc   :  { %10972 = vmatpush1.bf16.msra.mxu1 %v12805_v52  ;;  %v9031_v52 = vld [vmem:[#allocation28 + $0x228] sm:$0xff]  ;;  %v12911_v22 = vcombine.low %v9075_v21, %v9079_v48 }
 0xacd   :  { %10973 = vmatprep.subr.bf16.mxu1 %v12814_v37  ;;  %v12863_v57 = vcombine.low %v9027_v50, %v9031_v52  ;;  %v12864_v16 = vcombine.high %v9027_v50, %v9031_v52  ;;  %v12870_v37 = vcombine.high %v9034_v1, %v9038_v3  ;;  %v12903_v50 = vcombine.low %v9067_v12, %v9071_v20  ;;  %v9087_v1 = vld [vmem:[#allocation28 + $0x3e8] sm:$0xff] }
 0xace   :  { %v12912_v52 = vcombine.high %v9075_v21, %v9079_v48  ;;  %v9103_v21 = vld [vmem:[#allocation28 + $0x468] sm:$0xff] }
 0xacf   :  { %11108 = vmatprep.subr.bf16.mxu0 %v12864_v16  ;;  %v9083_v16 = vld [vmem:[#allocation28 + $0x3c8] sm:$0xff] }
 0xad0   :  { %10974 = vmatpush1.bf16.msra.mxu1 %v12813_v35  ;;  %11109 = vmatpush1.bf16.msra.mxu0 %v12863_v57  ;;  %v12878_v35 = vcombine.high %v9042_v18, %v9046_v6  ;;  %v9086_v57 = vld [vmem:[#allocation28 + $0x3e0] sm:$0xff]  ;;  %v12920_v38 = vcombine.high %v9083_v16, %v9087_v1 }
 0xad1   :  { %10975 = vmatprep.subr.bf16.mxu1 %v12822_v41  ;;  %11110 = vmatprep.subr.bf16.mxu0 %v12872_v13  ;;  %v12877_v41 = vcombine.low %v9042_v18, %v9046_v6  ;;  %v9090_v13 = vld [vmem:[#allocation28 + $0x400] sm:$0xff]  ;;  %v9091_v6 = vld [vmem:[#allocation28 + $0x408] sm:$0xff] }
 0xad2   :  { %v9094_v18 = vld [vmem:[#allocation28 + $0x420] sm:$0xff] }
 0xad3   :  { %v12926_v19 = vcombine.high %v9090_v13, %v9094_v18  ;;  %v12925_v8 = vcombine.low %v9090_v13, %v9094_v18  ;;  %v9118_v13 = vld [vmem:[#allocation28 + $0x4e0] sm:$0xff]  ;;  %v9115_v18 = vld [vmem:[#allocation28 + $0x4c8] sm:$0xff] }
 0xad4   :  { %10976 = vmatpush1.bf16.msra.mxu1 %v12821_v9  ;;  %11111 = vmatpush1.bf16.msra.mxu0 %v12871_v2  ;;  %v9054_v9 = vld [vmem:[#allocation28 + $0x2e0] sm:$0xff]  ;;  %v12919_v2 = vcombine.low %v9083_v16, %v9087_v1  ;;  %v9107_v1 = vld [vmem:[#allocation28 + $0x488] sm:$0xff] }
 0xad5   :  { %10977 = vmatprep.subr.bf16.mxu1 %v12830_v17  ;;  %11112 = vmatprep.subr.bf16.mxu0 %v12880_v7  ;;  %v12886_v17 = vcombine.high %v9050_v40, %v9054_v9  ;;  %v12885_v26 = vcombine.low %v9050_v40, %v9054_v9  ;;  %v9110_v16 = vld [vmem:[#allocation28 + $0x4a0] sm:$0xff] }
 0xad8   :  { %10978 = vmatpush1.bf16.msra.mxu1 %v12829_v49  ;;  %11113 = vmatpush1.bf16.msra.mxu0 %v12879_v56  ;;  %v12791_v49 = vld.sshfl [vmem:[#allocation11] sm:$0x33 pattern:$0x76325410] }
 0xad9   :  { %10979 = vmatprep.subr.bf16.mxu1 %v12838_v33  ;;  %v8897_v14 = vcombine.high %v12791_v49, %v12791_v49  ;;  %11114 = vmatprep.subr.bf16.mxu0 %v12888_v28  ;;  %v9058_v33 = vld [vmem:[#allocation28 + $0x300] sm:$0xff] }
 0xada   :  { %v12894_v32 = vcombine.high %v9058_v33, %v9062_v30  ;;  %v12893_v53 = vcombine.low %v9058_v33, %v9062_v30 }
 0xadb   :  { %v12792_v10 = vpack.c.bf16 %v8897_v14, %v12791_v49 }
 0xadc   :  { %10980 = vmatpush1.bf16.msra.mxu1 %v12837_v29  ;;  %11115 = vmatpush1.bf16.msra.mxu0 %v12887_v55  ;;  %v16478_v29 = vsub.s32 %v8907_v63, %v16101_v44 }
 0xadd   :  { %10981 = vmatprep.subr.bf16.mxu1 %v12846_v39  ;;  %v12895_v39 = vcombine.low %v9059_v25, %v9063_v23  ;;  %11116 = vmatprep.subr.bf16.mxu0 %v12896_v31 }
 0xae0   :  { %10982 = vmatpush1.bf16.msra.mxu1 %v12845_v4  ;;  %v9066_v4 = vld [vmem:[#allocation28 + $0x340] sm:$0xff]  ;;  %11117 = vmatpush1.bf16.msra.mxu0 %v12895_v39 }
 0xae1   :  { %10983 = vmatprep.subr.bf16.mxu1 %v12854_v36  ;;  %v12902_v27 = vcombine.high %v9066_v4, %v9070_v34  ;;  %v9074_v36 = vld [vmem:[#allocation28 + $0x380] sm:$0xff]  ;;  %v12901_v51 = vcombine.low %v9066_v4, %v9070_v34  ;;  %11118 = vmatprep.subr.bf16.mxu0 %v12904_v46  ;;  %v9099_v46 = vld [vmem:[#allocation28 + $0x448] sm:$0xff] }
 0xae2   :  { %v12909_v3 = vcombine.low %v9074_v36, %v9078_v62 }
 0xae4   :  { %10984 = vmatpush1.bf16.msra.mxu1 %v12853_v60  ;;  %v8911_v60 = vrot.slane %v12792_v10, %v16478_v29  ;;  %11119 = vmatpush1.bf16.msra.mxu0 %v12903_v50 }
 0xae5   :  { %10985 = vmatprep.subr.bf16.mxu1 %v12862_v43  ;;  %v12910_v43 = vcombine.high %v9074_v36, %v9078_v62  ;;  %11120 = vmatprep.subr.bf16.mxu0 %v12912_v52 }
 0xae6   :  { %12793 = vst.sshfl [vmem:[#allocation10] sm:$0x5 pattern:$0x73625140] %v8911_v60  ;;  %v9098_v60 = vld [vmem:[#allocation28 + $0x440] sm:$0xff] }
 0xae8   :  { %10986 = vmatpush1.bf16.msra.mxu1 %v12861_v24  ;;  %v9082_v24 = vld [vmem:[#allocation28 + $0x3c0] sm:$0xff]  ;;  %11121 = vmatpush1.bf16.msra.mxu0 %v12911_v22 }
 0xae9   :  { %10987 = vmatprep.subr.bf16.mxu1 %v12870_v37  ;;  %v12918_v37 = vcombine.high %v9082_v24, %v9086_v57  ;;  %11122 = vmatprep.subr.bf16.mxu0 %v12920_v38 }
 0xaec   :  { %10988 = vmatpush1.bf16.msra.mxu1 %v12869_v54  ;;  %v12917_v54 = vcombine.low %v9082_v24, %v9086_v57  ;;  %11123 = vmatpush1.bf16.msra.mxu0 %v12919_v2  ;;  %v12936_v57 = vcombine.high %v9099_v46, %v9103_v21  ;;  %v9114_v2 = vld [vmem:[#allocation28 + $0x4c0] sm:$0xff] }
 0xaed   :  { %10989 = vmatprep.subr.bf16.mxu1 %v12878_v35  ;;  %v9095_v35 = vld [vmem:[#allocation28 + $0x428] sm:$0xff] }
 0xaee   :  { %v12928_v56 = vcombine.high %v9091_v6, %v9095_v35 }
 0xaf0   :  { %10990 = vmatpush1.bf16.msra.mxu1 %v12877_v41  ;;  %v12927_v41 = vcombine.low %v9091_v6, %v9095_v35  ;;  %11133 = vmatprep.subr.bf16.mxu0 %v12928_v56  ;;  %v9119_v6 = vld [vmem:[#allocation28 + $0x4e8] sm:$0xff]  ;;  %v9122_v56 = vld [vmem:[#allocation28 + $0x500] sm:$0xff] }
 0xaf1   :  { %10991 = vmatprep.subr.bf16.mxu1 %v12886_v17 }
 0xaf4   :  { %10992 = vmatpush1.bf16.msra.mxu1 %v12885_v26 }
 0xaf5   :  { %10993 = vmatprep.subr.bf16.mxu1 %v12894_v32 }
 0xaf8   :  { %10994 = vmatpush1.bf16.msra.mxu1 %v12893_v53 }
 0xaf9   :  { %10995 = vmatprep.subr.bf16.mxu1 %v12902_v27 }
 0xafc   :  { %10996 = vmatpush1.bf16.msra.mxu1 %v12901_v51  ;;  %v9102_v51 = vld [vmem:[#allocation28 + $0x460] sm:$0xff] }
 0xafd   :  { %10997 = vmatprep.subr.bf16.mxu1 %v12910_v43  ;;  %v9106_v43 = vld [vmem:[#allocation28 + $0x480] sm:$0xff]  ;;  %v12934_v24 = vcombine.high %v9098_v60, %v9102_v51  ;;  %v12933_v22 = vcombine.low %v9098_v60, %v9102_v51 }
 0xafe   :  { %v12942_v38 = vcombine.high %v9106_v43, %v9110_v16 }
 0xb00   :  { %10998 = vmatpush1.bf16.msra.mxu1 %v12909_v3  ;;  %v9111_v3 = vld [vmem:[#allocation28 + $0x4a8] sm:$0xff] }
 0xb01   :  { %10999 = vmatprep.subr.bf16.mxu1 %v12918_v37  ;;  %v12935_v37 = vcombine.low %v9099_v46, %v9103_v21  ;;  %v12943_v35 = vcombine.low %v9107_v1, %v9111_v3  ;;  %v9154_v46 = vld [vmem:[#allocation28 + $0x600] sm:$0xff] }
 0xb02   :  { %v9158_v21 = vld [vmem:[#allocation28 + $0x620] sm:$0xff] }
 0xb04   :  { %11000 = vmatpush1.bf16.msra.mxu1 %v12917_v54  ;;  %v12944_v54 = vcombine.high %v9107_v1, %v9111_v3  ;;  %v12990_v1 = vcombine.high %v9154_v46, %v9158_v21 }
 0xb05   :  { %11010 = vmatprep.subr.bf16.mxu1 %v12926_v19  ;;  %v12941_v19 = vcombine.low %v9106_v43, %v9110_v16  ;;  %v9155_v43 = vld [vmem:[#allocation28 + $0x608] sm:$0xff] }
 0xb5a   :  { %v13572_v7 = vpop.f32.mrb[72].mxu1 }
 0xb5b   :  { %v13573_v11 = vpop.f32.mrb[73].mxu1 }
 0xb5c   :  { %v13574_v47 = vadd.f32 %v13573_v11, %v13572_v7  ;;  %v13575_v40 = vpop.f32.mrb[74].mxu1  ;;  %v9126_v7 = vld [vmem:[#allocation28 + $0x520] sm:$0xff]  ;;  %v9123_v11 = vld [vmem:[#allocation28 + $0x508] sm:$0xff] }
 0xb5d   :  { %v13576_v9 = vpop.f32.mrb[75].mxu1  ;;  %v12949_v40 = vcombine.low %v9114_v2, %v9118_v13 }
 0xb5e   :  { %v8800_v63 = vadd.f32 %v13574_v47, %v12736_v15  ;;  %v9127_v47 = vld [vmem:[#allocation28 + $0x528] sm:$0xff]  ;;  %v12951_v9 = vcombine.low %v9115_v18, %v9119_v6  ;;  %v12958_v15 = vcombine.high %v9122_v56, %v9126_v7 }
 0xb7a   :  { %v13594_v17 = vpop.f32.mrb[76].mxu1 }
 0xb7b   :  { %v13595_v58 = vpop.f32.mrb[77].mxu1 }
 0xb7c   :  { %v13596_v26 = vadd.f32 %v13595_v58, %v13594_v17  ;;  %v13597_v55 = vpop.f32.mrb[78].mxu1  ;;  %v12960_v17 = vcombine.high %v9123_v11, %v9127_v47  ;;  %v9130_v58 = vld [vmem:[#allocation28 + $0x540] sm:$0xff] }
 0xb7d   :  { %v13598_v28 = vpop.f32.mrb[79].mxu1  ;;  %v9135_v55 = vld [vmem:[#allocation28 + $0x568] sm:$0xff] }
 0xb7e   :  { %v8840_v49 = vadd.f32 %v13596_v26, %v8800_v63  ;;  %v9134_v63 = vld [vmem:[#allocation28 + $0x560] sm:$0xff]  ;;  %v9131_v26 = vld [vmem:[#allocation28 + $0x548] sm:$0xff]  ;;  %v12957_v28 = vcombine.low %v9122_v56, %v9126_v7 }
 0xb9a   :  { %v13616_v14 = vpop.f32.mrb[80].mxu1 }
 0xb9b   :  { %v13617_v33 = vpop.f32.mrb[81].mxu1 }
 0xb9c   :  { %v13618_v30 = vadd.f32 %v13617_v33, %v13616_v14  ;;  %v13619_v25 = vpop.f32.mrb[82].mxu1  ;;  %v12966_v14 = vcombine.high %v9130_v58, %v9134_v63  ;;  %v12968_v33 = vcombine.high %v9131_v26, %v9135_v55 }
 0xb9d   :  { %v13620_v32 = vpop.f32.mrb[83].mxu1  ;;  %v9142_v25 = vld [vmem:[#allocation28 + $0x5a0] sm:$0xff] }
 0xb9e   :  { %v8880_v23 = vadd.f32 %v13618_v30, %v8840_v49  ;;  %v12959_v49 = vcombine.low %v9123_v11, %v9127_v47  ;;  %v9138_v30 = vld [vmem:[#allocation28 + $0x580] sm:$0xff]  ;;  %v9139_v32 = vld [vmem:[#allocation28 + $0x588] sm:$0xff] }
 0xba0   :  { %v8885_v10 = vmax.f32 %v8880_v23, 0.0  ;;  %v9143_v23 = vld [vmem:[#allocation28 + $0x5a8] sm:$0xff] }
 0xba2   :  { %v8886_v53 = vpack.c.bf16 %v8885_v10, %v8885_v10  ;;  %v12965_v10 = vcombine.low %v9130_v58, %v9134_v63 }
 0xba4   :  { %8887 = vst [vmem:[#allocation9] sm:$0xf] %v8886_v53  ;;  %v12967_v53 = vcombine.low %v9131_v26, %v9135_v55 }
 0xbab   :  { %v8921_v39 = vld [vmem:[#allocation9] sm:$0x1]  ;;  %v12794_v31 = vld.sshfl [vmem:[#allocation9] sm:$0x10 pattern:$0x75316420] }
 0xbac   :  { %8922 = vst [vmem:[#allocation10 + $0x2] sm:$0x1] %v8921_v39  ;;  %v8932_v4 = vcombine.high %v12794_v31, %v12794_v31  ;;  %v12796_v34 = vld.sshfl [vmem:[#allocation9] sm:$0x2 pattern:$0x75316420]  ;;  %v12974_v39 = vcombine.high %v9138_v30, %v9142_v25  ;;  %v12976_v31 = vcombine.high %v9139_v32, %v9143_v23 }
 0xbad   :  { %v8957_v12 = vrot.slane %v12796_v34, %v16478_v29  ;;  %v9150_v34 = vld [vmem:[#allocation28 + $0x5e0] sm:$0xff] }
 0xbae   :  { %12795 = vst.sshfl [vmem:[#allocation10 + $0x3] sm:$0x1 pattern:$0x73625140] %v8932_v4  ;;  %v9146_v4 = vld [vmem:[#allocation28 + $0x5c0] sm:$0xff] }
 0xbaf   :  { %v8958_v27 = vcombine.high %v8957_v12, %v8957_v12  ;;  %v9147_v12 = vld [vmem:[#allocation28 + $0x5c8] sm:$0xff]  ;;  %v12982_v60 = vcombine.high %v9146_v4, %v9150_v34 }
 0xbb1   :  { %8960 = vst [vmem:[#allocation10 + $0x4] sm:$0x1] %v8958_v27  ;;  %v9151_v27 = vld [vmem:[#allocation28 + $0x5e8] sm:$0xff] }
 0xbb2   :  { %v12984_v51 = vcombine.high %v9147_v12, %v9151_v27  ;;  %v12983_v16 = vcombine.low %v9147_v12, %v9151_v27 }
 0xbb8   :  { %v16482_v20 = vld [vmem:[#allocation10] sm:$0x1f] }
 0xbb9   :  { %v9332_v36 = vrot.slane %v16482_v20, %v16478_v29 }
 0xbbb   :  { %v9340_v62 = vcombine.high %v9332_v36, %v9332_v36  ;;  %v16490_v50 = vrot.slane %v9332_v36, %v16478_v29  ;;  %v12973_v36 = vcombine.low %v9138_v30, %v9142_v25 }
 0xbbd   :  { %v16487_v48 = vrot.slane %v9340_v62, %v16478_v29  ;;  %v12975_v62 = vcombine.low %v9139_v32, %v9143_v23 }
 0xbbf   :  { %11001 = vmatprep.mubr.bf16.mxu1 %v16487_v48  ;;  %11124 = vmatprep.mubr.bf16.mxu0 %v16487_v48  ;;  %v16496_v52 = vcombine.high %v16487_v48, %v16487_v48 }
 0xbc0   :  { %11002 = vmatmul.mubr.bf16.vlgmr.msra.gmra.mrb[84].mxu1 %v16490_v50  ;;  %11125 = vmatmul.mubr.bf16.vlgmr.msra.gmra.mrb[184].mxu0 %v16490_v50 }
 0xbc1   :  { %11011 = vmatpush1.bf16.msra.mxu1 %v12925_v8  ;;  %11134 = vmatpush1.bf16.msra.mxu0 %v12927_v41  ;;  %v12950_v8 = vcombine.high %v9114_v2, %v9118_v13  ;;  %v12952_v41 = vcombine.high %v9115_v18, %v9119_v6  ;;  %v12989_v2 = vcombine.low %v9154_v46, %v9158_v21 }
 0xbc2   :  { %11042 = vmatprep.mubr.bf16.mxu1 %v16496_v52  ;;  %11165 = vmatprep.mubr.bf16.mxu0 %v16496_v52 }
 0xbc3   :  { %11012 = vmatprep.subr.bf16.mxu1 %v12934_v24  ;;  %11135 = vmatprep.subr.bf16.mxu0 %v12936_v57  ;;  %v9159_v24 = vld [vmem:[#allocation28 + $0x628] sm:$0xff]  ;;  %v12981_v57 = vcombine.low %v9146_v4, %v9150_v34 }
 0xbc4   :  { %v12992_v3 = vcombine.high %v9155_v43, %v9159_v24  ;;  %v12991_v13 = vcombine.low %v9155_v43, %v9159_v24 }
 0xbc5   :  { %11013 = vmatpush1.bf16.msra.mxu1 %v12933_v22  ;;  %11136 = vmatpush1.bf16.msra.mxu0 %v12935_v37  ;;  %v9162_v22 = vld [vmem:[#allocation28 + $0x640] sm:$0xff] }
 0xbc6   :  { %11014 = vmatprep.subr.bf16.mxu1 %v12942_v38  ;;  %11137 = vmatprep.subr.bf16.mxu0 %v12944_v54  ;;  %v9166_v37 = vld [vmem:[#allocation28 + $0x660] sm:$0xff]  ;;  %v9163_v38 = vld [vmem:[#allocation28 + $0x648] sm:$0xff] }
 0xbc7   :  { %v9167_v54 = vld [vmem:[#allocation28 + $0x668] sm:$0xff]  ;;  %v12998_v18 = vcombine.high %v9162_v22, %v9166_v37  ;;  %v12997_v56 = vcombine.low %v9162_v22, %v9166_v37 }
 0xbc8   :  { %v13000_v6 = vcombine.high %v9163_v38, %v9167_v54  ;;  %v12999_v7 = vcombine.low %v9163_v38, %v9167_v54 }
 0xbc9   :  { %11015 = vmatpush1.bf16.msra.mxu1 %v12941_v19  ;;  %11138 = vmatpush1.bf16.msra.mxu0 %v12943_v35  ;;  %v9170_v19 = vld [vmem:[#allocation28 + $0x680] sm:$0xff] }
 0xbca   :  { %11016 = vmatprep.subr.bf16.mxu1 %v12950_v8  ;;  %11139 = vmatprep.subr.bf16.mxu0 %v12952_v41  ;;  %v9174_v35 = vld [vmem:[#allocation28 + $0x6a0] sm:$0xff]  ;;  %v9171_v8 = vld [vmem:[#allocation28 + $0x688] sm:$0xff] }
 0xbcb   :  { %v9175_v41 = vld [vmem:[#allocation28 + $0x6a8] sm:$0xff]  ;;  %v13006_v11 = vcombine.high %v9170_v19, %v9174_v35  ;;  %v13005_v58 = vcombine.low %v9170_v19, %v9174_v35 }
 0xbcc   :  { %v13008_v47 = vcombine.high %v9171_v8, %v9175_v41  ;;  %v13007_v63 = vcombine.low %v9171_v8, %v9175_v41 }
 0xbcd   :  { %11017 = vmatpush1.bf16.msra.mxu1 %v12949_v40  ;;  %11140 = vmatpush1.bf16.msra.mxu0 %v12951_v9  ;;  %v9178_v40 = vld [vmem:[#allocation28 + $0x6c0] sm:$0xff] }
 0xbce   :  { %11018 = vmatprep.subr.bf16.mxu1 %v12958_v15  ;;  %11141 = vmatprep.subr.bf16.mxu0 %v12960_v17  ;;  %v9182_v9 = vld [vmem:[#allocation28 + $0x6e0] sm:$0xff]  ;;  %v9179_v15 = vld [vmem:[#allocation28 + $0x6c8] sm:$0xff] }
 0xbcf   :  { %v9183_v17 = vld [vmem:[#allocation28 + $0x6e8] sm:$0xff]  ;;  %v13014_v26 = vcombine.high %v9178_v40, %v9182_v9  ;;  %v13013_v30 = vcombine.low %v9178_v40, %v9182_v9 }
 0xbd0   :  { %v13016_v55 = vcombine.high %v9179_v15, %v9183_v17  ;;  %v13015_v25 = vcombine.low %v9179_v15, %v9183_v17  ;;  %v16504_v15 = vcombine.high %v16490_v50, %v16490_v50 }
 0xbd1   :  { %11019 = vmatpush1.bf16.msra.mxu1 %v12957_v28  ;;  %11142 = vmatpush1.bf16.msra.mxu0 %v12959_v49  ;;  %v9186_v28 = vld [vmem:[#allocation28 + $0x700] sm:$0xff] }
 0xbd2   :  { %11020 = vmatprep.subr.bf16.mxu1 %v12966_v14  ;;  %11143 = vmatprep.subr.bf16.mxu0 %v12968_v33  ;;  %v9190_v49 = vld [vmem:[#allocation28 + $0x720] sm:$0xff]  ;;  %v9187_v14 = vld [vmem:[#allocation28 + $0x708] sm:$0xff] }
 0xbd3   :  { %v9191_v33 = vld [vmem:[#allocation28 + $0x728] sm:$0xff]  ;;  %v13022_v32 = vcombine.high %v9186_v28, %v9190_v49  ;;  %v13021_v4 = vcombine.low %v9186_v28, %v9190_v49 }
 0xbd4   :  { %v13024_v23 = vcombine.high %v9187_v14, %v9191_v33  ;;  %v13023_v34 = vcombine.low %v9187_v14, %v9191_v33  ;;  %v9239_v28 = vld [vmem:[#allocation28 + $0x8a8] sm:$0xff] }
 0xbd5   :  { %11021 = vmatpush1.bf16.msra.mxu1 %v12965_v10  ;;  %11144 = vmatpush1.bf16.msra.mxu0 %v12967_v53  ;;  %v9194_v10 = vld [vmem:[#allocation28 + $0x740] sm:$0xff] }
 0xbd6   :  { %11022 = vmatprep.subr.bf16.mxu1 %v12974_v39  ;;  %11145 = vmatprep.subr.bf16.mxu0 %v12976_v31  ;;  %v9198_v53 = vld [vmem:[#allocation28 + $0x760] sm:$0xff]  ;;  %v9195_v39 = vld [vmem:[#allocation28 + $0x748] sm:$0xff] }
 0xbd7   :  { %v9199_v31 = vld [vmem:[#allocation28 + $0x768] sm:$0xff]  ;;  %v13030_v12 = vcombine.high %v9194_v10, %v9198_v53  ;;  %v13029_v46 = vcombine.low %v9194_v10, %v9198_v53 }
 0xbd8   :  { %v13032_v27 = vcombine.high %v9195_v39, %v9199_v31  ;;  %v13031_v21 = vcombine.low %v9195_v39, %v9199_v31  ;;  %v9247_v10 = vld [vmem:[#allocation28 + $0x8e8] sm:$0xff] }
 0xbd9   :  { %11023 = vmatpush1.bf16.msra.mxu1 %v12973_v36  ;;  %11146 = vmatpush1.bf16.msra.mxu0 %v12975_v62  ;;  %v9202_v36 = vld [vmem:[#allocation28 + $0x780] sm:$0xff] }
 0xbda   :  { %11024 = vmatprep.subr.bf16.mxu1 %v12982_v60  ;;  %11147 = vmatprep.subr.bf16.mxu0 %v12984_v51  ;;  %v9206_v62 = vld [vmem:[#allocation28 + $0x7a0] sm:$0xff]  ;;  %v9203_v60 = vld [vmem:[#allocation28 + $0x788] sm:$0xff] }
 0xbdb   :  { %v9207_v51 = vld [vmem:[#allocation28 + $0x7a8] sm:$0xff]  ;;  %v13038_v43 = vcombine.high %v9202_v36, %v9206_v62  ;;  %v13037_v22 = vcombine.low %v9202_v36, %v9206_v62 }
 0xbdc   :  { %v13040_v24 = vcombine.high %v9203_v60, %v9207_v51  ;;  %v13039_v37 = vcombine.low %v9203_v60, %v9207_v51  ;;  %v9255_v36 = vld [vmem:[#allocation28 + $0x928] sm:$0xff] }
 0xbdd   :  { %11025 = vmatpush1.bf16.msra.mxu1 %v12981_v57  ;;  %11148 = vmatpush1.bf16.msra.mxu0 %v12983_v16  ;;  %v9210_v57 = vld [vmem:[#allocation28 + $0x7c0] sm:$0xff] }
 0xbde   :  { %11026 = vmatprep.subr.bf16.mxu1 %v12990_v1  ;;  %11149 = vmatprep.subr.bf16.mxu0 %v12992_v3  ;;  %v9214_v16 = vld [vmem:[#allocation28 + $0x7e0] sm:$0xff]  ;;  %v9211_v1 = vld [vmem:[#allocation28 + $0x7c8] sm:$0xff] }
 0xbdf   :  { %v9215_v3 = vld [vmem:[#allocation28 + $0x7e8] sm:$0xff]  ;;  %v13046_v38 = vcombine.high %v9210_v57, %v9214_v16  ;;  %v13045_v19 = vcombine.low %v9210_v57, %v9214_v16 }
 0xbe0   :  { %v13048_v54 = vcombine.high %v9211_v1, %v9215_v3  ;;  %v13047_v35 = vcombine.low %v9211_v1, %v9215_v3  ;;  %v9263_v57 = vld [vmem:[#allocation28 + $0x968] sm:$0xff] }
 0xbe1   :  { %11027 = vmatpush1.bf16.msra.mxu1 %v12989_v2  ;;  %11150 = vmatpush1.bf16.msra.mxu0 %v12991_v13  ;;  %v9218_v2 = vld [vmem:[#allocation28 + $0x800] sm:$0xff] }
 0xbe2   :  { %11028 = vmatprep.subr.bf16.mxu1 %v12998_v18  ;;  %11151 = vmatprep.subr.bf16.mxu0 %v13000_v6  ;;  %v9222_v13 = vld [vmem:[#allocation28 + $0x820] sm:$0xff]  ;;  %v9219_v18 = vld [vmem:[#allocation28 + $0x808] sm:$0xff] }
 0xbe3   :  { %v9223_v6 = vld [vmem:[#allocation28 + $0x828] sm:$0xff]  ;;  %v13054_v8 = vcombine.high %v9218_v2, %v9222_v13  ;;  %v13053_v40 = vcombine.low %v9218_v2, %v9222_v13 }
 0xbe4   :  { %v13056_v41 = vcombine.high %v9219_v18, %v9223_v6  ;;  %v13055_v9 = vcombine.low %v9219_v18, %v9223_v6  ;;  %v9271_v2 = vld [vmem:[#allocation28 + $0x9a8] sm:$0xff] }
 0xbe5   :  { %11029 = vmatpush1.bf16.msra.mxu1 %v12997_v56  ;;  %11152 = vmatpush1.bf16.msra.mxu0 %v12999_v7  ;;  %v9226_v56 = vld [vmem:[#allocation28 + $0x840] sm:$0xff] }
 0xbe6   :  { %11030 = vmatprep.subr.bf16.mxu1 %v13006_v11  ;;  %11153 = vmatprep.subr.bf16.mxu0 %v13008_v47  ;;  %v9230_v7 = vld [vmem:[#allocation28 + $0x860] sm:$0xff]  ;;  %v9227_v11 = vld [vmem:[#allocation28 + $0x848] sm:$0xff] }
 0xbe7   :  { %v9231_v47 = vld [vmem:[#allocation28 + $0x868] sm:$0xff]  ;;  %v13062_v17 = vcombine.high %v9226_v56, %v9230_v7  ;;  %v13061_v49 = vcombine.low %v9226_v56, %v9230_v7 }
 0xbe8   :  { %v13063_v14 = vcombine.low %v9227_v11, %v9231_v47  ;;  %v9279_v56 = vld [vmem:[#allocation28 + $0x9e8] sm:$0xff] }
 0xbe9   :  { %11031 = vmatpush1.bf16.msra.mxu1 %v13005_v58  ;;  %11154 = vmatpush1.bf16.msra.mxu0 %v13007_v63  ;;  %v13064_v58 = vcombine.high %v9227_v11, %v9231_v47  ;;  %v9234_v63 = vld [vmem:[#allocation28 + $0x880] sm:$0xff] }
 0xbea   :  { %11032 = vmatprep.subr.bf16.mxu1 %v13014_v26  ;;  %11155 = vmatprep.subr.bf16.mxu0 %v13016_v55  ;;  %v9238_v26 = vld [vmem:[#allocation28 + $0x8a0] sm:$0xff]  ;;  %v9235_v55 = vld [vmem:[#allocation28 + $0x888] sm:$0xff] }
 0xbeb   :  { %v13070_v33 = vcombine.high %v9234_v63, %v9238_v26  ;;  %v13069_v53 = vcombine.low %v9234_v63, %v9238_v26  ;;  %v13071_v39 = vcombine.low %v9235_v55, %v9239_v28  ;;  %v8965_v63 = vld [vmem:[#allocation28 + $0x18] sm:$0xff] }
 0xbec   :  { %v8969_v26 = vld [vmem:[#allocation28 + $0x38] sm:$0xff] }
 0xbed   :  { %11033 = vmatpush1.bf16.msra.mxu1 %v13013_v30  ;;  %11156 = vmatpush1.bf16.msra.mxu0 %v13015_v25  ;;  %v13072_v30 = vcombine.high %v9235_v55, %v9239_v28  ;;  %v9242_v25 = vld [vmem:[#allocation28 + $0x8c0] sm:$0xff] }
 0xbee   :  { %11034 = vmatprep.subr.bf16.mxu1 %v13022_v32  ;;  %11157 = vmatprep.subr.bf16.mxu0 %v13024_v23  ;;  %v9246_v32 = vld [vmem:[#allocation28 + $0x8e0] sm:$0xff]  ;;  %v9243_v23 = vld [vmem:[#allocation28 + $0x8c8] sm:$0xff] }
 0xbef   :  { %v13078_v31 = vcombine.high %v9242_v25, %v9246_v32  ;;  %v13077_v62 = vcombine.low %v9242_v25, %v9246_v32  ;;  %v13079_v60 = vcombine.low %v9243_v23, %v9247_v10  ;;  %v8976_v25 = vld [vmem:[#allocation28 + $0x70] sm:$0xff]  ;;  %v8973_v32 = vld [vmem:[#allocation28 + $0x58] sm:$0xff] }
 0xbf1   :  { %11035 = vmatpush1.bf16.msra.mxu1 %v13021_v4  ;;  %11158 = vmatpush1.bf16.msra.mxu0 %v13023_v34  ;;  %v13080_v4 = vcombine.high %v9243_v23, %v9247_v10  ;;  %v9250_v34 = vld [vmem:[#allocation28 + $0x900] sm:$0xff]  ;;  %v8977_v23 = vld [vmem:[#allocation28 + $0x78] sm:$0xff] }
 0xbf2   :  { %11036 = vmatprep.subr.bf16.mxu1 %v13030_v12  ;;  %11159 = vmatprep.subr.bf16.mxu0 %v13032_v27  ;;  %v9254_v12 = vld [vmem:[#allocation28 + $0x920] sm:$0xff]  ;;  %v9251_v27 = vld [vmem:[#allocation28 + $0x908] sm:$0xff] }
 0xbf3   :  { %v13086_v51 = vcombine.high %v9250_v34, %v9254_v12  ;;  %v13085_v16 = vcombine.low %v9250_v34, %v9254_v12  ;;  %v13087_v1 = vcombine.low %v9251_v27, %v9255_v36  ;;  %v8984_v34 = vld [vmem:[#allocation28 + $0xb0] sm:$0xff]  ;;  %v8981_v12 = vld [vmem:[#allocation28 + $0x98] sm:$0xff] }
 0xbf5   :  { %11037 = vmatpush1.bf16.msra.mxu1 %v13029_v46  ;;  %11160 = vmatpush1.bf16.msra.mxu0 %v13031_v21  ;;  %v13088_v46 = vcombine.high %v9251_v27, %v9255_v36  ;;  %v9258_v21 = vld [vmem:[#allocation28 + $0x940] sm:$0xff]  ;;  %v8985_v27 = vld [vmem:[#allocation28 + $0xb8] sm:$0xff] }
 0xbf6   :  { %11038 = vmatprep.subr.bf16.mxu1 %v13038_v43  ;;  %11161 = vmatprep.subr.bf16.mxu0 %v13040_v24  ;;  %v9262_v43 = vld [vmem:[#allocation28 + $0x960] sm:$0xff]  ;;  %v9259_v24 = vld [vmem:[#allocation28 + $0x948] sm:$0xff] }
 0xbf7   :  { %v13094_v3 = vcombine.high %v9258_v21, %v9262_v43  ;;  %v13093_v13 = vcombine.low %v9258_v21, %v9262_v43  ;;  %v13095_v18 = vcombine.low %v9259_v24, %v9263_v57  ;;  %v8989_v21 = vld [vmem:[#allocation28 + $0xd8] sm:$0xff] }
 0xbf8   :  { %v8993_v43 = vld [vmem:[#allocation28 + $0xf8] sm:$0xff] }
 0xbf9   :  { %11039 = vmatpush1.bf16.msra.mxu1 %v13037_v22  ;;  %11162 = vmatpush1.bf16.msra.mxu0 %v13039_v37  ;;  %v13096_v22 = vcombine.high %v9259_v24, %v9263_v57  ;;  %v9266_v37 = vld [vmem:[#allocation28 + $0x980] sm:$0xff]  ;;  %v12819_v57 = vcombine.low %v8981_v12, %v8985_v27 }
 0xbfa   :  { %11040 = vmatprep.subr.bf16.mxu1 %v13046_v38  ;;  %11163 = vmatprep.subr.bf16.mxu0 %v13048_v54  ;;  %v9270_v38 = vld [vmem:[#allocation28 + $0x9a0] sm:$0xff]  ;;  %v9267_v54 = vld [vmem:[#allocation28 + $0x988] sm:$0xff] }
 0xbfb   :  { %v13102_v6 = vcombine.high %v9266_v37, %v9270_v38  ;;  %v13101_v7 = vcombine.low %v9266_v37, %v9270_v38  ;;  %v13103_v11 = vcombine.low %v9267_v54, %v9271_v2  ;;  %v9001_v37 = vld [vmem:[#allocation28 + $0x138] sm:$0xff] }
 0xbfd   :  { %11041 = vmatpush1.bf16.msra.mxu1 %v13045_v19  ;;  %11164 = vmatpush1.bf16.msra.mxu0 %v13047_v35  ;;  %v13104_v19 = vcombine.high %v9267_v54, %v9271_v2  ;;  %v9274_v35 = vld [vmem:[#allocation28 + $0x9c0] sm:$0xff]  ;;  %v12827_v54 = vcombine.low %v8989_v21, %v8993_v43 }
 0xbfe   :  { %11051 = vmatprep.subr.bf16.mxu1 %v13054_v8  ;;  %11174 = vmatprep.subr.bf16.mxu0 %v13056_v41  ;;  %v9278_v8 = vld [vmem:[#allocation28 + $0x9e0] sm:$0xff]  ;;  %v9275_v41 = vld [vmem:[#allocation28 + $0x9c8] sm:$0xff] }
 0xbff   :  { %v13110_v47 = vcombine.high %v9274_v35, %v9278_v8  ;;  %v13109_v55 = vcombine.low %v9274_v35, %v9278_v8  ;;  %v13111_v28 = vcombine.low %v9275_v41, %v9279_v56  ;;  %v9009_v35 = vld [vmem:[#allocation28 + $0x178] sm:$0xff] }
 0xc00   :  { %11043 = vmatmul.mubr.bf16.vlgmr.msra.gmra.mrb[84].mxu1 %v16504_v15  ;;  %11166 = vmatmul.mubr.bf16.vlgmr.msra.gmra.mrb[184].mxu0 %v16504_v15 }
 0xc01   :  { %11052 = vmatpush1.bf16.msra.mxu1 %v13053_v40  ;;  %11175 = vmatpush1.bf16.msra.mxu0 %v13055_v9  ;;  %v13112_v40 = vcombine.high %v9275_v41, %v9279_v56  ;;  %v9325_v9 = vcombine.high %v16482_v20, %v16482_v20 }
 0xc02   :  { %11053 = vmatprep.subr.bf16.mxu1 %v13062_v17  ;;  %11176 = vmatprep.subr.bf16.mxu0 %v13064_v58  ;;  %v8964_v17 = vld [vmem:[#allocation28 + $0x10] sm:$0xff] }
 0xc03   :  { %11083 = vmatprep.mubr.bf16.mxu1 %v15594_v0  ;;  %11206 = vmatprep.mubr.bf16.mxu0 %v15594_v0  ;;  %v8968_v58 = vld [vmem:[#allocation28 + $0x30] sm:$0xff] }
 0xc04   :  { %v12801_v20 = vcombine.low %v8964_v17, %v8968_v58 }
 0xc05   :  { %11054 = vmatpush1.bf16.msra.mxu1 %v13061_v49  ;;  %11177 = vmatpush1.bf16.msra.mxu0 %v13063_v14  ;;  %v9339_v49 = vrot.slane %v9325_v9, %v16478_v29  ;;  %v12802_v14 = vcombine.high %v8964_v17, %v8968_v58  ;;  %v9017_v9 = vld [vmem:[#allocation28 + $0x1b8] sm:$0xff] }
 0xc06   :  { %11055 = vmatprep.subr.bf16.mxu1 %v13070_v33  ;;  %11178 = vmatprep.subr.bf16.mxu0 %v13072_v30  ;;  %v12804_v33 = vcombine.high %v8965_v63, %v8969_v26  ;;  %v8972_v30 = vld [vmem:[#allocation28 + $0x50] sm:$0xff] }
 0xc07   :  { %v16514_v10 = vrot.slane %v9339_v49, %v16478_v29  ;;  %v12809_v36 = vcombine.low %v8972_v30, %v8976_v25  ;;  %v12811_v29 = vcombine.low %v8973_v32, %v8977_v23  ;;  %v9021_v49 = vld [vmem:[#allocation28 + $0x1d8] sm:$0xff] }
 0xc09   :  { %11056 = vmatpush1.bf16.msra.mxu1 %v13069_v53  ;;  %11179 = vmatpush1.bf16.msra.mxu0 %v13071_v39  ;;  %v12803_v53 = vcombine.low %v8965_v63, %v8969_v26  ;;  %v12810_v39 = vcombine.high %v8972_v30, %v8976_v25 }
 0xc0a   :  { %11057 = vmatprep.subr.bf16.mxu1 %v13078_v31  ;;  %11180 = vmatprep.subr.bf16.mxu0 %v13080_v4  ;;  %v12812_v31 = vcombine.high %v8973_v32, %v8977_v23  ;;  %v8980_v4 = vld [vmem:[#allocation28 + $0x90] sm:$0xff] }
 0xc0b   :  { %v12817_v24 = vcombine.low %v8980_v4, %v8984_v34  ;;  %v9028_v23 = vld [vmem:[#allocation28 + $0x210] sm:$0xff] }
 0xc0d   :  { %11058 = vmatpush1.bf16.msra.mxu1 %v13077_v62  ;;  %11181 = vmatpush1.bf16.msra.mxu0 %v13079_v60  ;;  %v12818_v62 = vcombine.high %v8980_v4, %v8984_v34  ;;  %v12820_v60 = vcombine.high %v8981_v12, %v8985_v27  ;;  %v9036_v27 = vld [vmem:[#allocation28 + $0x250] sm:$0xff] }
 0xc0e   :  { %11059 = vmatprep.subr.bf16.mxu1 %v13086_v51  ;;  %11182 = vmatprep.subr.bf16.mxu0 %v13088_v46  ;;  %v8988_v51 = vld [vmem:[#allocation28 + $0xd0] sm:$0xff] }
 0xc0f   :  { %v8992_v46 = vld [vmem:[#allocation28 + $0xf0] sm:$0xff] }
 0xc10   :  { %v12825_v38 = vcombine.low %v8988_v51, %v8992_v46 }
 0xc11   :  { %11060 = vmatpush1.bf16.msra.mxu1 %v13085_v16  ;;  %11183 = vmatpush1.bf16.msra.mxu0 %v13087_v1  ;;  %v12826_v16 = vcombine.high %v8988_v51, %v8992_v46  ;;  %v12828_v1 = vcombine.high %v8989_v21, %v8993_v43  ;;  %v9044_v43 = vld [vmem:[#allocation28 + $0x290] sm:$0xff] }
 0xc12   :  { %11061 = vmatprep.subr.bf16.mxu1 %v13094_v3  ;;  %11184 = vmatprep.subr.bf16.mxu0 %v13096_v22  ;;  %v8996_v3 = vld [vmem:[#allocation28 + $0x110] sm:$0xff] }
 0xc13   :  { %v9000_v22 = vld [vmem:[#allocation28 + $0x130] sm:$0xff] }
 0xc14   :  { %v12834_v2 = vcombine.high %v8996_v3, %v9000_v22  ;;  %v12833_v8 = vcombine.low %v8996_v3, %v9000_v22 }
 0xc15   :  { %11062 = vmatpush1.bf16.msra.mxu1 %v13093_v13  ;;  %11185 = vmatpush1.bf16.msra.mxu0 %v13095_v18  ;;  %v9004_v18 = vld [vmem:[#allocation28 + $0x150] sm:$0xff] }
 0xc16   :  { %11063 = vmatprep.subr.bf16.mxu1 %v13102_v6  ;;  %11186 = vmatprep.subr.bf16.mxu0 %v13104_v19  ;;  %v9008_v6 = vld [vmem:[#allocation28 + $0x170] sm:$0xff]  ;;  %v9005_v19 = vld [vmem:[#allocation28 + $0x158] sm:$0xff] }
 0xc17   :  { %v12842_v56 = vcombine.high %v9004_v18, %v9008_v6  ;;  %v12841_v17 = vcombine.low %v9004_v18, %v9008_v6  ;;  %v12843_v58 = vcombine.low %v9005_v19, %v9009_v35 }
 0xc19   :  { %11064 = vmatpush1.bf16.msra.mxu1 %v13101_v7  ;;  %11187 = vmatpush1.bf16.msra.mxu0 %v13103_v11  ;;  %v12844_v7 = vcombine.high %v9005_v19, %v9009_v35  ;;  %v9012_v11 = vld [vmem:[#allocation28 + $0x190] sm:$0xff] }
 0xc1a   :  { %11065 = vmatprep.subr.bf16.mxu1 %v13110_v47  ;;  %11188 = vmatprep.subr.bf16.mxu0 %v13112_v40  ;;  %v9016_v47 = vld [vmem:[#allocation28 + $0x1b0] sm:$0xff]  ;;  %v9013_v40 = vld [vmem:[#allocation28 + $0x198] sm:$0xff] }
 0xc1b   :  { %v12850_v63 = vcombine.high %v9012_v11, %v9016_v47  ;;  %v12852_v26 = vcombine.high %v9013_v40, %v9017_v9  ;;  %v12851_v30 = vcombine.low %v9013_v40, %v9017_v9  ;;  %v9060_v35 = vld [vmem:[#allocation28 + $0x310] sm:$0xff] }
 0xc1c   :  { %v9068_v9 = vld [vmem:[#allocation28 + $0x350] sm:$0xff] }
 0xc1d   :  { %11066 = vmatpush1.bf16.msra.mxu1 %v13109_v55  ;;  %11189 = vmatpush1.bf16.msra.mxu0 %v13111_v28  ;;  %v9020_v55 = vld [vmem:[#allocation28 + $0x1d0] sm:$0xff] }
 0xc1e   :  { %11215 = vmatprep.subr.bf16.mxu1 %v12802_v14  ;;  %11338 = vmatprep.subr.bf16.mxu0 %v12804_v33  ;;  %v9024_v28 = vld [vmem:[#allocation28 + $0x1f0] sm:$0xff]  ;;  %v9025_v14 = vld [vmem:[#allocation28 + $0x1f8] sm:$0xff]  ;;  %v12849_v33 = vcombine.low %v9012_v11, %v9016_v47 }
 0xc1f   :  { %v12858_v25 = vcombine.high %v9020_v55, %v9024_v28  ;;  %v12860_v32 = vcombine.high %v9021_v49, %v9025_v14  ;;  %v12859_v4 = vcombine.low %v9021_v49, %v9025_v14  ;;  %v9076_v14 = vld [vmem:[#allocation28 + $0x390] sm:$0xff] }
 0xc20   :  { %11084 = vmatmul.mubr.bf16.vlgmr.msra.gmra.mrb[84].mxu1 %v16514_v10  ;;  %11207 = vmatmul.mubr.bf16.vlgmr.msra.gmra.mrb[184].mxu0 %v16514_v10 }
 0xc21   :  { %11216 = vmatpush1.bf16.msra.mxu1 %v12801_v20  ;;  %11247 = vmatprep.mubr.bf16.mxu1 %v16487_v48  ;;  %v9032_v20 = vld [vmem:[#allocation28 + $0x230] sm:$0xff] }
 0xc22   :  { %11339 = vmatpush1.bf16.msra.mxu0 %v12803_v53  ;;  %11370 = vmatprep.mubr.bf16.mxu0 %v16487_v48  ;;  %v8997_v48 = vld [vmem:[#allocation28 + $0x118] sm:$0xff]  ;;  %v12866_v34 = vcombine.high %v9028_v23, %v9032_v20 }
 0xc23   :  { %11217 = vmatprep.subr.bf16.mxu1 %v12810_v39  ;;  %11340 = vmatprep.subr.bf16.mxu0 %v12812_v31  ;;  %v12836_v13 = vcombine.high %v8997_v48, %v9001_v37  ;;  %v12835_v41 = vcombine.low %v8997_v48, %v9001_v37  ;;  %v9029_v53 = vld [vmem:[#allocation28 + $0x218] sm:$0xff]  ;;  %v12857_v31 = vcombine.low %v9020_v55, %v9024_v28  ;;  %v9052_v37 = vld [vmem:[#allocation28 + $0x2d0] sm:$0xff] }
 0xc24   :  { %v9033_v39 = vld [vmem:[#allocation28 + $0x238] sm:$0xff] }
 0xc25   :  { %11218 = vmatpush1.bf16.msra.mxu1 %v12809_v36  ;;  %v12868_v12 = vcombine.high %v9029_v53, %v9033_v39  ;;  %v9040_v36 = vld [vmem:[#allocation28 + $0x270] sm:$0xff]  ;;  %v12867_v51 = vcombine.low %v9029_v53, %v9033_v39 }
 0xc26   :  { %11341 = vmatpush1.bf16.msra.mxu0 %v12811_v29  ;;  %11219 = vmatprep.subr.bf16.mxu1 %v12818_v62  ;;  %v9037_v29 = vld [vmem:[#allocation28 + $0x258] sm:$0xff]  ;;  %v12874_v46 = vcombine.high %v9036_v27, %v9040_v36  ;;  %v9084_v39 = vld [vmem:[#allocation28 + $0x3d0] sm:$0xff] }
 0xc27   :  { %11342 = vmatprep.subr.bf16.mxu0 %v12820_v60  ;;  %v9041_v62 = vld [vmem:[#allocation28 + $0x278] sm:$0xff]  ;;  %v12865_v60 = vcombine.low %v9028_v23, %v9032_v20 }
 0xc28   :  { %v12876_v21 = vcombine.high %v9037_v29, %v9041_v62  ;;  %v12875_v3 = vcombine.low %v9037_v29, %v9041_v62  ;;  %v9092_v62 = vld [vmem:[#allocation28 + $0x410] sm:$0xff] }
 0xc29   :  { %11220 = vmatpush1.bf16.msra.mxu1 %v12817_v24  ;;  %v9048_v24 = vld [vmem:[#allocation28 + $0x2b0] sm:$0xff] }
 0xc2a   :  { %11343 = vmatpush1.bf16.msra.mxu0 %v12819_v57  ;;  %11221 = vmatprep.subr.bf16.mxu1 %v12826_v16  ;;  %v9045_v57 = vld [vmem:[#allocation28 + $0x298] sm:$0xff]  ;;  %v12882_v22 = vcombine.high %v9044_v43, %v9048_v24 }
 0xc2b   :  { %11344 = vmatprep.subr.bf16.mxu0 %v12828_v1  ;;  %v9049_v16 = vld [vmem:[#allocation28 + $0x2b8] sm:$0xff]  ;;  %v12873_v1 = vcombine.low %v9036_v27, %v9040_v36 }
 0xc2c   :  { %v12884_v48 = vcombine.high %v9045_v57, %v9049_v16  ;;  %v12883_v18 = vcombine.low %v9045_v57, %v9049_v16  ;;  %v9100_v16 = vld [vmem:[#allocation28 + $0x450] sm:$0xff] }
 0xc2d   :  { %11222 = vmatpush1.bf16.msra.mxu1 %v12825_v38  ;;  %v9056_v38 = vld [vmem:[#allocation28 + $0x2f0] sm:$0xff] }
 0xc2e   :  { %11345 = vmatpush1.bf16.msra.mxu0 %v12827_v54  ;;  %11223 = vmatprep.subr.bf16.mxu1 %v12834_v2  ;;  %v9053_v54 = vld [vmem:[#allocation28 + $0x2d8] sm:$0xff]  ;;  %v12890_v6 = vcombine.high %v9052_v37, %v9056_v38 }
 0xc2f   :  { %11346 = vmatprep.subr.bf16.mxu0 %v12836_v13  ;;  %v9057_v2 = vld [vmem:[#allocation28 + $0x2f8] sm:$0xff]  ;;  %v12881_v13 = vcombine.low %v9044_v43, %v9048_v24 }
 0xc30   :  { %v12892_v19 = vcombine.high %v9053_v54, %v9057_v2  ;;  %v12891_v11 = vcombine.low %v9053_v54, %v9057_v2  ;;  %v9108_v54 = vld [vmem:[#allocation28 + $0x490] sm:$0xff] }
 0xc31   :  { %11224 = vmatpush1.bf16.msra.mxu1 %v12833_v8  ;;  %v9064_v8 = vld [vmem:[#allocation28 + $0x330] sm:$0xff] }
 0xc32   :  { %11347 = vmatpush1.bf16.msra.mxu0 %v12835_v41  ;;  %11225 = vmatprep.subr.bf16.mxu1 %v12842_v56  ;;  %v9061_v41 = vld [vmem:[#allocation28 + $0x318] sm:$0xff]  ;;  %v12898_v47 = vcombine.high %v9060_v35, %v9064_v8  ;;  %v9112_v2 = vld [vmem:[#allocation28 + $0x4b0] sm:$0xff] }
 0xc33   :  { %11348 = vmatprep.subr.bf16.mxu0 %v12844_v7  ;;  %v9065_v56 = vld [vmem:[#allocation28 + $0x338] sm:$0xff]  ;;  %v12889_v7 = vcombine.low %v9052_v37, %v9056_v38 }
 0xc34   :  { %v12900_v40 = vcombine.high %v9061_v41, %v9065_v56  ;;  %v12899_v55 = vcombine.low %v9061_v41, %v9065_v56  ;;  %v9116_v56 = vld [vmem:[#allocation28 + $0x4d0] sm:$0xff] }
 0xc35   :  { %11226 = vmatpush1.bf16.msra.mxu1 %v12841_v17  ;;  %v9072_v17 = vld [vmem:[#allocation28 + $0x370] sm:$0xff] }
 0xc36   :  { %11349 = vmatpush1.bf16.msra.mxu0 %v12843_v58  ;;  %11227 = vmatprep.subr.bf16.mxu1 %v12850_v63  ;;  %v9069_v58 = vld [vmem:[#allocation28 + $0x358] sm:$0xff]  ;;  %v12906_v28 = vcombine.high %v9068_v9, %v9072_v17 }
 0xc37   :  { %11350 = vmatprep.subr.bf16.mxu0 %v12852_v26  ;;  %v9073_v63 = vld [vmem:[#allocation28 + $0x378] sm:$0xff]  ;;  %v12897_v26 = vcombine.low %v9060_v35, %v9064_v8  ;;  %v12946_v8 = vcombine.high %v9108_v54, %v9112_v2 }
 0xc38   :  { %v12908_v49 = vcombine.high %v9069_v58, %v9073_v63  ;;  %v12907_v23 = vcombine.low %v9069_v58, %v9073_v63  ;;  %v9124_v58 = vld [vmem:[#allocation28 + $0x510] sm:$0xff] }
 0xc39   :  { %11228 = vmatpush1.bf16.msra.mxu1 %v12849_v33  ;;  %v9080_v33 = vld [vmem:[#allocation28 + $0x3b0] sm:$0xff] }
 0xc3a   :  { %11351 = vmatpush1.bf16.msra.mxu0 %v12851_v30  ;;  %11229 = vmatprep.subr.bf16.mxu1 %v12858_v25  ;;  %v9077_v30 = vld [vmem:[#allocation28 + $0x398] sm:$0xff]  ;;  %v12914_v20 = vcombine.high %v9076_v14, %v9080_v33  ;;  %v9128_v63 = vld [vmem:[#allocation28 + $0x530] sm:$0xff] }
 0xc3b   :  { %11352 = vmatprep.subr.bf16.mxu0 %v12860_v32  ;;  %v9081_v25 = vld [vmem:[#allocation28 + $0x3b8] sm:$0xff]  ;;  %v12905_v32 = vcombine.low %v9068_v9, %v9072_v17 }
 0xc3c   :  { %v12916_v53 = vcombine.high %v9077_v30, %v9081_v25  ;;  %v12915_v27 = vcombine.low %v9077_v30, %v9081_v25  ;;  %v9136_v30 = vld [vmem:[#allocation28 + $0x570] sm:$0xff]  ;;  %v9133_v25 = vld [vmem:[#allocation28 + $0x558] sm:$0xff] }
 0xc3d   :  { %11230 = vmatpush1.bf16.msra.mxu1 %v12857_v31  ;;  %v9088_v31 = vld [vmem:[#allocation28 + $0x3f0] sm:$0xff] }
 0xc3e   :  { %11353 = vmatpush1.bf16.msra.mxu0 %v12859_v4  ;;  %11231 = vmatprep.subr.bf16.mxu1 %v12866_v34  ;;  %v9085_v4 = vld [vmem:[#allocation28 + $0x3d8] sm:$0xff]  ;;  %v12922_v36 = vcombine.high %v9084_v39, %v9088_v31 }
 0xc3f   :  { %11354 = vmatprep.subr.bf16.mxu0 %v12868_v12  ;;  %v9089_v34 = vld [vmem:[#allocation28 + $0x3f8] sm:$0xff]  ;;  %v12913_v12 = vcombine.low %v9076_v14, %v9080_v33  ;;  %v9132_v33 = vld [vmem:[#allocation28 + $0x550] sm:$0xff] }
 0xc40   :  { %v12924_v29 = vcombine.high %v9085_v4, %v9089_v34  ;;  %v12923_v43 = vcombine.low %v9085_v4, %v9089_v34  ;;  %v9144_v4 = vld [vmem:[#allocation28 + $0x5b0] sm:$0xff]  ;;  %v9141_v34 = vld [vmem:[#allocation28 + $0x598] sm:$0xff] }
 0xc41   :  { %11232 = vmatpush1.bf16.msra.mxu1 %v12865_v60  ;;  %v9096_v60 = vld [vmem:[#allocation28 + $0x430] sm:$0xff] }
 0xc42   :  { %11355 = vmatpush1.bf16.msra.mxu0 %v12867_v51  ;;  %11233 = vmatprep.subr.bf16.mxu1 %v12874_v46  ;;  %v9093_v51 = vld [vmem:[#allocation28 + $0x418] sm:$0xff]  ;;  %v12930_v24 = vcombine.high %v9092_v62, %v9096_v60 }
 0xc43   :  { %11356 = vmatprep.subr.bf16.mxu0 %v12876_v21  ;;  %v9097_v46 = vld [vmem:[#allocation28 + $0x438] sm:$0xff]  ;;  %v12921_v21 = vcombine.low %v9084_v39, %v9088_v31  ;;  %v9140_v31 = vld [vmem:[#allocation28 + $0x590] sm:$0xff] }
 0xc44   :  { %v12932_v57 = vcombine.high %v9093_v51, %v9097_v46  ;;  %v12931_v37 = vcombine.low %v9093_v51, %v9097_v46  ;;  %v9152_v51 = vld [vmem:[#allocation28 + $0x5f0] sm:$0xff]  ;;  %v9149_v46 = vld [vmem:[#allocation28 + $0x5d8] sm:$0xff] }
 0xc45   :  { %11234 = vmatpush1.bf16.msra.mxu1 %v12873_v1  ;;  %v9104_v1 = vld [vmem:[#allocation28 + $0x470] sm:$0xff] }
 0xc46   :  { %11357 = vmatpush1.bf16.msra.mxu0 %v12875_v3  ;;  %11235 = vmatprep.subr.bf16.mxu1 %v12882_v22  ;;  %v12929_v3 = vcombine.low %v9092_v62, %v9096_v60  ;;  %v9101_v22 = vld [vmem:[#allocation28 + $0x458] sm:$0xff]  ;;  %v12938_v38 = vcombine.high %v9100_v16, %v9104_v1  ;;  %v9148_v60 = vld [vmem:[#allocation28 + $0x5d0] sm:$0xff] }
 0xc47   :  { %11358 = vmatprep.subr.bf16.mxu0 %v12884_v48  ;;  %v9105_v48 = vld [vmem:[#allocation28 + $0x478] sm:$0xff] }
 0xc48   :  { %v12939_v35 = vcombine.low %v9101_v22, %v9105_v48 }
 0xc49   :  { %11236 = vmatpush1.bf16.msra.mxu1 %v12881_v13  ;;  %v12940_v13 = vcombine.high %v9101_v22, %v9105_v48  ;;  %v9157_v22 = vld [vmem:[#allocation28 + $0x618] sm:$0xff] }
 0xc4a   :  { %11359 = vmatpush1.bf16.msra.mxu0 %v12883_v18  ;;  %11237 = vmatprep.subr.bf16.mxu1 %v12890_v6  ;;  %v9109_v18 = vld [vmem:[#allocation28 + $0x498] sm:$0xff] }
 0xc4b   :  { %11360 = vmatprep.subr.bf16.mxu0 %v12892_v19  ;;  %v9113_v6 = vld [vmem:[#allocation28 + $0x4b8] sm:$0xff]  ;;  %v12937_v19 = vcombine.low %v9100_v16, %v9104_v1  ;;  %v9156_v1 = vld [vmem:[#allocation28 + $0x610] sm:$0xff] }
 0xc4c   :  { %v12948_v41 = vcombine.high %v9109_v18, %v9113_v6  ;;  %v9161_v48 = vld [vmem:[#allocation28 + $0x638] sm:$0xff] }
 0xc4d   :  { %11238 = vmatpush1.bf16.msra.mxu1 %v12889_v7  ;;  %v9120_v7 = vld [vmem:[#allocation28 + $0x4f0] sm:$0xff] }
 0xc4e   :  { %11361 = vmatpush1.bf16.msra.mxu0 %v12891_v11  ;;  %11239 = vmatprep.subr.bf16.mxu1 %v12898_v47  ;;  %v9117_v11 = vld [vmem:[#allocation28 + $0x4d8] sm:$0xff]  ;;  %v12954_v9 = vcombine.high %v9116_v56, %v9120_v7 }
 0xc4f   :  { %11362 = vmatprep.subr.bf16.mxu0 %v12900_v40  ;;  %v9121_v47 = vld [vmem:[#allocation28 + $0x4f8] sm:$0xff]  ;;  %v12945_v40 = vcombine.low %v9108_v54, %v9112_v2  ;;  %v12996_v2 = vcombine.high %v9157_v22, %v9161_v48 }
 0xc50   :  { %v12956_v17 = vcombine.high %v9117_v11, %v9121_v47 }
 0xc51   :  { %11240 = vmatpush1.bf16.msra.mxu1 %v12897_v26  ;;  %v9125_v26 = vld [vmem:[#allocation28 + $0x518] sm:$0xff] }
 0xc52   :  { %11363 = vmatpush1.bf16.msra.mxu0 %v12899_v55  ;;  %11241 = vmatprep.subr.bf16.mxu1 %v12906_v28  ;;  %v9129_v55 = vld [vmem:[#allocation28 + $0x538] sm:$0xff]  ;;  %v12955_v28 = vcombine.low %v9117_v11, %v9121_v47  ;;  %v9176_v11 = vld [vmem:[#allocation28 + $0x6b0] sm:$0xff] }
 0xc53   :  { %11364 = vmatprep.subr.bf16.mxu0 %v12908_v49  ;;  %v12962_v49 = vcombine.high %v9124_v58, %v9128_v63  ;;  %v12964_v14 = vcombine.high %v9125_v26, %v9129_v55  ;;  %v9173_v47 = vld [vmem:[#allocation28 + $0x698] sm:$0xff] }
 0xc55   :  { %11242 = vmatpush1.bf16.msra.mxu1 %v12905_v32  ;;  %v9137_v32 = vld [vmem:[#allocation28 + $0x578] sm:$0xff] }
 0xc56   :  { %11365 = vmatpush1.bf16.msra.mxu0 %v12907_v23  ;;  %11243 = vmatprep.subr.bf16.mxu1 %v12914_v20  ;;  %v12961_v23 = vcombine.low %v9124_v58, %v9128_v63  ;;  %v12963_v20 = vcombine.low %v9125_v26, %v9129_v55  ;;  %v12972_v39 = vcombine.high %v9133_v25, %v9137_v32  ;;  %v9180_v63 = vld [vmem:[#allocation28 + $0x6d0] sm:$0xff]  ;;  %v9181_v55 = vld [vmem:[#allocation28 + $0x6d8] sm:$0xff] }
 0xc57   :  { %11366 = vmatprep.subr.bf16.mxu0 %v12916_v53  ;;  %v12970_v53 = vcombine.high %v9132_v33, %v9136_v30  ;;  %v9184_v26 = vld [vmem:[#allocation28 + $0x6f0] sm:$0xff] }
 0xc59   :  { %11244 = vmatpush1.bf16.msra.mxu1 %v12913_v12  ;;  %v9145_v12 = vld [vmem:[#allocation28 + $0x5b8] sm:$0xff] }
 0xc5a   :  { %11367 = vmatpush1.bf16.msra.mxu0 %v12915_v27  ;;  %11245 = vmatprep.subr.bf16.mxu1 %v12922_v36  ;;  %v12969_v27 = vcombine.low %v9132_v33, %v9136_v30  ;;  %v12971_v36 = vcombine.low %v9133_v25, %v9137_v32  ;;  %v12980_v62 = vcombine.high %v9141_v34, %v9145_v12  ;;  %v9188_v30 = vld [vmem:[#allocation28 + $0x710] sm:$0xff]  ;;  %v9189_v32 = vld [vmem:[#allocation28 + $0x718] sm:$0xff] }
 0xc5b   :  { %11368 = vmatprep.subr.bf16.mxu0 %v12924_v29  ;;  %v12978_v29 = vcombine.high %v9140_v31, %v9144_v4  ;;  %v9192_v25 = vld [vmem:[#allocation28 + $0x730] sm:$0xff] }
 0xc5d   :  { %11246 = vmatpush1.bf16.msra.mxu1 %v12921_v21  ;;  %v9153_v21 = vld [vmem:[#allocation28 + $0x5f8] sm:$0xff] }
 0xc5e   :  { %11369 = vmatpush1.bf16.msra.mxu0 %v12923_v43  ;;  %11256 = vmatprep.subr.bf16.mxu1 %v12930_v24  ;;  %v12977_v43 = vcombine.low %v9140_v31, %v9144_v4  ;;  %v12979_v24 = vcombine.low %v9141_v34, %v9145_v12  ;;  %v12988_v16 = vcombine.high %v9149_v46, %v9153_v21  ;;  %v9196_v4 = vld [vmem:[#allocation28 + $0x750] sm:$0xff]  ;;  %v9197_v12 = vld [vmem:[#allocation28 + $0x758] sm:$0xff] }
 0xc5f   :  { %11379 = vmatprep.subr.bf16.mxu0 %v12932_v57  ;;  %v12986_v57 = vcombine.high %v9148_v60, %v9152_v51  ;;  %v9200_v34 = vld [vmem:[#allocation28 + $0x770] sm:$0xff] }
 0xc60   :  { %11248 = vmatmul.mubr.bf16.vlgmr.msra.gmra.mrb[88].mxu1 %v16490_v50 }
 0xc61   :  { %11371 = vmatmul.mubr.bf16.vlgmr.msra.gmra.mrb[188].mxu0 %v16490_v50  ;;  %11257 = vmatpush1.bf16.msra.mxu1 %v12929_v3  ;;  %v12947_v50 = vcombine.low %v9109_v18, %v9113_v6  ;;  %v9160_v3 = vld [vmem:[#allocation28 + $0x630] sm:$0xff]  ;;  %v9165_v6 = vld [vmem:[#allocation28 + $0x658] sm:$0xff] }
 0xc62   :  { %11288 = vmatprep.mubr.bf16.mxu1 %v16496_v52  ;;  %11380 = vmatpush1.bf16.msra.mxu0 %v12931_v37  ;;  %v12985_v37 = vcombine.low %v9148_v60, %v9152_v51  ;;  %v12994_v54 = vcombine.high %v9156_v1, %v9160_v3  ;;  %v9168_v18 = vld [vmem:[#allocation28 + $0x670] sm:$0xff] }
 0xc63   :  { %11411 = vmatprep.mubr.bf16.mxu0 %v16496_v52  ;;  %11258 = vmatprep.subr.bf16.mxu1 %v12938_v38  ;;  %v12953_v52 = vcombine.low %v9116_v56, %v9120_v7  ;;  %v12987_v38 = vcombine.low %v9149_v46, %v9153_v21  ;;  %v9172_v7 = vld [vmem:[#allocation28 + $0x690] sm:$0xff]  ;;  %v9205_v21 = vld [vmem:[#allocation28 + $0x798] sm:$0xff] }
 0xc64   :  { %11381 = vmatprep.subr.bf16.mxu0 %v12940_v13  ;;  %v9164_v13 = vld [vmem:[#allocation28 + $0x650] sm:$0xff] }
 0xc65   :  { %11259 = vmatpush1.bf16.msra.mxu1 %v12937_v19  ;;  %v9169_v19 = vld [vmem:[#allocation28 + $0x678] sm:$0xff]  ;;  %v9204_v51 = vld [vmem:[#allocation28 + $0x790] sm:$0xff] }
 0xc66   :  { %11382 = vmatpush1.bf16.msra.mxu0 %v12939_v35  ;;  %11260 = vmatprep.subr.bf16.mxu1 %v12946_v8  ;;  %v12993_v35 = vcombine.low %v9156_v1, %v9160_v3  ;;  %v12995_v8 = vcombine.low %v9157_v22, %v9161_v48  ;;  %v13004_v56 = vcombine.high %v9165_v6, %v9169_v19  ;;  %v9208_v46 = vld [vmem:[#allocation28 + $0x7b0] sm:$0xff]  ;;  %v9213_v48 = vld [vmem:[#allocation28 + $0x7d8] sm:$0xff] }
 0xc67   :  { %11383 = vmatprep.subr.bf16.mxu0 %v12948_v41  ;;  %v13002_v41 = vcombine.high %v9164_v13, %v9168_v18  ;;  %v9212_v3 = vld [vmem:[#allocation28 + $0x7d0] sm:$0xff] }
 0xc68   :  { %v9216_v22 = vld [vmem:[#allocation28 + $0x7f0] sm:$0xff] }
 0xc69   :  { %11261 = vmatpush1.bf16.msra.mxu1 %v12945_v40  ;;  %v9177_v40 = vld [vmem:[#allocation28 + $0x6b8] sm:$0xff] }
 0xc6a   :  { %11384 = vmatpush1.bf16.msra.mxu0 %v12947_v50  ;;  %11262 = vmatprep.subr.bf16.mxu1 %v12954_v9  ;;  %v13001_v50 = vcombine.low %v9164_v13, %v9168_v18  ;;  %v13003_v9 = vcombine.low %v9165_v6, %v9169_v19  ;;  %v13012_v58 = vcombine.high %v9173_v47, %v9177_v40  ;;  %v9220_v18 = vld [vmem:[#allocation28 + $0x810] sm:$0xff]  ;;  %v9221_v19 = vld [vmem:[#allocation28 + $0x818] sm:$0xff] }
 0xc6b   :  { %11385 = vmatprep.subr.bf16.mxu0 %v12956_v17  ;;  %v13010_v17 = vcombine.high %v9172_v7, %v9176_v11  ;;  %v9224_v6 = vld [vmem:[#allocation28 + $0x830] sm:$0xff] }
 0xc6d   :  { %11263 = vmatpush1.bf16.msra.mxu1 %v12953_v52  ;;  %v9185_v52 = vld [vmem:[#allocation28 + $0x6f8] sm:$0xff] }
 0xc6e   :  { %11386 = vmatpush1.bf16.msra.mxu0 %v12955_v28  ;;  %11264 = vmatprep.subr.bf16.mxu1 %v12962_v49  ;;  %v13009_v28 = vcombine.low %v9172_v7, %v9176_v11  ;;  %v13011_v49 = vcombine.low %v9173_v47, %v9177_v40  ;;  %v13020_v33 = vcombine.high %v9181_v55, %v9185_v52  ;;  %v9228_v11 = vld [vmem:[#allocation28 + $0x850] sm:$0xff]  ;;  %v9229_v40 = vld [vmem:[#allocation28 + $0x858] sm:$0xff] }
 0xc6f   :  { %11387 = vmatprep.subr.bf16.mxu0 %v12964_v14  ;;  %v13018_v14 = vcombine.high %v9180_v63, %v9184_v26  ;;  %v9232_v47 = vld [vmem:[#allocation28 + $0x870] sm:$0xff] }
 0xc71   :  { %11265 = vmatpush1.bf16.msra.mxu1 %v12961_v23  ;;  %v9193_v23 = vld [vmem:[#allocation28 + $0x738] sm:$0xff] }
 0xc72   :  { %11388 = vmatpush1.bf16.msra.mxu0 %v12963_v20  ;;  %11266 = vmatprep.subr.bf16.mxu1 %v12970_v53  ;;  %v13017_v20 = vcombine.low %v9180_v63, %v9184_v26  ;;  %v13019_v53 = vcombine.low %v9181_v55, %v9185_v52  ;;  %v13028_v31 = vcombine.high %v9189_v32, %v9193_v23  ;;  %v9236_v26 = vld [vmem:[#allocation28 + $0x890] sm:$0xff]  ;;  %v9237_v52 = vld [vmem:[#allocation28 + $0x898] sm:$0xff] }
 0xc73   :  { %11389 = vmatprep.subr.bf16.mxu0 %v12972_v39  ;;  %v13026_v39 = vcombine.high %v9188_v30, %v9192_v25  ;;  %v9240_v55 = vld [vmem:[#allocation28 + $0x8b0] sm:$0xff] }
 0xc75   :  { %11267 = vmatpush1.bf16.msra.mxu1 %v12969_v27  ;;  %v9201_v27 = vld [vmem:[#allocation28 + $0x778] sm:$0xff] }
 0xc76   :  { %11390 = vmatpush1.bf16.msra.mxu0 %v12971_v36  ;;  %11268 = vmatprep.subr.bf16.mxu1 %v12978_v29  ;;  %v13025_v36 = vcombine.low %v9188_v30, %v9192_v25  ;;  %v13027_v29 = vcombine.low %v9189_v32, %v9193_v23  ;;  %v13036_v60 = vcombine.high %v9197_v12, %v9201_v27  ;;  %v9244_v25 = vld [vmem:[#allocation28 + $0x8d0] sm:$0xff]  ;;  %v9245_v23 = vld [vmem:[#allocation28 + $0x8d8] sm:$0xff] }
 0xc77   :  { %11391 = vmatprep.subr.bf16.mxu0 %v12980_v62  ;;  %v13034_v62 = vcombine.high %v9196_v4, %v9200_v34  ;;  %v9248_v32 = vld [vmem:[#allocation28 + $0x8f0] sm:$0xff] }
 0xc79   :  { %11269 = vmatpush1.bf16.msra.mxu1 %v12977_v43  ;;  %v9209_v43 = vld [vmem:[#allocation28 + $0x7b8] sm:$0xff] }
 0xc7a   :  { %11392 = vmatpush1.bf16.msra.mxu0 %v12979_v24  ;;  %11270 = vmatprep.subr.bf16.mxu1 %v12986_v57  ;;  %v13033_v24 = vcombine.low %v9196_v4, %v9200_v34  ;;  %v13035_v57 = vcombine.low %v9197_v12, %v9201_v27  ;;  %v13044_v1 = vcombine.high %v9205_v21, %v9209_v43  ;;  %v9252_v4 = vld [vmem:[#allocation28 + $0x910] sm:$0xff]  ;;  %v9253_v12 = vld [vmem:[#allocation28 + $0x918] sm:$0xff] }
 0xc7b   :  { %11393 = vmatprep.subr.bf16.mxu0 %v12988_v16  ;;  %v13042_v16 = vcombine.high %v9204_v51, %v9208_v46  ;;  %v9256_v34 = vld [vmem:[#allocation28 + $0x930] sm:$0xff]  ;;  %v9257_v27 = vld [vmem:[#allocation28 + $0x938] sm:$0xff] }
 0xc7d   :  { %11271 = vmatpush1.bf16.msra.mxu1 %v12985_v37  ;;  %v9217_v37 = vld [vmem:[#allocation28 + $0x7f8] sm:$0xff] }
 0xc7e   :  { %11394 = vmatpush1.bf16.msra.mxu0 %v12987_v38  ;;  %11272 = vmatprep.subr.bf16.mxu1 %v12994_v54  ;;  %v13041_v38 = vcombine.low %v9204_v51, %v9208_v46  ;;  %v13043_v54 = vcombine.low %v9205_v21, %v9209_v43  ;;  %v13052_v13 = vcombine.high %v9213_v48, %v9217_v37  ;;  %v9264_v51 = vld [vmem:[#allocation28 + $0x970] sm:$0xff]  ;;  %v9261_v46 = vld [vmem:[#allocation28 + $0x958] sm:$0xff] }
 0xc7f   :  { %11395 = vmatprep.subr.bf16.mxu0 %v12996_v2  ;;  %v13050_v2 = vcombine.high %v9212_v3, %v9216_v22  ;;  %v9265_v21 = vld [vmem:[#allocation28 + $0x978] sm:$0xff]  ;;  %v13089_v43 = vcombine.low %v9252_v4, %v9256_v34 }
 0xc81   :  { %11273 = vmatpush1.bf16.msra.mxu1 %v12993_v35  ;;  %v9225_v35 = vld [vmem:[#allocation28 + $0x838] sm:$0xff] }
 0xc82   :  { %11396 = vmatpush1.bf16.msra.mxu0 %v12995_v8  ;;  %11274 = vmatprep.subr.bf16.mxu1 %v13002_v41  ;;  %v13049_v8 = vcombine.low %v9212_v3, %v9216_v22  ;;  %v13051_v41 = vcombine.low %v9213_v48, %v9217_v37  ;;  %v13060_v7 = vcombine.high %v9221_v19, %v9225_v35  ;;  %v9272_v3 = vld [vmem:[#allocation28 + $0x9b0] sm:$0xff]  ;;  %v9269_v22 = vld [vmem:[#allocation28 + $0x998] sm:$0xff] }
 0xc83   :  { %11397 = vmatprep.subr.bf16.mxu0 %v13004_v56  ;;  %v13058_v56 = vcombine.high %v9220_v18, %v9224_v6  ;;  %v9273_v48 = vld [vmem:[#allocation28 + $0x9b8] sm:$0xff] }
 0xc85   :  { %11275 = vmatpush1.bf16.msra.mxu1 %v13001_v50  ;;  %v9233_v50 = vld [vmem:[#allocation28 + $0x878] sm:$0xff] }
 0xc86   :  { %11398 = vmatpush1.bf16.msra.mxu0 %v13003_v9  ;;  %11276 = vmatprep.subr.bf16.mxu1 %v13010_v17  ;;  %v13057_v9 = vcombine.low %v9220_v18, %v9224_v6  ;;  %v13059_v17 = vcombine.low %v9221_v19, %v9225_v35  ;;  %v13068_v63 = vcombine.high %v9229_v40, %v9233_v50  ;;  %v9280_v18 = vld [vmem:[#allocation28 + $0x9f0] sm:$0xff]  ;;  %v9277_v6 = vld [vmem:[#allocation28 + $0x9d8] sm:$0xff] }
 0xc87   :  { %11399 = vmatprep.subr.bf16.mxu0 %v13012_v58  ;;  %v13066_v58 = vcombine.high %v9228_v11, %v9232_v47  ;;  %v9281_v19 = vld [vmem:[#allocation28 + $0x9f8] sm:$0xff] }
 0xc89   :  { %11277 = vmatpush1.bf16.msra.mxu1 %v13009_v28  ;;  %v9241_v28 = vld [vmem:[#allocation28 + $0x8b8] sm:$0xff] }
 0xc8a   :  { %11400 = vmatpush1.bf16.msra.mxu0 %v13011_v49  ;;  %11278 = vmatprep.subr.bf16.mxu1 %v13018_v14  ;;  %v13065_v49 = vcombine.low %v9228_v11, %v9232_v47  ;;  %v13067_v14 = vcombine.low %v9229_v40, %v9233_v50  ;;  %v13076_v30 = vcombine.high %v9237_v52, %v9241_v28 }
 0xc8b   :  { %11401 = vmatprep.subr.bf16.mxu0 %v13020_v33  ;;  %v13074_v33 = vcombine.high %v9236_v26, %v9240_v55  ;;  %v13115_v11 = vcombine.low %v9277_v6, %v9281_v19 }
 0xc8d   :  { %11279 = vmatpush1.bf16.msra.mxu1 %v13017_v20  ;;  %v9249_v20 = vld [vmem:[#allocation28 + $0x8f8] sm:$0xff] }
 0xc8e   :  { %11402 = vmatpush1.bf16.msra.mxu0 %v13019_v53  ;;  %11280 = vmatprep.subr.bf16.mxu1 %v13026_v39  ;;  %v13073_v53 = vcombine.low %v9236_v26, %v9240_v55  ;;  %v13082_v39 = vcombine.high %v9244_v25, %v9248_v32  ;;  %v15066_v55 = vld [vmem:[#allocation31 + $0x40] sm:$0xff]  }
 0xc8f   :  { %11403 = vmatprep.subr.bf16.mxu0 %v13028_v31  ;;  %v13084_v31 = vcombine.high %v9245_v23, %v9249_v20 }
 0xc91   :  { %11281 = vmatpush1.bf16.msra.mxu1 %v13025_v36  ;;  %v13081_v36 = vcombine.low %v9244_v25, %v9248_v32  ;;  %v15074_v25 = vld [vmem:[#allocation31 + $0x60] sm:$0xff]  }
 0xc92   :  { %11404 = vmatpush1.bf16.msra.mxu0 %v13027_v29  ;;  %11282 = vmatprep.subr.bf16.mxu1 %v13034_v62  ;;  %v13083_v29 = vcombine.low %v9245_v23, %v9249_v20  ;;  %v13090_v62 = vcombine.high %v9252_v4, %v9256_v34  ;;  %v15075_v32 = vld [vmem:[#allocation31 + $0x20] sm:$0xff]   ;;  %v15076_v23 = vld [vmem:[#allocation31 + $0x68] sm:$0xff]   ;;  %v9282_v4 = vld [vmem:[#allocation29] sm:$0xff] }
 0xc93   :  { %11405 = vmatprep.subr.bf16.mxu0 %v13036_v60  ;;  %v9260_v60 = vld [vmem:[#allocation28 + $0x950] sm:$0xff]  ;;  %v9287_v34 = vrot.slane %v9282_v4, %v16104_v45 }
 0xc94   :  { %v13097_v37 = vcombine.low %v9260_v60, %v9264_v51  ;;  %v15077_v20 = vld [vmem:[#allocation31 + $0x28] sm:$0xff]  }
 0xc95   :  { %11283 = vmatpush1.bf16.msra.mxu1 %v13033_v24  ;;  %v13091_v24 = vcombine.low %v9253_v12, %v9257_v27 }
 0xc96   :  { %11406 = vmatpush1.bf16.msra.mxu0 %v13035_v57  ;;  %11284 = vmatprep.subr.bf16.mxu1 %v13042_v16  ;;  %v13098_v57 = vcombine.high %v9260_v60, %v9264_v51  ;;  %v13100_v16 = vcombine.high %v9261_v46, %v9265_v21 }
 0xc97   :  { %11407 = vmatprep.subr.bf16.mxu0 %v13044_v1  ;;  %v9268_v1 = vld [vmem:[#allocation28 + $0x990] sm:$0xff] }
 0xc98   :  { %v13105_v35 = vcombine.low %v9268_v1, %v9272_v3 }
 0xc99   :  { %11285 = vmatpush1.bf16.msra.mxu1 %v13041_v38  ;;  %v13099_v38 = vcombine.low %v9261_v46, %v9265_v21 }
 0xc9a   :  { %11408 = vmatpush1.bf16.msra.mxu0 %v13043_v54  ;;  %11286 = vmatprep.subr.bf16.mxu1 %v13050_v2  ;;  %v13106_v54 = vcombine.high %v9268_v1, %v9272_v3  ;;  %v13108_v2 = vcombine.high %v9269_v22, %v9273_v48  ;;  %v9314_v1 = vsub.s32 7, %v16101_v44 }
 0xc9b   :  { %11409 = vmatprep.subr.bf16.mxu0 %v13052_v13  ;;  %v9276_v13 = vld [vmem:[#allocation28 + $0x9d0] sm:$0xff] }
 0xc9d   :  { %11287 = vmatpush1.bf16.msra.mxu1 %v13049_v8  ;;  %v13107_v8 = vcombine.low %v9269_v22, %v9273_v48  ;;  %v9303_v48 = vrot.slane %v9282_v4, %v967_v5 }
 0xc9e   :  { %11410 = vmatpush1.bf16.msra.mxu0 %v13051_v41  ;;  %11297 = vmatprep.subr.bf16.mxu1 %v13058_v56  ;;  %v13114_v41 = vcombine.high %v9276_v13, %v9280_v18  ;;  %v13116_v56 = vcombine.high %v9277_v6, %v9281_v19 }
 0xc9f   :  { %11420 = vmatprep.subr.bf16.mxu0 %v13060_v7  ;;  %v13113_v7 = vcombine.low %v9276_v13, %v9280_v18 }
 0xca0   :  { %11289 = vmatmul.mubr.bf16.vlgmr.msra.gmra.mrb[88].mxu1 %v16504_v15 }
 0xca1   :  { %11412 = vmatmul.mubr.bf16.vlgmr.msra.gmra.mrb[188].mxu0 %v16504_v15  ;;  %11298 = vmatpush1.bf16.msra.mxu1 %v13057_v9  ;;  %v13075_v15 = vcombine.low %v9237_v52, %v9241_v28  ;;  %v15067_v52 = vld [vmem:[#allocation31] sm:$0xff]   ;;  %v15068_v28 = vld [vmem:[#allocation31 + $0x48] sm:$0xff]  }
 0xca2   :  { %11421 = vmatpush1.bf16.msra.mxu0 %v13059_v17  ;;  %11299 = vmatprep.subr.bf16.mxu1 %v13066_v58 }
 0xca3   :  { %11422 = vmatprep.subr.bf16.mxu0 %v13068_v63  ;;  %11329 = vmatprep.mubr.bf16.mxu1 %v15594_v0 }
 0xca4   :  { %11452 = vmatprep.mubr.bf16.mxu0 %v15594_v0  ;;  %v13092_v0 = vcombine.high %v9253_v12, %v9257_v27  ;;  %v9295_v12 = vrot.slane %v9282_v4, %v16109_v42  ;;  %v9291_v27 = vrot.slane %v9282_v4, %v16112_v61  ;;  %v9310_v61 = vsub.s32 6, %v16101_v44 }
 0xca5   :  { %11300 = vmatpush1.bf16.msra.mxu1 %v13065_v49  ;;  %v15069_v49 = vld [vmem:[#allocation31 + $0x8] sm:$0xff]  }
 0xca6   :  { %11423 = vmatpush1.bf16.msra.mxu0 %v13067_v14  ;;  %11301 = vmatprep.subr.bf16.mxu1 %v13074_v33  ;;  %v15070_v14 = vld [vmem:[#allocation31 + $0x50] sm:$0xff]  }
 0xca7   :  { %11424 = vmatprep.subr.bf16.mxu0 %v13076_v30  ;;  %v15071_v33 = vld [vmem:[#allocation31 + $0x10] sm:$0xff]   ;;  %v15073_v30 = vld [vmem:[#allocation31 + $0x18] sm:$0xff]  }
 0xca9   :  { %11302 = vmatpush1.bf16.msra.mxu1 %v13073_v53  ;;  %v15078_v53 = vld [vmem:[#allocation31 + $0x70] sm:$0xff]  }
 0xcaa   :  { %11425 = vmatpush1.bf16.msra.mxu0 %v13075_v15  ;;  %11303 = vmatprep.subr.bf16.mxu1 %v13082_v39  ;;  %v15079_v15 = vld [vmem:[#allocation31 + $0x30] sm:$0xff]   ;;  %v15080_v39 = vld [vmem:[#allocation31 + $0x78] sm:$0xff]  }
 0xcab   :  { %11426 = vmatprep.subr.bf16.mxu0 %v13084_v31  ;;  %v15081_v31 = vld [vmem:[#allocation31 + $0x38] sm:$0xff]  }
 0xcad   :  { %11304 = vmatpush1.bf16.msra.mxu1 %v13081_v36  ;;  %v9299_v36 = vrot.slane %v9282_v4, %v963_v59 }
 0xcae   :  { %11427 = vmatpush1.bf16.msra.mxu0 %v13083_v29  ;;  %11305 = vmatprep.subr.bf16.mxu1 %v13090_v62 }
 0xcaf   :  { %11428 = vmatprep.subr.bf16.mxu0 %v13092_v0 }
 0xcb1   :  { %11306 = vmatpush1.bf16.msra.mxu1 %v13089_v43 }
 0xcb2   :  { %11429 = vmatpush1.bf16.msra.mxu0 %v13091_v24  ;;  %11307 = vmatprep.subr.bf16.mxu1 %v13098_v57  ;;  %v9306_v57 = vsub.s32 5, %v16101_v44 }
 0xcb3   :  { %11430 = vmatprep.subr.bf16.mxu0 %v13100_v16 }
 0xcb5   :  { %11308 = vmatpush1.bf16.msra.mxu1 %v13097_v37 }
 0xcb6   :  { %11431 = vmatpush1.bf16.msra.mxu0 %v13099_v38  ;;  %11309 = vmatprep.subr.bf16.mxu1 %v13106_v54  ;;  %v9311_v38 = vrot.slane %v9282_v4, %v9310_v61  ;;  %v9307_v54 = vrot.slane %v9282_v4, %v9306_v57 }
 0xcb7   :  { %11432 = vmatprep.subr.bf16.mxu0 %v13108_v2  ;;  %v9315_v2 = vrot.slane %v9282_v4, %v9314_v1 }
 0xcb9   :  { %11310 = vmatpush1.bf16.msra.mxu1 %v13105_v35 }
 0xcba   :  { %11433 = vmatpush1.bf16.msra.mxu0 %v13107_v8  ;;  %11311 = vmatprep.subr.bf16.mxu1 %v13114_v41 }
 0xcbb   :  { %11434 = vmatprep.subr.bf16.mxu0 %v13116_v56 }
 0xcbd   :  { %11312 = vmatpush1.bf16.msra.mxu1 %v13113_v7 }
 0xcbe   :  { %11435 = vmatpush1.bf16.msra.mxu0 %v13115_v11  ;;  %13622 = vmatprep.subr.bf16.mxu1 %v15066_v55 }
 0xcc0   :  { %11330 = vmatmul.mubr.bf16.vlgmr.msra.gmra.mrb[88].mxu1 %v16514_v10 }
 0xcc1   :  { %11453 = vmatmul.mubr.bf16.vlgmr.msra.gmra.mrb[188].mxu0 %v16514_v10  ;;  %13623 = vmatpush3.bf16.msra.mxu1 %v15067_v52  ;;  %v15072_v10 = vld [vmem:[#allocation31 + $0x58] sm:$0xff]  }
 0xcc2   :  { %13624 = vmatprep.subr.bf16.mxu1 %v15068_v28 }
 0xcc5   :  { %13625 = vmatpush3.bf16.msra.mxu1 %v15069_v49 }
 0xcc6   :  { %13626 = vmatprep.subr.bf16.mxu1 %v15070_v14 }
 0xcc9   :  { %13627 = vmatpush3.bf16.msra.mxu1 %v15071_v33 }
 0xcca   :  { %13628 = vmatprep.subr.bf16.mxu1 %v15072_v10 }
 0xccd   :  { %13629 = vmatpush3.bf16.msra.mxu1 %v15073_v30 }
 0xcce   :  { %13630 = vmatprep.subr.bf16.mxu1 %v15074_v25 }
 0xcd1   :  { %13631 = vmatpush3.bf16.msra.mxu1 %v15075_v32 }
 0xcd2   :  { %13632 = vmatprep.subr.bf16.mxu1 %v15076_v23 }
 0xcd5   :  { %13633 = vmatpush3.bf16.msra.mxu1 %v15077_v20 }
 0xcd6   :  { %13634 = vmatprep.subr.bf16.mxu1 %v15078_v53 }
 0xcd9   :  { %13635 = vmatpush3.bf16.msra.mxu1 %v15079_v15 }
 0xcda   :  { %13636 = vmatprep.subr.bf16.mxu1 %v15080_v39 }
 0xcdd   :  { %13637 = vmatpush3.bf16.msra.mxu1 %v15081_v31 }
 0xcf3   :  { %v11085_v47 = vpop.f32.mrb[84].mxu1  ;;  %v11208_v40 = vpop.f32.mrb[184].mxu0 }
 0xcf4   :  { %v11087_v50 = vpop.f32.mrb[85].mxu1  ;;  %v11210_v9 = vpop.f32.mrb[185].mxu0  ;;  %v13736_v29 = vadd.f32 %v11085_v47, %v9287_v34  ;;  %v13738_v62 = vadd.f32 %v11208_v40, %v9295_v12 }
 0xcf5   :  { %v11089_v17 = vpop.f32.mrb[86].mxu1  ;;  %v11212_v58 = vpop.f32.mrb[186].mxu0  ;;  %v13737_v0 = vadd.f32 %v11087_v50, %v9291_v27  ;;  %v13739_v60 = vadd.f32 %v11210_v9, %v9299_v36  ;;  %v13123_v50 = vld.sshfl [vmem:[#allocation14] sm:$0x33 pattern:$0x76325410] }
 0xcf6   :  { %v11090_v63 = vpop.f32.mrb[87].mxu1  ;;  %v11213_v26 = vpop.f32.mrb[187].mxu0  ;;  %v13117_v51 = vmul.f32 -1.442695, %v13736_v29  ;;  %v13119_v46 = vmul.f32 -1.442695, %v13738_v62 }
 0xcf7   :  { %v13118_v21 = vmul.f32 -1.442695, %v13737_v0  ;;  %v13120_v43 = vmul.f32 -1.442695, %v13739_v60  ;;  %v11508_v63 = vcombine.high %v13123_v50, %v13123_v50  ;;  %v13126_v0 = vld [vmem:[#allocation32] ss:$0 sm:$0xff] }
 0xcf8   :  { %15082 = vpow2.f32 %v13117_v51 }
 0xcf9   :  { %15084 = vpow2.f32 %v13119_v46 }
 0xcfa   :  { %15086 = vpow2.f32 %v13118_v21 }
 0xcfb   :  { %15088 = vpow2.f32 %v13120_v43  ;;  %v13143_v43 = vld [vmem:[#allocation34] ss:$0 sm:$0xff] }
 0xd02   :  { %v15083_v45 = vpop.eup %15082 }
 0xd03   :  { %v15085_v24 = vpop.eup %15084  ;;  %v11467_v16 = vadd.f32 1.0, %v15083_v45 }
 0xd04   :  { %v15087_v42 = vpop.eup %15086  ;;  %v11479_v3 = vadd.f32 1.0, %v15085_v24 }
 0xd05   :  { %v15089_v59 = vpop.eup %15088  ;;  %v11468_v22 = vadd.f32 1.0, %v15087_v42  ;;  %15090 = vrcp.f32 %v11467_v16 }
 0xd06   :  { %v11480_v37 = vadd.f32 1.0, %v15089_v59  ;;  %15092 = vrcp.f32 %v11479_v3 }
 0xd07   :  { %15094 = vrcp.f32 %v11468_v22 }
 0xd08   :  { %15096 = vrcp.f32 %v11480_v37 }
 0xd0f   :  { %v15091_v9 = vpop.eup %15090 }
 0xd10   :  { %v15093_v17 = vpop.eup %15092 }
 0xd11   :  { %v15095_v58 = vpop.eup %15094  ;;  %v11511_v28 = vmul.f32 %v15093_v17, %v13123_v50 }
 0xd12   :  { %v15097_v26 = vpop.eup %15096 }
 0xd13   :  { %v11512_v14 = vmul.f32 %v15097_v26, %v11508_v63 }
 0xd93   :  { %v11331_v13 = vpop.f32.mrb[88].mxu1 }
 0xd94   :  { %v13740_v18 = vadd.f32 %v11331_v13, %v9303_v48  ;;  %v11454_v6 = vpop.f32.mrb[188].mxu0  ;;  %v11333_v19 = vpop.f32.mrb[89].mxu1 }
 0xd95   :  { %v13742_v35 = vadd.f32 %v11454_v6, %v9311_v38  ;;  %v13741_v8 = vadd.f32 %v11333_v19, %v9307_v54  ;;  %v11456_v41 = vpop.f32.mrb[189].mxu0  ;;  %v11335_v56 = vpop.f32.mrb[90].mxu1 }
 0xd96   :  { %15098 = vtanh.f32 %v13740_v18  ;;  %v13743_v7 = vadd.f32 %v11456_v41, %v9315_v2  ;;  %v11458_v44 = vpop.f32.mrb[190].mxu0  ;;  %v11336_v5 = vpop.f32.mrb[91].mxu1 }
 0xd97   :  { %v13121_v11 = vmul.f32 -1.442695, %v13742_v35  ;;  %15100 = vtanh.f32 %v13741_v8  ;;  %v11459_v47 = vpop.f32.mrb[191].mxu0 }
 0xd98   :  { %v13122_v40 = vmul.f32 -1.442695, %v13743_v7 }
 0xd99   :  { %15102 = vpow2.f32 %v13121_v11 }
 0xd9a   :  { %15104 = vpow2.f32 %v13122_v40 }
 0xda0   :  { %v15099_v55 = vpop.eup %15098 }
 0xda1   :  { %v15101_v52 = vpop.eup %15100  ;;  %v11513_v49 = vmul.f32 %v15099_v55, %v15091_v9 }
 0xda2   :  { %v11514_v33 = vmul.f32 %v15101_v52, %v15095_v58 }
 0xda3   :  { %v15103_v10 = vpop.eup %15102  ;;  %v11515_v30 = vadd.f32 %v11513_v49, %v11511_v28 }
 0xda4   :  { %v15105_v25 = vpop.eup %15104  ;;  %v11493_v32 = vadd.f32 1.0, %v15103_v10  ;;  %v11516_v23 = vadd.f32 %v11514_v33, %v11512_v14 }
 0xda5   :  { %15106 = vtanh.f32 %v11515_v30  ;;  %v11494_v20 = vadd.f32 1.0, %v15105_v25 }
 0xda6   :  { %15108 = vrcp.f32 %v11493_v32  ;;  %v11535_v53 = vcombine.low %v11515_v30, %v11516_v23 }
 0xda7   :  { %15110 = vtanh.f32 %v11516_v23 }
 0xda8   :  { %15112 = vrcp.f32 %v11494_v20  ;;  %13125 = vst.sshfl [vmem:[#allocation38] sm:$0x33 pattern:$0x76325410] %v11535_v53 }
 0xdaf   :  { %v15107_v15 = vpop.eup %15106 }
 0xdb0   :  { %v15109_v39 = vpop.eup %15108 }
 0xdb1   :  { %v15111_v31 = vpop.eup %15110  ;;  %v11519_v4 = vmul.f32 %v15109_v39, %v15107_v15 }
 0xdb2   :  { %v15113_v34 = vpop.eup %15112 }
 0xdb3   :  { %v11520_v12 = vmul.f32 %v15113_v34, %v15111_v31  ;;  %v11545_v29 = vpack.c.bf16 %v11519_v4, %v11519_v4 }
 0xdb5   :  { %v11546_v27 = vpack.c.bf16 %v11520_v12, %v11520_v12  ;;  %v11523_v36 = vcombine.low %v11519_v4, %v11520_v12 }
 0xdb7   :  { %11714 = vmatprep.mubr.bf16.mxu1 %v11546_v27  ;;  %13124 = vst.sshfl [vmem:[#allocation37] sm:$0x33 pattern:$0x76325410] %v11523_v36 }
 0xdb8   :  { %11715 = vmatmul.mubr.bf16.vlgmr.msra.gmra.mrb[92].mxu1 %v11545_v29 }
 0xe8b   :  { %v13638_v62 = vpop.f32.mrb[92].mxu1 }
 0xe8c   :  { %v13639_v60 = vpop.f32.mrb[93].mxu1 }
 0xe8d   :  { %v13640_v51 = vadd.f32 %v13639_v60, %v13638_v62  ;;  %v13641_v46 = vpop.f32.mrb[94].mxu1 }
 0xe8e   :  { %v13642_v21 = vpop.f32.mrb[95].mxu1 }
 0xe8f   :  { %v11717_v45 = vadd.f32 %v13640_v51, %v13126_v0 }
 0xe91   :  { %v11729_v24 = vadd.f32 %v13143_v43, %v11717_v45 }
 0xe93   :  { %v11730_v42 = vsel %vm415_vm0, %v11729_v24, -inf }
 0xe94   :  { %11731 = vmax.xlane.f32.xlu0 %v11730_v42 }
 0xf21   :  { %v11732_v61 = vpop.xlane.xlu0 %11731 }
 0xf22   :  { %v11733_v57 = vsub.f32 %v11729_v24, %v11732_v61 }
 0xf24   :  { %v11734_v59 = vmul.f32 1.442695, %v11733_v57 }
 0xf26   :  { %15114 = vpow2.f32 %v11734_v59 }
 0xf30   :  { %v15115_v16 = vpop.eup %15114 }
 0xf31   :  { %v11736_v1 = vsel %vm415_vm0, %v15115_v16, 0.0 }
 0xf32   :  { %11737 = vadd.xlane.f32.xlu0 %v11736_v1 }
 0xf33   :  { %15513 = shalt.err (!%p15510_p6)
}
 0xf34   :  { %s15514_s14 = scalar_lea.hbm %s16591_s22, 64 }
 0xf35   :  { %p15515_p7 = scmp.ne.s32.totalorder %s16591_s22, %s15514_s14  ;;  %p15518_p8 = scmp.lt.u32.totalorder %s15514_s14, %s16591_s22 }
 0xf37   :  { %p15520_p9 = pnand %p15518_p8, %p15515_p7 }
 0xf39   :  { %15523 = shalt.err (!%p15520_p9)
}
 0xf3a   :  { %11762 = dma.vmem_to_hbm [thread:$0]  %s11760_s1, 64, %s16591_s22, [#allocation13]  }
 0xf3b   :  { %s15524_s5 = scalar_lea.vmem %s11770_s6, 64  ;;  %p15529_p11 = scmp.lt.s32.totalorder %s11770_s6, %s11770_s6 }
 0xf3c   :  { %p15525_p10 = scmp.ne.s32.totalorder %s11770_s6, %s15524_s5  ;;  %p15530_p12 = scmp.lt.s32.totalorder %s15524_s5, %s15524_s5 }
 0xf3e   :  { %p15531_p13 = por %p15530_p12, %p15529_p11 }
 0xf40   :  { %p15532_p0 = pnand %p15531_p13, %p15525_p10 }
 0xf42   :  { %15535 = shalt.err (!%p15532_p0)
}
 0xf43   :  { %s15536_s2 = scalar_lea.hbm %s16592_s23, 64 }
 0xf44   :  { %p15537_p1 = scmp.ne.s32.totalorder %s16592_s23, %s15536_s2  ;;  %p15540_p2 = scmp.lt.u32.totalorder %s15536_s2, %s16592_s23 }
 0xf46   :  { %p15542_p3 = pnand %p15540_p2, %p15537_p1 }
 0xf48   :  { %15545 = shalt.err (!%p15542_p3)
}
 0xf49   :  { %11772 = dma.vmem_to_hbm [thread:$0]  %s11770_s6, 64, %s16592_s23, [#allocation39]   ;;  %v13144_v22 = vld [vmem:[#allocation35] ss:$0 sm:$0xff] }
 0xf4a   :  { %v11748_v37 = vmul.f32 %v13144_v22, %v11717_v45 }
 0xfbf   :  { %v11738_v3 = vpop.xlane.xlu0 %11737 }
 0xfc0   :  { %15116 = vrcp.f32 %v11738_v3 }
 0xfca   :  { %v15117_v48 = vpop.eup %15116 }
 0xfcb   :  { %v11740_v38 = vmul.f32 %v15117_v48, %v15115_v16 }
 0xfcd   :  { %v11749_v54 = vadd.f32 %v11748_v37, %v11740_v38 }
 0xfcf   :  { %11750 = vst [vmem:[%s16590_s21] sm:$0x3] %v11749_v54 }
 0xfd0   :  { %15564 = dma.done.wait [#allocation13], 64  }
 0xfd1   :  { %15565 = vsyncadd [#allocation13], 4294967232 }
 0xfd2   :  { %15566 = dma.done.wait [#allocation39], 64  }
 0xfd3   :  { %15567 = vsyncadd [#allocation39], 4294967232 }
 0xfd4   :  { %11781 = vsyncpa [#allocation12], 1 }
 0xfd5   :  { %11782 = vsyncpa [#allocation15], 1 }
 0xfd6   :  { %11783 = vsyncpa [#allocation18], 1 }
 0xfd7   :  { %11784 = vsyncpa [#allocation21], 1 }
 0xfd8   :  { %11785 = vsyncpa [#allocation24], 1 }
 0xfd9   :  { %11786 = vsyncpa [#allocation27], 1 }
 0xfda   :  { %11787 = vsyncpa [#allocation30], 1 }
 0xfdb   :  { %11788 = vsyncpa [#allocation33], 1 }
 0xfdc   :  { %11789 = vsyncpa [#allocation36], 1 }
 0xfdd   :  { %11790 = vsyncpa [#allocation13], 1 }
 0xfde   :  { %11791 = vsyncpa [#allocation39], 1 }

</bundles_post_ra>
